<compile_context>
chip_gen: v7x
topology: tpu7x:2x2x1
jax: 0.10.0
libtpu: 0.0.40
codegen_flags: <defaults>
</compile_context>

<pallas_src>
import jax
import jax.numpy as jnp
from jax.experimental import pallas as pl
from jax.experimental.pallas import tpu as pltpu

NUM_FREQS = 4                   # get_embedder(4, 1): multires=4, input_dims=1
EMB_DIM = 1 + 2 * NUM_FREQS     # include_input + (sin, cos) per freq = 9
HIDDEN = (128, 128, 64)
OUT_DIM = 3


def _round_up(n, m):
    return ((n + m - 1) // m) * m


def _softplus(x):
    # matches F.softplus (beta=1), numerically stable
    return jnp.maximum(x, 0.0) + jnp.log1p(jnp.exp(-jnp.abs(x)))


def energy_int_kernel(x_ref, sp_ref, w1, b1, w2, b2, w3, b3, w4, b4, o_ref):
    # x_ref: (1, T) f32, points on the lane axis.
    x_row = x_ref[...]

    # Dense NeRF embedding: one sin over a fully-occupied (8, T) block.
    # rows: sin(1x), cos(1x), sin(2x), cos(2x), sin(4x), cos(4x), sin(8x), cos(8x)
    scale = sp_ref[:, 0:1]                                  # (8, 1) = [1,1,2,2,4,4,8,8]
    phase = sp_ref[:, 1:2]                                  # (8, 1) = [0,pi/2,...]
    sin_block = jnp.sin(x_row * scale + phase)              # (8, T) f32, single EUP pass
    emb = jnp.concatenate([x_row, sin_block], axis=0)       # (9, T) f32 — torch feature order
    emb_b = emb.astype(jnp.bfloat16)

    # All layers: bf16 operands on the MXU, f32 accumulation; bias broadcasts over lanes.
    h = jnp.dot(w1[...], emb_b, preferred_element_type=jnp.float32) + b1[...]   # (128, T)
    h = jnp.maximum(h, 0.0)
    h = jnp.dot(w2[...], h.astype(jnp.bfloat16),
                preferred_element_type=jnp.float32) + b2[...]                    # (128, T)
    h = jnp.maximum(h, 0.0)
    h = jnp.dot(w3[...], h.astype(jnp.bfloat16),
                preferred_element_type=jnp.float32) + b3[...]                    # (64, T)
    h = jnp.maximum(h, 0.0)
    y = jnp.dot(w4[...], h.astype(jnp.bfloat16),
                preferred_element_type=jnp.float32) + b4[...]                    # (3, T)

    o_ref[...] = _softplus(y)


def energy_int(x, params, *, tile_m=2048, lane_major_out=False):
    """x: (N, 1) float32 -> (N, 3) float32 (or (3, N) if lane_major_out)."""
    (w1, b1), (w2, b2), (w3, b3), (w4, b4) = params

    N = x.shape[0]
    # Shrink the tile for small N so padding waste stays bounded; keep lane alignment.
    tile_eff = min(tile_m, _round_up(max(N, 1), 128))
    assert tile_eff % 128 == 0, "tile width must be a multiple of 128 (lane width)"

    n_pad = (-N) % tile_eff
    n_total = N + n_pad
    x_t = x.reshape(1, N).astype(jnp.float32)
    if n_pad:
        x_t = jnp.pad(x_t, ((0, 0), (0, n_pad)))

    # bf16 at the MXU boundary for every layer (f32 accumulation inside the kernel).
    w1b, w2b, w3b, w4b = (w.astype(jnp.bfloat16) for w in (w1, w2, w3, w4))

    # Per-row scale/phase columns for the dense sin trick (cos(a) = sin(a + pi/2)).
    freqs = 2.0 ** jnp.arange(NUM_FREQS, dtype=jnp.float32)                    # [1,2,4,8]
    scale = jnp.repeat(freqs, 2).reshape(2 * NUM_FREQS, 1)                     # [1,1,2,2,4,4,8,8]
    phase = jnp.tile(jnp.array([0.0, jnp.pi / 2.0], jnp.float32),
                     NUM_FREQS).reshape(2 * NUM_FREQS, 1)                      # [0,pi/2,...]
    sp = jnp.concatenate([scale, phase], axis=1)                               # (8, 2)

    # ~16 KB of live activation per lane column; cap at 56 MiB so it fits v7x (64 MiB VMEM)
    # with headroom while still unlocking big tiles on v5e/v6e.
    vmem_limit = int(min(56 * 1024 * 1024, max(32 * 1024 * 1024, 16 * 1024 * tile_eff)))

    def full_spec(a):
        return pl.BlockSpec(a.shape, lambda i: (0,) * a.ndim)

    out = pl.pallas_call(
        energy_int_kernel,
        out_shape=jax.ShapeDtypeStruct((OUT_DIM, n_total), jnp.float32),
        grid_spec=pltpu.PrefetchScalarGridSpec(
            num_scalar_prefetch=0,
            grid=(n_total // tile_eff,),
            in_specs=[
                pl.BlockSpec((1, tile_eff), lambda i: (0, i)),   # x row tile (lane-dense)
                full_spec(sp),
                full_spec(w1b), full_spec(b1),
                full_spec(w2b), full_spec(b2),
                full_spec(w3b), full_spec(b3),
                full_spec(w4b), full_spec(b4),
            ],
            out_specs=pl.BlockSpec((OUT_DIM, tile_eff), lambda i: (0, i)),
        ),
        compiler_params=pltpu.CompilerParams(
            dimension_semantics=("parallel",),      # megacore sharding on v7x
            vmem_limit_bytes=vmem_limit,
        ),
    )(x_t, sp, w1b, b1, w2b, b2, w3b, b3, w4b, b4)

    out = out[:, :N]
    if lane_major_out:
        return out                                   # (3, N): skips the extra HBM relayout
    return out.T                                     # (N, 3): matches the PyTorch module


def init_params(key):
    # Deterministic init mimicking torch.nn.Linear default (uniform +/- 1/sqrt(fan_in)),
    # stored in torch (out_features, in_features) layout; bias as (out_features, 1).
    dims = [EMB_DIM, *HIDDEN, OUT_DIM]
    params = []
    for i in range(len(dims) - 1):
        fan_in, fan_out = dims[i], dims[i + 1]
        key, kw, kb = jax.random.split(key, 3)
        bound = 1.0 / jnp.sqrt(jnp.float32(fan_in))
        w = jax.random.uniform(kw, (fan_out, fan_in), jnp.float32, -bound, bound)
        b = jax.random.uniform(kb, (fan_out, 1), jnp.float32, -bound, bound)
        params.append((w, b))
    return params


def reference(x, params):
    # Plain-JAX f32 reference matching the PyTorch forward semantics.
    feats = [x]
    for f in range(NUM_FREQS):
        a = x * (2.0 ** f)
        feats.append(jnp.sin(a))
        feats.append(jnp.cos(a))
    h = jnp.concatenate(feats, axis=-1)                          # (N, 9)
    n_layers = len(params)
    for i, (w, b) in enumerate(params):
        h = h @ w.T + b[:, 0]
        if i < n_layers - 1:
            h = jax.nn.relu(h)
    return jax.nn.softplus(h)


if __name__ == "__main__":
    key = jax.random.PRNGKey(0)
    k_x, k_p = jax.random.split(key)

    N = 5000                                # ragged; spans multiple 2048-wide lane tiles
    x = jax.random.normal(k_x, (N, 1), jnp.float32)
    params = init_params(k_p)

    out = jax.block_until_ready(energy_int(x, params, tile_m=2048))
    ref = reference(x, params)

    assert out.shape == (N, OUT_DIM)
    # All four matmuls feed the MXU in bf16 (f32 accumulation), so the comparison against
    # the pure-f32 reference uses a correspondingly relaxed tolerance.
    max_err = jnp.max(jnp.abs(out - ref))
    assert jnp.allclose(out, ref, atol=2e-2, rtol=2e-2), \
        f"mismatch vs reference (max abs err {max_err})"
    print("KERNEL_OK")
</pallas_src>

<mosaic_0001>
module attributes {stable_mosaic.version = 11 : i64} {
  func.func @energy_int_kernel(%arg0: i32, %arg1: memref<1x2048xf32, #tpu.memory_space<vmem>>, %arg2: memref<8x2xf32, #tpu.memory_space<vmem>>, %arg3: memref<128x9xbf16, #tpu.memory_space<vmem>>, %arg4: memref<128x1xf32, #tpu.memory_space<vmem>>, %arg5: memref<128x128xbf16, #tpu.memory_space<vmem>>, %arg6: memref<128x1xf32, #tpu.memory_space<vmem>>, %arg7: memref<64x128xbf16, #tpu.memory_space<vmem>>, %arg8: memref<64x1xf32, #tpu.memory_space<vmem>>, %arg9: memref<3x64xbf16, #tpu.memory_space<vmem>>, %arg10: memref<3x1xf32, #tpu.memory_space<vmem>>, %arg11: memref<3x2048xf32, #tpu.memory_space<vmem>>) attributes {dimension_semantics = [#tpu.dimension_semantics<parallel>], iteration_bounds = array<i64: 3>, scalar_prefetch = 0 : i64, scratch_operands = 0 : i64, tpu.core_type = #tpu.core_type<tc>, window_params = [{transform_indices = @transform_0, window_bounds = array<i64: 1, 2048>}, {pipeline_mode = #tpu.pipeline_mode<synchronous>, transform_indices = @transform_1, window_bounds = array<i64: 8, 2>}, {pipeline_mode = #tpu.pipeline_mode<synchronous>, transform_indices = @transform_2, window_bounds = array<i64: 128, 9>}, {pipeline_mode = #tpu.pipeline_mode<synchronous>, transform_indices = @transform_3, window_bounds = array<i64: 128, 1>}, {pipeline_mode = #tpu.pipeline_mode<synchronous>, transform_indices = @transform_4, window_bounds = array<i64: 128, 128>}, {pipeline_mode = #tpu.pipeline_mode<synchronous>, transform_indices = @transform_5, window_bounds = array<i64: 128, 1>}, {pipeline_mode = #tpu.pipeline_mode<synchronous>, transform_indices = @transform_6, window_bounds = array<i64: 64, 128>}, {pipeline_mode = #tpu.pipeline_mode<synchronous>, transform_indices = @transform_7, window_bounds = array<i64: 64, 1>}, {pipeline_mode = #tpu.pipeline_mode<synchronous>, transform_indices = @transform_8, window_bounds = array<i64: 3, 64>}, {pipeline_mode = #tpu.pipeline_mode<synchronous>, transform_indices = @transform_9, window_bounds = array<i64: 3, 1>}, {transform_indices = @transform_10, window_bounds = array<i64: 3, 2048>}]} {
    %c0 = arith.constant 0 : index
    %c0_0 = arith.constant 0 : index
    %0 = vector.load %arg1[%c0, %c0_0] : memref<1x2048xf32, #tpu.memory_space<vmem>>, vector<1x2048xf32>
    %c0_1 = arith.constant 0 : index
    %c0_2 = arith.constant 0 : index
    %1 = vector.load %arg2[%c0_1, %c0_2] : memref<8x2xf32, #tpu.memory_space<vmem>>, vector<8x1xf32>
    %c0_3 = arith.constant 0 : index
    %c1 = arith.constant 1 : index
    %2 = vector.load %arg2[%c0_3, %c1] : memref<8x2xf32, #tpu.memory_space<vmem>>, vector<8x1xf32>
    %3 = vector.broadcast %0 : vector<1x2048xf32> to vector<8x2048xf32>
    %4 = vector.broadcast %1 : vector<8x1xf32> to vector<8x2048xf32>
    %5 = arith.mulf %3, %4 : vector<8x2048xf32>
    %6 = vector.broadcast %2 : vector<8x1xf32> to vector<8x2048xf32>
    %7 = arith.addf %5, %6 : vector<8x2048xf32>
    %8 = math.sin %7 : vector<8x2048xf32>
    %9 = tpu.concatenate %0, %8 in 0 : vector<1x2048xf32>, vector<8x2048xf32> -> vector<9x2048xf32>
    %10 = arith.truncf %9 : vector<9x2048xf32> to vector<9x2048xbf16>
    %c0_4 = arith.constant 0 : index
    %c0_5 = arith.constant 0 : index
    %11 = vector.load %arg3[%c0_4, %c0_5] : memref<128x9xbf16, #tpu.memory_space<vmem>>, vector<128x9xbf16>
    %cst = arith.constant dense<0.000000e+00> : vector<128x2048xf32>
    %12 = tpu.matmul %11, %10, %cst {dimension_numbers = #tpu.dot_dimension_numbers<[1], [0], [0], [1], [0, 0, 1, 1], [], []>} : vector<128x9xbf16>, vector<9x2048xbf16>, vector<128x2048xf32> -> vector<128x2048xf32>
    %c0_6 = arith.constant 0 : index
    %c0_7 = arith.constant 0 : index
    %13 = vector.load %arg4[%c0_6, %c0_7] : memref<128x1xf32, #tpu.memory_space<vmem>>, vector<128x1xf32>
    %14 = vector.broadcast %13 : vector<128x1xf32> to vector<128x2048xf32>
    %15 = arith.addf %12, %14 : vector<128x2048xf32>
    %cst_8 = arith.constant 0.000000e+00 : f32
    %16 = vector.broadcast %cst_8 : f32 to vector<128x2048xf32>
    %17 = arith.maximumf %15, %16 : vector<128x2048xf32>
    %c0_9 = arith.constant 0 : index
    %c0_10 = arith.constant 0 : index
    %18 = vector.load %arg5[%c0_9, %c0_10] : memref<128x128xbf16, #tpu.memory_space<vmem>>, vector<128x128xbf16>
    %19 = arith.truncf %17 : vector<128x2048xf32> to vector<128x2048xbf16>
    %cst_11 = arith.constant dense<0.000000e+00> : vector<128x2048xf32>
    %20 = tpu.matmul %18, %19, %cst_11 {dimension_numbers = #tpu.dot_dimension_numbers<[1], [0], [0], [1], [0, 0, 1, 1], [], []>} : vector<128x128xbf16>, vector<128x2048xbf16>, vector<128x2048xf32> -> vector<128x2048xf32>
    %c0_12 = arith.constant 0 : index
    %c0_13 = arith.constant 0 : index
    %21 = vector.load %arg6[%c0_12, %c0_13] : memref<128x1xf32, #tpu.memory_space<vmem>>, vector<128x1xf32>
    %22 = vector.broadcast %21 : vector<128x1xf32> to vector<128x2048xf32>
    %23 = arith.addf %20, %22 : vector<128x2048xf32>
    %cst_14 = arith.constant 0.000000e+00 : f32
    %24 = vector.broadcast %cst_14 : f32 to vector<128x2048xf32>
    %25 = arith.maximumf %23, %24 : vector<128x2048xf32>
    %c0_15 = arith.constant 0 : index
    %c0_16 = arith.constant 0 : index
    %26 = vector.load %arg7[%c0_15, %c0_16] : memref<64x128xbf16, #tpu.memory_space<vmem>>, vector<64x128xbf16>
    %27 = arith.truncf %25 : vector<128x2048xf32> to vector<128x2048xbf16>
    %cst_17 = arith.constant dense<0.000000e+00> : vector<64x2048xf32>
    %28 = tpu.matmul %26, %27, %cst_17 {dimension_numbers = #tpu.dot_dimension_numbers<[1], [0], [0], [1], [0, 0, 1, 1], [], []>} : vector<64x128xbf16>, vector<128x2048xbf16>, vector<64x2048xf32> -> vector<64x2048xf32>
    %c0_18 = arith.constant 0 : index
    %c0_19 = arith.constant 0 : index
    %29 = vector.load %arg8[%c0_18, %c0_19] : memref<64x1xf32, #tpu.memory_space<vmem>>, vector<64x1xf32>
    %30 = vector.broadcast %29 : vector<64x1xf32> to vector<64x2048xf32>
    %31 = arith.addf %28, %30 : vector<64x2048xf32>
    %cst_20 = arith.constant 0.000000e+00 : f32
    %32 = vector.broadcast %cst_20 : f32 to vector<64x2048xf32>
    %33 = arith.maximumf %31, %32 : vector<64x2048xf32>
    %c0_21 = arith.constant 0 : index
    %c0_22 = arith.constant 0 : index
    %34 = vector.load %arg9[%c0_21, %c0_22] : memref<3x64xbf16, #tpu.memory_space<vmem>>, vector<3x64xbf16>
    %35 = arith.truncf %33 : vector<64x2048xf32> to vector<64x2048xbf16>
    %cst_23 = arith.constant dense<0.000000e+00> : vector<3x2048xf32>
    %36 = tpu.matmul %34, %35, %cst_23 {dimension_numbers = #tpu.dot_dimension_numbers<[1], [0], [0], [1], [0, 0, 1, 1], [], []>} : vector<3x64xbf16>, vector<64x2048xbf16>, vector<3x2048xf32> -> vector<3x2048xf32>
    %c0_24 = arith.constant 0 : index
    %c0_25 = arith.constant 0 : index
    %37 = vector.load %arg10[%c0_24, %c0_25] : memref<3x1xf32, #tpu.memory_space<vmem>>, vector<3x1xf32>
    %38 = vector.broadcast %37 : vector<3x1xf32> to vector<3x2048xf32>
    %39 = arith.addf %36, %38 : vector<3x2048xf32>
    %cst_26 = arith.constant 0.000000e+00 : f32
    %40 = vector.broadcast %cst_26 : f32 to vector<3x2048xf32>
    %41 = arith.maximumf %39, %40 : vector<3x2048xf32>
    %42 = math.absf %39 : vector<3x2048xf32>
    %cst_27 = arith.constant 0.000000e+00 : f32
    %43 = vector.broadcast %cst_27 : f32 to vector<3x2048xf32>
    %44 = arith.subf %43, %42 : vector<3x2048xf32>
    %45 = math.exp %44 : vector<3x2048xf32>
    %46 = math.log1p %45 : vector<3x2048xf32>
    %47 = arith.addf %41, %46 : vector<3x2048xf32>
    %c0_28 = arith.constant 0 : index
    %c0_29 = arith.constant 0 : index
    %48 = vector.load %arg11[%c0_28, %c0_29] : memref<3x2048xf32, #tpu.memory_space<vmem>>, vector<3x2048xf32>
    tpu.vector_store %arg11[%c0_28, %c0_29], %47 {strides = array<i32>} : memref<3x2048xf32, #tpu.memory_space<vmem>>, vector<3x2048xf32>,
    return
  }
  func.func @transform_0(%arg0: i32) -> (i32, i32) {
    %c0_i32 = arith.constant 0 : i32
    %c0_i32_0 = arith.constant 0 : i32
    return %c0_i32, %arg0 : i32, i32
  }
  func.func @transform_1(%arg0: i32) -> (i32, i32) {
    %c0_i32 = arith.constant 0 : i32
    %c0_i32_0 = arith.constant 0 : i32
    %c0_i32_1 = arith.constant 0 : i32
    return %c0_i32, %c0_i32_0 : i32, i32
  }
  func.func @transform_2(%arg0: i32) -> (i32, i32) {
    %c0_i32 = arith.constant 0 : i32
    %c0_i32_0 = arith.constant 0 : i32
    %c0_i32_1 = arith.constant 0 : i32
    return %c0_i32, %c0_i32_0 : i32, i32
  }
  func.func @transform_3(%arg0: i32) -> (i32, i32) {
    %c0_i32 = arith.constant 0 : i32
    %c0_i32_0 = arith.constant 0 : i32
    %c0_i32_1 = arith.constant 0 : i32
    return %c0_i32, %c0_i32_0 : i32, i32
  }
  func.func @transform_4(%arg0: i32) -> (i32, i32) {
    %c0_i32 = arith.constant 0 : i32
    %c0_i32_0 = arith.constant 0 : i32
    %c0_i32_1 = arith.constant 0 : i32
    return %c0_i32, %c0_i32_0 : i32, i32
  }
  func.func @transform_5(%arg0: i32) -> (i32, i32) {
    %c0_i32 = arith.constant 0 : i32
    %c0_i32_0 = arith.constant 0 : i32
    %c0_i32_1 = arith.constant 0 : i32
    return %c0_i32, %c0_i32_0 : i32, i32
  }
  func.func @transform_6(%arg0: i32) -> (i32, i32) {
    %c0_i32 = arith.constant 0 : i32
    %c0_i32_0 = arith.constant 0 : i32
    %c0_i32_1 = arith.constant 0 : i32
    return %c0_i32, %c0_i32_0 : i32, i32
  }
  func.func @transform_7(%arg0: i32) -> (i32, i32) {
    %c0_i32 = arith.constant 0 : i32
    %c0_i32_0 = arith.constant 0 : i32
    %c0_i32_1 = arith.constant 0 : i32
    return %c0_i32, %c0_i32_0 : i32, i32
  }
  func.func @transform_8(%arg0: i32) -> (i32, i32) {
    %c0_i32 = arith.constant 0 : i32
    %c0_i32_0 = arith.constant 0 : i32
    %c0_i32_1 = arith.constant 0 : i32
    return %c0_i32, %c0_i32_0 : i32, i32
  }
  func.func @transform_9(%arg0: i32) -> (i32, i32) {
    %c0_i32 = arith.constant 0 : i32
    %c0_i32_0 = arith.constant 0 : i32
    %c0_i32_1 = arith.constant 0 : i32
    return %c0_i32, %c0_i32_0 : i32, i32
  }
  func.func @transform_10(%arg0: i32) -> (i32, i32) {
    %c0_i32 = arith.constant 0 : i32
    %c0_i32_0 = arith.constant 0 : i32
    return %c0_i32, %arg0 : i32, i32
  }
}

</mosaic_0001>

<bundles_post_ra>
// kernel: tpu_custom_call.1
= control target key start
LH: loop header
LB: loop body
LE: loop exit
PB: predicated region body
PF: predicated region fallthrough
CT: control target
= control target key end

     0   :  { %15 = vsyncpa [#allocation3], 0  ;;  %s10969_s0 = inlined_call_operand.vmem [shape: f32[1,6144], index: 0, kind: input, shape index: {}]   ;;  %s10970_s1 = inlined_call_operand.vmem [shape: f32[8,2], index: 1, kind: input, shape index: {}]   ;;  %s10971_s2 = inlined_call_operand.vmem [shape: bf16[128,9], index: 2, kind: input, shape index: {}]   ;;  %s10972_s3 = inlined_call_operand.vmem [shape: f32[128,1], index: 3, kind: input, shape index: {}]   ;;  %s10973_s4 = inlined_call_operand.vmem [shape: bf16[128,128], index: 4, kind: input, shape index: {}]   ;;  %s10974_s5 = inlined_call_operand.vmem [shape: f32[128,1], index: 5, kind: input, shape index: {}]   ;;  %s10975_s6 = inlined_call_operand.vmem [shape: bf16[64,128], index: 6, kind: input, shape index: {}]   ;;  %s10976_s7 = inlined_call_operand.vmem [shape: f32[64,1], index: 7, kind: input, shape index: {}]   ;;  %s10977_s8 = inlined_call_operand.vmem [shape: bf16[3,64], index: 8, kind: input, shape index: {}]   ;;  %s10978_s9 = inlined_call_operand.vmem [shape: f32[3,1], index: 9, kind: input, shape index: {}]   ;;  %s10979_s10 = inlined_call_operand.hbm [shape: f32[3,6144], index: 10, kind: output, shape index: {}]  }
   0x1   :  { %17 = vsyncpa [#allocation3 + $0x1], 0  ;;  %s7334_s13 = smov 0   ;;  %s7336_s14 = smov 0  }
   0x2   :  { %s7338_s15 = smov 0   ;;  %s7340_s16 = smov 0  }
   0x3 LB: > { %s7355_s17 = sadd.s32 4294967295, %s7267_s16   ;;  %s6741_s18 = sadd.s32 4294967294, %s7267_s16   ;;  %s7267_s16 = sphi %s7340_s16, %s11060_s16   ;;  %s7263_s15 = sphi %s7338_s15, %s11059_s15   ;;  %s7259_s14 = sphi %s7336_s14, %s11058_s14   ;;  %s7255_s13 = sphi %s7334_s13, %s11057_s13  }
   0x4   : > { %s7359_s19 = sadd.s32 1, %s7267_s16   ;;  %s245_s20 = sadd.s32 1, %s7263_s15 }
   0x5   : > { %s242_s21 = ssub.s32 %s7267_s16, %s7359_s19  ;;  %p255_p0 = scmp.ne.s32.totalorder %s7263_s15, %s7259_s14 }
   0x6   : > { %p243_p1 = scmp.eq.s32.totalorder %s242_s21, 0  ;;  %p256_p2 = scmp.eq.s32.totalorder %s7355_s17, 2 }
   0x7   : > { %p261_p3 = scmp.ne.s32.totalorder %s7259_s14, %s7255_s13  ;;  %p262_p4 = scmp.eq.s32.totalorder %s6741_s18, 2 }
   0x8   : > { %s7370_s22 = scalar_select %p243_p1, %s7263_s15, %s245_s20  }
   0x9   : > { %p7372_p5 = por %p256_p2, %p255_p0  ;;  %p7376_p6 = por %p262_p4, %p261_p3 }
   0xa   : > { %p6744_p7 = scmp.ge.s32.totalorder %s7267_s16, 1  ;;  %p315_p8 = scmp.lt.s32.totalorder %s7267_s16, 4 }
   0xc   : > { %p316_p9 = pnand %p6744_p7, %p315_p8 }
   0xe   : > { %319 = sbr.rel (%p316_p9) target bundleno = 1714 (0x6b2), region = 60 }
  0x15   : > { %v361_v0 = vld [vmem:[%s10970_s1] sm:$0xff]  ;;  %v10994_v1 = vmov 0   ;;  %v7270_v2 = vmov 1   ;;  %s6746_s27 = sshll.u32 %s7355_s17, 4  ;;  %v364_v3 = vlaneseq  ;;  %v10990_v47 = vmov 683565275  }
  0x16   : > { %7021 = vset.pattern.permute.xlu0 %v10994_v1  ;;  %7023 = vset.pattern.permute.xlu1 %v10994_v1  ;;  %p353_p10 = scmp.lt.s32.totalorder %s6746_s27, 47  ;;  %v7272_v51 = vmov 2475754826   ;;  %v7273_v53 = vmov 2131351028   ;;  %vm2407_vm7 = vcmask 1043456  }
  0x17   : > { %446 = vperm.xlu0 %7021, %v361_v0   ;;  %2491 = vmatprep.mubr.bf16.mxu0 %v10994_v1  ;;  %v7391_v4 = vshrl.u32 %v364_v3, 7  ;;  %v10992_v55 = vmov 2102212464   ;;  %v7275_v57 = vmov 920167782   ;;  %vm2408_vm13 = vcmask 1044480  }
  0x18   : > { %2604 = vmatprep.mubr.bf16.mxu1 %v10994_v1  ;;  %s11062_s27 = smov (!%p353_p10, %s6746_s27), 47  ;;  %s349_s21 = sand.u32 1, %s7259_s14  }
  0x19   : > { %s7396_s30 = scalar_lea.vmem %s10969_s0, %s11062_s27  ;;  %v370_v5 = vsub.s32 1, %v7391_v4  ;;  %v10982_v6 = vsub.s32 3, %v7391_v4  ;;  %v366_v8 = vsub.s32 0, %v7391_v4  ;;  %v374_v33 = vsub.s32 2, %v7391_v4  ;;  %s6745_s25 = sshll.u32 %s349_s21, 6 }
  0x1a   : > { %v7401_v7 = vld [vmem:[%s7396_s30] sm:$0xff]  ;;  %s10898_s26 = scalar_lea.vmem [#allocation2], %s6745_s25  ;;  %s6908_s27 = sshll.u32 %s7355_s17, 10 }
  0x1b   : > { %7022 = vset.pattern.permute.xlu0 %v7270_v2  ;;  %v7409_v10 = vrot.slane %v7401_v7, %v370_v5  ;;  %v7414_v11 = vrot.slane %v7401_v7, %v10982_v6  ;;  %v7419_v12 = vrot.slane %v7401_v7, %v366_v8  ;;  %v7457_v45 = vrot.slane %v7401_v7, %v374_v33  ;;  %s10924_s11 = scalar_lea.hbm %s10979_s10, %s6908_s27  ;;  %s6671_s12 = scalar_lea.sflag [#allocation3], %s349_s21 }
  0x1c   : > { %466 = vperm.xlu0 %7022, %v361_v0   ;;  %v10986_v0 = vmov 1326507024   ;;  %s7278_s17 = smov [#allocation2]  }
  0x1d   : > { %s7209_s20 = sshll.u32 %s7278_s17, 4  ;;  %s7210_s20 = int_to_ptr.vmem [resolvable:$false] %s7209_s20 }
  0x1e   : > { %s7211_s25 = scalar_lea.vmem %s7210_s20, 2048 }
  0x20   : > { %7024 = vset.pattern.permute.xlu0 %v10994_v1 }
  0x96   : > { %v7404_v9 = vpop.permute.xlu0 %446 }
  0x97   : > { %v450_v13 = vmul.f32 %v7404_v9, %v7409_v10  ;;  %v452_v14 = vmul.f32 %v7404_v9, %v7414_v11  ;;  %v449_v16 = vmul.f32 %v7404_v9, %v7419_v12 }
  0x9b   : > { %v7425_v15 = vpop.permute.xlu0 %466 }
  0x9c   : > { %v7430_v17 = vadd.f32 %v7425_v15, %v450_v13  ;;  %v7433_v18 = vadd.f32 %v7425_v15, %v452_v14  ;;  %v7436_v19 = vadd.f32 %v7425_v15, %v449_v16 }
  0x9e   : > { %v589_v20 = vand.u32 2147483647, %v7430_v17  ;;  %v592_v21 = vand.u32 2139095040, %v7430_v17  ;;  %v797_v22 = vand.u32 2147483647, %v7433_v18  ;;  %v800_v23 = vand.u32 2139095040, %v7433_v18 }
  0x9f   : > { %v488_v28 = vand.u32 2139095040, %v7436_v19  ;;  %vm591_vm15 = vcmp.lt.s32.totalorder %v7430_v17, 0 }
  0xa0   : > { %v593_v24 = vshrl.u32 %v592_v21, 23  ;;  %v596_v25 = vand.u32 8388607, %v589_v20  ;;  %v801_v26 = vshrl.u32 %v800_v23, 23  ;;  %v804_v27 = vand.u32 8388607, %v797_v22 }
  0xa1   : > { %v489_v31 = vshrl.u32 %v488_v28, 23 }
  0xa2   : > { %v6751_v29 = vadd.s32 4294967169, %v593_v24  ;;  %v6759_v30 = vadd.s32 4294967169, %v801_v26  ;;  %v597_v34 = vor.u32 8388608, %v596_v25  ;;  %v805_v35 = vor.u32 8388608, %v804_v27 }
  0xa3   : > { %v6747_v37 = vadd.s32 4294967169, %v489_v31 }
  0xa4   : > { %v599_v32 = vadd.s32 1, %v6751_v29  ;;  %v807_v36 = vadd.s32 1, %v6759_v30  ;;  %v7448_v42 = vshll.u32 %v597_v34, 8  ;;  %v7450_v43 = vshll.u32 %v805_v35, 8 }
  0xa5   : > { %v7452_v44 = vadd.s32 1, %v6747_v37 }
  0xa6   : > { %vm600_vm0 = vcmp.gt.s32.totalorder %v599_v32, 0  ;;  %vm808_vm1 = vcmp.gt.s32.totalorder %v807_v36, 0 }
  0xa7   : > { %v601_v38 = vsel %vm600_vm0, %v599_v32, 0  ;;  %v809_v41 = vsel %vm808_vm1, %v807_v36, 0  ;;  %vm496_vm6 = vcmp.gt.s32.totalorder %v7452_v44, 0 }
  0xa8   : > { %v602_v39 = vshrl.u32 %v601_v38, 5  ;;  %v603_v40 = vand.u32 31, %v601_v38  ;;  %v7460_v49 = vshrl.u32 %v809_v41, 5  ;;  %v811_v50 = vand.u32 31, %v809_v41 }
  0xaa   : > { %v604_v46 = vsub.s32 32, %v603_v40  ;;  %v606_v48 = vshll.u32 %v10990_v47, %v603_v40  ;;  %v609_v52 = vshll.u32 %v7272_v51, %v603_v40  ;;  %v612_v54 = vshll.u32 %v7273_v53, %v603_v40 }
  0xab   : > { %v615_v56 = vshll.u32 %v10992_v55, %v603_v40  ;;  %v618_v58 = vshll.u32 %v7275_v57, %v603_v40  ;;  %vm621_vm2 = vcmp.lt.s32.totalorder %v602_v39, 1  ;;  %vm622_vm3 = vcmp.lt.s32.totalorder %v602_v39, 2 }
  0xac   : > { %v607_v59 = vshrl.u32 %v7272_v51, %v604_v46  ;;  %v610_v60 = vshrl.u32 %v7273_v53, %v604_v46  ;;  %v613_v61 = vshrl.u32 %v10992_v55, %v604_v46  ;;  %v605_v62 = vshrl.u32 %v10990_v47, %v604_v46 }
  0xad   : > { %v616_v63 = vshrl.u32 %v7275_v57, %v604_v46  ;;  %v619_v2 = vshrl.u32 %v10986_v0, %v604_v46  ;;  %v812_v16 = vsub.s32 32, %v811_v50  ;;  %vm623_vm4 = vcmp.lt.s32.totalorder %v602_v39, 3 }
  0xae   : > { %v608_v3 = vor.u32 %v607_v59, %v606_v48  ;;  %v611_v13 = vor.u32 %v610_v60, %v609_v52  ;;  %v614_v14 = vor.u32 %v613_v61, %v612_v54  ;;  %vm624_vm5 = vcmp.lt.s32.totalorder %v602_v39, 4 }
  0xaf   : > { %v617_v21 = vor.u32 %v616_v63, %v615_v56  ;;  %v620_v23 = vor.u32 %v619_v2, %v618_v58  ;;  %v814_v31 = vshll.u32 %v10990_v47, %v811_v50  ;;  %v815_v35 = vshrl.u32 %v7272_v51, %v812_v16 }
  0xb0   : > { %v625_v24 = vsel %vm621_vm2, %v605_v62, %v608_v3  ;;  %v626_v25 = vsel %vm624_vm5, %v614_v14, 2102212464  ;;  %v629_v26 = vsel %vm621_vm2, %v608_v3, %v611_v13  ;;  %v633_v27 = vsel %vm621_vm2, %v611_v13, %v614_v14 }
  0xb1   : > { %v627_v28 = vsel %vm623_vm4, %v611_v13, %v626_v25  ;;  %v630_v29 = vsel %vm624_vm5, %v617_v21, 920167782  ;;  %v634_v30 = vsel %vm624_vm5, %v620_v23, 1326507024  ;;  %v817_v36 = vshll.u32 %v7272_v51, %v811_v50 }
  0xb2   : > { %v631_v32 = vsel %vm623_vm4, %v614_v14, %v630_v29  ;;  %v635_v34 = vsel %vm623_vm4, %v617_v21, %v634_v30  ;;  %v628_v37 = vsel %vm622_vm3, %v625_v24, %v627_v28  ;;  %v818_v41 = vshrl.u32 %v7273_v53, %v812_v16 }
  0xb3   : > { %v632_v38 = vsel %vm622_vm3, %v629_v26, %v631_v32  ;;  %v636_v40 = vsel %vm622_vm3, %v633_v27, %v635_v34  ;;  %v816_v56 = vor.u32 %v815_v35, %v814_v31  ;;  %v820_v59 = vshll.u32 %v7273_v53, %v811_v50  ;;  %v7514_v35 = vld [vmem:[%s7396_s30 + $0x8] sm:$0xff] }
  0xb4   : > { %v7484_v46 = vmul.u32.u64.low %v7448_v42, %v636_v40  ;;  %v7485_v48 = vmul.u32.u64.high %v7448_v42, %v636_v40, %v7484_v46  ;;  %v7488_v52 = vmul.u32.u64.low %v7448_v42, %v632_v38  ;;  %v7489_v54 = vmul.u32.u64.high %v7448_v42, %v632_v38, %v7488_v52 }
  0xb5   : > { %v819_v58 = vor.u32 %v818_v41, %v817_v36  ;;  %v821_v60 = vshrl.u32 %v10992_v55, %v812_v16  ;;  %v813_v39 = vshrl.u32 %v10990_v47, %v812_v16  ;;  %v823_v61 = vshll.u32 %v10992_v55, %v811_v50 }
  0xb6   : > { %v824_v62 = vshrl.u32 %v7275_v57, %v812_v16  ;;  %v827_v63 = vshrl.u32 %v10986_v0, %v812_v16  ;;  %v644_v2 = vmul.u32 %v7448_v42, %v628_v37  ;;  %v826_v13 = vshll.u32 %v7275_v57, %v811_v50 }
  0xb7   : > { %v822_v3 = vor.u32 %v821_v60, %v820_v59  ;;  %vm829_vm8 = vcmp.lt.s32.totalorder %v7460_v49, 1  ;;  %vm646_vm9 = vc.u32 %v7485_v48, %v7488_v52  ;;  %v647_v14 = vadd.s32 1, %v7489_v54 }
  0xb8   : > { %v825_v21 = vor.u32 %v824_v62, %v823_v61  ;;  %vm830_vm10 = vcmp.lt.s32.totalorder %v7460_v49, 2  ;;  %v828_v23 = vor.u32 %v827_v63, %v826_v13  ;;  %vm831_vm11 = vcmp.lt.s32.totalorder %v7460_v49, 3 }
  0xb9   : > { %vm832_vm12 = vcmp.lt.s32.totalorder %v7460_v49, 4  ;;  %v837_v42 = vsel %vm829_vm8, %v816_v56, %v819_v58  ;;  %v648_v16 = vsel %vm646_vm9, %v647_v14, %v7489_v54  ;;  %v841_v25 = vsel %vm829_vm8, %v819_v58, %v822_v3 }
  0xba   : > { %v834_v50 = vsel %vm832_vm12, %v822_v3, 2102212464  ;;  %v838_v24 = vsel %vm832_vm12, %v825_v21, 920167782  ;;  %v649_v26 = vadd.s32 %v648_v16, %v644_v2  ;;  %v833_v27 = vsel %vm829_vm8, %v813_v39, %v816_v56 }
  0xbb   : > { %v839_v28 = vsel %vm831_vm11, %v822_v3, %v838_v24  ;;  %v842_v29 = vsel %vm832_vm12, %v828_v23, 1326507024  ;;  %v835_v30 = vsel %vm831_vm11, %v819_v58, %v834_v50  ;;  %v497_v34 = vsel %vm496_vm6, %v7452_v44, 0 }
  0xbc   : > { %v840_v31 = vsel %vm830_vm10, %v837_v42, %v839_v28  ;;  %v843_v32 = vsel %vm831_vm11, %v825_v21, %v842_v29  ;;  %v650_v36 = vadd.s32 536870912, %v649_v26  ;;  %v485_v54 = vand.u32 2147483647, %v7436_v19 }
  0xbd   : > { %v844_v37 = vsel %vm830_vm10, %v841_v25, %v843_v32  ;;  %v7519_v38 = vmul.u32.u64.low %v7450_v43, %v840_v31  ;;  %v7520_v40 = vmul.u32.u64.high %v7450_v43, %v840_v31, %v7519_v38  ;;  %v836_v44 = vsel %vm830_vm10, %v833_v27, %v835_v30 }
  0xbe   : > { %v7524_v41 = vmul.u32.u64.low %v7450_v43, %v844_v37  ;;  %v7525_v46 = vmul.u32.u64.high %v7450_v43, %v844_v37, %v7524_v41  ;;  %v7528_v56 = vshrl.u32 %v650_v36, 30  ;;  %v499_v58 = vand.u32 31, %v497_v34 }
  0xbf   : > { %v10981_v59 = vsub.s32 5, %v7391_v4  ;;  %v7536_v60 = vrot.slane %v7514_v35, %v366_v8  ;;  %v10980_v39 = vsub.s32 7, %v7391_v4  ;;  %v7277_v62 = vmov 65535  }
  0xc0   : > { %v652_v61 = vshll.u32 %v7528_v56, 30  ;;  %v2409_v63 = vsel %vm2407_vm7, 4294967295, %v7277_v62  ;;  %v855_v2 = vadd.s32 1, %v7520_v40  ;;  %v500_v49 = vsub.s32 32, %v499_v58 }
  0xc1   : > { %v852_v3 = vmul.u32 %v7450_v43, %v836_v44  ;;  %vm854_vm14 = vc.u32 %v7525_v46, %v7519_v38  ;;  %v492_v13 = vand.u32 8388607, %v485_v54  ;;  %v7550_v8 = vrot.slane %v7514_v35, %v374_v33 }
  0xc2   : > { %v7552_v14 = vsub.s32 %v649_v26, %v652_v61  ;;  %v856_v21 = vsel %vm854_vm14, %v855_v2, %v7520_v40  ;;  %v451_v23 = vmul.f32 %v7404_v9, %v7457_v45  ;;  %v7560_v43 = vrot.slane %v7401_v7, %v10981_v59 }
  0xc3   : > { %v7563_v42 = vsel %vm2408_vm13, %v2409_v63, 0  ;;  %v857_v16 = vadd.s32 %v856_v21, %v852_v3  ;;  %v503_v50 = vshrl.u32 %v7272_v51, %v500_v49  ;;  %v7569_v33 = vrot.slane %v7401_v7, %v10980_v39 }
  0xc4   : > { %v655_v24 = vsub.s32 0, %v7552_v14  ;;  %v506_v25 = vshrl.u32 %v7273_v53, %v500_v49  ;;  %v509_v26 = vshrl.u32 %v10992_v55, %v500_v49  ;;  %v7575_v27 = vadd.f32 %v7425_v15, %v451_v23 }
  0xc5   : > { %v858_v28 = vadd.s32 536870912, %v857_v16  ;;  %v493_v29 = vor.u32 8388608, %v492_v13  ;;  %v7577_v30 = vshrl.u32 %v497_v34, 5  ;;  %v502_v31 = vshll.u32 %v10990_v47, %v499_v58 }
  0xc6   : > { %v6752_v32 = vmin.u32 %v655_v24, %v7552_v14  ;;  %v505_v36 = vshll.u32 %v7272_v51, %v499_v58  ;;  %v508_v37 = vshll.u32 %v7273_v53, %v499_v58  ;;  %v512_v40 = vshrl.u32 %v7275_v57, %v500_v49 }
  0xc7   : > { %v7584_v41 = vshrl.u32 %v858_v28, 30  ;;  %v504_v44 = vor.u32 %v503_v50, %v502_v31  ;;  %v511_v61 = vshll.u32 %v10992_v55, %v499_v58  ;;  %v515_v62 = vshrl.u32 %v10986_v0, %v500_v49 }
  0xc8   : > { %v657_v63 = vclz %v6752_v32  ;;  %v507_v34 = vor.u32 %v506_v25, %v505_v36  ;;  %v510_v2 = vor.u32 %v509_v26, %v508_v37  ;;  %v514_v3 = vshll.u32 %v7275_v57, %v499_v58 }
  0xc9   : > { %v860_v13 = vshll.u32 %v7584_v41, 30  ;;  %v513_v21 = vor.u32 %v512_v40, %v511_v61  ;;  %v7591_v23 = vshll.u32 %v493_v29, 8  ;;  %v645_v24 = vadd.s32 %v7488_v52, %v7485_v48 }
  0xca   : > { %v6753_v50 = vadd.s32 4294967294, %v657_v63  ;;  %v516_v28 = vor.u32 %v515_v62, %v514_v3  ;;  %vm520_vm0 = vcmp.lt.s32.totalorder %v7577_v30, 4  ;;  %vm517_vm1 = vcmp.lt.s32.totalorder %v7577_v30, 1 }
  0xcb   : > { %v7596_v31 = vsub.s32 %v857_v16, %v860_v13  ;;  %vm519_vm2 = vcmp.lt.s32.totalorder %v7577_v30, 3  ;;  %v526_v58 = vsel %vm520_vm0, %v513_v21, 920167782  ;;  %vm518_vm4 = vcmp.lt.s32.totalorder %v7577_v30, 2 }
  0xcc   : > { %vm6754_vm3 = vcmp.lt.s32.totalorder %v6753_v50, 0  ;;  %v525_v25 = vsel %vm517_vm1, %v504_v44, %v507_v34  ;;  %v527_v48 = vsel %vm519_vm2, %v510_v2, %v526_v58  ;;  %v675_v16 = vsub.s32 4, %v7528_v56 }
  0xcd   : > { %v660_v52 = vsel %vm6754_vm3, 0, %v6753_v50  ;;  %v863_v26 = vsub.s32 0, %v7596_v31  ;;  %v529_v29 = vsel %vm517_vm1, %v507_v34, %v510_v2  ;;  %v522_v37 = vsel %vm520_vm0, %v510_v2, 2102212464 }
  0xce   : > { %v661_v32 = vsub.s32 32, %v660_v52  ;;  %v665_v36 = vsub.s32 4294967266, %v660_v52  ;;  %v530_v40 = vsel %vm520_vm0, %v516_v28, 1326507024  ;;  %vm799_vm5 = vcmp.lt.s32.totalorder %v7433_v18, 0 }
  0xcf   : > { %v6760_v61 = vmin.u32 %v863_v26, %v7596_v31  ;;  %v501_v62 = vshrl.u32 %v10990_v47, %v500_v49  ;;  %v528_v63 = vsel %vm518_vm4, %v525_v25, %v527_v48  ;;  %v531_v3 = vsel %vm519_vm2, %v513_v21, %v530_v40 }
  0xd0   : > { %v662_v13 = vshll.u32 %v7552_v14, %v660_v52  ;;  %v663_v50 = vshrl.u32 %v645_v24, %v661_v32  ;;  %v666_v58 = vadd.s32 127, %v665_v36  ;;  %v532_v2 = vsel %vm518_vm4, %v529_v29, %v531_v3 }
  0xd1   : > { %v676_v28 = vsel %vm591_vm15, %v675_v16, %v7528_v56  ;;  %v865_v26 = vclz %v6760_v61  ;;  %v521_v49 = vsel %vm517_vm1, %v501_v62, %v504_v44  ;;  %v523_v25 = vsel %vm519_vm2, %v507_v34, %v522_v37 }
  0xd2   : > { %v664_v48 = vor.u32 %v663_v50, %v662_v13  ;;  %v667_v21 = vshll.u32 %v666_v58, 23  ;;  %v7633_v14 = vmul.u32.u64.low %v7591_v23, %v532_v2  ;;  %v7634_v24 = vmul.u32.u64.high %v7591_v23, %v532_v2, %v7633_v14 }
  0xd3   : > { %vm7638_vm6 = vcmp.le.f32.partialorder %v589_v20, 0.7853982  ;;  %v6761_v56 = vadd.s32 4294967294, %v865_v26  ;;  %v7643_v16 = vmul.u32.u64.low %v7591_v23, %v528_v63  ;;  %v7644_v29 = vmul.u32.u64.high %v7591_v23, %v528_v63, %v7643_v16 }
  0xd4   : > { %v668_v44 = vor.u32 4788187, %v667_v21  ;;  %v678_v34 = vsel %vm7638_vm6, 0, %v676_v28  ;;  %v883_v32 = vsub.s32 4, %v7584_v41  ;;  %v696_v36 = vand.u32 2139095040, %v7575_v27 }
  0xd5   : > { %v853_v20 = vadd.s32 %v7519_v38, %v7525_v46  ;;  %vm6762_vm7 = vcmp.lt.s32.totalorder %v6761_v56, 0  ;;  %v524_v37 = vsel %vm518_vm4, %v521_v49, %v523_v25  ;;  %v693_v40 = vand.u32 2147483647, %v7575_v27 }
  0xd6   : > { %v669_v61 = vand.u32 2147483647, %v668_v44  ;;  %v671_v62 = vcvt.s32.f32 %v664_v48  ;;  %v868_v63 = vsel %vm6762_vm7, 0, %v6761_v56  ;;  %vm542_vm8 = vc.u32 %v7634_v24, %v7643_v16 }
  0xd7   : > { %v682_v3 = vadd.s32 3, %v678_v34  ;;  %v869_v13 = vsub.s32 32, %v868_v63  ;;  %v873_v50 = vsub.s32 4294967266, %v868_v63  ;;  %v543_v58 = vadd.s32 1, %v7644_v29 }
  0xd8   : > { %v672_v2 = vmul.f32 %v671_v62, %v669_v61  ;;  %v884_v38 = vsel %vm799_vm5, %v883_v32, %v7584_v41  ;;  %v540_v46 = vmul.u32 %v7591_v23, %v524_v37  ;;  %v697_v30 = vshrl.u32 %v696_v36, 23 }
  0xd9   : > { %v870_v28 = vshll.u32 %v7596_v31, %v868_v63  ;;  %v871_v26 = vshrl.u32 %v853_v20, %v869_v13  ;;  %v874_v49 = vadd.s32 127, %v873_v50  ;;  %v544_v25 = vsel %vm542_vm8, %v543_v58, %v7644_v29 }
  0xda   : > { %v673_v48 = vxor.u32 2147483648, %v672_v2  ;;  %vm7667_vm9 = vcmp.le.f32.partialorder %v797_v22, 0.7853982  ;;  %v545_v14 = vadd.s32 %v544_v25, %v540_v46  ;;  %v6755_v56 = vadd.s32 4294967169, %v697_v30 }
  0xdb   : > { %v872_v44 = vor.u32 %v871_v26, %v870_v28  ;;  %v875_v41 = vshll.u32 %v874_v49, 23  ;;  %v886_v23 = vsel %vm7667_vm9, 0, %v884_v38  ;;  %v454_v31 = vmul.f32 %v7404_v9, %v7560_v43 }
  0xdc   : > { %v674_v29 = vsel %vm591_vm15, %v673_v48, %v672_v2  ;;  %v546_v34 = vadd.s32 536870912, %v545_v14  ;;  %v700_v22 = vand.u32 8388607, %v693_v40  ;;  %v703_v32 = vadd.s32 1, %v6755_v56 }
  0xdd   : > { %v677_v36 = vsel %vm7638_vm6, %v7430_v17, %v674_v29  ;;  %v7682_v20 = vand.u32 3, %v682_v3  ;;  %v876_v37 = vor.u32 4788187, %v875_v41  ;;  %v456_v61 = vmul.f32 %v7404_v9, %v7569_v33 }
  0xde   : > { %7045 = vcosq.f32 %v677_v36  ;;  %v890_v62 = vadd.s32 3, %v886_v23  ;;  %v547_v63 = vshrl.u32 %v546_v34, 30  ;;  %vm704_vm10 = vcmp.gt.s32.totalorder %v703_v32, 0 }
  0xdf   : > { %7047 = vsinq.f32 %v677_v36  ;;  %v877_v13 = vand.u32 2147483647, %v876_v37  ;;  %v879_v50 = vcvt.s32.f32 %v872_v44  ;;  %v705_v58 = vsel %vm704_vm10, %v703_v32, 0 }
  0xe0   : > { %v548_v2 = vshll.u32 %v547_v63, 30  ;;  %v701_v38 = vor.u32 8388608, %v700_v22  ;;  %v707_v46 = vand.u32 31, %v705_v58  ;;  %v10984_v52 = vsub.s32 4, %v7391_v4 }
  0xe1   : > { %v880_v30 = vmul.f32 %v879_v50, %v877_v13  ;;  %v7689_v3 = vmul.f32 %v7404_v9, %v7536_v60  ;;  %v7692_v28 = vadd.f32 %v7425_v15, %v454_v31  ;;  %v7695_v26 = vadd.f32 %v7425_v15, %v456_v61  ;;  %v2246_v61 = vld [vmem:[%s10972_s3] sm:$0xff] }
  0xe2   : > { %vm487_vm11 = vcmp.lt.s32.totalorder %v7436_v19, 0  ;;  %v7698_v49 = vsub.s32 %v545_v14, %v548_v2  ;;  %v571_v25 = vsub.s32 4, %v547_v63  ;;  %v708_v48 = vsub.s32 32, %v707_v46  ;;  %2264 = vperm.xlu1 %7023, %v2246_v61  }
  0xe3   : > { %vm685_vm12 = vcmp.eq.s32.totalorder %v7682_v20, 0  ;;  %vm688_vm13 = vcmp.eq.s32.totalorder %v7682_v20, 2  ;;  %v881_v56 = vxor.u32 2147483648, %v880_v30  ;;  %v7702_v44 = vand.u32 3, %v890_v62 }
  0xe4   : > { %vm684_vm14 = vcmp.lt.s32.totalorder %v7682_v20, 2  ;;  %v541_v41 = vadd.s32 %v7643_v16, %v7634_v24  ;;  %v551_v23 = vsub.s32 0, %v7698_v49  ;;  %v7708_v31 = vshrl.u32 %v705_v58, 5 }
  0xe5   : > { %v7710_v14 = vshll.u32 %v701_v38, 8  ;;  %vm681_vm15 = vweird.f32 %v7430_v17  ;;  %v882_v29 = vsel %vm799_vm5, %v881_v56, %v880_v30  ;;  %v711_v34 = vshrl.u32 %v7272_v51, %v708_v48 }
  0xe6   : > { %v714_v22 = vshrl.u32 %v7273_v53, %v708_v48  ;;  %v1008_v32 = vand.u32 2139095040, %v7692_v28  ;;  %vm2197_vm0 = vcmask 1040384   ;;  %v885_v24 = vsel %vm7667_vm9, %v7433_v18, %v882_v29 }
  0xe7   : > { %v6748_v16 = vmin.u32 %v551_v23, %v7698_v49  ;;  %v7724_v36 = vsel %vm487_vm11, %v571_v25, %v547_v63  ;;  %v717_v37 = vshrl.u32 %v10992_v55, %v708_v48  ;;  %7049 = vcosq.f32 %v885_v24 }
  0xe8   : > { %v710_v62 = vshll.u32 %v10990_v47, %v707_v46  ;;  %v713_v13 = vshll.u32 %v7272_v51, %v707_v46  ;;  %v720_v21 = vshrl.u32 %v7275_v57, %v708_v48  ;;  %v7046_v50 = vpop.eup %7045  ;;  %7051 = vsinq.f32 %v885_v24 }
  0xe9   : > { %v553_v58 = vclz %v6748_v16  ;;  %v709_v63 = vshrl.u32 %v10990_v47, %v708_v48  ;;  %v716_v2 = vshll.u32 %v7273_v53, %v707_v46  ;;  %v7048_v38 = vpop.eup %7047  ;;  %v689_v30 = vxor.u32 2147483648, %v7046_v50 }
  0xea   : > { %v712_v25 = vor.u32 %v711_v34, %v710_v62  ;;  %v715_v56 = vor.u32 %v714_v22, %v713_v13  ;;  %v719_v23 = vshll.u32 %v10992_v55, %v707_v46  ;;  %v686_v29 = vxor.u32 2147483648, %v7048_v38 }
  0xeb   : > { %v6749_v39 = vadd.s32 4294967294, %v553_v58  ;;  %v718_v59 = vor.u32 %v717_v37, %v716_v2  ;;  %v723_v6 = vshrl.u32 %v10986_v0, %v708_v48  ;;  %v690_v61 = vsel %vm688_vm13, %v689_v30, %v7048_v38 }
  0xec   : > { %vm896_vm1 = vcmp.eq.s32.totalorder %v7702_v44, 2  ;;  %v721_v24 = vor.u32 %v720_v21, %v719_v23  ;;  %v722_v16 = vshll.u32 %v7275_v57, %v707_v46  ;;  %vm725_vm2 = vcmp.lt.s32.totalorder %v7708_v31, 1 }
  0xed   : > { %v687_v34 = vsel %vm685_vm12, %v7046_v50, %v686_v29  ;;  %vm893_vm3 = vcmp.eq.s32.totalorder %v7702_v44, 0  ;;  %vm7747_vm4 = vcmp.le.f32.partialorder %v485_v54, 0.7853982  ;;  %vm6750_vm5 = vcmp.lt.s32.totalorder %v6749_v39, 0 }
  0xee   : > { %vm726_vm6 = vcmp.lt.s32.totalorder %v7708_v31, 2  ;;  %vm727_vm7 = vcmp.lt.s32.totalorder %v7708_v31, 3  ;;  %v691_v46 = vsel %vm684_vm14, %v687_v34, %v690_v61  ;;  %vm892_vm8 = vcmp.lt.s32.totalorder %v7702_v44, 2 }
  0xef   : > { %v556_v48 = vsel %vm6750_vm5, 0, %v6749_v39  ;;  %v724_v37 = vor.u32 %v723_v6, %v722_v16  ;;  %vm728_vm9 = vcmp.lt.s32.totalorder %v7708_v31, 4  ;;  %v692_v54 = vsel %vm681_vm15, nan, %v691_v46 }
  0xf0   : > { %vm889_vm10 = vweird.f32 %v7433_v18  ;;  %v557_v62 = vsub.s32 32, %v556_v48  ;;  %v561_v13 = vsub.s32 4294967266, %v556_v48  ;;  %v733_v21 = vsel %vm725_vm2, %v712_v25, %v715_v56 }
  0xf1   : > { %v2166_v50 = vrot.slane %v692_v54, 7  ;;  %v729_v20 = vsel %vm725_vm2, %v709_v63, %v712_v25  ;;  %v730_v39 = vsel %vm728_vm9, %v718_v59, 2102212464  ;;  %v734_v6 = vsel %vm728_vm9, %v721_v24, 920167782  ;;  %v7050_v30 = vpop.eup %7049 }
  0xf2   : > { %v558_v17 = vshll.u32 %v7698_v49, %v556_v48  ;;  %v559_v58 = vshrl.u32 %v541_v41, %v557_v62  ;;  %v562_v2 = vadd.s32 127, %v561_v13  ;;  %v735_v38 = vsel %vm727_vm7, %v718_v59, %v734_v6  ;;  %v7052_v61 = vpop.eup %7051 }
  0xf3   : > { %v2199_v23 = vsel %vm2197_vm0, %v7409_v10, %v2166_v50  ;;  %v736_v63 = vsel %vm726_vm6, %v733_v21, %v735_v38  ;;  %v737_v25 = vsel %vm725_vm2, %v715_v56, %v718_v59  ;;  %v738_v29 = vsel %vm728_vm9, %v724_v37, 1326507024 }
  0xf4   : > { %v2215_v49 = vpack.c.bf16 %v2166_v50, %v2199_v23  ;;  %v897_v41 = vxor.u32 2147483648, %v7050_v30  ;;  %v560_v16 = vor.u32 %v559_v58, %v558_v17  ;;  %v563_v34 = vshll.u32 %v562_v2, 23 }
  0xf5   : > { %v894_v46 = vxor.u32 2147483648, %v7052_v61  ;;  %v739_v48 = vsel %vm727_vm7, %v721_v24, %v738_v29  ;;  %v7782_v10 = vmul.u32.u64.low %v7710_v14, %v736_v63  ;;  %v7783_v54 = vmul.u32.u64.high %v7710_v14, %v736_v63, %v7782_v10 }
  0xf6   : > { %v2415_v62 = vand.u32 %v7563_v42, %v2215_v49  ;;  %v898_v59 = vsel %vm896_vm1, %v897_v41, %v7052_v61  ;;  %v564_v13 = vor.u32 4788187, %v563_v34  ;;  %v731_v37 = vsel %vm727_vm7, %v715_v56, %v730_v39 }
  0xf7   : > { %v895_v21 = vsel %vm893_vm3, %v7050_v30, %v894_v46  ;;  %v567_v50 = vcvt.s32.f32 %v560_v16  ;;  %v574_v24 = vsel %vm7747_vm4, 0, %v7724_v36  ;;  %v740_v6 = vsel %vm726_vm6, %v737_v25, %v739_v48 }
  0xf8   : > { %2459 = vmatprep.subr.bf16.mxu0 %v2415_v62  ;;  %v899_v17 = vsel %vm892_vm8, %v895_v21, %v898_v59  ;;  %v565_v58 = vand.u32 2147483647, %v564_v13  ;;  %v7800_v2 = vmul.u32.u64.low %v7710_v14, %v740_v6  ;;  %v7801_v38 = vmul.u32.u64.high %v7710_v14, %v740_v6, %v7800_v2 }
  0xf9   : > { %v900_v56 = vsel %vm889_vm10, nan, %v899_v17  ;;  %v732_v39 = vsel %vm726_vm6, %v729_v20, %v731_v37  ;;  %v751_v36 = vadd.s32 1, %v7783_v54  ;;  %v1009_v30 = vshrl.u32 %v1008_v32, 23 }
  0xfa   : > { %v2168_v23 = vrot.slane %v900_v56, 7  ;;  %v7812_v44 = vadd.f32 %v7425_v15, %v7689_v3  ;;  %v568_v63 = vmul.f32 %v567_v50, %v565_v58  ;;  %v1005_v25 = vand.u32 2147483647, %v7692_v28 }
  0xfb   : > { %v578_v29 = vadd.s32 3, %v574_v24  ;;  %v6767_v61 = vadd.s32 4294967169, %v1009_v30  ;;  %v1216_v18 = vand.u32 2139095040, %v7695_v26  ;;  %v7819_v31 = vrot.slane %v7401_v7, %v10984_v52 }
  0xfc   : > { %v2201_v32 = vsel %vm2197_vm0, %v7414_v11, %v2168_v23  ;;  %v569_v20 = vxor.u32 2147483648, %v568_v63  ;;  %v748_v49 = vmul.u32 %v7710_v14, %v732_v39  ;;  %vm750_vm12 = vc.u32 %v7801_v38, %v7782_v10 }
  0xfd   : > { %v2217_v3 = vpack.c.bf16 %v2168_v23, %v2201_v32  ;;  %v459_v41 = vmul.f32 %v7404_v9, %v7550_v8  ;;  %v752_v16 = vsel %vm750_vm12, %v751_v36, %v7783_v54  ;;  %v1015_v34 = vadd.s32 1, %v6767_v61 }
  0xfe   : > { %v570_v46 = vsel %vm487_vm11, %v569_v20, %v568_v63  ;;  %v1320_v7 = vand.u32 2139095040, %v7812_v44  ;;  %v753_v48 = vadd.s32 %v752_v16, %v748_v49  ;;  %v1012_v11 = vand.u32 8388607, %v1005_v25 }
  0xff   : > { %v2421_v14 = vand.u32 %v7563_v42, %v2217_v3  ;;  %v573_v62 = vsel %vm7747_vm4, %v7436_v19, %v570_v46  ;;  %vm1016_vm13 = vcmp.gt.s32.totalorder %v1015_v34, 0  ;;  %v1217_v59 = vshrl.u32 %v1216_v18, 23 }
 0x100   : > { %7053 = vcosq.f32 %v573_v62  ;;  %v7837_v54 = vand.u32 3, %v578_v29  ;;  %v754_v13 = vadd.s32 536870912, %v753_v48  ;;  %v1017_v37 = vsel %vm1016_vm13, %v1015_v34, 0 }
 0x101   : > { %2572 = vmatprep.subr.bf16.mxu1 %v2421_v14  ;;  %7055 = vsinq.f32 %v573_v62  ;;  %v7840_v21 = vadd.f32 %v7425_v15, %v459_v41  ;;  %v1019_v50 = vand.u32 31, %v1017_v37  ;;  %v7844_v24 = vmul.f32 %v7404_v9, %v7819_v31 }
 0x102   : > { %v7846_v6 = vshrl.u32 %v1320_v7, 23  ;;  %vm695_vm11 = vcmp.lt.s32.totalorder %v7575_v27, 0  ;;  %v755_v22 = vshrl.u32 %v754_v13, 30  ;;  %v1013_v17 = vor.u32 8388608, %v1012_v11 }
 0x103   : > { %v7850_v58 = vadd.s32 %v7782_v10, %v7801_v38  ;;  %v1020_v2 = vsub.s32 32, %v1019_v50  ;;  %v1213_v56 = vand.u32 2147483647, %v7695_v26  ;;  %v6775_v39 = vadd.s32 4294967169, %v1217_v59 }
 0x104   : > { %vm584_vm14 = vcmp.eq.s32.totalorder %v7837_v54, 2  ;;  %v756_v36 = vshll.u32 %v755_v22, 30  ;;  %v7854_v30 = vshrl.u32 %v1017_v37, 5  ;;  %v1022_v23 = vshll.u32 %v10990_v47, %v1019_v50 }
 0x105   : > { %v1025_v63 = vshll.u32 %v7272_v51, %v1019_v50  ;;  %vm581_vm15 = vcmp.eq.s32.totalorder %v7837_v54, 0  ;;  %v1023_v29 = vshrl.u32 %v7272_v51, %v1020_v2  ;;  %v1026_v10 = vshrl.u32 %v7273_v53, %v1020_v2 }
 0x106   : > { %v1028_v38 = vshll.u32 %v7273_v53, %v1019_v50  ;;  %v1029_v61 = vshrl.u32 %v10992_v55, %v1020_v2  ;;  %vm580_vm1 = vcmp.lt.s32.totalorder %v7837_v54, 2  ;;  %v7864_v18 = vsub.s32 %v753_v48, %v756_v36 }
 0x107   : > { %v779_v32 = vsub.s32 4, %v755_v22  ;;  %v1031_v20 = vshll.u32 %v10992_v55, %v1019_v50  ;;  %v1032_v49 = vshrl.u32 %v7275_v57, %v1020_v2  ;;  %vm577_vm2 = vweird.f32 %v7436_v19 }
 0x108   : > { %vm7871_vm3 = vcmp.le.f32.partialorder %v693_v40, 0.7853982  ;;  %v1024_v41 = vor.u32 %v1023_v29, %v1022_v23  ;;  %v1027_v16 = vor.u32 %v1026_v10, %v1025_v63  ;;  %v1030_v34 = vor.u32 %v1029_v61, %v1028_v38 }
 0x109   : > { %v1035_v46 = vshrl.u32 %v10986_v0, %v1020_v2  ;;  %v759_v7 = vsub.s32 0, %v7864_v18  ;;  %v1033_v48 = vor.u32 %v1032_v49, %v1031_v20  ;;  %v7877_v11 = vshll.u32 %v1013_v17, 8 }
 0x10a   : > { %v7881_v14 = vand.u32 8388607, %v1213_v56  ;;  %v1021_v62 = vshrl.u32 %v10990_v47, %v1020_v2  ;;  %v1034_v40 = vshll.u32 %v7275_v57, %v1019_v50  ;;  %vm1040_vm4 = vcmp.lt.s32.totalorder %v7854_v30, 4  ;;  %v7054_v13 = vpop.eup %7053 }
 0x10b   : > { %v1223_v59 = vadd.s32 1, %v6775_v39  ;;  %v6756_v37 = vmin.u32 %v759_v7, %v7864_v18  ;;  %v780_v36 = vsel %vm695_vm11, %v779_v32, %v755_v22  ;;  %vm1037_vm5 = vcmp.lt.s32.totalorder %v7854_v30, 1  ;;  %v7056_v23 = vpop.eup %7055 }
 0x10c   : > { %v1042_v17 = vsel %vm1040_vm4, %v1030_v34, 2102212464  ;;  %v585_v63 = vxor.u32 2147483648, %v7054_v13  ;;  %v1036_v29 = vor.u32 %v1035_v46, %v1034_v40  ;;  %v1045_v50 = vsel %vm1037_vm5, %v1024_v41, %v1027_v16 }
 0x10d   : > { %v1046_v2 = vsel %vm1040_vm4, %v1033_v48, 920167782  ;;  %v582_v39 = vxor.u32 2147483648, %v7056_v23  ;;  %v761_v10 = vclz %v6756_v37  ;;  %vm1038_vm6 = vcmp.lt.s32.totalorder %v7854_v30, 2 }
 0x10e   : > { %vm1039_vm7 = vcmp.lt.s32.totalorder %v7854_v30, 3  ;;  %v586_v22 = vsel %vm584_vm14, %v585_v63, %v7056_v23  ;;  %v1041_v38 = vsel %vm1037_vm5, %v1021_v62, %v1024_v41  ;;  %v1049_v7 = vsel %vm1037_vm5, %v1027_v16, %v1030_v34 }
 0x10f   : > { %v1043_v61 = vsel %vm1039_vm7, %v1027_v16, %v1042_v17  ;;  %v1047_v32 = vsel %vm1039_vm7, %v1030_v34, %v1046_v2  ;;  %v583_v20 = vsel %vm581_vm15, %v7054_v13, %v582_v39  ;;  %v6757_v49 = vadd.s32 4294967294, %v761_v10 }
 0x110   : > { %v1048_v46 = vsel %vm1038_vm6, %v1045_v50, %v1047_v32  ;;  %v587_v40 = vsel %vm580_vm1, %v583_v20, %v586_v22  ;;  %v1050_v37 = vsel %vm1040_vm4, %v1036_v29, 1326507024  ;;  %v782_v17 = vsel %vm7871_vm3, 0, %v780_v36 }
 0x111   : > { %v7913_v41 = vmul.u32.u64.low %v7877_v11, %v1048_v46  ;;  %v7914_v62 = vmul.u32.u64.high %v7877_v11, %v1048_v46, %v7913_v41  ;;  %v588_v13 = vsel %vm577_vm2, nan, %v587_v40  ;;  %vm6758_vm8 = vcmp.lt.s32.totalorder %v6757_v49, 0 }
 0x112   : > { %v1051_v23 = vsel %vm1039_vm7, %v1033_v48, %v1050_v37  ;;  %v2165_v16 = vrot.slane %v588_v13, 7  ;;  %v764_v34 = vsel %vm6758_vm8, 0, %v6757_v49  ;;  %vm1224_vm9 = vcmp.gt.s32.totalorder %v1223_v59, 0 }
 0x113   : > { %v1052_v54 = vsel %vm1038_vm6, %v1049_v7, %v1051_v23  ;;  %v765_v63 = vsub.s32 32, %v764_v34  ;;  %v769_v29 = vsub.s32 4294967266, %v764_v34  ;;  %v1044_v50 = vsel %vm1038_vm6, %v1041_v38, %v1043_v61 }
 0x114   : > { %v1225_v2 = vsel %vm1224_vm9, %v1223_v59, 0  ;;  %v2198_v19 = vsel %vm2197_vm0, %v7419_v12, %v2165_v16  ;;  %v766_v39 = vshll.u32 %v7864_v18, %v764_v34  ;;  %v1063_v20 = vadd.s32 1, %v7914_v62 }
 0x115   : > { %v7929_v36 = vmul.u32.u64.low %v7877_v11, %v1052_v54  ;;  %v7930_v48 = vmul.u32.u64.high %v7877_v11, %v1052_v54, %v7929_v36  ;;  %v2214_v10 = vpack.c.bf16 %v2165_v16, %v2198_v19  ;;  %v767_v22 = vshrl.u32 %v7850_v58, %v765_v63 }
 0x116   : > { %v770_v32 = vadd.s32 127, %v769_v29  ;;  %v7935_v49 = vadd.s32 4294967169, %v7846_v6  ;;  %v1528_v30 = vand.u32 2139095040, %v7840_v21  ;;  %v1221_v59 = vor.u32 8388608, %v7881_v14  ;;  %v7946_v6 = vld [vmem:[%s10971_s2] sm:$0xff]  }
 0x117   : > { %v1227_v12 = vand.u32 31, %v1225_v2  ;;  %v2412_v18 = vand.u32 %v7563_v42, %v2214_v10  ;;  %v768_v38 = vor.u32 %v767_v22, %v766_v39  ;;  %vm2382_vm10 = vcmask 72704  }
 0x118   : > { %v771_v61 = vshll.u32 %v770_v32, 23  ;;  %v786_v46 = vadd.s32 3, %v782_v17  ;;  %v1060_v7 = vmul.u32 %v7877_v11, %v1044_v50  ;;  %vm1062_vm12 = vc.u32 %v7930_v48, %v7913_v41 }
 0x119   : > { %v1228_v58 = vsub.s32 32, %v1227_v12  ;;  %2460 = vmatpush1.bf16.msra.mxu0 %v2412_v18  ;;  %v1064_v40 = vsel %vm1062_vm12, %v1063_v20, %v7914_v62  ;;  %v7949_v37 = vshrl.u32 %v1225_v2, 5  ;;  %v1230_v13 = vshll.u32 %v10990_v47, %v1227_v12 }
 0x11a   : > { %v772_v14 = vor.u32 4788187, %v771_v61  ;;  %v775_v17 = vcvt.s32.f32 %v768_v38  ;;  %v1065_v23 = vadd.s32 %v1064_v40, %v1060_v7  ;;  %v1233_v54 = vshll.u32 %v7272_v51, %v1227_v12 }
 0x11b   : > { %v1231_v11 = vshrl.u32 %v7272_v51, %v1228_v58  ;;  %v1234_v16 = vshrl.u32 %v7273_v53, %v1228_v58  ;;  %v1236_v63 = vshll.u32 %v7273_v53, %v1227_v12  ;;  %v1237_v29 = vshrl.u32 %v10992_v55, %v1228_v58 }
 0x11c   : > { %v773_v34 = vand.u32 2147483647, %v772_v14  ;;  %v1066_v50 = vadd.s32 536870912, %v1065_v23  ;;  %v1239_v62 = vshll.u32 %v10992_v55, %v1227_v12  ;;  %v1240_v2 = vshrl.u32 %v7275_v57, %v1228_v58  ;;  %6819 = vmatmul.mubr.msk.bf16.vlgmr.msra.gmra.mrb[0].mxu0 %vm2382_vm10, %v7946_v6 }
 0x11d   : > { %v1232_v19 = vor.u32 %v1231_v11, %v1230_v13  ;;  %vm1007_vm13 = vcmp.lt.s32.totalorder %v7692_v28, 0  ;;  %v1235_v36 = vor.u32 %v1234_v16, %v1233_v54  ;;  %v1242_v10 = vshll.u32 %v7275_v57, %v1227_v12  ;;  %2501 = vmatprep.mubr.bf16.mxu0 %v10994_v1 }
 0x11e   : > { %v776_v39 = vmul.f32 %v775_v17, %v773_v34  ;;  %v1243_v22 = vshrl.u32 %v10986_v0, %v1228_v58  ;;  %v1067_v32 = vshrl.u32 %v1066_v50, 30  ;;  %v1238_v20 = vor.u32 %v1237_v29, %v1236_v63 }
 0x11f   : > { %v1241_v18 = vor.u32 %v1240_v2, %v1239_v62  ;;  %v1261_v38 = vshll.u32 %v1221_v59, 8  ;;  %vm1245_vm14 = vcmp.lt.s32.totalorder %v7949_v37, 1  ;;  %v7968_v14 = vadd.f32 %v7425_v15, %v7844_v24 }
 0x120   : > { %v777_v61 = vxor.u32 2147483648, %v776_v39  ;;  %v1244_v7 = vor.u32 %v1243_v22, %v1242_v10  ;;  %v1068_v40 = vshll.u32 %v1067_v32, 30  ;;  %v1229_v13 = vshrl.u32 %v10990_v47, %v1228_v58 }
 0x121   : > { %vm1246_vm15 = vcmp.lt.s32.totalorder %v7949_v37, 2  ;;  %vm1248_vm1 = vcmp.lt.s32.totalorder %v7949_v37, 4  ;;  %vm1247_vm2 = vcmp.lt.s32.totalorder %v7949_v37, 3  ;;  %v1253_v59 = vsel %vm1245_vm14, %v1232_v19, %v1235_v36 }
 0x122   : > { %v778_v12 = vsel %vm695_vm11, %v777_v61, %v776_v39  ;;  %v1254_v17 = vsel %vm1248_vm1, %v1241_v18, 920167782  ;;  %v7981_v11 = vsub.s32 %v1065_v23, %v1068_v40  ;;  %v1091_v58 = vsub.s32 4, %v1067_v32 }
 0x123   : > { %v781_v24 = vsel %vm7871_vm3, %v7575_v27, %v778_v12  ;;  %v1250_v16 = vsel %vm1248_vm1, %v1238_v20, 2102212464  ;;  %v1255_v34 = vsel %vm1247_vm2, %v1238_v20, %v1254_v17  ;;  %v1257_v54 = vsel %vm1245_vm14, %v1235_v36, %v1238_v20 }
 0x124   : > { %7057 = vcosq.f32 %v781_v24  ;;  %v1258_v63 = vsel %vm1248_vm1, %v1244_v7, 1326507024  ;;  %v1071_v29 = vsub.s32 0, %v7981_v11  ;;  %v1249_v50 = vsel %vm1245_vm14, %v1229_v13, %v1232_v19 }
 0x125   : > { %7059 = vsinq.f32 %v781_v24  ;;  %v1256_v3 = vsel %vm1246_vm15, %v1253_v59, %v1255_v34  ;;  %v1251_v23 = vsel %vm1247_vm2, %v1235_v36, %v1250_v16  ;;  %v1259_v62 = vsel %vm1247_vm2, %v1241_v18, %v1258_v63 }
 0x126   : > { %v7996_v2 = vmul.u32.u64.low %v1261_v38, %v1256_v3  ;;  %v7997_v39 = vmul.u32.u64.high %v1261_v38, %v1256_v3, %v7996_v2  ;;  %v787_v10 = vand.u32 3, %v786_v46  ;;  %v6768_v22 = vmin.u32 %v1071_v29, %v7981_v11 }
 0x127   : > { %v1092_v20 = vsel %vm1007_vm13, %v1091_v58, %v1067_v32  ;;  %v1260_v19 = vsel %vm1246_vm15, %v1257_v54, %v1259_v62  ;;  %v8006_v61 = vadd.s32 1, %v7935_v49  ;;  %v904_v18 = vand.u32 2139095040, %v7968_v14 }
 0x128   : > { %v8008_v36 = vmul.u32.u64.low %v1261_v38, %v1260_v19  ;;  %v8009_v7 = vmul.u32.u64.high %v1261_v38, %v1260_v19, %v8008_v36  ;;  %v1529_v40 = vshrl.u32 %v1528_v30, 23  ;;  %vm8016_vm11 = vcmp.le.f32.partialorder %v1005_v25, 0.7853982 }
 0x129   : > { %v1073_v32 = vclz %v6768_v22  ;;  %v1252_v13 = vsel %vm1246_vm15, %v1249_v50, %v1251_v23  ;;  %v1094_v49 = vsel %vm8016_vm11, 0, %v1092_v20  ;;  %v1271_v12 = vadd.s32 1, %v7997_v39  ;;  %v7173_v20 = vld [vmem:[%s7396_s30] sm:$0xff] }
 0x12a   : > { %v901_v59 = vand.u32 2147483647, %v7968_v14  ;;  %v905_v17 = vshrl.u32 %v904_v18, 23  ;;  %vm785_vm3 = vweird.f32 %v7575_v27  ;;  %vm788_vm4 = vcmp.lt.s32.totalorder %v787_v10, 2 }
 0x12b   : > { %vm789_vm5 = vcmp.eq.s32.totalorder %v787_v10, 0  ;;  %v6769_v25 = vadd.s32 4294967294, %v1073_v32  ;;  %v10983_v30 = vsub.s32 6, %v7391_v4  ;;  %vm792_vm6 = vcmp.eq.s32.totalorder %v787_v10, 2 }
 0x12c   : > { %v1268_v24 = vmul.u32 %v1261_v38, %v1252_v13  ;;  %vm1270_vm7 = vc.u32 %v8009_v7, %v7996_v2  ;;  %v6763_v37 = vadd.s32 4294967169, %v905_v17  ;;  %v1061_v58 = vadd.s32 %v7913_v41, %v7930_v48 }
 0x12d   : > { %vm6770_vm8 = vcmp.lt.s32.totalorder %v6769_v25, 0  ;;  %v1098_v16 = vadd.s32 3, %v1094_v49  ;;  %v1272_v34 = vsel %vm1270_vm7, %v1271_v12, %v7997_v39  ;;  %v908_v50 = vand.u32 8388607, %v901_v59 }
 0x12e   : > { %v7058_v54 = vpop.eup %7057  ;;  %v1076_v63 = vsel %vm6770_vm8, 0, %v6769_v25  ;;  %v1273_v29 = vadd.s32 %v1272_v34, %v1268_v24  ;;  %v911_v3 = vadd.s32 1, %v6763_v37  ;;  %v8038_v19 = vrot.slane %v7173_v20, %v10983_v30 }
 0x12f   : > { %v7060_v38 = vpop.eup %7059  ;;  %v793_v23 = vxor.u32 2147483648, %v7058_v54  ;;  %v1077_v62 = vsub.s32 32, %v1076_v63  ;;  %v1081_v22 = vsub.s32 4294967266, %v1076_v63  ;;  %v1078_v48 = vshll.u32 %v7981_v11, %v1076_v63 }
 0x130   : > { %v790_v41 = vxor.u32 2147483648, %v7060_v38  ;;  %v1274_v39 = vadd.s32 536870912, %v1273_v29  ;;  %vm912_vm9 = vcmp.gt.s32.totalorder %v911_v3, 0  ;;  %v909_v17 = vor.u32 8388608, %v908_v50 }
 0x131   : > { %v794_v36 = vsel %vm792_vm6, %v793_v23, %v7060_v38  ;;  %v1079_v18 = vshrl.u32 %v1061_v58, %v1077_v62  ;;  %v1082_v32 = vadd.s32 127, %v1081_v22  ;;  %v913_v13 = vsel %vm912_vm9, %v911_v3, 0 }
 0x132   : > { %v791_v49 = vsel %vm789_vm5, %v7058_v54, %v790_v41  ;;  %v1275_v12 = vshrl.u32 %v1274_v39, 30  ;;  %v915_v25 = vand.u32 31, %v913_v13  ;;  %v8044_v37 = vadd.s32 4294967169, %v1529_v40 }
 0x133   : > { %v795_v24 = vsel %vm788_vm4, %v791_v49, %v794_v36  ;;  %v1080_v34 = vor.u32 %v1079_v18, %v1078_v48  ;;  %v1083_v20 = vshll.u32 %v1082_v32, 23  ;;  %v455_v58 = vmul.f32 %v7404_v9, %v8038_v19 }
 0x134   : > { %v796_v11 = vsel %vm785_vm3, nan, %v795_v24  ;;  %v1276_v63 = vshll.u32 %v1275_v12, 30  ;;  %v916_v30 = vsub.s32 32, %v915_v25  ;;  %v8050_v54 = vand.u32 3, %v1098_v16 }
 0x135   : > { %v2167_v3 = vrot.slane %v796_v11, 7  ;;  %v1084_v38 = vor.u32 4788187, %v1083_v20  ;;  %vm1215_vm12 = vcmp.lt.s32.totalorder %v7695_v26, 0  ;;  %v8056_v10 = vrot.slane %v7514_v35, %v370_v5 }
 0x136   : > { %v1269_v27 = vadd.s32 %v7996_v2, %v8009_v7  ;;  %v8060_v40 = vsub.s32 %v1273_v29, %v1276_v63  ;;  %v8062_v50 = vshll.u32 %v909_v17, 8  ;;  %v8065_v23 = vadd.f32 %v7425_v15, %v455_v58 }
 0x137   : > { %v2200_v16 = vsel %vm2197_vm0, %v7457_v45, %v2167_v3  ;;  %v1085_v62 = vand.u32 2147483647, %v1084_v38  ;;  %v1087_v22 = vcvt.s32.f32 %v1080_v34  ;;  %v914_v41 = vshrl.u32 %v913_v13, 5 }
 0x138   : > { %v2216_v48 = vpack.c.bf16 %v2167_v3, %v2200_v16  ;;  %v1279_v5 = vsub.s32 0, %v8060_v40  ;;  %v1299_v35 = vsub.s32 4, %v1275_v12  ;;  %v919_v39 = vshrl.u32 %v7272_v51, %v916_v30 }
 0x139   : > { %v1088_v2 = vmul.f32 %v1087_v22, %v1085_v62  ;;  %v918_v7 = vshll.u32 %v10990_v47, %v915_v25  ;;  %v922_v29 = vshrl.u32 %v7273_v53, %v916_v30  ;;  %v925_v36 = vshrl.u32 %v10992_v55, %v916_v30 }
 0x13a   : > { %v2418_v18 = vand.u32 %v7563_v42, %v2216_v48  ;;  %v6776_v45 = vmin.u32 %v1279_v5, %v8060_v40  ;;  %v921_v32 = vshll.u32 %v7272_v51, %v915_v25  ;;  %v924_v13 = vshll.u32 %v7273_v53, %v915_v25 }
 0x13b   : > { %v1089_v49 = vxor.u32 2147483648, %v1088_v2  ;;  %v927_v17 = vshll.u32 %v10992_v55, %v915_v25  ;;  %v928_v24 = vshrl.u32 %v7275_v57, %v916_v30  ;;  %v1109_v34 = vand.u32 2147483647, %v8065_v23 }
 0x13c   : > { %2573 = vmatpush1.bf16.msra.mxu1 %v2418_v18  ;;  %v1281_v20 = vclz %v6776_v45  ;;  %v920_v11 = vor.u32 %v919_v39, %v918_v7  ;;  %v923_v63 = vor.u32 %v922_v29, %v921_v32  ;;  %v926_v58 = vor.u32 %v925_v36, %v924_v13 }
 0x13d   : > { %v1090_v3 = vsel %vm1007_vm13, %v1089_v49, %v1088_v2  ;;  %v929_v38 = vor.u32 %v928_v24, %v927_v17  ;;  %v930_v16 = vshll.u32 %v7275_v57, %v915_v25  ;;  %v931_v62 = vshrl.u32 %v10986_v0, %v916_v30 }
 0x13e   : > { %v1093_v22 = vsel %vm8016_vm11, %v7692_v28, %v1090_v3  ;;  %v6777_v48 = vadd.s32 4294967294, %v1281_v20  ;;  %v8090_v5 = vsel %vm1215_vm12, %v1299_v35, %v1275_v12  ;;  %v917_v39 = vshrl.u32 %v10990_v47, %v916_v30 }
 0x13f   : > { %7061 = vcosq.f32 %v1093_v22  ;;  %6827 = vmatmul.mubr.msk.bf16.vlgmr.msra.gmra.mrb[0].mxu1 %vm2382_vm10, %v7946_v6  ;;  %v932_v2 = vor.u32 %v931_v62, %v930_v16  ;;  %vm933_vm13 = vcmp.lt.s32.totalorder %v914_v41, 1  ;;  %vm936_vm14 = vcmp.lt.s32.totalorder %v914_v41, 4 }
 0x140   : > { %7063 = vsinq.f32 %v1093_v22  ;;  %vm6778_vm15 = vcmp.lt.s32.totalorder %v6777_v48, 0  ;;  %vm934_vm1 = vcmp.lt.s32.totalorder %v914_v41, 2  ;;  %v938_v46 = vsel %vm936_vm14, %v926_v58, 2102212464  ;;  %2614 = vmatprep.mubr.bf16.mxu1 %v10994_v1 }
 0x141   : > { %v1284_v25 = vsel %vm6778_vm15, 0, %v6777_v48  ;;  %vm935_vm2 = vcmp.lt.s32.totalorder %v914_v41, 3  ;;  %v941_v12 = vsel %vm933_vm13, %v920_v11, %v923_v63  ;;  %v942_v30 = vsel %vm936_vm14, %v929_v38, 920167782 }
 0x142   : > { %v1285_v35 = vsub.s32 32, %v1284_v25  ;;  %v1289_v7 = vsub.s32 4294967266, %v1284_v25  ;;  %v937_v6 = vsel %vm933_vm13, %v917_v39, %v920_v11  ;;  %v939_v29 = vsel %vm935_vm2, %v923_v63, %v938_v46 }
 0x143   : > { %v1286_v36 = vshll.u32 %v8060_v40, %v1284_v25  ;;  %v943_v18 = vsel %vm935_vm2, %v926_v58, %v942_v30  ;;  %v945_v45 = vsel %vm933_vm13, %v923_v63, %v926_v58  ;;  %v946_v32 = vsel %vm936_vm14, %v932_v2, 1326507024 }
 0x144   : > { %v1287_v13 = vshrl.u32 %v1269_v27, %v1285_v35  ;;  %v1290_v49 = vadd.s32 127, %v1289_v7  ;;  %v944_v17 = vsel %vm934_vm1, %v941_v12, %v943_v18  ;;  %v947_v24 = vsel %vm935_vm2, %v929_v38, %v946_v32 }
 0x145   : > { %v940_v20 = vsel %vm934_vm1, %v937_v6, %v939_v29  ;;  %v948_v3 = vsel %vm934_vm1, %v945_v45, %v947_v24  ;;  %v8107_v16 = vmul.u32.u64.low %v8062_v50, %v944_v17  ;;  %v8108_v11 = vmul.u32.u64.high %v8062_v50, %v944_v17, %v8107_v16 }
 0x146   : > { %v1288_v62 = vor.u32 %v1287_v13, %v1286_v36  ;;  %v1291_v40 = vshll.u32 %v1290_v49, 23  ;;  %v8111_v22 = vmul.u32.u64.low %v8062_v50, %v948_v3  ;;  %v8112_v63 = vmul.u32.u64.high %v8062_v50, %v948_v3, %v8111_v22 }
 0x147   : > { %v8115_v27 = vadd.s32 1, %v8044_v37  ;;  %vm1097_vm11 = vweird.f32 %v7692_v28  ;;  %vm8120_vm3 = vcmp.le.f32.partialorder %v1213_v56, 0.7853982  ;;  %v1112_v58 = vand.u32 2139095040, %v8065_v23  ;;  %v2259_v28 = vld [vmem:[%s10972_s3 + $0x68] sm:$0xff] }
 0x148   : > { %vm1104_vm4 = vcmp.eq.s32.totalorder %v8050_v54, 2  ;;  %v1292_v38 = vor.u32 4788187, %v1291_v40  ;;  %v1302_v48 = vsel %vm8120_vm3, 0, %v8090_v5  ;;  %v458_v37 = vmul.f32 %v7404_v9, %v8056_v10 }
 0x149   : > { %v7062_v39 = vpop.eup %7061  ;;  %v956_v2 = vmul.u32 %v8062_v50, %v940_v20  ;;  %v959_v56 = vadd.s32 1, %v8108_v11  ;;  %v1113_v46 = vshrl.u32 %v1112_v58, 23  ;;  %v1116_v25 = vand.u32 8388607, %v1109_v34 }
 0x14a   : > { %v7064_v12 = vpop.eup %7063  ;;  %v1105_v30 = vxor.u32 2147483648, %v7062_v39  ;;  %v1293_v35 = vand.u32 2147483647, %v1292_v38  ;;  %v1295_v7 = vcvt.s32.f32 %v1288_v62  ;;  %vm958_vm5 = vc.u32 %v8112_v63, %v8107_v16 }
 0x14b   : > { %v1102_v6 = vxor.u32 2147483648, %v7064_v12  ;;  %v960_v5 = vsel %vm958_vm5, %v959_v56, %v8108_v11  ;;  %v6771_v29 = vadd.s32 4294967169, %v1113_v46  ;;  %v8138_v36 = vadd.f32 %v7425_v15, %v458_v37 }
 0x14c   : > { %vm1101_vm6 = vcmp.eq.s32.totalorder %v8050_v54, 0  ;;  %v1106_v50 = vsel %vm1104_vm4, %v1105_v30, %v7064_v12  ;;  %v1296_v18 = vmul.f32 %v1295_v7, %v1293_v35  ;;  %v961_v45 = vadd.s32 %v960_v5, %v956_v2 }
 0x14d   : > { %vm1100_vm7 = vcmp.lt.s32.totalorder %v8050_v54, 2  ;;  %v1103_v32 = vsel %vm1101_vm6, %v7062_v39, %v1102_v6  ;;  %v1306_v13 = vadd.s32 3, %v1302_v48  ;;  %v1119_v49 = vadd.s32 1, %v6771_v29 }
 0x14e   : > { %v1107_v17 = vsel %vm1100_vm7, %v1103_v32, %v1106_v50  ;;  %v1297_v24 = vxor.u32 2147483648, %v1296_v18  ;;  %vm903_vm8 = vcmp.lt.s32.totalorder %v7968_v14, 0  ;;  %v962_v20 = vadd.s32 536870912, %v961_v45 }
 0x14f   : > { %v1108_v3 = vsel %vm1097_vm11, nan, %v1107_v17  ;;  %v1117_v11 = vor.u32 8388608, %v1116_v25  ;;  %vm1120_vm9 = vcmp.gt.s32.totalorder %v1119_v49, 0  ;;  %v1424_v62 = vand.u32 2139095040, %v8138_v36  ;;  %v8195_v17 = vld [vmem:[%s10971_s2 + $0x8] sm:$0xff]  }
 0x150   : > { %v2170_v40 = vrot.slane %v1108_v3, 7  ;;  %v1298_v22 = vsel %vm1215_vm12, %v1297_v24, %v1296_v18  ;;  %v963_v54 = vshrl.u32 %v962_v20, 30  ;;  %v1121_v58 = vsel %vm1120_vm9, %v1119_v49, 0  ;;  %v2247_v49 = vld [vmem:[%s10972_s3 + $0x8] sm:$0xff]  ;;  %6820 = vmatmul.mubr.msk.bf16.gmra.mrb[4].mxu0 %vm2382_vm10, %v8195_v17  ;;  %6828 = vmatmul.mubr.msk.bf16.gmra.mrb[4].mxu1 %vm2382_vm10, %v8195_v17 }
 0x151   : > { %v1301_v38 = vsel %vm8120_vm3, %v7695_v26, %v1298_v22  ;;  %v8153_v48 = vand.u32 3, %v1306_v13  ;;  %vm8157_vm13 = vcmp.le.f32.partialorder %v901_v59, 0.7853982  ;;  %v1123_v37 = vand.u32 31, %v1121_v58  ;;  %2269 = vperm.xlu1 %7023, %v2247_v49   ;;  %2511 = vmatprep.mubr.bf16.mxu0 %v10994_v1 }
 0x152   : > { %v2203_v39 = vsel %vm2197_vm0, %v7560_v43, %v2170_v40  ;;  %7065 = vcosq.f32 %v1301_v38  ;;  %v8164_v2 = vadd.s32 %v8107_v16, %v8112_v63  ;;  %v964_v56 = vshll.u32 %v963_v54, 30  ;;  %2624 = vmatprep.mubr.bf16.mxu1 %v10994_v1 }
 0x153   : > { %v2219_v46 = vpack.c.bf16 %v2170_v40, %v2203_v39  ;;  %7067 = vsinq.f32 %v1301_v38  ;;  %v987_v41 = vsub.s32 4, %v963_v54  ;;  %v1124_v25 = vsub.s32 32, %v1123_v37  ;;  %v2249_v38 = vld [vmem:[%s10972_s3 + $0x18] sm:$0xff] }
 0x154   : > { %v8166_v12 = vsub.s32 %v961_v45, %v964_v56  ;;  %v8168_v30 = vshll.u32 %v1117_v11, 8  ;;  %v10985_v59 = vand.u32 2147483647, %v8138_v36  ;;  %v1425_v35 = vshrl.u32 %v1424_v62, 23  ;;  %2279 = vperm.xlu0 %7024, %v2249_v38  }
 0x155   : > { %v2427_v7 = vand.u32 %v7563_v42, %v2219_v46  ;;  %v1126_v43 = vshll.u32 %v10990_v47, %v1123_v37  ;;  %v1127_v6 = vshrl.u32 %v7272_v51, %v1124_v25  ;;  %v1129_v16 = vshll.u32 %v7272_v51, %v1123_v37 }
 0x156   : > { %vm1312_vm12 = vcmp.eq.s32.totalorder %v8153_v48, 2  ;;  %v967_v63 = vsub.s32 0, %v8166_v12  ;;  %v1130_v5 = vshrl.u32 %v7273_v53, %v1124_v25  ;;  %v1132_v29 = vshll.u32 %v7273_v53, %v1123_v37 }
 0x157   : > { %v1133_v50 = vshrl.u32 %v10992_v55, %v1124_v25  ;;  %2685 = vmatprep.subr.bf16.mxu0 %v2427_v7  ;;  %vm1309_vm14 = vcmp.eq.s32.totalorder %v8153_v48, 0  ;;  %v8183_v18 = vsel %vm903_vm8, %v987_v41, %v963_v54  ;;  %v8185_v45 = vshrl.u32 %v1121_v58, 5  ;;  %v2248_v58 = vld [vmem:[%s10972_s3 + $0x10] sm:$0xff] }
 0x158   : > { %v1135_v32 = vshll.u32 %v10992_v55, %v1123_v37  ;;  %v1136_v13 = vshrl.u32 %v7275_v57, %v1124_v25  ;;  %vm1328_vm15 = vcmp.gt.s32.totalorder %v8006_v61, 0  ;;  %vm1308_vm1 = vcmp.lt.s32.totalorder %v8153_v48, 2  ;;  %2274 = vperm.xlu1 %7023, %v2248_v58  }
 0x159   : > { %v6764_v24 = vmin.u32 %v967_v63, %v8166_v12  ;;  %v1128_v20 = vor.u32 %v1127_v6, %v1126_v43  ;;  %v1131_v3 = vor.u32 %v1130_v5, %v1129_v16  ;;  %v1134_v11 = vor.u32 %v1133_v50, %v1132_v29  ;;  %v2252_v16 = vld [vmem:[%s10972_s3 + $0x30] sm:$0xff] }
 0x15a   : > { %vm1305_vm2 = vweird.f32 %v7695_v26  ;;  %v1137_v62 = vor.u32 %v1136_v13, %v1135_v32  ;;  %v1138_v40 = vshll.u32 %v7275_v57, %v1123_v37  ;;  %v1139_v22 = vshrl.u32 %v10986_v0, %v1124_v25  ;;  %v2250_v32 = vld [vmem:[%s10972_s3 + $0x20] sm:$0xff]  ;;  %v8247_v13 = vld [vmem:[%s10971_s2 + $0x10] sm:$0xff]   ;;  %2294 = vperm.xlu0 %7024, %v2252_v16  }
 0x15b   : > { %v8205_v54 = vand.u32 8388607, %v10985_v59  ;;  %vm1536_vm11 = vcmp.gt.s32.totalorder %v8115_v27, 0  ;;  %v969_v37 = vclz %v6764_v24  ;;  %v990_v39 = vsel %vm8157_vm13, 0, %v8183_v18  ;;  %6821 = vmatmul.mubr.msk.bf16.gmra.mrb[8].mxu0 %vm2382_vm10, %v8247_v13  ;;  %6829 = vmatmul.mubr.msk.bf16.gmra.mrb[8].mxu1 %vm2382_vm10, %v8247_v13 }
 0x15c   : > { %v1125_v56 = vshrl.u32 %v10990_v47, %v1124_v25  ;;  %v6783_v46 = vadd.s32 4294967169, %v1425_v35  ;;  %v1140_v41 = vor.u32 %v1139_v22, %v1138_v40  ;;  %vm1141_vm3 = vcmp.lt.s32.totalorder %v8185_v45, 1  ;;  %v7066_v7 = vpop.eup %7065  ;;  %2284 = vperm.xlu1 %7023, %v2250_v32   ;;  %2521 = vmatprep.mubr.bf16.mxu0 %v10994_v1 }
 0x15d   : > { %vm1143_vm4 = vcmp.lt.s32.totalorder %v8185_v45, 3  ;;  %vm1144_vm5 = vcmp.lt.s32.totalorder %v8185_v45, 4  ;;  %v6765_v43 = vadd.s32 4294967294, %v969_v37  ;;  %v1149_v25 = vsel %vm1141_vm3, %v1128_v20, %v1131_v3  ;;  %v7068_v63 = vpop.eup %7067  ;;  %2634 = vmatprep.mubr.bf16.mxu1 %v10994_v1 }
 0x15e   : > { %v1146_v6 = vsel %vm1144_vm5, %v1134_v11, 2102212464  ;;  %v1150_v35 = vsel %vm1144_vm5, %v1137_v62, 920167782  ;;  %v1313_v5 = vxor.u32 2147483648, %v7066_v7  ;;  %vm1142_vm6 = vcmp.lt.s32.totalorder %v8185_v45, 2 }
 0x15f   : > { %v1145_v29 = vsel %vm1141_vm3, %v1125_v56, %v1128_v20  ;;  %v1151_v50 = vsel %vm1143_vm4, %v1134_v11, %v1150_v35  ;;  %v1310_v49 = vxor.u32 2147483648, %v7068_v63  ;;  %vm6766_vm7 = vcmp.lt.s32.totalorder %v6765_v43, 0 }
 0x160   : > { %v1147_v24 = vsel %vm1143_vm4, %v1131_v3, %v1146_v6  ;;  %v1152_v20 = vsel %vm1142_vm6, %v1149_v25, %v1151_v50  ;;  %v1314_v40 = vsel %vm1312_vm12, %v1313_v5, %v7068_v63  ;;  %v972_v22 = vsel %vm6766_vm7, 0, %v6765_v43  ;;  %v2254_v25 = vld [vmem:[%s10972_s3 + $0x40] sm:$0xff] }
 0x161   : > { %v1153_v58 = vsel %vm1141_vm3, %v1131_v3, %v1134_v11  ;;  %v1154_v38 = vsel %vm1144_vm5, %v1140_v41, 1326507024  ;;  %v1311_v37 = vsel %vm1309_vm14, %v7066_v7, %v1310_v49  ;;  %v973_v56 = vsub.s32 32, %v972_v22  ;;  %2304 = vperm.xlu0 %7024, %v2254_v25  }
 0x162   : > { %v974_v6 = vshll.u32 %v8166_v12, %v972_v22  ;;  %v977_v35 = vsub.s32 4294967266, %v972_v22  ;;  %v1315_v43 = vsel %vm1308_vm1, %v1311_v37, %v1314_v40  ;;  %v1155_v3 = vsel %vm1143_vm4, %v1137_v62, %v1154_v38  ;;  %v2251_v12 = vld [vmem:[%s10972_s3 + $0x28] sm:$0xff]  ;;  %v2256_v40 = vld [vmem:[%s10972_s3 + $0x50] sm:$0xff] }
 0x163   : > { %v8270_v11 = vmul.u32.u64.low %v8168_v30, %v1152_v20  ;;  %v8271_v41 = vmul.u32.u64.high %v8168_v30, %v1152_v20, %v8270_v11  ;;  %v1316_v48 = vsel %vm1305_vm2, nan, %v1315_v43  ;;  %v975_v62 = vshrl.u32 %v8164_v2, %v973_v56  ;;  %2289 = vperm.xlu1 %7023, %v2251_v12  }
 0x164   : > { %v978_v7 = vadd.s32 127, %v977_v35  ;;  %v1156_v16 = vsel %vm1142_vm6, %v1153_v58, %v1155_v3  ;;  %v8291_v63 = vsel %vm1328_vm15, %v8006_v61, 0  ;;  %v2172_v5 = vrot.slane %v1316_v48, 7  ;;  %v2255_v48 = vld [vmem:[%s10972_s3 + $0x48] sm:$0xff] }
 0x165   : > { %v8294_v50 = vmul.u32.u64.low %v8168_v30, %v1156_v16  ;;  %v8295_v26 = vmul.u32.u64.high %v8168_v30, %v1156_v16, %v8294_v50  ;;  %v976_v2 = vor.u32 %v975_v62, %v974_v6  ;;  %v1148_v49 = vsel %vm1142_vm6, %v1145_v29, %v1147_v24  ;;  %v2253_v29 = vld [vmem:[%s10972_s3 + $0x38] sm:$0xff]  ;;  %2314 = vperm.xlu0 %7024, %v2256_v40  }
 0x166   : > { %v979_v32 = vshll.u32 %v978_v7, 23  ;;  %v1431_v20 = vadd.s32 1, %v6783_v46  ;;  %v8305_v61 = vsel %vm1536_vm11, %v8115_v27, 0  ;;  %v2205_v22 = vsel %vm2197_vm0, %v7569_v33, %v2172_v5  ;;  %v8320_v24 = vld [vmem:[%s10971_s2 + $0x18] sm:$0xff]  }
 0x167   : > { %v994_v45 = vadd.s32 3, %v990_v39  ;;  %v1167_v46 = vadd.s32 1, %v8271_v41  ;;  %v2221_v27 = vpack.c.bf16 %v2172_v5, %v2205_v22  ;;  %v1429_v33 = vor.u32 8388608, %v8205_v54  ;;  %v8327_v39 = vld [vmem:[%s7396_s30 + $0x8] sm:$0xff]  ;;  %2299 = vperm.xlu1 %7023, %v2253_v29   ;;  %6822 = vmatmul.mubr.msk.bf16.gmra.mrb[12].mxu0 %vm2382_vm10, %v8320_v24 }
 0x168   : > { %v980_v58 = vor.u32 4788187, %v979_v32  ;;  %vm1432_vm9 = vcmp.gt.s32.totalorder %v1431_v20, 0  ;;  %v1164_v38 = vmul.u32 %v8168_v30, %v1148_v49  ;;  %vm1166_vm12 = vc.u32 %v8295_v26, %v8270_v11  ;;  %v2258_v30 = vld [vmem:[%s10972_s3 + $0x60] sm:$0xff]  ;;  %6830 = vmatmul.mubr.msk.bf16.gmra.mrb[12].mxu1 %vm2382_vm10, %v8320_v24  ;;  %2531 = vmatprep.mubr.bf16.mxu0 %v10994_v1 }
 0x169   : > { %v1433_v18 = vsel %vm1432_vm9, %v1431_v20, 0  ;;  %v11018_v37 = vsub.s32 3, %v7391_v4  ;;  %v2433_v6 = vand.u32 %v7563_v42, %v2221_v27  ;;  %v983_v25 = vcvt.s32.f32 %v976_v2  ;;  %2644 = vmatprep.mubr.bf16.mxu1 %v10994_v1  ;;  %2324 = vperm.xlu0 %7024, %v2258_v30  }
 0x16a   : > { %v981_v35 = vand.u32 2147483647, %v980_v58  ;;  %v1168_v54 = vsel %vm1166_vm12, %v1167_v46, %v8271_v41  ;;  %v8340_v43 = vand.u32 31, %v8291_v63  ;;  %v1435_v12 = vand.u32 31, %v1433_v18 }
 0x16b   : > { %v8332_v56 = vrot.slane %v8327_v39, %v11018_v37  ;;  %v1169_v3 = vadd.s32 %v1168_v54, %v1164_v38  ;;  %v8350_v41 = vand.u32 31, %v8305_v61  ;;  %2798 = vmatprep.subr.bf16.mxu1 %v2433_v6  ;;  %v8352_v7 = vand.u32 3, %v994_v45  ;;  %2309 = vperm.xlu1 %7023, %v2255_v48   ;;  %v2260_v45 = vld [vmem:[%s10972_s3 + $0x70] sm:$0xff]  ;;  %v8377_v38 = vld [vmem:[%s10971_s2 + $0x20] sm:$0xff]  }
 0x16c   : > { %v984_v62 = vmul.f32 %v983_v25, %v981_v35  ;;  %v8354_v16 = vshll.u32 %v1429_v33, 8  ;;  %v8357_v50 = vshrl.u32 %v1433_v18, 5  ;;  %v1436_v2 = vsub.s32 32, %v1435_v12  ;;  %v2257_v33 = vld [vmem:[%s10972_s3 + $0x58] sm:$0xff] }
 0x16d   : > { %v1170_v5 = vadd.s32 536870912, %v1169_v3  ;;  %v460_v32 = vmul.f32 %v7404_v9, %v8332_v56  ;;  %v1438_v20 = vshll.u32 %v10990_v47, %v1435_v12  ;;  %v1441_v40 = vshll.u32 %v7272_v51, %v1435_v12  ;;  %2334 = vperm.xlu0 %7024, %v2260_v45  }
 0x16e   : > { %v985_v49 = vxor.u32 2147483648, %v984_v62  ;;  %v1444_v22 = vshll.u32 %v7273_v53, %v1435_v12  ;;  %v1439_v29 = vshrl.u32 %v7272_v51, %v1436_v2  ;;  %v1442_v27 = vshrl.u32 %v7273_v53, %v1436_v2 }
 0x16f   : > { %v1171_v46 = vshrl.u32 %v1170_v5, 30  ;;  %v1447_v58 = vshll.u32 %v10992_v55, %v1435_v12  ;;  %v1445_v37 = vshrl.u32 %v10992_v55, %v1436_v2  ;;  %v1448_v6 = vshrl.u32 %v7275_v57, %v1436_v2  ;;  %2319 = vperm.xlu1 %7023, %v2257_v33   ;;  %6823 = vmatmul.mubr.msk.bf16.gmra.mrb[16].mxu0 %vm2382_vm10, %v8377_v38 }
 0x170   : > { %v986_v18 = vsel %vm903_vm8, %v985_v49, %v984_v62  ;;  %v1451_v35 = vshrl.u32 %v10986_v0, %v1436_v2  ;;  %v1440_v30 = vor.u32 %v1439_v29, %v1438_v20  ;;  %v1450_v48 = vshll.u32 %v7275_v57, %v1435_v12  ;;  %v3763_v62 = vld [vmem:[%s10974_s5] sm:$0xff]  ;;  %6831 = vmatmul.mubr.msk.bf16.gmra.mrb[16].mxu1 %vm2382_vm10, %v8377_v38 }
 0x171   : > { %v989_v25 = vsel %vm8157_vm13, %v7968_v14, %v986_v18  ;;  %v1172_v54 = vshll.u32 %v1171_v46, 30  ;;  %v1443_v5 = vor.u32 %v1442_v27, %v1441_v40  ;;  %v1446_v52 = vor.u32 %v1445_v37, %v1444_v22  ;;  %2541 = vmatprep.mubr.bf16.mxu0 %v10994_v1  ;;  %2654 = vmatprep.mubr.bf16.mxu1 %v10994_v1 }
 0x172   : > { %7069 = vcosq.f32 %v989_v25  ;;  %v1449_v59 = vor.u32 %v1448_v6, %v1447_v58  ;;  %v1452_v0 = vor.u32 %v1451_v35, %v1450_v48  ;;  %vm1453_vm8 = vcmp.lt.s32.totalorder %v8357_v50, 1  ;;  %3781 = vperm.xlu0 %7024, %v3763_v62   ;;  %v8431_v6 = vld [vmem:[%s10971_s2 + $0x28] sm:$0xff]  }
 0x173   : > { %7071 = vsinq.f32 %v989_v25  ;;  %v8391_v49 = vsub.s32 %v1169_v3, %v1172_v54  ;;  %vm1455_vm13 = vcmp.lt.s32.totalorder %v8357_v50, 3  ;;  %vm1456_vm14 = vcmp.lt.s32.totalorder %v8357_v50, 4  ;;  %2329 = vperm.xlu1 %7023, %v2259_v28  }
 0x174   : > { %v1461_v3 = vsel %vm1453_vm8, %v1440_v30, %v1443_v5  ;;  %v8406_v12 = vadd.f32 %v7425_v15, %v460_v32  ;;  %v1437_v40 = vshrl.u32 %v10990_v47, %v1436_v2  ;;  %v1458_v22 = vsel %vm1456_vm14, %v1446_v52, 2102212464  ;;  %v3765_v32 = vld [vmem:[%s10974_s5 + $0x10] sm:$0xff] }
 0x175   : > { %v1175_v20 = vsub.s32 0, %v8391_v49  ;;  %v1462_v45 = vsel %vm1456_vm14, %v1449_v59, 920167782  ;;  %v1195_v29 = vsub.s32 4, %v1171_v46  ;;  %vm1454_vm15 = vcmp.lt.s32.totalorder %v8357_v50, 2 }
 0x176   : > { %v1463_v27 = vsel %vm1455_vm13, %v1446_v52, %v1462_v45  ;;  %v1466_v58 = vsel %vm1456_vm14, %v1452_v0, 1326507024  ;;  %v1457_v2 = vsel %vm1453_vm8, %v1437_v40, %v1440_v30  ;;  %v1465_v37 = vsel %vm1453_vm8, %v1443_v5, %v1446_v52  ;;  %v2261_v0 = vld [vmem:[%s10972_s3 + $0x78] sm:$0xff]  ;;  %3791 = vperm.xlu0 %7024, %v3765_v32  }
 0x177   : > { %v6772_v33 = vmin.u32 %v1175_v20, %v8391_v49  ;;  %v1464_v18 = vsel %vm1454_vm15, %v1461_v3, %v1463_v27  ;;  %v1459_v35 = vsel %vm1455_vm13, %v1443_v5, %v1458_v22  ;;  %v1467_v25 = vsel %vm1455_vm13, %v1449_v59, %v1466_v58  ;;  %2339 = vperm.xlu1 %7023, %v2261_v0   ;;  %v3774_v52 = vld [vmem:[%s10974_s5 + $0x58] sm:$0xff] }
 0x178   : > { %v8438_v54 = vmul.u32.u64.low %v8354_v16, %v1464_v18  ;;  %v8439_v30 = vmul.u32.u64.high %v8354_v16, %v1464_v18, %v8438_v54  ;;  %vm993_vm1 = vweird.f32 %v7968_v14  ;;  %vm996_vm2 = vcmp.lt.s32.totalorder %v8352_v7, 2  ;;  %6824 = vmatmul.mubr.msk.bf16.gmra.mrb[20].mxu0 %vm2382_vm10, %v8431_v6  ;;  %6832 = vmatmul.mubr.msk.bf16.gmra.mrb[20].mxu1 %vm2382_vm10, %v8431_v6 }
 0x179   : > { %vm8446_vm11 = vcmp.le.f32.partialorder %v1109_v34, 0.7853982  ;;  %vm1111_vm3 = vcmp.lt.s32.totalorder %v8065_v23, 0  ;;  %v1177_v48 = vclz %v6772_v33  ;;  %v1468_v5 = vsel %vm1454_vm15, %v1465_v37, %v1467_v25  ;;  %v3767_v34 = vld [vmem:[%s10974_s5 + $0x20] sm:$0xff]  ;;  %2551 = vmatprep.mubr.bf16.mxu0 %v10994_v1  ;;  %2664 = vmatprep.mubr.bf16.mxu1 %v10994_v1 }
 0x17a   : > { %v1196_v59 = vsel %vm1111_vm3, %v1195_v29, %v1171_v46  ;;  %v10989_v62 = vand.u32 2147483647, %v8406_v12  ;;  %v1632_v28 = vand.u32 2139095040, %v8406_v12  ;;  %v1460_v20 = vsel %vm1454_vm15, %v1457_v2, %v1459_v35  ;;  %v3764_v46 = vld [vmem:[%s10974_s5 + $0x8] sm:$0xff]  ;;  %3801 = vperm.xlu0 %7024, %v3767_v34  }
 0x17b   : > { %v6773_v3 = vadd.s32 4294967294, %v1177_v48  ;;  %v8463_v40 = vmul.u32.u64.low %v8354_v16, %v1468_v5  ;;  %v8464_v22 = vmul.u32.u64.high %v8354_v16, %v1468_v5, %v8463_v40  ;;  %vm997_vm4 = vcmp.eq.s32.totalorder %v8352_v7, 0  ;;  %3786 = vperm.xlu1 %7023, %v3764_v46  }
 0x17c   : > { %v7070_v45 = vpop.eup %7069  ;;  %vm1000_vm5 = vcmp.eq.s32.totalorder %v8352_v7, 2  ;;  %v1165_v50 = vadd.s32 %v8270_v11, %v8295_v26  ;;  %v1633_v29 = vshrl.u32 %v1632_v28, 23  ;;  %v1198_v32 = vsel %vm8446_vm11, 0, %v1196_v59  ;;  %v3769_v11 = vld [vmem:[%s10974_s5 + $0x30] sm:$0xff]  ;;  %v3766_v59 = vld [vmem:[%s10974_s5 + $0x18] sm:$0xff] }
 0x17d   : > { %v7072_v27 = vpop.eup %7071  ;;  %v1001_v58 = vxor.u32 2147483648, %v7070_v45  ;;  %vm6774_vm6 = vcmp.lt.s32.totalorder %v6773_v3, 0  ;;  %v1479_v33 = vadd.s32 1, %v8439_v30  ;;  %v1476_v37 = vmul.u32 %v8354_v16, %v1460_v20  ;;  %v8496_v16 = vld [vmem:[%s10971_s2 + $0x30] sm:$0xff]  }
 0x17e   : > { %v998_v2 = vxor.u32 2147483648, %v7072_v27  ;;  %v1180_v18 = vsel %vm6774_vm6, 0, %v6773_v3  ;;  %v6791_v0 = vadd.s32 4294967169, %v1633_v29  ;;  %v1636_v48 = vand.u32 8388607, %v10989_v62  ;;  %3811 = vperm.xlu0 %7024, %v3769_v11  }
 0x17f   : > { %v1002_v26 = vsel %vm1000_vm5, %v1001_v58, %v7072_v27  ;;  %v1181_v35 = vsub.s32 32, %v1180_v18  ;;  %v1185_v25 = vsub.s32 4294967266, %v1180_v18  ;;  %v1182_v28 = vshll.u32 %v8391_v49, %v1180_v18  ;;  %3796 = vperm.xlu1 %7023, %v3766_v59   ;;  %v3771_v49 = vld [vmem:[%s10974_s5 + $0x40] sm:$0xff] }
 0x180   : > { %v999_v5 = vsel %vm997_vm4, %v7070_v45, %v998_v2  ;;  %vm1478_vm7 = vc.u32 %v8464_v22, %v8438_v54  ;;  %v1639_v34 = vadd.s32 1, %v6791_v0  ;;  %v1202_v27 = vadd.s32 3, %v1198_v32  ;;  %6825 = vmatmul.mubr.msk.bf16.gmra.mrb[24].mxu0 %vm2382_vm10, %v8496_v16  ;;  %6833 = vmatmul.mubr.msk.bf16.gmra.mrb[24].mxu1 %vm2382_vm10, %v8496_v16 }
 0x181   : > { %v1003_v3 = vsel %vm996_vm2, %v999_v5, %v1002_v26  ;;  %v1183_v20 = vshrl.u32 %v1165_v50, %v1181_v35  ;;  %v1186_v40 = vadd.s32 127, %v1185_v25  ;;  %v1480_v46 = vsel %vm1478_vm7, %v1479_v33, %v8439_v30  ;;  %v3768_v30 = vld [vmem:[%s10974_s5 + $0x28] sm:$0xff]  ;;  %2561 = vmatprep.mubr.bf16.mxu0 %v10994_v1  ;;  %2674 = vmatprep.mubr.bf16.mxu1 %v10994_v1 }
 0x182   : > { %v1004_v29 = vsel %vm993_vm1, nan, %v1003_v3  ;;  %v1481_v58 = vadd.s32 %v1480_v46, %v1476_v37  ;;  %vm1640_vm9 = vcmp.gt.s32.totalorder %v1639_v34, 0  ;;  %v1637_v50 = vor.u32 8388608, %v1636_v48  ;;  %3821 = vperm.xlu0 %7024, %v3771_v49  }
 0x183   : > { %v2169_v45 = vrot.slane %v1004_v29, 7  ;;  %v1184_v2 = vor.u32 %v1183_v20, %v1182_v28  ;;  %v1187_v7 = vshll.u32 %v1186_v40, 23  ;;  %v1641_v18 = vsel %vm1640_vm9, %v1639_v34, 0  ;;  %3806 = vperm.xlu1 %7023, %v3768_v30   ;;  %v3770_v40 = vld [vmem:[%s10974_s5 + $0x38] sm:$0xff] }
 0x184   : > { %v1482_v14 = vadd.s32 536870912, %v1481_v58  ;;  %v1643_v32 = vand.u32 31, %v1641_v18  ;;  %v10988_v33 = vand.u32 2147483647, %v7812_v44  ;;  %v8522_v37 = vshrl.u32 %v8291_v63, 5 }
 0x185   : > { %v2202_v0 = vsel %vm2197_vm0, %v7819_v31, %v2169_v45  ;;  %v1188_v11 = vor.u32 4788187, %v1187_v7  ;;  %v8527_v26 = vsub.s32 32, %v8340_v43  ;;  %v8532_v59 = vsub.s32 32, %v8350_v41  ;;  %v8539_v31 = vld [vmem:[%s10971_s2 + $0x38] sm:$0xff]  }
 0x186   : > { %v2218_v35 = vpack.c.bf16 %v2169_v45, %v2202_v0  ;;  %v8529_v25 = vshrl.u32 %v1482_v14, 30  ;;  %v1644_v48 = vsub.s32 32, %v1643_v32  ;;  %v1191_v28 = vcvt.s32.f32 %v1184_v2 }
 0x187   : > { %v1189_v5 = vand.u32 2147483647, %v1188_v11  ;;  %v8534_v63 = vand.u32 3, %v1202_v27  ;;  %v8543_v20 = vshll.u32 %v1637_v50, 8  ;;  %v8550_v46 = vand.u32 8388607, %v10988_v33  ;;  %3816 = vperm.xlu1 %7023, %v3770_v40  }
 0x188   : > { %v2424_v34 = vand.u32 %v7563_v42, %v2218_v35  ;;  %v1484_v3 = vshll.u32 %v8529_v25, 30  ;;  %v1647_v27 = vshrl.u32 %v7272_v51, %v1644_v48  ;;  %v1650_v49 = vshrl.u32 %v7273_v53, %v1644_v48  ;;  %6826 = vmatmul.mubr.msk.bf16.gmra.mrb[28].mxu0 %vm2382_vm10, %v8539_v31  ;;  %6834 = vmatmul.mubr.msk.bf16.gmra.mrb[28].mxu1 %vm2382_vm10, %v8539_v31 }
 0x189   : > { %v1192_v29 = vmul.f32 %v1191_v28, %v1189_v5  ;;  %v1653_v45 = vshrl.u32 %v10992_v55, %v1644_v48  ;;  %v1646_v7 = vshll.u32 %v10990_v47, %v1643_v32  ;;  %v1649_v30 = vshll.u32 %v7272_v51, %v1643_v32  ;;  %2717 = vmatprep.mubr.bf16.mxu0 %v10994_v1 }
 0x18a   : > { %2686 = vmatpush1.bf16.msra.mxu0 %v2424_v34  ;;  %v8555_v2 = vsub.s32 %v1481_v58, %v1484_v3  ;;  %v1656_v14 = vshrl.u32 %v7275_v57, %v1644_v48  ;;  %v1642_v0 = vshrl.u32 %v1641_v18, 5  ;;  %v1652_v11 = vshll.u32 %v7273_v53, %v1643_v32  ;;  %v3772_v3 = vld [vmem:[%s10974_s5 + $0x48] sm:$0xff]  ;;  %2830 = vmatprep.mubr.bf16.mxu1 %v10994_v1 }
 0x18b   : > { %v1193_v50 = vxor.u32 2147483648, %v1192_v29  ;;  %v1655_v35 = vshll.u32 %v10992_v55, %v1643_v32  ;;  %v1648_v58 = vor.u32 %v1647_v27, %v1646_v7  ;;  %v1651_v28 = vor.u32 %v1650_v49, %v1649_v30  ;;  %3826 = vperm.xlu1 %7023, %v3772_v3  }
 0x18c   : > { %v1487_v5 = vsub.s32 0, %v8555_v2  ;;  %v1658_v34 = vshll.u32 %v7275_v57, %v1643_v32  ;;  %vm1423_vm12 = vcmp.lt.s32.totalorder %v8138_v36, 0  ;;  %v1654_v40 = vor.u32 %v1653_v45, %v1652_v11 }
 0x18d   : > { %v1194_v18 = vsel %vm1111_vm3, %v1193_v50, %v1192_v29  ;;  %v1657_v33 = vor.u32 %v1656_v14, %v1655_v35  ;;  %v11021_v27 = vmov 1326507024   ;;  %v1507_v30 = vsub.s32 4, %v8529_v25 }
 0x18e   : > { %v1659_v49 = vshrl.u32 %v11021_v27, %v1644_v48  ;;  %v1197_v32 = vsel %vm8446_vm11, %v8065_v23, %v1194_v18  ;;  %v6784_v7 = vmin.u32 %v1487_v5, %v8555_v2  ;;  %v1645_v62 = vshrl.u32 %v10990_v47, %v1644_v48 }
 0x18f   : > { %7073 = vcosq.f32 %v1197_v32  ;;  %vm1661_vm8 = vcmp.lt.s32.totalorder %v1642_v0, 1  ;;  %vm1662_vm13 = vcmp.lt.s32.totalorder %v1642_v0, 2  ;;  %vm1664_vm14 = vcmp.lt.s32.totalorder %v1642_v0, 4  ;;  %3836 = vperm.xlu1 %7023, %v3774_v52  }
 0x190   : > { %v1660_v29 = vor.u32 %v1659_v49, %v1658_v34  ;;  %7075 = vsinq.f32 %v1197_v32  ;;  %v1489_v45 = vclz %v6784_v7  ;;  %v1665_v14 = vsel %vm1661_vm8, %v1645_v62, %v1648_v58 }
 0x191   : > { %vm1663_vm15 = vcmp.lt.s32.totalorder %v1642_v0, 3  ;;  %v1666_v50 = vsel %vm1664_vm14, %v1654_v40, 2102212464  ;;  %v1669_v11 = vsel %vm1661_vm8, %v1648_v58, %v1651_v28  ;;  %v1670_v35 = vsel %vm1664_vm14, %v1657_v33, 920167782  ;;  %v8596_v58 = vld [vmem:[%s10971_s2] sm:$0xff]  }
 0x192   : > { %v6785_v5 = vadd.s32 4294967294, %v1489_v45  ;;  %v1667_v48 = vsel %vm1663_vm15, %v1651_v28, %v1666_v50  ;;  %v1671_v34 = vsel %vm1663_vm15, %v1654_v40, %v1670_v35  ;;  %v1673_v18 = vsel %vm1661_vm8, %v1651_v28, %v1654_v40  ;;  %6835 = vmatmul.mubr.msk.bf16.vlgmr.msra.gmra.mrb[32].mxu0 %vm2382_vm10, %v8596_v58  ;;  %v3776_v40 = vld [vmem:[%s10974_s5 + $0x68] sm:$0xff] }
 0x193   : > { %vm1208_vm1 = vcmp.eq.s32.totalorder %v8534_v63, 2  ;;  %v1477_v3 = vadd.s32 %v8438_v54, %v8464_v22  ;;  %v1668_v62 = vsel %vm1662_vm13, %v1665_v14, %v1667_v48  ;;  %v1672_v49 = vsel %vm1662_vm13, %v1669_v11, %v1671_v34  ;;  %2727 = vmatprep.mubr.bf16.mxu0 %v10994_v1  ;;  %3846 = vperm.xlu1 %7023, %v3776_v40  }
 0x194   : > { %v1674_v32 = vsel %vm1664_vm14, %v1660_v29, 1326507024  ;;  %vm1205_vm2 = vcmp.eq.s32.totalorder %v8534_v63, 0  ;;  %vm6786_vm11 = vcmp.lt.s32.totalorder %v6785_v5, 0  ;;  %vm1204_vm3 = vcmp.lt.s32.totalorder %v8534_v63, 2 }
 0x195   : > { %v1675_v28 = vsel %vm1663_vm15, %v1657_v33, %v1674_v32  ;;  %v8603_v54 = vmul.u32.u64.low %v8543_v20, %v1672_v49  ;;  %v8604_v22 = vmul.u32.u64.high %v8543_v20, %v1672_v49, %v8603_v54  ;;  %v1492_v7 = vsel %vm6786_vm11, 0, %v6785_v5 }
 0x196   : > { %v1676_v29 = vsel %vm1662_vm13, %v1673_v18, %v1675_v28  ;;  %v1335_v33 = vshrl.u32 %v7272_v51, %v8527_v26  ;;  %vm1201_vm4 = vweird.f32 %v8065_v23  ;;  %v11022_v14 = vand.u32 2147483647, %v8138_v36 }
 0x197   : > { %v1493_v50 = vsub.s32 32, %v1492_v7  ;;  %v1497_v11 = vsub.s32 4294967266, %v1492_v7  ;;  %v1508_v0 = vsel %vm1423_vm12, %v1507_v30, %v8529_v25  ;;  %v1334_v35 = vshll.u32 %v10990_v47, %v8340_v43 }
 0x198   : > { %vm8619_vm5 = vcmp.le.f32.partialorder %v11022_v14, 0.7853982  ;;  %v8629_v5 = vmul.u32.u64.low %v8543_v20, %v1676_v29  ;;  %v8630_v48 = vmul.u32.u64.high %v8543_v20, %v1676_v29, %v8629_v5  ;;  %v1684_v34 = vmul.u32 %v8543_v20, %v1668_v62 }
 0x199   : > { %v1338_v18 = vshrl.u32 %v7273_v53, %v8527_v26  ;;  %v1494_v49 = vshll.u32 %v8555_v2, %v1492_v7  ;;  %v1495_v32 = vshrl.u32 %v1477_v3, %v1493_v50  ;;  %v1498_v28 = vadd.s32 127, %v1497_v11  ;;  %v7074_v25 = vpop.eup %7073 }
 0x19a   : > { %v1687_v14 = vadd.s32 1, %v8604_v22  ;;  %v1336_v30 = vor.u32 %v1335_v33, %v1334_v35  ;;  %v1337_v45 = vshll.u32 %v7272_v51, %v8340_v43  ;;  %v1340_v29 = vshll.u32 %v7273_v53, %v8340_v43  ;;  %v7076_v62 = vpop.eup %7075  ;;  %6836 = vmatmul.mubr.msk.bf16.gmra.mrb[36].mxu0 %vm2382_vm10, %v8195_v17 }
 0x19b   : > { %v1344_v20 = vshrl.u32 %v7275_v57, %v8527_v26  ;;  %v1209_v40 = vxor.u32 2147483648, %v7074_v25  ;;  %v1496_v5 = vor.u32 %v1495_v32, %v1494_v49  ;;  %v1499_v47 = vshll.u32 %v1498_v28, 23  ;;  %2737 = vmatprep.mubr.bf16.mxu0 %v10994_v1 }
 0x19c   : > { %v1341_v2 = vshrl.u32 %v10992_v55, %v8527_v26  ;;  %v1206_v3 = vxor.u32 2147483648, %v7076_v62  ;;  %vm1686_vm6 = vc.u32 %v8630_v48, %v8603_v54  ;;  %v1339_v7 = vor.u32 %v1338_v18, %v1337_v45 }
 0x19d   : > { %v1343_v33 = vshll.u32 %v10992_v55, %v8340_v43  ;;  %v1210_v50 = vsel %vm1208_vm1, %v1209_v40, %v7076_v62  ;;  %v1500_v11 = vor.u32 4788187, %v1499_v47  ;;  %v1688_v35 = vsel %vm1686_vm6, %v1687_v14, %v8604_v22 }
 0x19e   : > { %v1346_v49 = vshll.u32 %v7275_v57, %v8340_v43  ;;  %v1207_v45 = vsel %vm1205_vm2, %v7074_v25, %v1206_v3  ;;  %v1689_v18 = vadd.s32 %v1688_v35, %v1684_v34  ;;  %v1347_v28 = vshrl.u32 %v11021_v27, %v8527_v26 }
 0x19f   : > { %v1345_v32 = vor.u32 %v1344_v20, %v1343_v33  ;;  %v1211_v55 = vsel %vm1204_vm3, %v1207_v45, %v1210_v50  ;;  %v1501_v62 = vand.u32 2147483647, %v1500_v11  ;;  %v1503_v47 = vcvt.s32.f32 %v1496_v5 }
 0x1a0   : > { %v1342_v40 = vor.u32 %v1341_v2, %v1340_v29  ;;  %v1212_v22 = vsel %vm1201_vm4, nan, %v1211_v55  ;;  %v1510_v43 = vsel %vm8619_vm5, 0, %v1508_v0  ;;  %v1690_v14 = vadd.s32 536870912, %v1689_v18 }
 0x1a1   : > { %v11025_v25 = vmov 683565275   ;;  %v2171_v20 = vrot.slane %v1212_v22, 7  ;;  %v1504_v3 = vmul.f32 %v1503_v47, %v1501_v62  ;;  %v1348_v33 = vor.u32 %v1347_v28, %v1346_v49 }
 0x1a2   : > { %v1333_v34 = vshrl.u32 %v11025_v25, %v8527_v26  ;;  %vm1352_vm7 = vcmp.lt.s32.totalorder %v8522_v37, 4  ;;  %v1691_v63 = vshrl.u32 %v1690_v14, 30  ;;  %vm1349_vm9 = vcmp.lt.s32.totalorder %v8522_v37, 1  ;;  %6837 = vmatmul.mubr.msk.bf16.gmra.mrb[40].mxu0 %vm2382_vm10, %v8247_v13 }
 0x1a3   : > { %vm1351_vm8 = vcmp.lt.s32.totalorder %v8522_v37, 3  ;;  %v1358_v55 = vsel %vm1352_vm7, %v1345_v32, 920167782  ;;  %v2204_v23 = vsel %vm2197_vm0, %v8038_v19, %v2171_v20  ;;  %v1505_v0 = vxor.u32 2147483648, %v1504_v3  ;;  %2747 = vmatprep.mubr.bf16.mxu0 %v10994_v1 }
 0x1a4   : > { %v1357_v26 = vsel %vm1349_vm9, %v1336_v30, %v1339_v7  ;;  %v1359_v29 = vsel %vm1351_vm8, %v1342_v40, %v1358_v55  ;;  %v2220_v5 = vpack.c.bf16 %v2171_v20, %v2204_v23  ;;  %v1514_v2 = vadd.s32 3, %v1510_v43 }
 0x1a5   : > { %v1692_v50 = vshll.u32 %v1691_v63, 30  ;;  %vm1350_vm13 = vcmp.lt.s32.totalorder %v8522_v37, 2  ;;  %v1506_v11 = vsel %vm1423_vm12, %v1505_v0, %v1504_v3  ;;  %v1354_v19 = vsel %vm1352_vm7, %v1342_v40, 2102212464 }
 0x1a6   : > { %v1361_v35 = vsel %vm1349_vm9, %v1339_v7, %v1342_v40  ;;  %v1362_v49 = vsel %vm1352_vm7, %v1348_v33, 1326507024  ;;  %v2430_v45 = vand.u32 %v7563_v42, %v2220_v5  ;;  %v1509_v28 = vsel %vm8619_vm5, %v8138_v36, %v1506_v11 }
 0x1a7   : > { %v8696_v62 = vsub.s32 %v1689_v18, %v1692_v50  ;;  %v1360_v47 = vsel %vm1350_vm13, %v1357_v26, %v1359_v29  ;;  %7077 = vcosq.f32 %v1509_v28  ;;  %v1353_v40 = vsel %vm1349_vm9, %v1333_v34, %v1336_v30 }
 0x1a8   : > { %v1363_v22 = vsel %vm1351_vm8, %v1345_v32, %v1362_v49  ;;  %v11026_v43 = vor.u32 8388608, %v8550_v46  ;;  %2799 = vmatpush1.bf16.msra.mxu1 %v2430_v45  ;;  %7079 = vsinq.f32 %v1509_v28  ;;  %v1355_v18 = vsel %vm1351_vm8, %v1339_v7, %v1354_v19 }
 0x1a9   : > { %v1695_v52 = vsub.s32 0, %v8696_v62  ;;  %v1364_v20 = vsel %vm1350_vm13, %v1361_v35, %v1363_v22  ;;  %v1515_v32 = vand.u32 3, %v1514_v2  ;;  %v1356_v55 = vsel %vm1350_vm13, %v1353_v40, %v1355_v18 }
 0x1aa   : > { %v1365_v14 = vshll.u32 %v11026_v43, 8  ;;  %v8724_v7 = vshrl.u32 %v8305_v61, 5  ;;  %vm1631_vm12 = vcmp.lt.s32.totalorder %v8406_v12, 0  ;;  %v1715_v0 = vsub.s32 4, %v1691_v63  ;;  %6838 = vmatmul.mubr.msk.bf16.gmra.mrb[44].mxu0 %vm2382_vm10, %v8320_v24 }
 0x1ab   : > { %v6792_v46 = vmin.u32 %v1695_v52, %v8696_v62  ;;  %6843 = vmatmul.mubr.msk.bf16.vlgmr.msra.gmra.mrb[32].mxu1 %vm2382_vm10, %v8596_v58  ;;  %v1525_v37 = vand.u32 2147483647, %v7840_v21  ;;  %v1543_v61 = vshrl.u32 %v7272_v51, %v8532_v59  ;;  %2757 = vmatprep.mubr.bf16.mxu0 %v10994_v1  ;;  %vm1513_vm15 = vweird.f32 %v8138_v36 }
 0x1ac   : > { %v8711_v3 = vmul.u32.u64.low %v1365_v14, %v1364_v20  ;;  %v8712_v33 = vmul.u32.u64.high %v1365_v14, %v1364_v20, %v8711_v3  ;;  %v8714_v30 = vmul.u32.u64.low %v1365_v14, %v1360_v47  ;;  %v8715_v34 = vmul.u32.u64.high %v1365_v14, %v1360_v47, %v8714_v30  ;;  %2840 = vmatprep.mubr.bf16.mxu1 %v10994_v1 }
 0x1ad   : > { %v1697_v23 = vclz %v6792_v46  ;;  %vm1516_vm1 = vcmp.lt.s32.totalorder %v1515_v32, 2  ;;  %vm1517_vm2 = vcmp.eq.s32.totalorder %v1515_v32, 0  ;;  %v1372_v5 = vmul.u32 %v1365_v14, %v1356_v55 }
 0x1ae   : > { %vm1374_vm14 = vc.u32 %v8712_v33, %v8714_v30  ;;  %v1375_v26 = vadd.s32 1, %v8715_v34  ;;  %vm1520_vm11 = vcmp.eq.s32.totalorder %v1515_v32, 2  ;;  %v1685_v2 = vadd.s32 %v8603_v54, %v8630_v48 }
 0x1af   : > { %v6793_v29 = vadd.s32 4294967294, %v1697_v23  ;;  %v1542_v11 = vshll.u32 %v11025_v25, %v8350_v41  ;;  %v8745_v19 = vsel %vm1631_vm12, %v1715_v0, %v1691_v63  ;;  %v8749_v49 = vshrl.u32 %v11025_v25, %v8532_v59 }
 0x1b0   : > { %v1376_v50 = vsel %vm1374_vm14, %v1375_v26, %v8715_v34  ;;  %v8753_v54 = vand.u32 8388607, %v1525_v37  ;;  %v1545_v47 = vshll.u32 %v7272_v51, %v8350_v41  ;;  %v1546_v14 = vshrl.u32 %v7273_v53, %v8532_v59 }
 0x1b1   : > { %vm6794_vm3 = vcmp.lt.s32.totalorder %v6793_v29, 0  ;;  %v1377_v35 = vadd.s32 %v1376_v50, %v1372_v5  ;;  %v7078_v45 = vpop.eup %7077  ;;  %v8755_v48 = vor.u32 %v1543_v61, %v1542_v11  ;;  %v11027_v20 = vmov 2102212464  }
 0x1b2   : > { %v1700_v28 = vsel %vm6794_vm3, 0, %v6793_v29  ;;  %v7080_v40 = vpop.eup %7079  ;;  %v1521_v22 = vxor.u32 2147483648, %v7078_v45  ;;  %v1549_v3 = vshrl.u32 %v11027_v20, %v8532_v59  ;;  %v1552_v34 = vshrl.u32 %v7275_v57, %v8532_v59  ;;  %6839 = vmatmul.mubr.msk.bf16.gmra.mrb[48].mxu0 %vm2382_vm10, %v8377_v38 }
 0x1b3   : > { %v1701_v63 = vsub.s32 32, %v1700_v28  ;;  %v1705_v43 = vsub.s32 4294967266, %v1700_v28  ;;  %v1518_v52 = vxor.u32 2147483648, %v7080_v40  ;;  %v1378_v18 = vadd.s32 536870912, %v1377_v35  ;;  %6844 = vmatmul.mubr.msk.bf16.gmra.mrb[36].mxu1 %vm2382_vm10, %v8195_v17  ;;  %2767 = vmatprep.mubr.bf16.mxu0 %v10994_v1 }
 0x1b4   : > { %v1522_v46 = vsel %vm1520_vm11, %v1521_v22, %v7080_v40  ;;  %v1702_v55 = vshll.u32 %v8696_v62, %v1700_v28  ;;  %2850 = vmatprep.mubr.bf16.mxu1 %v10994_v1  ;;  %v1548_v29 = vshll.u32 %v7273_v53, %v8350_v41  ;;  %v1555_v17 = vshrl.u32 %v11021_v27, %v8532_v59 }
 0x1b5   : > { %v1703_v23 = vshrl.u32 %v1685_v2, %v1701_v63  ;;  %v1706_v0 = vadd.s32 127, %v1705_v43  ;;  %v1519_v26 = vsel %vm1517_vm2, %v7078_v45, %v1518_v52  ;;  %v8773_v61 = vshrl.u32 %v1378_v18, 30 }
 0x1b6   : > { %v1523_v62 = vsel %vm1516_vm1, %v1519_v26, %v1522_v46  ;;  %v11028_v5 = vand.u32 2147483647, %v8406_v12  ;;  %v1551_v45 = vshll.u32 %v11027_v20, %v8350_v41  ;;  %v1550_v40 = vor.u32 %v1549_v3, %v1548_v29 }
 0x1b7   : > { %v1704_v50 = vor.u32 %v1703_v23, %v1702_v55  ;;  %v1707_v11 = vshll.u32 %v1706_v0, 23  ;;  %v1524_v28 = vsel %vm1513_vm15, nan, %v1523_v62  ;;  %v1380_v59 = vshll.u32 %v8773_v61, 30  ;;  %v5204_v62 = vld [vmem:[%s10976_s7 + $0x8] sm:$0xff] }
 0x1b8   : > { %vm8783_vm4 = vcmp.le.f32.partialorder %v11028_v5, 0.7853982  ;;  %v1554_v32 = vshll.u32 %v7275_v57, %v8350_v41  ;;  %v2174_v22 = vrot.slane %v1524_v28, 7  ;;  %v1547_v43 = vor.u32 %v1546_v14, %v1545_v47  ;;  %v3775_v5 = vld [vmem:[%s10974_s5 + $0x60] sm:$0xff] }
 0x1b9   : > { %v1708_v63 = vor.u32 4788187, %v1707_v11  ;;  %v1553_v52 = vor.u32 %v1552_v34, %v1551_v45  ;;  %v8794_v18 = vsub.s32 %v1377_v35, %v1380_v59  ;;  %v1533_v46 = vor.u32 8388608, %v8753_v54  ;;  %v3778_v54 = vld [vmem:[%s10974_s5 + $0x78] sm:$0xff] }
 0x1ba   : > { %v1556_v55 = vor.u32 %v1555_v17, %v1554_v32  ;;  %vm1557_vm5 = vcmp.lt.s32.totalorder %v8724_v7, 1  ;;  %v2207_v36 = vsel %vm2197_vm0, %v8056_v10, %v2174_v22  ;;  %v1711_v0 = vcvt.s32.f32 %v1704_v50  ;;  %v3773_v10 = vld [vmem:[%s10974_s5 + $0x50] sm:$0xff]  ;;  %3856 = vperm.xlu1 %7023, %v3778_v54   ;;  %6840 = vmatmul.mubr.msk.bf16.gmra.mrb[52].mxu0 %vm2382_vm10, %v8431_v6 }
 0x1bb   : > { %v1709_v23 = vand.u32 2147483647, %v1708_v63  ;;  %vm1560_vm6 = vcmp.lt.s32.totalorder %v8724_v7, 4  ;;  %v2223_v3 = vpack.c.bf16 %v2174_v22, %v2207_v36  ;;  %v1383_v41 = vsub.s32 0, %v8794_v18  ;;  %6845 = vmatmul.mubr.msk.bf16.gmra.mrb[40].mxu1 %vm2382_vm10, %v8247_v13  ;;  %3831 = vperm.xlu0 %7024, %v3773_v10  }
 0x1bc   : > { %vm1559_vm7 = vcmp.lt.s32.totalorder %v8724_v7, 3  ;;  %v1562_v35 = vsel %vm1560_vm6, %v1550_v40, 2102212464  ;;  %v1565_v14 = vsel %vm1557_vm5, %v8755_v48, %v1547_v43  ;;  %v1566_v34 = vsel %vm1560_vm6, %v1553_v52, 920167782  ;;  %2860 = vmatprep.mubr.bf16.mxu1 %v10994_v1  ;;  %2777 = vmatprep.mubr.bf16.mxu0 %v10994_v1 }
 0x1bd   : > { %v1712_v47 = vmul.f32 %v1711_v0, %v1709_v23  ;;  %v1569_v26 = vsel %vm1557_vm5, %v1547_v43, %v1550_v40  ;;  %v2439_v29 = vand.u32 %v7563_v42, %v2223_v3  ;;  %v6780_v17 = vmin.u32 %v1383_v41, %v8794_v18 }
 0x1be   : > { %vm1558_vm9 = vcmp.lt.s32.totalorder %v8724_v7, 2  ;;  %v1567_v13 = vsel %vm1559_vm7, %v1550_v40, %v1566_v34  ;;  %v1570_v45 = vsel %vm1560_vm6, %v1556_v55, 1326507024  ;;  %v1573_v28 = vshll.u32 %v1533_v46, 8  ;;  %5218 = vperm.xlu1 %7023, %v5204_v62  }
 0x1bf   : > { %v1713_v50 = vxor.u32 2147483648, %v1712_v47  ;;  %v1568_v11 = vsel %vm1558_vm9, %v1565_v14, %v1567_v13  ;;  %2911 = vmatprep.subr.bf16.mxu0 %v2439_v29  ;;  %v1718_v59 = vsel %vm8783_vm4, 0, %v8745_v19  ;;  %v1385_v40 = vclz %v6780_v17  ;;  %3841 = vperm.xlu0 %7024, %v3775_v5   ;;  %v5208_v29 = vld [vmem:[%s10976_s7 + $0x28] sm:$0xff] }
 0x1c0   : > { %v1561_v32 = vsel %vm1557_vm5, %v8749_v49, %v8755_v48  ;;  %v1563_v22 = vsel %vm1559_vm7, %v1547_v43, %v1562_v35  ;;  %v1571_v46 = vsel %vm1559_vm7, %v1553_v52, %v1570_v45  ;;  %v5206_v43 = vld [vmem:[%s10976_s7 + $0x18] sm:$0xff]  ;;  %v3777_v52 = vld [vmem:[%s10974_s5 + $0x70] sm:$0xff]  ;;  %v1722_v23 = vadd.s32 3, %v1718_v59 }
 0x1c1   : > { %v1714_v63 = vsel %vm1631_vm12, %v1713_v50, %v1712_v47  ;;  %v8852_v55 = vmul.u32.u64.low %v1573_v28, %v1568_v11  ;;  %v8853_v36 = vmul.u32.u64.high %v1573_v28, %v1568_v11, %v8852_v55  ;;  %v6781_v49 = vadd.s32 4294967294, %v1385_v40 }
 0x1c2   : > { %v1717_v19 = vsel %vm8783_vm4, %v8406_v12, %v1714_v63  ;;  %v1572_v48 = vsel %vm1558_vm9, %v1569_v26, %v1571_v46  ;;  %v1564_v2 = vsel %vm1558_vm9, %v1561_v32, %v1563_v22  ;;  %v11031_v41 = vsub.s32 5, %v7391_v4  ;;  %5228 = vperm.xlu1 %7023, %v5206_v43   ;;  %6841 = vmatmul.mubr.msk.bf16.gmra.mrb[56].mxu0 %vm2382_vm10, %v8496_v16  ;;  %v5210_v32 = vld [vmem:[%s10976_s7 + $0x38] sm:$0xff]  ;;  %v5205_v22 = vld [vmem:[%s10976_s7 + $0x10] sm:$0xff]  ;;  %v6052_v63 = vld [vmem:[%s10978_s9] sm:$0x7] }
 0x1c3   : > { %7081 = vcosq.f32 %v1717_v19  ;;  %v8867_v0 = vmul.u32.u64.low %v1573_v28, %v1572_v48  ;;  %v8868_v3 = vmul.u32.u64.high %v1573_v28, %v1572_v48, %v8867_v0  ;;  %vm6782_vm8 = vcmp.lt.s32.totalorder %v6781_v49, 0  ;;  %6846 = vmatmul.mubr.msk.bf16.gmra.mrb[44].mxu1 %vm2382_vm10, %v8320_v24  ;;  %3851 = vperm.xlu0 %7024, %v3777_v52   ;;  %v5203_v24 = vld [vmem:[%s10976_s7] sm:$0xff] }
 0x1c4   : > { %7083 = vsinq.f32 %v1717_v19  ;;  %v8875_v35 = vrot.slane %v8327_v39, %v11031_v41  ;;  %v1373_v54 = vadd.s32 %v8714_v30, %v8712_v33  ;;  %v1388_v10 = vsel %vm6782_vm8, 0, %v6781_v49  ;;  %2870 = vmatprep.mubr.bf16.mxu1 %v10994_v1  ;;  %2787 = vmatprep.mubr.bf16.mxu0 %v10994_v1 }
 0x1c5   : > { %v1583_v47 = vadd.s32 1, %v8853_v36  ;;  %v1389_v14 = vsub.s32 32, %v1388_v10  ;;  %v1393_v34 = vsub.s32 4294967266, %v1388_v10  ;;  %v1403_v7 = vsub.s32 4, %v8773_v61 }
 0x1c6   : > { %v462_v26 = vmul.f32 %v7404_v9, %v8875_v35  ;;  %v1723_v33 = vand.u32 3, %v1722_v23  ;;  %v1390_v30 = vshll.u32 %v8794_v18, %v1388_v10  ;;  %v1580_v17 = vmul.u32 %v1573_v28, %v1564_v2  ;;  %5238 = vperm.xlu1 %7023, %v5208_v29  }
 0x1c7   : > { %vm1582_vm13 = vc.u32 %v8868_v3, %v8852_v55  ;;  %v1391_v13 = vshrl.u32 %v1373_v54, %v1389_v14  ;;  %v1394_v62 = vadd.s32 127, %v1393_v34  ;;  %vm1319_vm12 = vcmp.lt.s32.totalorder %v7812_v44, 0  ;;  %5213 = vperm.xlu0 %7024, %v5203_v24  }
 0x1c8   : > { %v1584_v5 = vsel %vm1582_vm13, %v1583_v47, %v8853_v36  ;;  %v8900_v50 = vadd.f32 %v7425_v15, %v462_v26  ;;  %v11032_v45 = vsub.s32 7, %v7391_v4  ;;  %v1404_v40 = vsel %vm1319_vm12, %v1403_v7, %v8773_v61 }
 0x1c9   : > { %v1585_v11 = vadd.s32 %v1584_v5, %v1580_v17  ;;  %v1392_v28 = vor.u32 %v1391_v13, %v1390_v30  ;;  %v1395_v59 = vshll.u32 %v1394_v62, 23  ;;  %vm1721_vm14 = vweird.f32 %v8406_v12 }
 0x1ca   : > { %v8906_v18 = vrot.slane %v8327_v39, %v11032_v45  ;;  %v11033_v39 = vand.u32 2147483647, %v7812_v44  ;;  %v1840_v36 = vand.u32 2139095040, %v8900_v50  ;;  %vm1724_vm1 = vcmp.lt.s32.totalorder %v1723_v33, 2  ;;  %5248 = vperm.xlu1 %7023, %v5210_v32   ;;  %6842 = vmatmul.mubr.msk.bf16.gmra.mrb[60].mxu0 %vm2382_vm10, %v8539_v31 }
 0x1cb   : > { %v1586_v46 = vadd.s32 536870912, %v1585_v11  ;;  %vm1725_vm2 = vcmp.eq.s32.totalorder %v1723_v33, 0  ;;  %v1396_v61 = vor.u32 4788187, %v1395_v59  ;;  %vm1527_vm11 = vcmp.lt.s32.totalorder %v7840_v21, 0  ;;  %6847 = vmatmul.mubr.msk.bf16.gmra.mrb[48].mxu1 %vm2382_vm10, %v8377_v38  ;;  %5223 = vperm.xlu0 %7024, %v5205_v22   ;;  %v5207_v38 = vld [vmem:[%s10976_s7 + $0x20] sm:$0xff] }
 0x1cc   : > { %vm8920_vm15 = vcmp.le.f32.partialorder %v11033_v39, 0.7853982  ;;  %v1837_v19 = vand.u32 2147483647, %v8900_v50  ;;  %v1841_v52 = vshrl.u32 %v1840_v36, 23  ;;  %v464_v23 = vmul.f32 %v7404_v9, %v8906_v18  ;;  %2880 = vmatprep.mubr.bf16.mxu1 %v10994_v1  ;;  %2943 = vmatprep.mubr.bf16.mxu0 %v10994_v1  ;;  %v5209_v59 = vld [vmem:[%s10976_s7 + $0x30] sm:$0xff] }
 0x1cd   : > { %v7082_v49 = vpop.eup %7081  ;;  %v1406_v48 = vsel %vm8920_vm15, 0, %v1404_v40  ;;  %v1587_v43 = vshrl.u32 %v1586_v46, 30  ;;  %vm1728_vm3 = vcmp.eq.s32.totalorder %v1723_v33, 2  ;;  %v1397_v41 = vand.u32 2147483647, %v1396_v61  ;;  %v8963_v40 = vld [vmem:[%s7396_s30 + $0x8] sm:$0xff] }
 0x1ce   : > { %v7084_v0 = vpop.eup %7083  ;;  %v1729_v2 = vxor.u32 2147483648, %v7082_v49  ;;  %v1399_v54 = vcvt.s32.f32 %v1392_v28  ;;  %vm8941_vm4 = vcmp.le.f32.partialorder %v1525_v37, 0.7853982  ;;  %v6799_v34 = vadd.s32 4294967169, %v1841_v52  ;;  %s6685_s30 = sshll.u32 %s10898_s26, 4  ;;  %s10926_s30 = int_to_ptr.vmem [resolvable:$true] %s6685_s30 }
 0x1cf   : > { %v1726_v10 = vxor.u32 2147483648, %v7084_v0  ;;  %v1588_v14 = vshll.u32 %v1587_v43, 30  ;;  %v8946_v7 = vadd.f32 %v7425_v15, %v464_v23  ;;  %v1410_v24 = vadd.s32 3, %v1406_v48  ;;  %5233 = vperm.xlu0 %7024, %v5207_v38   ;;  %s7205_s18 = scalar_lea.vmem %s10926_s30, 1024  ;;  %p7212_p0 = scmp.lt.s32.totalorder %s10926_s30, %s7210_s20 }
 0x1d0   : > { %v1730_v26 = vsel %vm1728_vm3, %v1729_v2, %v7084_v0  ;;  %v1400_v29 = vmul.f32 %v1399_v54, %v1397_v41  ;;  %v1844_v30 = vand.u32 8388607, %v1837_v19  ;;  %v1611_v13 = vsub.s32 4, %v1587_v43  ;;  %p7206_p11 = scmp.ne.s32.totalorder %s10926_s30, %s7205_s18  ;;  %p7213_p1 = scmp.lt.s32.totalorder %s7211_s25, %s7205_s18 }
 0x1d1   : > { %v1727_v17 = vsel %vm1725_vm2, %v7082_v49, %v1726_v10  ;;  %v8952_v37 = vsub.s32 %v1585_v11, %v1588_v14  ;;  %v1847_v62 = vadd.s32 1, %v6799_v34  ;;  %v8957_v28 = vadd.s32 %v8852_v55, %v8868_v3 }
 0x1d2   : > { %v1731_v5 = vsel %vm1724_vm1, %v1727_v17, %v1730_v26  ;;  %v1401_v45 = vxor.u32 2147483648, %v1400_v29  ;;  %v11038_v32 = vsub.s32 4, %v7391_v4  ;;  %v2048_v55 = vand.u32 2139095040, %v8946_v7  ;;  %p7207_p12 = pnand %p7206_p11, %p7372_p5  ;;  %p7214_p2 = por %p7213_p1, %p7212_p0 }
 0x1d3   : > { %v1732_v33 = vsel %vm1721_vm14, nan, %v1731_v5  ;;  %v1591_v22 = vsub.s32 0, %v8952_v37  ;;  %vm1848_vm5 = vcmp.gt.s32.totalorder %v1847_v62, 0  ;;  %v1845_v46 = vor.u32 8388608, %v1844_v30  ;;  %6848 = vmatmul.mubr.msk.bf16.gmra.mrb[52].mxu1 %vm2382_vm10, %v8431_v6  ;;  %5243 = vperm.xlu0 %7024, %v5209_v59  }
 0x1d4   : > { %v8968_v11 = vrot.slane %v8963_v40, %v11038_v32  ;;  %v2176_v3 = vrot.slane %v1732_v33, 7  ;;  %v1402_v39 = vsel %vm1319_vm12, %v1401_v45, %v1400_v29  ;;  %v1849_v36 = vsel %vm1848_vm5, %v1847_v62, 0  ;;  %2890 = vmatprep.mubr.bf16.mxu1 %v10994_v1  ;;  %p7208_p13 = pneg %p7207_p12 }
 0x1d5   : > { %v1405_v61 = vsel %vm8920_vm15, %v7812_v44, %v1402_v39  ;;  %v8981_v12 = vand.u32 3, %v1410_v24  ;;  %v6788_v49 = vmin.u32 %v1591_v22, %v8952_v37  ;;  %v8986_v48 = vsel %vm1527_vm11, %v1611_v13, %v1587_v43 }
 0x1d6   : > { %v2209_v52 = vsel %vm2197_vm0, %v8332_v56, %v2176_v3  ;;  %7085 = vcosq.f32 %v1405_v61  ;;  %v1851_v6 = vand.u32 31, %v1849_v36  ;;  %v2045_v23 = vand.u32 2147483647, %v8946_v7  ;;  %p7215_p3 = pnand %p7214_p2, %p7208_p13 }
 0x1d7   : > { %v2225_v0 = vpack.c.bf16 %v2176_v3, %v2209_v52  ;;  %7087 = vsinq.f32 %v1405_v61  ;;  %v1593_v2 = vclz %v6788_v49  ;;  %v2049_v41 = vshrl.u32 %v2048_v55, 23  ;;  %6055 = vperm.xlu0 %7024, %v6052_v63  }
 0x1d8   : > { %v1614_v43 = vsel %vm8941_vm4, 0, %v8986_v48  ;;  %v8998_v54 = vshrl.u32 %v1849_v36, 5  ;;  %v1852_v38 = vsub.s32 32, %v1851_v6  ;;  %v9000_v56 = vshll.u32 %v1845_v46, 8 }
 0x1d9   : > { %v2445_v10 = vand.u32 %v7563_v42, %v2225_v0  ;;  %v6789_v14 = vadd.s32 4294967294, %v1593_v2  ;;  %v1854_v34 = vshll.u32 %v11025_v25, %v1851_v6  ;;  %v1857_v26 = vshll.u32 %v7272_v51, %v1851_v6 }
 0x1da   : > { %vm1416_vm6 = vcmp.eq.s32.totalorder %v8981_v12, 2  ;;  %v1855_v29 = vshrl.u32 %v7272_v51, %v1852_v38  ;;  %v1858_v24 = vshrl.u32 %v7273_v53, %v1852_v38  ;;  %v1860_v30 = vshll.u32 %v7273_v53, %v1851_v6 }
 0x1db   : > { %v1861_v17 = vshrl.u32 %v11027_v20, %v1852_v38  ;;  %3024 = vmatprep.subr.bf16.mxu1 %v2445_v10  ;;  %vm1413_vm7 = vcmp.eq.s32.totalorder %v8981_v12, 0  ;;  %vm6790_vm9 = vcmp.lt.s32.totalorder %v6789_v14, 0  ;;  %v1863_v13 = vshll.u32 %v11027_v20, %v1851_v6  ;;  %6849 = vmatmul.mubr.msk.bf16.gmra.mrb[56].mxu1 %vm2382_vm10, %v8496_v16 }
 0x1dc   : > { %v1864_v62 = vshrl.u32 %v7275_v57, %v1852_v38  ;;  %v6807_v5 = vadd.s32 4294967169, %v2049_v41  ;;  %vm1412_vm8 = vcmp.lt.s32.totalorder %v8981_v12, 2  ;;  %v1596_v45 = vsel %vm6790_vm9, 0, %v6789_v14  ;;  %2900 = vmatprep.mubr.bf16.mxu1 %v10994_v1 }
 0x1dd   : > { %v1856_v59 = vor.u32 %v1855_v29, %v1854_v34  ;;  %v1859_v32 = vor.u32 %v1858_v24, %v1857_v26  ;;  %v1862_v33 = vor.u32 %v1861_v17, %v1860_v30  ;;  %vm1409_vm13 = vweird.f32 %v7812_v44 }
 0x1de   : > { %v1597_v22 = vsub.s32 32, %v1596_v45  ;;  %v1601_v55 = vsub.s32 4294967266, %v1596_v45  ;;  %v1853_v3 = vshrl.u32 %v11025_v25, %v1852_v38  ;;  %v1865_v39 = vor.u32 %v1864_v62, %v1863_v13 }
 0x1df   : > { %v1598_v46 = vshll.u32 %v8952_v37, %v1596_v45  ;;  %v1866_v36 = vshll.u32 %v7275_v57, %v1851_v6  ;;  %v1867_v61 = vshrl.u32 %v11021_v27, %v1852_v38  ;;  %vm1869_vm12 = vcmp.lt.s32.totalorder %v8998_v54, 1 }
 0x1e0   : > { %v1599_v49 = vshrl.u32 %v8957_v28, %v1597_v22  ;;  %v1602_v16 = vadd.s32 127, %v1601_v55  ;;  %vm1870_vm14 = vcmp.lt.s32.totalorder %v8998_v54, 2  ;;  %vm1872_vm15 = vcmp.lt.s32.totalorder %v8998_v54, 4  ;;  %v7086_v52 = vpop.eup %7085 }
 0x1e1   : > { %v1868_v63 = vor.u32 %v1867_v61, %v1866_v36  ;;  %v1874_v0 = vsel %vm1872_vm15, %v1862_v33, 2102212464  ;;  %v1877_v37 = vsel %vm1869_vm12, %v1856_v59, %v1859_v32  ;;  %v1878_v6 = vsel %vm1872_vm15, %v1865_v39, 920167782  ;;  %v7088_v2 = vpop.eup %7087 }
 0x1e2   : > { %v1417_v41 = vxor.u32 2147483648, %v7086_v52  ;;  %v1600_v38 = vor.u32 %v1599_v49, %v1598_v46  ;;  %v1603_v28 = vshll.u32 %v1602_v16, 23  ;;  %vm1871_vm1 = vcmp.lt.s32.totalorder %v8998_v54, 3 }
 0x1e3   : > { %v1414_v10 = vxor.u32 2147483648, %v7088_v2  ;;  %v1873_v14 = vsel %vm1869_vm12, %v1853_v3, %v1856_v59  ;;  %v1875_v34 = vsel %vm1871_vm1, %v1859_v32, %v1874_v0  ;;  %v1879_v26 = vsel %vm1871_vm1, %v1862_v33, %v1878_v6  ;;  %6850 = vmatmul.mubr.msk.bf16.gmra.mrb[60].mxu1 %vm2382_vm10, %v8539_v31 }
 0x1e4   : > { %v1418_v29 = vsel %vm1416_vm6, %v1417_v41, %v7088_v2  ;;  %v1604_v24 = vor.u32 4788187, %v1603_v28  ;;  %v1880_v30 = vsel %vm1870_vm14, %v1877_v37, %v1879_v26  ;;  %v1881_v17 = vsel %vm1869_vm12, %v1859_v32, %v1862_v33  ;;  %3056 = vmatprep.mubr.bf16.mxu1 %v10994_v1 }
 0x1e5   : > { %v1415_v13 = vsel %vm1413_vm7, %v7086_v52, %v1414_v10  ;;  %v1882_v62 = vsel %vm1872_vm15, %v1868_v63, 1326507024  ;;  %v9050_v45 = vmul.u32.u64.low %v9000_v56, %v1880_v30  ;;  %v9051_v59 = vmul.u32.u64.high %v9000_v56, %v1880_v30, %v9050_v45 }
 0x1e6   : > { %v1419_v22 = vsel %vm1412_vm8, %v1415_v13, %v1418_v29  ;;  %v1605_v55 = vand.u32 2147483647, %v1604_v24  ;;  %v1607_v3 = vcvt.s32.f32 %v1600_v38  ;;  %v1883_v32 = vsel %vm1871_vm1, %v1865_v39, %v1882_v62 }
 0x1e7   : > { %v1420_v33 = vsel %vm1409_vm13, nan, %v1419_v22  ;;  %v1618_v46 = vadd.s32 3, %v1614_v43  ;;  %v1884_v31 = vsel %vm1870_vm14, %v1881_v17, %v1883_v32  ;;  %v2055_v12 = vadd.s32 1, %v6807_v5 }
 0x1e8   : > { %v2173_v36 = vrot.slane %v1420_v33, 7  ;;  %v1608_v61 = vmul.f32 %v1607_v3, %v1605_v55  ;;  %v9070_v49 = vmul.u32.u64.low %v9000_v56, %v1884_v31  ;;  %v9071_v16 = vmul.u32.u64.high %v9000_v56, %v1884_v31, %v9070_v49 }
 0x1e9   : > { %v1876_v39 = vsel %vm1870_vm14, %v1873_v14, %v1875_v34  ;;  %v1895_v44 = vadd.s32 1, %v9051_v59  ;;  %vm2056_vm2 = vcmp.gt.s32.totalorder %v2055_v12, 0  ;;  %v461_v48 = vmul.f32 %v7404_v9, %v8968_v11 }
 0x1ea   : > { %v2206_v43 = vsel %vm2197_vm0, %v7536_v60, %v2173_v36  ;;  %v1609_v52 = vxor.u32 2147483648, %v1608_v61  ;;  %v2057_v5 = vsel %vm2056_vm2, %v2055_v12, 0  ;;  %v2052_v0 = vand.u32 8388607, %v2045_v23 }
 0x1eb   : > { %v2222_v63 = vpack.c.bf16 %v2173_v36, %v2206_v43  ;;  %v2059_v37 = vand.u32 31, %v2057_v5  ;;  %v9083_v6 = vadd.f32 %v7425_v15, %v461_v48  ;;  %v9087_v2 = vand.u32 3, %v1618_v46 }
 0x1ec   : > { %v1610_v54 = vsel %vm1527_vm11, %v1609_v52, %v1608_v61  ;;  %v1892_v41 = vmul.u32 %v9000_v56, %v1876_v39  ;;  %vm1894_vm3 = vc.u32 %v9071_v16, %v9050_v45  ;;  %v9097_v34 = vshrl.u32 %v2057_v5, 5 }
 0x1ed   : > { %v2436_v60 = vand.u32 %v7563_v42, %v2222_v63  ;;  %v1613_v38 = vsel %vm8941_vm4, %v7840_v21, %v1610_v54  ;;  %v1896_v28 = vsel %vm1894_vm3, %v1895_v44, %v9051_v59  ;;  %v2060_v10 = vsub.s32 32, %v2059_v37 }
 0x1ee   : > { %7089 = vcosq.f32 %v1613_v38  ;;  %v1897_v14 = vadd.s32 %v1896_v28, %v1892_v41  ;;  %v2062_v26 = vshll.u32 %v11025_v25, %v2059_v37  ;;  %v2065_v29 = vshll.u32 %v7272_v51, %v2059_v37 }
 0x1ef   : > { %2912 = vmatpush1.bf16.msra.mxu0 %v2436_v60  ;;  %7091 = vsinq.f32 %v1613_v38  ;;  %v2063_v56 = vshrl.u32 %v7272_v51, %v2060_v10  ;;  %v2066_v24 = vshrl.u32 %v7273_v53, %v2060_v10  ;;  %v2053_v47 = vor.u32 8388608, %v2052_v0 }
 0x1f0   : > { %v1898_v30 = vadd.s32 536870912, %v1897_v14  ;;  %v2068_v17 = vshll.u32 %v7273_v53, %v2059_v37  ;;  %v2069_v13 = vshrl.u32 %v11027_v20, %v2060_v10  ;;  %vm1839_vm11 = vcmp.lt.s32.totalorder %v8900_v50, 0 }
 0x1f1   : > { %v2064_v62 = vor.u32 %v2063_v56, %v2062_v26  ;;  %v2067_v59 = vor.u32 %v2066_v24, %v2065_v29  ;;  %v2071_v22 = vshll.u32 %v11027_v20, %v2059_v37  ;;  %v2072_v55 = vshrl.u32 %v7275_v57, %v2060_v10 }
 0x1f2   : > { %vm1624_vm4 = vcmp.eq.s32.totalorder %v9087_v2, 2  ;;  %v1899_v3 = vshrl.u32 %v1898_v30, 30  ;;  %v2070_v32 = vor.u32 %v2069_v13, %v2068_v17  ;;  %v2074_v33 = vshll.u32 %v7275_v57, %v2059_v37  ;;  %6851 = vmatmul.mubr.msk.bf16.vlgmr.msra.gmra.mrb[64].mxu0 %vm2382_vm10, %v8596_v58 }
 0x1f3   : > { %v2075_v46 = vshrl.u32 %v11021_v27, %v2060_v10  ;;  %vm1621_vm5 = vcmp.eq.s32.totalorder %v9087_v2, 0  ;;  %v2061_v31 = vshrl.u32 %v11025_v25, %v2060_v10  ;;  %v2073_v12 = vor.u32 %v2072_v55, %v2071_v22  ;;  %2953 = vmatprep.mubr.bf16.mxu0 %v10994_v1 }
 0x1f4   : > { %vm2077_vm6 = vcmp.lt.s32.totalorder %v9097_v34, 1  ;;  %v1736_v36 = vand.u32 2139095040, %v9083_v6  ;;  %v1900_v61 = vshll.u32 %v1899_v3, 30  ;;  %vm2078_vm7 = vcmp.lt.s32.totalorder %v9097_v34, 2 }
 0x1f5   : > { %v2076_v49 = vor.u32 %v2075_v46, %v2074_v33  ;;  %vm2080_vm9 = vcmp.lt.s32.totalorder %v9097_v34, 4  ;;  %vm1617_vm8 = vweird.f32 %v7840_v21  ;;  %vm2079_vm13 = vcmp.lt.s32.totalorder %v9097_v34, 3  ;;  %v9287_v34 = vld [vmem:[%s10971_s2 + $0x20] sm:$0xff]  }
 0x1f6   : > { %v2082_v58 = vsel %vm2080_vm9, %v2070_v32, 2102212464  ;;  %v2085_v39 = vsel %vm2077_vm6, %v2064_v62, %v2067_v59  ;;  %v2086_v44 = vsel %vm2080_vm9, %v2073_v12, 920167782  ;;  %v9124_v48 = vsub.s32 %v1897_v14, %v1900_v61 }
 0x1f7   : > { %v1923_v43 = vsub.s32 4, %v1899_v3  ;;  %v2087_v52 = vsel %vm2079_vm13, %v2070_v32, %v2086_v44  ;;  %v2089_v5 = vsel %vm2077_vm6, %v2067_v59, %v2070_v32  ;;  %v2090_v0 = vsel %vm2080_vm9, %v2076_v49, 1326507024 }
 0x1f8   : > { %v2088_v63 = vsel %vm2078_vm7, %v2085_v39, %v2087_v52  ;;  %v2093_v37 = vshll.u32 %v2053_v47, 8  ;;  %v1733_v54 = vand.u32 2147483647, %v9083_v6  ;;  %v7090_v41 = vpop.eup %7089  ;;  %v1903_v60 = vsub.s32 0, %v9124_v48 }
 0x1f9   : > { %v2081_v38 = vsel %vm2077_vm6, %v2061_v31, %v2064_v62  ;;  %v2083_v28 = vsel %vm2079_vm13, %v2067_v59, %v2082_v58  ;;  %v2091_v10 = vsel %vm2079_vm13, %v2073_v12, %v2090_v0  ;;  %v7092_v14 = vpop.eup %7091  ;;  %v1625_v26 = vxor.u32 2147483648, %v7090_v41  ;;  %v9152_v62 = vld [vmem:[%s10971_s2 + $0x8] sm:$0xff]  }
 0x1fa   : > { %v2092_v56 = vsel %vm2078_vm7, %v2089_v5, %v2091_v10  ;;  %v9142_v29 = vmul.u32.u64.low %v2093_v37, %v2088_v63  ;;  %v9143_v24 = vmul.u32.u64.high %v2093_v37, %v2088_v63, %v9142_v29  ;;  %v1622_v30 = vxor.u32 2147483648, %v7092_v14  ;;  %6852 = vmatmul.mubr.msk.bf16.gmra.mrb[68].mxu0 %vm2382_vm10, %v9152_v62 }
 0x1fb   : > { %v6800_v47 = vmin.u32 %v1903_v60, %v9124_v48  ;;  %v1924_v17 = vsel %vm1839_vm11, %v1923_v43, %v1899_v3  ;;  %v1737_v13 = vshrl.u32 %v1736_v36, 23  ;;  %v1626_v59 = vsel %vm1624_vm4, %v1625_v26, %v7092_v14  ;;  %2963 = vmatprep.mubr.bf16.mxu0 %v10994_v1  ;;  %v9195_v60 = vld [vmem:[%s10971_s2 + $0x10] sm:$0xff]  }
 0x1fc   : > { %v2084_v22 = vsel %vm2078_vm7, %v2081_v38, %v2083_v28  ;;  %v9160_v55 = vmul.u32.u64.low %v2093_v37, %v2092_v56  ;;  %v9161_v32 = vmul.u32.u64.high %v2093_v37, %v2092_v56, %v9160_v55  ;;  %vm1620_vm12 = vcmp.lt.s32.totalorder %v9087_v2, 2 }
 0x1fd   : > { %v1623_v3 = vsel %vm1621_vm5, %v7090_v41, %v1622_v30  ;;  %v1905_v33 = vclz %v6800_v47  ;;  %v11039_v46 = vsub.s32 6, %v7391_v4  ;;  %vm9174_vm14 = vcmp.le.f32.partialorder %v1837_v19, 0.7853982 }
 0x1fe   : > { %v1627_v12 = vsel %vm1620_vm12, %v1623_v3, %v1626_v59  ;;  %v2103_v36 = vadd.s32 1, %v9143_v24  ;;  %v6795_v61 = vadd.s32 4294967169, %v1737_v13  ;;  %v1926_v4 = vsel %vm9174_vm14, 0, %v1924_v17 }
 0x1ff   : > { %v9170_v31 = vrot.slane %v8963_v40, %v11039_v46  ;;  %v1628_v2 = vsel %vm1617_vm8, nan, %v1627_v12  ;;  %v6801_v49 = vadd.s32 4294967294, %v1905_v33  ;;  %v2100_v58 = vmul.u32 %v2093_v37, %v2084_v22  ;;  %v9231_v12 = vld [vmem:[%s10971_s2] sm:$0xff]  }
 0x200   : > { %v2175_v40 = vrot.slane %v1628_v2, 7  ;;  %vm2102_vm15 = vc.u32 %v9161_v32, %v9142_v29  ;;  %v1740_v19 = vand.u32 8388607, %v1733_v54  ;;  %v1743_v39 = vadd.s32 1, %v6795_v61 }
 0x201   : > { %v1893_v44 = vadd.s32 %v9050_v45, %v9071_v16  ;;  %vm6802_vm1 = vcmp.lt.s32.totalorder %v6801_v49, 0  ;;  %v2104_v21 = vsel %vm2102_vm15, %v2103_v36, %v9143_v24  ;;  %v1930_v41 = vadd.s32 3, %v1926_v4  ;;  %v9237_v36 = vpop.f32.mrb[0].mxu0 }
 0x202   : > { %v2208_v43 = vsel %vm2197_vm0, %v7550_v8, %v2175_v40  ;;  %v1908_v52 = vsel %vm6802_vm1, 0, %v6801_v49  ;;  %v2105_v5 = vadd.s32 %v2104_v21, %v2100_v58  ;;  %vm1744_vm2 = vcmp.gt.s32.totalorder %v1743_v39, 0  ;;  %6853 = vmatmul.mubr.msk.bf16.gmra.mrb[72].mxu0 %vm2382_vm10, %v9195_v60  ;;  %v9245_v58 = vld [vmem:[%s10971_s2 + $0x18] sm:$0xff]   ;;  %v9254_v21 = vpop.f32.mrb[1].mxu0 }
 0x203   : > { %v2224_v63 = vpack.c.bf16 %v2175_v40, %v2208_v43  ;;  %v1909_v0 = vsub.s32 32, %v1908_v52  ;;  %v1913_v37 = vsub.s32 4294967266, %v1908_v52  ;;  %v1741_v16 = vor.u32 8388608, %v1740_v19  ;;  %2973 = vmatprep.mubr.bf16.mxu0 %v10994_v1 }
 0x204   : > { %v2106_v45 = vadd.s32 536870912, %v2105_v5  ;;  %v1745_v38 = vsel %vm1744_vm2, %v1743_v39, 0  ;;  %v463_v8 = vmul.f32 %v7404_v9, %v9170_v31  ;;  %v1910_v10 = vshll.u32 %v9124_v48, %v1908_v52 }
 0x205   : > { %v2442_v28 = vand.u32 %v7563_v42, %v2224_v63  ;;  %v1911_v14 = vshrl.u32 %v1893_v44, %v1909_v0  ;;  %v1914_v26 = vadd.s32 127, %v1913_v37  ;;  %v1747_v24 = vand.u32 31, %v1745_v38  ;;  %v9260_v0 = vpop.f32.mrb[2].mxu0 }
 0x206   : > { %v2107_v56 = vshrl.u32 %v2106_v45, 30  ;;  %v9205_v30 = vadd.f32 %v7425_v15, %v463_v8  ;;  %vm9209_vm3 = vcmp.le.f32.partialorder %v2045_v23, 0.7853982  ;;  %vm2047_vm4 = vcmp.lt.s32.totalorder %v8946_v7, 0 }
 0x207   : > { %3025 = vmatpush1.bf16.msra.mxu1 %v2442_v28  ;;  %v1912_v47 = vor.u32 %v1911_v14, %v1910_v10  ;;  %v1915_v17 = vshll.u32 %v1914_v26, 23  ;;  %v9214_v13 = vand.u32 3, %v1930_v41  ;;  %v1748_v22 = vsub.s32 32, %v1747_v24 }
 0x208   : > { %v2108_v48 = vshll.u32 %v2107_v56, 30  ;;  %v2131_v59 = vsub.s32 4, %v2107_v56  ;;  %v9218_v15 = vadd.s32 %v9142_v29, %v9161_v32  ;;  %v9220_v3 = vshrl.u32 %v1745_v38, 5  ;;  %v9264_v38 = vpop.f32.mrb[3].mxu0 }
 0x209   : > { %v1916_v55 = vor.u32 4788187, %v1915_v17  ;;  %v9222_v33 = vshll.u32 %v1741_v16, 8  ;;  %v1751_v29 = vshrl.u32 %v7272_v51, %v1748_v22  ;;  %v1941_v32 = vand.u32 2147483647, %v9205_v30 }
 0x20a   : > { %v9224_v23 = vsub.s32 %v2105_v5, %v2108_v48  ;;  %v2132_v46 = vsel %vm2047_vm4, %v2131_v59, %v2107_v56  ;;  %6859 = vmatmul.mubr.msk.bf16.vlgmr.msra.gmra.mrb[64].mxu1 %vm2382_vm10, %v9231_v12  ;;  %v1919_v2 = vcvt.s32.f32 %v1912_v47  ;;  %v1754_v49 = vshrl.u32 %v7273_v53, %v1748_v22  ;;  %6854 = vmatmul.mubr.msk.bf16.gmra.mrb[76].mxu0 %vm2382_vm10, %v9245_v58 }
 0x20b   : > { %v1917_v61 = vand.u32 2147483647, %v1916_v55  ;;  %v1757_v4 = vshrl.u32 %v11027_v20, %v1748_v22  ;;  %3066 = vmatprep.mubr.bf16.mxu1 %v10994_v1  ;;  %v1750_v19 = vshll.u32 %v11025_v25, %v1747_v24  ;;  %v1753_v39 = vshll.u32 %v7272_v51, %v1747_v24  ;;  %2983 = vmatprep.mubr.bf16.mxu0 %v10994_v1 }
 0x20c   : > { %v2111_v40 = vsub.s32 0, %v9224_v23  ;;  %v1756_v44 = vshll.u32 %v7273_v53, %v1747_v24  ;;  %v2134_v52 = vsel %vm9209_vm3, 0, %v2132_v46  ;;  %v1759_v5 = vshll.u32 %v11027_v20, %v1747_v24 }
 0x20d   : > { %v1920_v43 = vmul.f32 %v1919_v2, %v1917_v61  ;;  %v1760_v63 = vshrl.u32 %v7275_v57, %v1748_v22  ;;  %v1752_v41 = vor.u32 %v1751_v29, %v1750_v19  ;;  %v1755_v45 = vor.u32 %v1754_v49, %v1753_v39 }
 0x20e   : > { %v6808_v37 = vmin.u32 %v2111_v40, %v9224_v23  ;;  %v1763_v16 = vshrl.u32 %v11021_v27, %v1748_v22  ;;  %v1758_v28 = vor.u32 %v1757_v4, %v1756_v44  ;;  %v1762_v14 = vshll.u32 %v7275_v57, %v1747_v24 }
 0x20f   : > { %v1921_v8 = vxor.u32 2147483648, %v1920_v43  ;;  %v1761_v10 = vor.u32 %v1760_v63, %v1759_v5  ;;  %v1749_v56 = vshrl.u32 %v11025_v25, %v1748_v22  ;;  %vm1765_vm5 = vcmp.lt.s32.totalorder %v9220_v3, 1 }
 0x210   : > { %v2113_v26 = vclz %v6808_v37  ;;  %vm1766_vm6 = vcmp.lt.s32.totalorder %v9220_v3, 2  ;;  %v2138_v17 = vadd.s32 3, %v2134_v52  ;;  %v1764_v48 = vor.u32 %v1763_v16, %v1762_v14 }
 0x211   : > { %v1922_v47 = vsel %vm1839_vm11, %v1921_v8, %v1920_v43  ;;  %vm1767_vm7 = vcmp.lt.s32.totalorder %v9220_v3, 3  ;;  %vm1768_vm9 = vcmp.lt.s32.totalorder %v9220_v3, 4  ;;  %v1773_v24 = vsel %vm1765_vm5, %v1752_v41, %v1755_v45 }
 0x212   : > { %v1925_v59 = vsel %vm9174_vm14, %v8900_v50, %v1922_v47  ;;  %v6809_v55 = vadd.s32 4294967294, %v2113_v26  ;;  %6860 = vmatmul.mubr.msk.bf16.gmra.mrb[68].mxu1 %vm2382_vm10, %v9152_v62  ;;  %v1770_v22 = vsel %vm1768_vm9, %v1758_v28, 2102212464  ;;  %v1774_v46 = vsel %vm1768_vm9, %v1761_v10, 920167782  ;;  %6855 = vmatmul.mubr.msk.bf16.gmra.mrb[80].mxu0 %vm2382_vm10, %v9287_v34 }
 0x213   : > { %7093 = vcosq.f32 %v1925_v59  ;;  %v1777_v29 = vsel %vm1765_vm5, %v1755_v45, %v1758_v28  ;;  %3076 = vmatprep.mubr.bf16.mxu1 %v10994_v1  ;;  %v1775_v62 = vsel %vm1767_vm7, %v1758_v28, %v1774_v46  ;;  %v1778_v61 = vsel %vm1768_vm9, %v1764_v48, 1326507024  ;;  %2993 = vmatprep.mubr.bf16.mxu0 %v10994_v1  ;;  %v9314_v28 = vpop.permute.xlu1 %2264 }
 0x214   : > { %7095 = vsinq.f32 %v1925_v59  ;;  %vm6810_vm11 = vcmp.lt.s32.totalorder %v6809_v55, 0  ;;  %v1769_v49 = vsel %vm1765_vm5, %v1749_v56, %v1752_v41  ;;  %v1776_v4 = vsel %vm1766_vm6, %v1773_v24, %v1775_v62 }
 0x215   : > { %v2116_v2 = vsel %vm6810_vm11, 0, %v6809_v55  ;;  %v1779_v40 = vsel %vm1767_vm7, %v1761_v10, %v1778_v61  ;;  %v1771_v44 = vsel %vm1767_vm7, %v1755_v45, %v1770_v22  ;;  %v1944_v45 = vand.u32 2139095040, %v9205_v30  ;;  %v2606_v10 = vpop.f32.mrb[0].mxu1  ;;  %v9337_v55 = vld [vmem:[%s10971_s2 + $0x28] sm:$0xff]  }
 0x216   : > { %v2117_v19 = vsub.s32 32, %v2116_v2  ;;  %v2121_v39 = vsub.s32 4294967266, %v2116_v2  ;;  %v1780_v43 = vsel %vm1766_vm6, %v1777_v29, %v1779_v40  ;;  %v2118_v41 = vshll.u32 %v9224_v23, %v2116_v2  ;;  %v9322_v56 = vpop.f32.mrb[1].mxu1 }
 0x217   : > { %v9305_v52 = vmul.u32.u64.low %v9222_v33, %v1780_v43  ;;  %v9306_v5 = vmul.u32.u64.high %v9222_v33, %v1780_v43, %v9305_v52  ;;  %v9309_v63 = vmul.u32.u64.low %v9222_v33, %v1776_v4  ;;  %v9310_v37 = vmul.u32.u64.high %v9222_v33, %v1776_v4, %v9309_v63  ;;  %v2610_v48 = vpop.f32.mrb[2].mxu1 }
 0x218   : > { %v2119_v16 = vshrl.u32 %v9218_v15, %v2117_v19  ;;  %v2122_v8 = vadd.s32 127, %v2121_v39  ;;  %vm1932_vm8 = vcmp.lt.s32.totalorder %v9214_v13, 2  ;;  %v1772_v14 = vsel %vm1766_vm6, %v1769_v49, %v1771_v44  ;;  %v9345_v46 = vpop.f32.mrb[3].mxu1  ;;  %v9352_v44 = vpop.permute.xlu1 %2269 }
 0x219   : > { %v1948_v26 = vand.u32 8388607, %v1941_v32  ;;  %vm1929_vm13 = vweird.f32 %v8900_v50  ;;  %vm1933_vm12 = vcmp.eq.s32.totalorder %v9214_v13, 0  ;;  %v1945_v47 = vshrl.u32 %v1944_v45, 23 }
 0x21a   : > { %v2120_v15 = vor.u32 %v2119_v16, %v2118_v41  ;;  %v2123_v23 = vshll.u32 %v2122_v8, 23  ;;  %6861 = vmatmul.mubr.msk.bf16.gmra.mrb[72].mxu1 %vm2382_vm10, %v9195_v60  ;;  %vm1936_vm14 = vcmp.eq.s32.totalorder %v9214_v13, 2  ;;  %v9329_v3 = vand.u32 3, %v2138_v17  ;;  %6856 = vmatmul.mubr.msk.bf16.gmra.mrb[84].mxu0 %vm2382_vm10, %v9337_v55 }
 0x21b   : > { %vm1790_vm15 = vc.u32 %v9306_v5, %v9309_v63  ;;  %v1791_v59 = vadd.s32 1, %v9310_v37  ;;  %3086 = vmatprep.mubr.bf16.mxu1 %v10994_v1  ;;  %v1788_v24 = vmul.u32 %v9222_v33, %v1772_v14  ;;  %v6803_v22 = vadd.s32 4294967169, %v1945_v47  ;;  %3003 = vmatprep.mubr.bf16.mxu0 %v10994_v1  ;;  %v9385_v47 = vld [vmem:[%s10971_s2 + $0x30] sm:$0xff]  }
 0x21c   : > { %v2124_v60 = vor.u32 4788187, %v2123_v23  ;;  %v2494_v17 = vadd.f32 %v9237_v36, %v9314_v28  ;;  %v2127_v62 = vcvt.s32.f32 %v2120_v15  ;;  %vm1735_vm1 = vcmp.lt.s32.totalorder %v9083_v6, 0 }
 0x21d   : > { %v7094_v29 = vpop.eup %7093  ;;  %v1792_v61 = vsel %vm1790_vm15, %v1791_v59, %v9310_v37  ;;  %v1949_v2 = vor.u32 8388608, %v1948_v26  ;;  %v9350_v49 = vadd.f32 %v2606_v10, %v9314_v28  ;;  %v1951_v39 = vadd.s32 1, %v6803_v22 }
 0x21e   : > { %v7096_v4 = vpop.eup %7095  ;;  %v1937_v33 = vxor.u32 2147483648, %v7094_v29  ;;  %v2125_v40 = vand.u32 2147483647, %v2124_v60  ;;  %v1793_v19 = vadd.s32 %v1792_v61, %v1788_v24  ;;  %v9355_v43 = vadd.s32 %v9309_v63, %v9306_v5 }
 0x21f   : > { %v1934_v36 = vxor.u32 2147483648, %v7096_v4  ;;  %v9359_v52 = vadd.f32 %v9254_v21, %v9314_v28  ;;  %v2498_v37 = vadd.f32 %v9260_v0, %v9352_v44  ;;  %vm9367_vm2 = vcmp.le.f32.partialorder %v1733_v54, 0.7853982 }
 0x220   : > { %v1938_v41 = vsel %vm1936_vm14, %v1937_v33, %v7096_v4  ;;  %v2128_v16 = vmul.f32 %v2127_v62, %v2125_v40  ;;  %v1794_v45 = vadd.s32 536870912, %v1793_v19  ;;  %vm1952_vm5 = vcmp.gt.s32.totalorder %v1951_v39, 0 }
 0x221   : > { %v1935_v5 = vsel %vm1933_vm12, %v7094_v29, %v1934_v36  ;;  %v1953_v21 = vsel %vm1952_vm5, %v1951_v39, 0  ;;  %v3363_v63 = vmax.f32 %v2494_v17, 0.0  ;;  %v3379_v10 = vmax.f32 %v2498_v37, 0.0 }
 0x222   : > { %v1939_v0 = vsel %vm1932_vm8, %v1935_v5, %v1938_v41  ;;  %v2129_v14 = vxor.u32 2147483648, %v2128_v16  ;;  %v1795_v26 = vshrl.u32 %v1794_v45, 30  ;;  %v9375_v15 = vshll.u32 %v1949_v2, 8  ;;  %6862 = vmatmul.mubr.msk.bf16.gmra.mrb[76].mxu1 %vm2382_vm10, %v9245_v58  ;;  %6857 = vmatmul.mubr.msk.bf16.gmra.mrb[88].mxu0 %vm2382_vm10, %v9385_v47 }
 0x223   : > { %v1940_v54 = vsel %vm1929_vm13, nan, %v1939_v0  ;;  %v1955_v23 = vand.u32 31, %v1953_v21  ;;  %3096 = vmatprep.mubr.bf16.mxu1 %v10994_v1  ;;  %v3365_v13 = vmax.f32 %v9350_v49, 0.0  ;;  %v9390_v59 = vpack.c.bf16 %v3379_v10, %v3363_v63  ;;  %3013 = vmatprep.mubr.bf16.mxu0 %v10994_v1 }
 0x224   : > { %v2178_v60 = vrot.slane %v1940_v54, 7  ;;  %v2130_v50 = vsel %vm2047_vm4, %v2129_v14, %v2128_v16  ;;  %v1796_v58 = vshll.u32 %v1795_v26, 30  ;;  %v1819_v24 = vsub.s32 4, %v1795_v26 }
 0x225   : > { %v2133_v22 = vsel %vm9209_vm3, %v8946_v7, %v2130_v50  ;;  %v1956_v17 = vsub.s32 32, %v1955_v23  ;;  %v3364_v29 = vmax.f32 %v9359_v52, 0.0  ;;  %v9400_v62 = vadd.f32 %v2610_v48, %v9352_v44 }
 0x226   : > { %v2211_v61 = vsel %vm2197_vm0, %v8875_v35, %v2178_v60  ;;  %7097 = vcosq.f32 %v2133_v22  ;;  %v9404_v2 = vsub.s32 %v1793_v19, %v1796_v58  ;;  %v1820_v4 = vsel %vm1735_vm1, %v1819_v24, %v1795_v26 }
 0x227   : > { %v2227_v33 = vpack.c.bf16 %v2178_v60, %v2211_v61  ;;  %7099 = vsinq.f32 %v2133_v22  ;;  %v9408_v40 = vshrl.u32 %v1953_v21, 5  ;;  %v1958_v9 = vshll.u32 %v11025_v25, %v1955_v23 }
 0x228   : > { %v1799_v39 = vsub.s32 0, %v9404_v2  ;;  %v1959_v48 = vshrl.u32 %v7272_v51, %v1956_v17  ;;  %v1961_v36 = vshll.u32 %v7272_v51, %v1955_v23  ;;  %v1962_v35 = vshrl.u32 %v7273_v53, %v1956_v17 }
 0x229   : > { %v2451_v19 = vand.u32 %v7563_v42, %v2227_v33  ;;  %v1822_v37 = vsel %vm9367_vm2, 0, %v1820_v4  ;;  %v1964_v41 = vshll.u32 %v7273_v53, %v1955_v23  ;;  %v1965_v16 = vshrl.u32 %v11027_v20, %v1956_v17 }
 0x22a   : > { %vm2144_vm3 = vcmp.eq.s32.totalorder %v9329_v3, 2  ;;  %v6796_v45 = vmin.u32 %v1799_v39, %v9404_v2  ;;  %v1960_v5 = vor.u32 %v1959_v48, %v1958_v9  ;;  %v1963_v21 = vor.u32 %v1962_v35, %v1961_v36  ;;  %6863 = vmatmul.mubr.msk.bf16.gmra.mrb[80].mxu1 %vm2382_vm10, %v9287_v34 }
 0x22b   : > { %v1967_v63 = vshll.u32 %v11027_v20, %v1955_v23  ;;  %3137 = vmatprep.subr.bf16.mxu0 %v2451_v19  ;;  %vm2141_vm4 = vcmp.eq.s32.totalorder %v9329_v3, 0  ;;  %v1966_v51 = vor.u32 %v1965_v16, %v1964_v41  ;;  %v1968_v10 = vshrl.u32 %v7275_v57, %v1956_v17  ;;  %3106 = vmatprep.mubr.bf16.mxu1 %v10994_v1  ;;  %v9435_v20 = vld [vmem:[%s10971_s2 + $0x38] sm:$0xff]   ;;  %v2616_v41 = vpop.f32.mrb[4].mxu1 }
 0x22c   : > { %v1970_v53 = vshll.u32 %v7275_v57, %v1955_v23  ;;  %v1971_v0 = vshrl.u32 %v11021_v27, %v1956_v17  ;;  %vm2140_vm6 = vcmp.lt.s32.totalorder %v9329_v3, 2  ;;  %v1801_v14 = vclz %v6796_v45  ;;  %6858 = vmatmul.mubr.msk.bf16.gmra.mrb[92].mxu0 %vm2382_vm10, %v9435_v20 }
 0x22d   : > { %v1957_v26 = vshrl.u32 %v11025_v25, %v1956_v17  ;;  %v9441_v57 = vadd.f32 %v9322_v56, %v9314_v28  ;;  %v3381_v27 = vmax.f32 %v9400_v62, 0.0  ;;  %vm2137_vm7 = vweird.f32 %v8946_v7  ;;  %3169 = vmatprep.mubr.bf16.mxu0 %v10994_v1 }
 0x22e   : > { %v9445_v34 = vadd.s32 3, %v1822_v37  ;;  %v1969_v25 = vor.u32 %v1968_v10, %v1967_v63  ;;  %v1972_v54 = vor.u32 %v1971_v0, %v1970_v53  ;;  %vm1973_vm9 = vcmp.lt.s32.totalorder %v9408_v40, 1  ;;  %v2503_v37 = vpop.f32.mrb[4].mxu0  ;;  %v9470_v63 = vpop.permute.xlu1 %2274 }
 0x22f   : > { %v6797_v23 = vadd.s32 4294967294, %v1801_v14  ;;  %vm1974_vm11 = vcmp.lt.s32.totalorder %v9408_v40, 2  ;;  %vm1975_vm8 = vcmp.lt.s32.totalorder %v9408_v40, 3  ;;  %vm1976_vm13 = vcmp.lt.s32.totalorder %v9408_v40, 4  ;;  %v2618_v0 = vpop.f32.mrb[5].mxu1 }
 0x230   : > { %v1977_v56 = vsel %vm1973_vm9, %v1957_v26, %v1960_v5  ;;  %v1978_v60 = vsel %vm1976_vm13, %v1966_v51, 2102212464  ;;  %v1981_v50 = vsel %vm1973_vm9, %v1960_v5, %v1963_v21  ;;  %v1982_v58 = vsel %vm1976_vm13, %v1969_v25, 920167782  ;;  %v7098_v24 = vpop.eup %7097 }
 0x231   : > { %vm6798_vm12 = vcmp.lt.s32.totalorder %v6797_v23, 0  ;;  %v1983_v22 = vsel %vm1975_vm8, %v1966_v51, %v1982_v58  ;;  %v1985_v17 = vsel %vm1973_vm9, %v1963_v21, %v1966_v51  ;;  %v1986_v62 = vsel %vm1976_vm13, %v1972_v54, 1326507024  ;;  %v7100_v61 = vpop.eup %7099 }
 0x232   : > { %v2145_v4 = vxor.u32 2147483648, %v7098_v24  ;;  %v1804_v33 = vsel %vm6798_vm12, 0, %v6797_v23  ;;  %v1979_v9 = vsel %vm1975_vm8, %v1963_v21, %v1978_v60  ;;  %v1984_v39 = vsel %vm1974_vm11, %v1981_v50, %v1983_v22  ;;  %6864 = vmatmul.mubr.msk.bf16.gmra.mrb[84].mxu1 %vm2382_vm10, %v9337_v55  ;;  %v2620_v60 = vpop.f32.mrb[6].mxu1 }
 0x233   : > { %v2142_v48 = vxor.u32 2147483648, %v7100_v61  ;;  %v1805_v36 = vsub.s32 32, %v1804_v33  ;;  %v1806_v35 = vshll.u32 %v9404_v2, %v1804_v33  ;;  %v1809_v19 = vsub.s32 4294967266, %v1804_v33  ;;  %3116 = vmatprep.mubr.bf16.mxu1 %v10994_v1  ;;  %v2505_v2 = vpop.f32.mrb[5].mxu0  ;;  %v2622_v3 = vpop.f32.mrb[7].mxu1 }
 0x234   : > { %v2146_v16 = vsel %vm2144_vm3, %v2145_v4, %v7100_v61  ;;  %v1987_v45 = vsel %vm1975_vm8, %v1969_v25, %v1986_v62  ;;  %v9466_v5 = vmul.u32.u64.low %v9375_v15, %v1984_v39  ;;  %v9467_v21 = vmul.u32.u64.high %v9375_v15, %v1984_v39, %v9466_v5  ;;  %v2507_v14 = vpop.f32.mrb[6].mxu0 }
 0x235   : > { %v2143_v55 = vsel %vm2141_vm4, %v7098_v24, %v2142_v48  ;;  %v1807_v51 = vshrl.u32 %v9355_v43, %v1805_v36  ;;  %v1810_v10 = vadd.s32 127, %v1809_v19  ;;  %v1988_v53 = vsel %vm1974_vm11, %v1985_v17, %v1987_v45  ;;  %v2509_v50 = vpop.f32.mrb[7].mxu0  ;;  %v2626_v36 = vpop.f32.mrb[8].mxu1 }
 0x236   : > { %v2147_v26 = vsel %vm2140_vm6, %v2143_v55, %v2146_v16  ;;  %v1980_v25 = vsel %vm1974_vm11, %v1977_v56, %v1979_v9  ;;  %v9483_v54 = vmul.u32.u64.low %v9375_v15, %v1988_v53  ;;  %v9484_v23 = vmul.u32.u64.high %v9375_v15, %v1988_v53, %v9483_v54  ;;  %v2513_v48 = vpop.f32.mrb[8].mxu0  ;;  %v2628_v45 = vpop.f32.mrb[9].mxu1 }
 0x237   : > { %v2148_v43 = vsel %vm2137_vm7, nan, %v2147_v26  ;;  %v1808_v58 = vor.u32 %v1807_v51, %v1806_v35  ;;  %v1811_v24 = vshll.u32 %v1810_v10, 23  ;;  %v9490_v22 = vpack.c.bf16 %v3381_v27, %v3365_v13  ;;  %v9503_v13 = vpop.permute.xlu1 %2284  ;;  %v9505_v27 = vpop.permute.xlu0 %2279 }
 0x238   : > { %v2180_v17 = vrot.slane %v2148_v43, 7  ;;  %v1999_v40 = vadd.s32 1, %v9467_v21  ;;  %v2500_v56 = vadd.f32 %v9264_v38, %v9352_v44  ;;  %v2613_v62 = vadd.f32 %v9345_v46, %v9352_v44  ;;  %v2630_v10 = vpop.f32.mrb[10].mxu1 }
 0x239   : > { %v1812_v61 = vor.u32 4788187, %v1811_v24  ;;  %v1815_v4 = vcvt.s32.f32 %v1808_v58  ;;  %v1996_v7 = vmul.u32 %v9375_v15, %v1980_v25  ;;  %v2504_v33 = vadd.f32 %v2503_v37, %v9470_v63  ;;  %v2632_v54 = vpop.f32.mrb[11].mxu1 }
 0x23a   : > { %v2213_v49 = vsel %vm2197_vm0, %v8906_v18, %v2180_v17  ;;  %vm1998_vm14 = vc.u32 %v9484_v23, %v9466_v5  ;;  %v3380_v38 = vmax.f32 %v2500_v56, 0.0  ;;  %v2617_v9 = vadd.f32 %v2616_v41, %v9470_v63  ;;  %6865 = vmatmul.mubr.msk.bf16.gmra.mrb[88].mxu1 %vm2382_vm10, %v9385_v47  ;;  %v2515_v47 = vpop.f32.mrb[9].mxu0 }
 0x23b   : > { %v2229_v46 = vpack.c.bf16 %v2180_v17, %v2213_v49  ;;  %v1813_v39 = vand.u32 2147483647, %v1812_v61  ;;  %vm1943_vm15 = vcmp.lt.s32.totalorder %v9205_v30, 0  ;;  %v2000_v15 = vsel %vm1998_vm14, %v1999_v40, %v9467_v21  ;;  %3126 = vmatprep.mubr.bf16.mxu1 %v10994_v1  ;;  %v9545_v49 = vpop.permute.xlu1 %2289 }
 0x23c   : > { %v3382_v18 = vmax.f32 %v2613_v62, 0.0  ;;  %v9513_v35 = vand.u32 3, %v9445_v34  ;;  %vm9517_vm5 = vcmp.le.f32.partialorder %v1941_v32, 0.7853982  ;;  %v2001_v37 = vadd.s32 %v2000_v15, %v1996_v7  ;;  %v2517_v32 = vpop.f32.mrb[10].mxu0 }
 0x23d   : > { %v3366_v41 = vmax.f32 %v9441_v57, 0.0  ;;  %v2506_v16 = vadd.f32 %v2505_v2, %v9470_v63  ;;  %v2457_v21 = vand.u32 %v7563_v42, %v2229_v46  ;;  %v1816_v55 = vmul.f32 %v1815_v4, %v1813_v39  ;;  %v2519_v2 = vpop.f32.mrb[11].mxu0 }
 0x23e   : > { %v2619_v34 = vadd.f32 %v2618_v0, %v9470_v63  ;;  %v2508_v51 = vadd.f32 %v2507_v14, %v9505_v27  ;;  %v2002_v53 = vadd.s32 536870912, %v2001_v37  ;;  %v3395_v26 = vmax.f32 %v2504_v33, 0.0  ;;  %v2523_v15 = vpop.f32.mrb[12].mxu0 }
 0x23f   : > { %v2621_v25 = vadd.f32 %v2620_v60, %v9505_v27  ;;  %v9530_v57 = vpack.c.bf16 %v3380_v38, %v3364_v29  ;;  %3250 = vmatprep.subr.bf16.mxu1 %v2457_v21  ;;  %v1817_v43 = vxor.u32 2147483648, %v1816_v55  ;;  %v3397_v58 = vmax.f32 %v2617_v9, 0.0 }
 0x240   : > { %v3411_v24 = vmax.f32 %v2508_v51, 0.0  ;;  %v9532_v17 = vpack.c.bf16 %v3382_v18, %v3366_v41  ;;  %v2003_v0 = vshrl.u32 %v2002_v53, 30  ;;  %v2510_v40 = vadd.f32 %v2509_v50, %v9505_v27  ;;  %v9547_v50 = vpop.permute.xlu0 %2294  ;;  %v2636_v18 = vpop.f32.mrb[12].mxu1 }
 0x241   : > { %v3413_v14 = vmax.f32 %v2621_v25, 0.0  ;;  %v2623_v56 = vadd.f32 %v2622_v3, %v9505_v27  ;;  %v1818_v60 = vsel %vm1735_vm1, %v1817_v43, %v1816_v55  ;;  %v3396_v52 = vmax.f32 %v2506_v16, 0.0  ;;  %11048 = vst [vmem:[#allocation5_spill] sm:$0xff] %v9547_v50  ;;  %v2638_v21 = vpop.f32.mrb[13].mxu1 }
 0x242   : > { %v3398_v29 = vmax.f32 %v2619_v34, 0.0  ;;  %v9538_v62 = vpack.c.bf16 %v3411_v24, %v3395_v26  ;;  %v1821_v61 = vsel %vm9367_vm2, %v9083_v6, %v1818_v60  ;;  %v2004_v4 = vshll.u32 %v2003_v0, 30  ;;  %6866 = vmatmul.mubr.msk.bf16.gmra.mrb[92].mxu1 %vm2382_vm10, %v9435_v20  ;;  %v2640_v26 = vpop.f32.mrb[14].mxu1 }
 0x243   : > { %v2027_v7 = vsub.s32 4, %v2003_v0  ;;  %v9543_v33 = vpack.c.bf16 %v3413_v14, %v3397_v58  ;;  %7101 = vcosq.f32 %v1821_v61  ;;  %v3412_v3 = vmax.f32 %v2510_v40, 0.0  ;;  %3282 = vmatprep.mubr.bf16.mxu1 %v10994_v1  ;;  %v2642_v14 = vpop.f32.mrb[15].mxu1 }
 0x244   : > { %v3414_v38 = vmax.f32 %v2623_v56, 0.0  ;;  %v2514_v9 = vadd.f32 %v2513_v48, %v9503_v13  ;;  %7103 = vsinq.f32 %v1821_v61  ;;  %v9552_v46 = vsub.s32 %v2001_v37, %v2004_v4  ;;  %v2525_v37 = vpop.f32.mrb[13].mxu0  ;;  %v9588_v4 = vpop.permute.xlu0 %2304 }
 0x245   : > { %v2028_v8 = vsel %vm1943_vm15, %v2027_v7, %v2003_v0  ;;  %v2627_v39 = vadd.f32 %v2626_v36, %v9503_v13  ;;  %v2516_v20 = vadd.f32 %v2515_v47, %v9503_v13  ;;  %v2629_v16 = vadd.f32 %v2628_v45, %v9503_v13  ;;  %v2527_v36 = vpop.f32.mrb[14].mxu0  ;;  %11050 = vst [vmem:[#allocation7_spill] sm:$0xff] %v9588_v4 }
 0x246   : > { %v2030_v41 = vsel %vm9517_vm5, 0, %v2028_v8  ;;  %v2518_v48 = vadd.f32 %v2517_v32, %v9545_v49  ;;  %v2007_v55 = vsub.s32 0, %v9552_v46  ;;  %v2631_v51 = vadd.f32 %v2630_v10, %v9545_v49  ;;  %v2529_v0 = vpop.f32.mrb[15].mxu0 }
 0x247   : > { %v2034_v34 = vadd.s32 3, %v2030_v41  ;;  %v9565_v53 = vpack.c.bf16 %v3412_v3, %v3396_v52  ;;  %vm1832_vm1 = vcmp.eq.s32.totalorder %v9513_v35, 2  ;;  %v9570_v47 = vadd.s32 %v9466_v5, %v9484_v23  ;;  %v2646_v41 = vpop.f32.mrb[16].mxu1 }
 0x248   : > { %v3427_v45 = vmax.f32 %v2514_v9, 0.0  ;;  %v3443_v25 = vmax.f32 %v2518_v48, 0.0  ;;  %v9572_v32 = vpack.c.bf16 %v3414_v38, %v3398_v29  ;;  %vm1829_vm2 = vcmp.eq.s32.totalorder %v9513_v35, 0 }
 0x249   : > { %v6804_v43 = vmin.u32 %v2007_v55, %v9552_v46  ;;  %v3429_v58 = vmax.f32 %v2627_v39, 0.0  ;;  %v3445_v10 = vmax.f32 %v2631_v51, 0.0  ;;  %v2520_v24 = vadd.f32 %v2519_v2, %v9545_v49  ;;  %v9586_v2 = vpop.permute.xlu1 %2299 }
 0x24a   : > { %vm1828_vm3 = vcmp.lt.s32.totalorder %v9513_v35, 2  ;;  %v9578_v40 = vpack.c.bf16 %v3443_v25, %v3427_v45  ;;  %v2633_v5 = vadd.f32 %v2632_v54, %v9545_v49  ;;  %v2524_v23 = vadd.f32 %v2523_v15, %v9547_v50  ;;  %11049 = vst [vmem:[#allocation6_spill] sm:$0xff] %v9586_v2  ;;  %v2648_v45 = vpop.f32.mrb[17].mxu1 }
 0x24b   : > { %v2637_v56 = vadd.f32 %v2636_v18, %v9547_v50  ;;  %vm1825_vm4 = vweird.f32 %v9083_v6  ;;  %v2009_v60 = vclz %v6804_v43  ;;  %v9584_v52 = vand.u32 3, %v2034_v34  ;;  %v2533_v18 = vpop.f32.mrb[16].mxu0 }
 0x24c   : > { %v3428_v29 = vmax.f32 %v2516_v20, 0.0  ;;  %v3430_v61 = vmax.f32 %v2629_v16, 0.0  ;;  %v9590_v7 = vpack.c.bf16 %v3445_v10, %v3429_v58  ;;  %v3444_v3 = vmax.f32 %v2520_v24, 0.0  ;;  %v2535_v51 = vpop.f32.mrb[17].mxu0  ;;  %v2650_v10 = vpop.f32.mrb[18].mxu1 }
 0x24d   : > { %v3446_v38 = vmax.f32 %v2633_v5, 0.0  ;;  %v3459_v54 = vmax.f32 %v2524_v23, 0.0  ;;  %v6805_v9 = vadd.s32 4294967294, %v2009_v60  ;;  %v3461_v8 = vmax.f32 %v2637_v56, 0.0  ;;  %v7102_v20 = vpop.eup %7101  ;;  %v2537_v58 = vpop.f32.mrb[18].mxu0 }
 0x24e   : > { %v9593_v39 = vadd.f32 %v2525_v37, %v9547_v50  ;;  %v9596_v15 = vadd.f32 %v2638_v21, %v9547_v50  ;;  %v2528_v16 = vadd.f32 %v2527_v36, %v9586_v2  ;;  %v2641_v48 = vadd.f32 %v2640_v26, %v9586_v2  ;;  %v7104_v25 = vpop.eup %7103 }
 0x24f   : > { %v9600_v55 = vpack.c.bf16 %v3444_v3, %v3428_v29  ;;  %v9602_v34 = vpack.c.bf16 %v3446_v38, %v3430_v61  ;;  %v1833_v43 = vxor.u32 2147483648, %v7102_v20  ;;  %vm6806_vm6 = vcmp.lt.s32.totalorder %v6805_v9, 0  ;;  %v2539_v61 = vpop.f32.mrb[19].mxu0  ;;  %v2652_v3 = vpop.f32.mrb[19].mxu1 }
 0x250   : > { %v3460_v37 = vmax.f32 %v9593_v39, 0.0  ;;  %v3462_v21 = vmax.f32 %v9596_v15, 0.0  ;;  %v1830_v24 = vxor.u32 2147483648, %v7104_v25  ;;  %v2012_v5 = vsel %vm6806_vm6, 0, %v6805_v9 }
 0x251   : > { %v3475_v36 = vmax.f32 %v2528_v16, 0.0  ;;  %v3477_v23 = vmax.f32 %v2641_v48, 0.0  ;;  %v1834_v26 = vsel %vm1832_vm1, %v1833_v43, %v7104_v25  ;;  %v2013_v56 = vsub.s32 32, %v2012_v5  ;;  %v9619_v43 = vpop.permute.xlu0 %2314 }
 0x252   : > { %v2014_v60 = vshll.u32 %v9552_v46, %v2012_v5  ;;  %v2017_v29 = vsub.s32 4294967266, %v2012_v5  ;;  %v1831_v38 = vsel %vm1829_vm2, %v7102_v20, %v1830_v24  ;;  %v2530_v9 = vadd.f32 %v2529_v0, %v9586_v2  ;;  %v9624_v20 = vpop.permute.xlu1 %2309  ;;  %v2543_v24 = vpop.f32.mrb[20].mxu0 }
 0x253   : > { %v9611_v39 = vpack.c.bf16 %v3475_v36, %v3459_v54  ;;  %v9613_v15 = vpack.c.bf16 %v3477_v23, %v3461_v8  ;;  %v1835_v16 = vsel %vm1828_vm3, %v1831_v38, %v1834_v26  ;;  %v2015_v48 = vshrl.u32 %v9570_v47, %v2013_v56  ;;  %v2656_v26 = vpop.f32.mrb[20].mxu1  ;;  %v2545_v56 = vpop.f32.mrb[21].mxu0 }
 0x254   : > { %v2018_v25 = vadd.s32 127, %v2017_v29  ;;  %v2643_v46 = vadd.f32 %v2642_v14, %v9586_v2  ;;  %v1836_v5 = vsel %vm1825_vm4, nan, %v1835_v16  ;;  %v3476_v54 = vmax.f32 %v2530_v9, 0.0  ;;  %v2658_v16 = vpop.f32.mrb[21].mxu1  ;;  %v2547_v1 = vpop.f32.mrb[22].mxu0 }
 0x255   : > { %11051 = vst [vmem:[#allocation8_spill] sm:$0xff] %v9613_v15  ;;  %v2534_v8 = vadd.f32 %v2533_v18, %v9588_v4  ;;  %v2647_v0 = vadd.f32 %v2646_v41, %v9588_v4  ;;  %v2177_v35 = vrot.slane %v1836_v5, 7  ;;  %v2016_v36 = vor.u32 %v2015_v48, %v2014_v60  ;;  %v2660_v60 = vpop.f32.mrb[22].mxu1  ;;  %v2549_v48 = vpop.f32.mrb[23].mxu0 }
 0x256   : > { %v2019_v23 = vshll.u32 %v2018_v25, 23  ;;  %v3478_v47 = vmax.f32 %v2643_v46, 0.0  ;;  %v2536_v14 = vadd.f32 %v2535_v51, %v9588_v4  ;;  %v2649_v6 = vadd.f32 %v2648_v45, %v9588_v4 }
 0x257   : > { %v3491_v29 = vmax.f32 %v2534_v8, 0.0  ;;  %v3493_v38 = vmax.f32 %v2647_v0, 0.0  ;;  %v2210_v18 = vsel %vm2197_vm0, %v8968_v11, %v2177_v35  ;;  %v2023_v41 = vcvt.s32.f32 %v2016_v36  ;;  %v2662_v0 = vpop.f32.mrb[23].mxu1 }
 0x258   : > { %v2020_v9 = vor.u32 4788187, %v2019_v23  ;;  %v2538_v5 = vadd.f32 %v2537_v58, %v9624_v20  ;;  %v2226_v25 = vpack.c.bf16 %v2177_v35, %v2210_v18  ;;  %v3492_v46 = vmax.f32 %v2536_v14, 0.0  ;;  %v9641_v35 = vpop.permute.xlu0 %2324  ;;  %v2553_v18 = vpop.f32.mrb[24].mxu0 }
 0x259   : > { %v3494_v15 = vmax.f32 %v2649_v6, 0.0  ;;  %v2651_v8 = vadd.f32 %v2650_v10, %v9624_v20  ;;  %v9634_v45 = vpack.c.bf16 %v3476_v54, %v3460_v37  ;;  %v9636_v4 = vpack.c.bf16 %v3478_v47, %v3462_v21  ;;  %v9647_v37 = vpop.permute.xlu1 %2319 }
 0x25a   : > { %v2021_v51 = vand.u32 2147483647, %v2020_v9  ;;  %v3507_v2 = vmax.f32 %v2538_v5, 0.0  ;;  %v2448_v11 = vand.u32 %v7563_v42, %v2226_v25  ;;  %v2540_v36 = vadd.f32 %v2539_v61, %v9624_v20 }
 0x25b   : > { %v3509_v23 = vmax.f32 %v2651_v8, 0.0  ;;  %v2653_v58 = vadd.f32 %v2652_v3, %v9624_v20  ;;  %v2544_v10 = vadd.f32 %v2543_v24, %v9619_v43  ;;  %v2657_v6 = vadd.f32 %v2656_v26, %v9619_v43  ;;  %v2666_v24 = vpop.f32.mrb[24].mxu1 }
 0x25c   : > { %v2024_v50 = vmul.f32 %v2023_v41, %v2021_v51  ;;  %v9643_v14 = vpack.c.bf16 %v3507_v2, %v3491_v29  ;;  %3138 = vmatpush1.bf16.msra.mxu0 %v2448_v11  ;;  %v3508_v54 = vmax.f32 %v2540_v36, 0.0  ;;  %v2546_v61 = vadd.f32 %v2545_v56, %v9619_v43  ;;  %v2555_v41 = vpop.f32.mrb[25].mxu0  ;;  %v2668_v8 = vpop.f32.mrb[25].mxu1 }
 0x25d   : > { %v9649_v21 = vpack.c.bf16 %v3509_v23, %v3493_v38  ;;  %v3510_v47 = vmax.f32 %v2653_v58, 0.0  ;;  %3907 = vmatprep.subr.bf16.mxu0 %v9530_v57  ;;  %v3523_v9 = vmax.f32 %v2544_v10, 0.0  ;;  %v3525_v2 = vmax.f32 %v2657_v6, 0.0  ;;  %v2557_v51 = vpop.f32.mrb[26].mxu0  ;;  %v2670_v23 = vpop.f32.mrb[26].mxu1 }
 0x25e   : > { %v2025_v3 = vxor.u32 2147483648, %v2024_v50  ;;  %v2659_v29 = vadd.f32 %v2658_v16, %v9619_v43  ;;  %v3524_v26 = vmax.f32 %v2546_v61, 0.0  ;;  %v2548_v5 = vadd.f32 %v2547_v1, %v9647_v37  ;;  %v2559_v36 = vpop.f32.mrb[27].mxu0  ;;  %v9674_v19 = vpop.permute.xlu1 %2329 }
 0x25f   : > { %v2661_v38 = vadd.f32 %v2660_v60, %v9647_v37  ;;  %v9656_v25 = vpack.c.bf16 %v3508_v54, %v3492_v46  ;;  %6867 = vmatmul.mubr.msk.bf16.vlgmr.msra.gmra.mrb[96].mxu0 %vm2382_vm10, %v9231_v12  ;;  %v9662_v11 = vpack.c.bf16 %v3510_v47, %v3494_v15  ;;  %v2550_v16 = vadd.f32 %v2549_v48, %v9647_v37  ;;  %v2672_v12 = vpop.f32.mrb[27].mxu1  ;;  %v9682_v61 = vpop.permute.xlu0 %2334 }
 0x260   : > { %v2026_v56 = vsel %vm1943_vm15, %v2025_v3, %v2024_v50  ;;  %v3526_v57 = vmax.f32 %v2659_v29, 0.0  ;;  %v11052_v60 = vmov 0   ;;  %3908 = vmatpush1.bf16.msra.mxu0 %v9390_v59  ;;  %v3539_v46 = vmax.f32 %v2548_v5, 0.0 }
 0x261   : > { %v2029_v1 = vsel %vm9517_vm5, %v9205_v30, %v2026_v56  ;;  %3179 = vmatprep.mubr.bf16.mxu0 %v11052_v60  ;;  %v3541_v50 = vmax.f32 %v2661_v38, 0.0  ;;  %v2663_v58 = vadd.f32 %v2662_v0, %v9647_v37  ;;  %3909 = vmatprep.subr.bf16.mxu0 %v9565_v53  ;;  %v3540_v15 = vmax.f32 %v2550_v16, 0.0  ;;  %v2676_v38 = vpop.f32.mrb[28].mxu1 }
 0x262   : > { %7105 = vcosq.f32 %v2029_v1  ;;  %v2554_v48 = vadd.f32 %v2553_v18, %v9641_v35  ;;  %v2667_v10 = vadd.f32 %v2666_v24, %v9641_v35  ;;  %v9676_v6 = vpack.c.bf16 %v3539_v46, %v3523_v9  ;;  %v2563_v9 = vpop.f32.mrb[28].mxu0 }
 0x263   : > { %7107 = vsinq.f32 %v2029_v1  ;;  %v9678_v54 = vpack.c.bf16 %v3541_v50, %v3525_v2  ;;  %v3542_v59 = vmax.f32 %v2663_v58, 0.0  ;;  %v2556_v47 = vadd.f32 %v2555_v41, %v9641_v35 }
 0x264   : > { %v2669_v0 = vadd.f32 %v2668_v8, %v9641_v35  ;;  %3910 = vmatpush1.bf16.msra.mxu0 %v9538_v62  ;;  %v2558_v53 = vadd.f32 %v2557_v51, %v9674_v19  ;;  %v2671_v18 = vadd.f32 %v2670_v23, %v9674_v19  ;;  %v9687_v3 = vpack.c.bf16 %v3540_v15, %v3524_v26  ;;  %v2565_v8 = vpop.f32.mrb[29].mxu0 }
 0x265   : > { %v9689_v29 = vpack.c.bf16 %v3542_v59, %v3526_v57  ;;  %3911 = vmatprep.subr.bf16.mxu0 %v9600_v55  ;;  %v3555_v2 = vmax.f32 %v2554_v48, 0.0  ;;  %v3557_v24 = vmax.f32 %v2667_v10, 0.0  ;;  %v2560_v41 = vadd.f32 %v2559_v36, %v9674_v19  ;;  %v2678_v57 = vpop.f32.mrb[29].mxu1  ;;  %v2567_v16 = vpop.f32.mrb[30].mxu0  ;;  %v9699_v55 = vld [vmem:[%s10971_s2 + $0x8] sm:$0xff]  }
 0x266   : > { %v2673_v5 = vadd.f32 %v2672_v12, %v9674_v19  ;;  %vm2037_vm7 = vcmp.eq.s32.totalorder %v9584_v52, 0  ;;  %v3556_v62 = vmax.f32 %v2556_v47, 0.0  ;;  %v3571_v51 = vmax.f32 %v2558_v53, 0.0  ;;  %v2680_v50 = vpop.f32.mrb[30].mxu1  ;;  %v2569_v58 = vpop.f32.mrb[31].mxu0 }
 0x267   : > { %v3573_v56 = vmax.f32 %v2671_v18, 0.0  ;;  %v2564_v26 = vadd.f32 %v2563_v9, %v9682_v61  ;;  %6868 = vmatmul.mubr.msk.bf16.gmra.mrb[100].mxu0 %vm2382_vm10, %v9699_v55  ;;  %v3572_v23 = vmax.f32 %v2560_v41, 0.0  ;;  %v2677_v1 = vadd.f32 %v2676_v38, %v9682_v61  ;;  %v9705_v12 = vpop.permute.xlu1 %2339  ;;  %v2682_v47 = vpop.f32.mrb[31].mxu1 }
 0x268   : > { %v3574_v36 = vmax.f32 %v2673_v5, 0.0  ;;  %v2566_v46 = vadd.f32 %v2565_v8, %v9682_v61  ;;  %3189 = vmatprep.mubr.bf16.mxu0 %v11052_v60  ;;  %3912 = vmatpush1.bf16.msra.mxu0 %v9578_v40  ;;  %v3558_v15 = vmax.f32 %v2669_v0, 0.0  ;;  %v9709_v48 = vpack.c.bf16 %v3571_v51, %v3555_v2 }
 0x269   : > { %v9711_v10 = vpack.c.bf16 %v3573_v56, %v3557_v24  ;;  %v2679_v59 = vadd.f32 %v2678_v57, %v9682_v61  ;;  %vm2040_vm9 = vcmp.eq.s32.totalorder %v9584_v52, 2  ;;  %3913 = vmatprep.subr.bf16.mxu0 %v9634_v45  ;;  %v3587_v53 = vmax.f32 %v2564_v26, 0.0 }
 0x26a   : > { %v2568_v18 = vadd.f32 %v2567_v16, %v9705_v12  ;;  %v2681_v9 = vadd.f32 %v2680_v50, %v9705_v12  ;;  %v3732_v41 = vpack.c.bf16 %v3572_v23, %v3556_v62  ;;  %v9718_v5 = vpack.c.bf16 %v3574_v36, %v3558_v15  ;;  %v2719_v50 = vpop.f32.mrb[32].mxu0 }
 0x26b   : > { %v2570_v40 = vadd.f32 %v2569_v58, %v9705_v12  ;;  %v2683_v0 = vadd.f32 %v2682_v47, %v9705_v12  ;;  %v3589_v24 = vmax.f32 %v2677_v1, 0.0  ;;  %v3588_v38 = vmax.f32 %v2566_v46, 0.0  ;;  %v2721_v1 = vpop.f32.mrb[33].mxu0 }
 0x26c   : > { %v7106_v2 = vpop.eup %7105  ;;  %v3603_v8 = vmax.f32 %v2568_v18, 0.0  ;;  %v3605_v51 = vmax.f32 %v2681_v9, 0.0  ;;  %3914 = vmatpush1.bf16.msra.mxu0 %v9611_v39  ;;  %v3590_v45 = vmax.f32 %v2679_v59, 0.0  ;;  %v2720_v58 = vadd.f32 %v2719_v50, %v9314_v28  ;;  %v2723_v47 = vpop.f32.mrb[34].mxu0 }
 0x26d   : > { %v7108_v56 = vpop.eup %7107  ;;  %v2041_v57 = vxor.u32 2147483648, %v7106_v2  ;;  %v3604_v26 = vmax.f32 %v2570_v40, 0.0  ;;  %v3606_v16 = vmax.f32 %v2683_v0, 0.0  ;;  %3915 = vmatprep.subr.bf16.mxu0 %v9656_v25  ;;  %v2722_v15 = vadd.f32 %v2721_v1, %v9314_v28  ;;  %v2725_v9 = vpop.f32.mrb[35].mxu0 }
 0x26e   : > { %v2038_v62 = vxor.u32 2147483648, %v7108_v56  ;;  %v3747_v23 = vpack.c.bf16 %v3603_v8, %v3587_v53  ;;  %v9724_v36 = vpack.c.bf16 %v3605_v51, %v3589_v24  ;;  %vm2036_vm11 = vcmp.lt.s32.totalorder %v9584_v52, 2  ;;  %v9738_v53 = vld [vmem:[%s10971_s2 + $0x10] sm:$0xff]  }
 0x26f   : > { %v2042_v46 = vsel %vm2040_vm9, %v2041_v57, %v7108_v56  ;;  %v3748_v39 = vpack.c.bf16 %v3604_v26, %v3588_v38  ;;  %v9730_v59 = vpack.c.bf16 %v3606_v16, %v3590_v45  ;;  %6869 = vmatmul.mubr.msk.bf16.gmra.mrb[104].mxu0 %vm2382_vm10, %v9738_v53  ;;  %v2724_v18 = vadd.f32 %v2723_v47, %v9352_v44  ;;  %v2729_v57 = vpop.f32.mrb[36].mxu0 }
 0x270   : > { %v2039_v25 = vsel %vm2037_vm7, %v7106_v2, %v2038_v62  ;;  %vm2033_vm8 = vweird.f32 %v9205_v30  ;;  %3199 = vmatprep.mubr.bf16.mxu0 %v11052_v60  ;;  %3916 = vmatpush1.bf16.msra.mxu0 %v9643_v14  ;;  %v2726_v52 = vadd.f32 %v2725_v9, %v9352_v44  ;;  %v3367_v2 = vmax.f32 %v2720_v58, 0.0  ;;  %v2731_v16 = vpop.f32.mrb[37].mxu0  ;;  %v9759_v58 = vld [vmem:[%s10971_s2 + $0x18] sm:$0xff]  }
 0x271   : > { %v2043_v40 = vsel %vm2036_vm11, %v2039_v25, %v2042_v46  ;;  %3917 = vmatprep.subr.bf16.mxu0 %v9687_v3  ;;  %v3383_v24 = vmax.f32 %v2724_v18, 0.0  ;;  %v3368_v8 = vmax.f32 %v2722_v15, 0.0  ;;  %v2730_v26 = vadd.f32 %v2729_v57, %v9470_v63  ;;  %v2733_v50 = vpop.f32.mrb[38].mxu0  ;;  %v7188_v25 = vld [vmem:[%s10971_s2] sm:$0xff]  }
 0x272   : > { %v2044_v0 = vsel %vm2033_vm8, nan, %v2043_v40  ;;  %v3384_v51 = vmax.f32 %v2726_v52, 0.0  ;;  %v2732_v3 = vadd.f32 %v2731_v16, %v9470_v63 }
 0x273   : > { %v2179_v38 = vrot.slane %v2044_v0, 7  ;;  %v9748_v56 = vpack.c.bf16 %v3383_v24, %v3367_v2 }
 0x274   : > { %3918 = vmatpush1.bf16.msra.mxu0 %v9676_v6  ;;  %v3640_v45 = vpack.c.bf16 %v3384_v51, %v3368_v8  ;;  %v2735_v6 = vpop.f32.mrb[39].mxu0  ;;  %v3400_v46 = vmax.f32 %v2732_v3, 0.0 }
 0x275   : > { %v2212_v30 = vsel %vm2197_vm0, %v9170_v31, %v2179_v38  ;;  %3919 = vmatprep.subr.bf16.mxu0 %v3732_v41  ;;  %v2734_v31 = vadd.f32 %v2733_v50, %v9505_v27  ;;  %v2736_v41 = vadd.f32 %v2735_v6, %v9505_v27  ;;  %v9810_v6 = vld [vmem:[%s10971_s2 + $0x28] sm:$0xff]   ;;  %vm6058_vm0 = vcmask 523264  }
 0x276   : > { %v2228_v14 = vpack.c.bf16 %v2179_v38, %v2212_v30 }
 0x277   : > { %6870 = vmatmul.mubr.msk.bf16.gmra.mrb[108].mxu0 %vm2382_vm10, %v9759_v58  ;;  %v3415_v1 = vmax.f32 %v2734_v31, 0.0  ;;  %v3416_v15 = vmax.f32 %v2736_v41, 0.0  ;;  %v11054_v41 = vld [vmem:[#allocation6_spill] sm:$0xff] }
 0x278   : > { %v2454_v62 = vand.u32 %v7563_v42, %v2228_v14  ;;  %3209 = vmatprep.mubr.bf16.mxu0 %v11052_v60  ;;  %3920 = vmatpush1.bf16.msra.mxu0 %v9709_v48  ;;  %v3399_v42 = vmax.f32 %v2730_v26, 0.0  ;;  %v2739_v48 = vpop.f32.mrb[40].mxu0  ;;  %v11053_v26 = vld [vmem:[#allocation5_spill] sm:$0xff] }
 0x279   : > { %3921 = vmatprep.subr.bf16.mxu0 %v3748_v39  ;;  %v9774_v18 = vpack.c.bf16 %v3416_v15, %v3400_v46  ;;  %v2741_v39 = vpop.f32.mrb[41].mxu0 }
 0x27a   : > { %3251 = vmatpush1.bf16.msra.mxu1 %v2454_v62  ;;  %v9768_v47 = vpack.c.bf16 %v3415_v1, %v3399_v42  ;;  %v2742_v9 = vadd.f32 %v2741_v39, %v9503_v13  ;;  %v2743_v40 = vpop.f32.mrb[42].mxu0 }
 0x27b   : > { %4020 = vmatprep.subr.bf16.mxu1 %v9532_v17  ;;  %v2740_v17 = vadd.f32 %v2739_v48, %v9503_v13  ;;  %v2744_v52 = vadd.f32 %v2743_v40, %v9545_v49 }
 0x27c   : > { %3922 = vmatpush1.bf16.msra.mxu0 %v3747_v23  ;;  %v9784_v23 = vld [vmem:[%s10971_s2 + $0x20] sm:$0xff]   ;;  %v3432_v24 = vmax.f32 %v2742_v9, 0.0 }
 0x27d   : > { %6875 = vmatmul.mubr.msk.bf16.vlgmr.msra.gmra.mrb[96].mxu1 %vm2382_vm10, %v7188_v25  ;;  %4133 = vmatprep.subr.bf16.mxu0 %v3640_v45  ;;  %v3447_v2 = vmax.f32 %v2744_v52, 0.0  ;;  %v11055_v25 = vld [vmem:[#allocation8_spill] sm:$0xff] }
 0x27e   : > { %3292 = vmatprep.mubr.bf16.mxu1 %v11052_v60  ;;  %4021 = vmatpush1.bf16.msra.mxu1 %v9490_v22  ;;  %v2745_v22 = vpop.f32.mrb[43].mxu0  ;;  %v2832_v8 = vpop.f32.mrb[32].mxu1 }
 0x27f   : > { %4022 = vmatprep.subr.bf16.mxu1 %v9572_v32  ;;  %6871 = vmatmul.mubr.msk.bf16.gmra.mrb[112].mxu0 %vm2382_vm10, %v9784_v23  ;;  %v2746_v0 = vadd.f32 %v2745_v22, %v9545_v49  ;;  %v3431_v32 = vmax.f32 %v2740_v17, 0.0  ;;  %v2833_v30 = vadd.f32 %v2832_v8, %v9314_v28  ;;  %v2834_v57 = vpop.f32.mrb[33].mxu1  ;;  %v2749_v45 = vpop.f32.mrb[44].mxu0 }
 0x280   : > { %3219 = vmatprep.mubr.bf16.mxu0 %v11052_v60  ;;  %v2750_v16 = vadd.f32 %v2749_v45, %v11053_v26  ;;  %v2751_v3 = vpop.f32.mrb[45].mxu0  ;;  %v11056_v45 = vld [vmem:[#allocation7_spill] sm:$0xff] }
 0x281   : > { %v3448_v38 = vmax.f32 %v2746_v0, 0.0  ;;  %v9793_v51 = vpack.c.bf16 %v3447_v2, %v3431_v32  ;;  %v2752_v62 = vadd.f32 %v2751_v3, %v11053_v26  ;;  %v2753_v31 = vpop.f32.mrb[46].mxu0 }
 0x282   : > { %4023 = vmatpush1.bf16.msra.mxu1 %v9543_v33  ;;  %v2835_v33 = vadd.f32 %v2834_v57, %v9314_v28  ;;  %v2754_v42 = vadd.f32 %v2753_v31, %v11054_v41  ;;  %v2755_v1 = vpop.f32.mrb[47].mxu0  ;;  %v3463_v39 = vmax.f32 %v2750_v16, 0.0 }
 0x283   : > { %4024 = vmatprep.subr.bf16.mxu1 %v9602_v34  ;;  %v9798_v14 = vpack.c.bf16 %v3448_v38, %v3432_v24  ;;  %v2836_v34 = vpop.f32.mrb[34].mxu1  ;;  %v2756_v15 = vadd.f32 %v2755_v1, %v11054_v41  ;;  %v3464_v52 = vmax.f32 %v2752_v62, 0.0 }
 0x284   : > { %v2838_v50 = vpop.f32.mrb[35].mxu1  ;;  %v3370_v48 = vmax.f32 %v2835_v33, 0.0  ;;  %v3479_v9 = vmax.f32 %v2754_v42, 0.0 }
 0x285   : > { %6876 = vmatmul.mubr.msk.bf16.gmra.mrb[100].mxu1 %vm2382_vm10, %v9699_v55  ;;  %v2837_v55 = vadd.f32 %v2836_v34, %v9352_v44  ;;  %v3480_v22 = vmax.f32 %v2756_v15, 0.0  ;;  %v2759_v8 = vpop.f32.mrb[48].mxu0 }
 0x286   : > { %3302 = vmatprep.mubr.bf16.mxu1 %v11052_v60  ;;  %4025 = vmatpush1.bf16.msra.mxu1 %v9590_v7  ;;  %v2839_v7 = vadd.f32 %v2838_v50, %v9352_v44  ;;  %v2842_v0 = vpop.f32.mrb[36].mxu1  ;;  %v9824_v2 = vpack.c.bf16 %v3479_v9, %v3463_v39  ;;  %v2760_v33 = vadd.f32 %v2759_v8, %v11056_v45  ;;  %v2761_v34 = vpop.f32.mrb[49].mxu0  ;;  %v9841_v50 = vld [vmem:[%s10971_s2 + $0x30] sm:$0xff]  }
 0x287   : > { %4026 = vmatprep.subr.bf16.mxu1 %v9636_v4  ;;  %6872 = vmatmul.mubr.msk.bf16.gmra.mrb[116].mxu0 %vm2382_vm10, %v9810_v6  ;;  %v3369_v4 = vmax.f32 %v2833_v30, 0.0  ;;  %v3385_v46 = vmax.f32 %v2837_v55, 0.0  ;;  %v2843_v24 = vadd.f32 %v2842_v0, %v9470_v63  ;;  %v2844_v38 = vpop.f32.mrb[37].mxu1  ;;  %v9829_v30 = vpack.c.bf16 %v3480_v22, %v3464_v52  ;;  %v2763_v55 = vpop.f32.mrb[50].mxu0 }
 0x288   : > { %3229 = vmatprep.mubr.bf16.mxu0 %v11052_v60  ;;  %v3386_v17 = vmax.f32 %v2839_v7, 0.0  ;;  %v2846_v57 = vpop.f32.mrb[38].mxu1  ;;  %v2762_v3 = vadd.f32 %v2761_v34, %v11056_v45  ;;  %v2764_v62 = vadd.f32 %v2763_v55, %v9624_v20  ;;  %v2765_v31 = vpop.f32.mrb[51].mxu0 }
 0x289   : > { %v9820_v40 = vpack.c.bf16 %v3385_v46, %v3369_v4  ;;  %v2848_v16 = vpop.f32.mrb[39].mxu1  ;;  %v2766_v42 = vadd.f32 %v2765_v31, %v9624_v20  ;;  %v3495_v46 = vmax.f32 %v2760_v33, 0.0  ;;  %v9871_v33 = vld [vmem:[%s10971_s2 + $0x38] sm:$0xff]  }
 0x28a   : > { %4027 = vmatpush1.bf16.msra.mxu1 %v11055_v25  ;;  %v9822_v32 = vpack.c.bf16 %v3386_v17, %v3370_v48  ;;  %v3511_v15 = vmax.f32 %v2764_v62, 0.0  ;;  %v3496_v48 = vmax.f32 %v2762_v3, 0.0 }
 0x28b   : > { %4028 = vmatprep.subr.bf16.mxu1 %v9662_v11  ;;  %v2845_v11 = vadd.f32 %v2844_v38, %v9470_v63  ;;  %v3512_v17 = vmax.f32 %v2766_v42, 0.0 }
 0x28c   : > { %v9855_v52 = vpack.c.bf16 %v3511_v15, %v3495_v46 }
 0x28d   : > { %6877 = vmatmul.mubr.msk.bf16.gmra.mrb[104].mxu1 %vm2382_vm10, %v9738_v53  ;;  %v2847_v53 = vadd.f32 %v2846_v57, %v9505_v27  ;;  %v3402_v1 = vmax.f32 %v2845_v11, 0.0  ;;  %v9860_v0 = vpack.c.bf16 %v3512_v17, %v3496_v48  ;;  %v2769_v38 = vpop.f32.mrb[52].mxu0 }
 0x28e   : > { %3312 = vmatprep.mubr.bf16.mxu1 %v11052_v60  ;;  %4029 = vmatpush1.bf16.msra.mxu1 %v9649_v21  ;;  %v2849_v21 = vadd.f32 %v2848_v16, %v9505_v27  ;;  %v2852_v39 = vpop.f32.mrb[40].mxu1  ;;  %v2771_v57 = vpop.f32.mrb[53].mxu0 }
 0x28f   : > { %4030 = vmatprep.subr.bf16.mxu1 %v9689_v29  ;;  %6873 = vmatmul.mubr.msk.bf16.gmra.mrb[120].mxu0 %vm2382_vm10, %v9841_v50  ;;  %v3401_v29 = vmax.f32 %v2843_v24, 0.0  ;;  %v3417_v7 = vmax.f32 %v2847_v53, 0.0  ;;  %v2854_v22 = vpop.f32.mrb[41].mxu1  ;;  %v2772_v34 = vadd.f32 %v2771_v57, %v9619_v43  ;;  %v2773_v53 = vpop.f32.mrb[54].mxu0 }
 0x290   : > { %3239 = vmatprep.mubr.bf16.mxu0 %v11052_v60  ;;  %v3418_v4 = vmax.f32 %v2849_v21, 0.0  ;;  %v2856_v24 = vpop.f32.mrb[42].mxu1  ;;  %v2774_v3 = vadd.f32 %v2773_v53, %v9647_v37  ;;  %v2775_v55 = vpop.f32.mrb[55].mxu0 }
 0x291   : > { %v9851_v25 = vpack.c.bf16 %v3417_v7, %v3401_v29  ;;  %v2857_v8 = vadd.f32 %v2856_v24, %v9545_v49  ;;  %v2858_v11 = vpop.f32.mrb[43].mxu1  ;;  %v2776_v31 = vadd.f32 %v2775_v55, %v9647_v37  ;;  %v3528_v15 = vmax.f32 %v2772_v34, 0.0 }
 0x292   : > { %4031 = vmatpush1.bf16.msra.mxu1 %v9678_v54  ;;  %v9853_v9 = vpack.c.bf16 %v3418_v4, %v3402_v1  ;;  %v2853_v54 = vadd.f32 %v2852_v39, %v9503_v13  ;;  %v3543_v42 = vmax.f32 %v2774_v3, 0.0  ;;  %v9887_v1 = vld [vmem:[%s10973_s4] sm:$0xff]  }
 0x293   : > { %4032 = vmatprep.subr.bf16.mxu1 %v9718_v5  ;;  %v2855_v5 = vadd.f32 %v2854_v22, %v9503_v13  ;;  %v3449_v16 = vmax.f32 %v2857_v8, 0.0 }
 0x295   : > { %6878 = vmatmul.mubr.msk.bf16.gmra.mrb[108].mxu1 %vm2382_vm10, %v9759_v58  ;;  %v2770_v58 = vadd.f32 %v2769_v38, %v9619_v43  ;;  %v3434_v21 = vmax.f32 %v2855_v5, 0.0  ;;  %v2779_v22 = vpop.f32.mrb[56].mxu0 }
 0x296   : > { %3322 = vmatprep.mubr.bf16.mxu1 %v11052_v60  ;;  %4033 = vmatpush1.bf16.msra.mxu1 %v9711_v10  ;;  %v2859_v10 = vadd.f32 %v2858_v11, %v9545_v49  ;;  %v2862_v4 = vpop.f32.mrb[44].mxu1  ;;  %v2780_v8 = vadd.f32 %v2779_v22, %v9641_v35  ;;  %v2781_v11 = vpop.f32.mrb[57].mxu0 }
 0x297   : > { %4034 = vmatprep.subr.bf16.mxu1 %v9730_v59  ;;  %6874 = vmatmul.mubr.msk.bf16.gmra.mrb[124].mxu0 %vm2382_vm10, %v9871_v33  ;;  %v3433_v59 = vmax.f32 %v2853_v54, 0.0  ;;  %v3527_v7 = vmax.f32 %v2770_v58, 0.0  ;;  %v2863_v48 = vadd.f32 %v2862_v4, %v11053_v26  ;;  %v2782_v58 = vadd.f32 %v2781_v11, %v9641_v35  ;;  %v2783_v57 = vpop.f32.mrb[58].mxu0 }
 0x298   : > { %3939 = vmatprep.mubr.bf16.mxu0 %v11052_v60  ;;  %v3450_v62 = vmax.f32 %v2859_v10, 0.0  ;;  %v2784_v53 = vadd.f32 %v2783_v57, %v9674_v19 }
 0x299   : > { %v9882_v29 = vpack.c.bf16 %v3449_v16, %v3433_v59  ;;  %v9894_v17 = vpack.c.bf16 %v3543_v42, %v3527_v7  ;;  %v3465_v10 = vmax.f32 %v2863_v48, 0.0  ;;  %v2785_v59 = vpop.f32.mrb[59].mxu0  ;;  %v3560_v4 = vmax.f32 %v2782_v58, 0.0 }
 0x29a   : > { %4035 = vmatpush1.bf16.msra.mxu1 %v9724_v36  ;;  %v9889_v46 = vpack.c.bf16 %v3450_v62, %v3434_v21  ;;  %v3544_v36 = vmax.f32 %v2776_v31, 0.0  ;;  %v2786_v55 = vadd.f32 %v2785_v59, %v9674_v19  ;;  %v3559_v62 = vmax.f32 %v2780_v8, 0.0 }
 0x29b   : > { %4246 = vmatprep.subr.bf16.mxu1 %v9822_v32  ;;  %v2864_v32 = vpop.f32.mrb[45].mxu1  ;;  %v3575_v31 = vmax.f32 %v2784_v53, 0.0 }
 0x29c   : > { %v2865_v39 = vadd.f32 %v2864_v32, %v11053_v26  ;;  %v2866_v54 = vpop.f32.mrb[46].mxu1  ;;  %v9898_v5 = vpack.c.bf16 %v3544_v36, %v3528_v15  ;;  %v3576_v15 = vmax.f32 %v2786_v55, 0.0 }
 0x29d   : > { %6879 = vmatmul.mubr.msk.bf16.gmra.mrb[112].mxu1 %vm2382_vm10, %v9784_v23  ;;  %v2867_v24 = vadd.f32 %v2866_v54, %v11054_v41  ;;  %v2868_v38 = vpop.f32.mrb[47].mxu1  ;;  %v9923_v48 = vpack.c.bf16 %v3575_v31, %v3559_v62  ;;  %v2789_v54 = vpop.f32.mrb[60].mxu0  ;;  %v9943_v62 = vld [vmem:[%s10973_s4 + $0x10] sm:$0xff]  }
 0x29e   : > { %3332 = vmatprep.mubr.bf16.mxu1 %v11052_v60  ;;  %v2869_v23 = vadd.f32 %v2868_v38, %v11054_v41  ;;  %v3466_v16 = vmax.f32 %v2865_v39, 0.0  ;;  %v2872_v7 = vpop.f32.mrb[48].mxu1  ;;  %v3736_v22 = vpack.c.bf16 %v3576_v15, %v3560_v4 }
 0x29f   : > { %3940 = vmatmul.mubr.bf16.vlgmr.msra.gmra.mrb[128].mxu0 %v9887_v1  ;;  %v3481_v34 = vmax.f32 %v2867_v24, 0.0  ;;  %v2874_v36 = vpop.f32.mrb[49].mxu1 }
 0x2a0   : > { %4134 = vmatpush1.bf16.msra.mxu0 %v9748_v56  ;;  %3949 = vmatprep.mubr.bf16.mxu0 %v11052_v60  ;;  %v3482_v3 = vmax.f32 %v2869_v23, 0.0  ;;  %v9915_v56 = vld [vmem:[%s10973_s4 + $0x8] sm:$0xff]   ;;  %v2875_v32 = vadd.f32 %v2874_v36, %v11056_v45  ;;  %v2876_v39 = vpop.f32.mrb[50].mxu1 }
 0x2a1   : > { %4135 = vmatprep.subr.bf16.mxu0 %v9774_v18  ;;  %v9910_v21 = vpack.c.bf16 %v3481_v34, %v3465_v10  ;;  %v2873_v18 = vadd.f32 %v2872_v7, %v11056_v45  ;;  %v2877_v24 = vadd.f32 %v2876_v39, %v9624_v20  ;;  %v2878_v38 = vpop.f32.mrb[51].mxu1 }
 0x2a2   : > { %v9917_v42 = vpack.c.bf16 %v3482_v3, %v3466_v16  ;;  %v2879_v8 = vadd.f32 %v2878_v38, %v9624_v20  ;;  %v3498_v34 = vmax.f32 %v2875_v32, 0.0 }
 0x2a3   : > { %v3513_v58 = vmax.f32 %v2877_v24, 0.0 }
 0x2a4   : > { %4136 = vmatpush1.bf16.msra.mxu0 %v9768_v47  ;;  %v2791_v47 = vpop.f32.mrb[61].mxu0  ;;  %v3514_v53 = vmax.f32 %v2879_v8, 0.0 }
 0x2a5   : > { %6880 = vmatmul.mubr.msk.bf16.gmra.mrb[116].mxu1 %vm2382_vm10, %v9810_v6  ;;  %4137 = vmatprep.subr.bf16.mxu0 %v9798_v14  ;;  %v2790_v6 = vadd.f32 %v2789_v54, %v9682_v61  ;;  %v2792_v11 = vadd.f32 %v2791_v47, %v9682_v61  ;;  %v2793_v23 = vpop.f32.mrb[62].mxu0  ;;  %v3497_v14 = vmax.f32 %v2873_v18, 0.0 }
 0x2a6   : > { %3342 = vmatprep.mubr.bf16.mxu1 %v11052_v60  ;;  %v2794_v57 = vadd.f32 %v2793_v23, %v9705_v12  ;;  %v2795_v10 = vpop.f32.mrb[63].mxu0  ;;  %v9945_v31 = vpack.c.bf16 %v3514_v53, %v3498_v34 }
 0x2a7   : > { %3950 = vmatmul.mubr.bf16.gmra.mrb[132].mxu0 %v9915_v56  ;;  %v2796_v59 = vadd.f32 %v2795_v10, %v9705_v12  ;;  %v9938_v16 = vpack.c.bf16 %v3513_v58, %v3497_v14  ;;  %v3591_v3 = vmax.f32 %v2790_v6, 0.0  ;;  %v3592_v7 = vmax.f32 %v2792_v11, 0.0 }
 0x2a8   : > { %3959 = vmatprep.mubr.bf16.mxu0 %v11052_v60  ;;  %4138 = vmatpush1.bf16.msra.mxu0 %v9793_v51  ;;  %v3607_v55 = vmax.f32 %v2794_v57, 0.0  ;;  %v2882_v51 = vpop.f32.mrb[52].mxu1 }
 0x2a9   : > { %4139 = vmatprep.subr.bf16.mxu0 %v9829_v30  ;;  %v3608_v4 = vmax.f32 %v2796_v59, 0.0  ;;  %v2883_v30 = vadd.f32 %v2882_v51, %v9619_v43  ;;  %v2884_v15 = vpop.f32.mrb[53].mxu1 }
 0x2aa   : > { %v3751_v18 = vpack.c.bf16 %v3607_v55, %v3591_v3  ;;  %v2885_v36 = vadd.f32 %v2884_v15, %v9619_v43  ;;  %v2886_v32 = vpop.f32.mrb[54].mxu1 }
 0x2ab   : > { %v3752_v39 = vpack.c.bf16 %v3608_v4, %v3592_v7  ;;  %v2887_v54 = vadd.f32 %v2886_v32, %v9647_v37  ;;  %v2888_v24 = vpop.f32.mrb[55].mxu1 }
 0x2ac   : > { %4140 = vmatpush1.bf16.msra.mxu0 %v9824_v2  ;;  %v3529_v2 = vmax.f32 %v2883_v30, 0.0  ;;  %v3530_v6 = vmax.f32 %v2885_v36, 0.0 }
 0x2ad   : > { %6881 = vmatmul.mubr.msk.bf16.gmra.mrb[120].mxu1 %vm2382_vm10, %v9841_v50  ;;  %4141 = vmatprep.subr.bf16.mxu0 %v9860_v0  ;;  %v2889_v50 = vadd.f32 %v2888_v24, %v9647_v37  ;;  %v3545_v38 = vmax.f32 %v2887_v54, 0.0  ;;  %v9965_v0 = vld [vmem:[%s10973_s4 + $0x18] sm:$0xff]  }
 0x2ae   : > { %3352 = vmatprep.mubr.bf16.mxu1 %v11052_v60  ;;  %v2892_v11 = vpop.f32.mrb[56].mxu1 }
 0x2af   : > { %3960 = vmatmul.mubr.bf16.gmra.mrb[136].mxu0 %v9943_v62  ;;  %v3546_v47 = vmax.f32 %v2889_v50, 0.0  ;;  %v9960_v8 = vpack.c.bf16 %v3545_v38, %v3529_v2  ;;  %v2893_v14 = vadd.f32 %v2892_v11, %v9641_v35 }
 0x2b0   : > { %3969 = vmatprep.mubr.bf16.mxu0 %v11052_v60  ;;  %4142 = vmatpush1.bf16.msra.mxu0 %v9855_v52  ;;  %v2894_v52 = vpop.f32.mrb[57].mxu1 }
 0x2b1   : > { %4143 = vmatprep.subr.bf16.mxu0 %v9898_v5  ;;  %v9967_v23 = vpack.c.bf16 %v3546_v47, %v3530_v6  ;;  %v2895_v5 = vadd.f32 %v2894_v52, %v9641_v35  ;;  %v2896_v58 = vpop.f32.mrb[58].mxu1 }
 0x2b2   : > { %v2897_v57 = vadd.f32 %v2896_v58, %v9674_v19  ;;  %v2898_v10 = vpop.f32.mrb[59].mxu1 }
 0x2b3   : > { %v2899_v34 = vadd.f32 %v2898_v10, %v9674_v19 }
 0x2b4   : > { %4144 = vmatpush1.bf16.msra.mxu0 %v9894_v17  ;;  %v3577_v53 = vmax.f32 %v2897_v57, 0.0  ;;  %v3562_v17 = vmax.f32 %v2895_v5, 0.0 }
 0x2b5   : > { %6882 = vmatmul.mubr.msk.bf16.gmra.mrb[124].mxu1 %vm2382_vm10, %v9871_v33  ;;  %4145 = vmatprep.subr.bf16.mxu0 %v3736_v22  ;;  %v3561_v33 = vmax.f32 %v2893_v14, 0.0  ;;  %v3578_v59 = vmax.f32 %v2899_v34, 0.0  ;;  %v9985_v22 = vld [vmem:[%s10973_s4 + $0x20] sm:$0xff]  }
 0x2b6   : > { %4052 = vmatprep.mubr.bf16.mxu1 %v11052_v60  ;;  %v2902_v55 = vpop.f32.mrb[60].mxu1 }
 0x2b7   : > { %3970 = vmatmul.mubr.bf16.gmra.mrb[140].mxu0 %v9965_v0  ;;  %v9980_v3 = vpack.c.bf16 %v3577_v53, %v3561_v33  ;;  %v3738_v51 = vpack.c.bf16 %v3578_v59, %v3562_v17  ;;  %v2903_v7 = vadd.f32 %v2902_v55, %v9682_v61  ;;  %v2904_v4 = vpop.f32.mrb[61].mxu1 }
 0x2b8   : > { %3979 = vmatprep.mubr.bf16.mxu0 %v11052_v60  ;;  %4146 = vmatpush1.bf16.msra.mxu0 %v9923_v48  ;;  %v2905_v48 = vadd.f32 %v2904_v4, %v9682_v61  ;;  %v2906_v30 = vpop.f32.mrb[62].mxu1 }
 0x2b9   : > { %4147 = vmatprep.subr.bf16.mxu0 %v3752_v39  ;;  %v2907_v15 = vadd.f32 %v2906_v30, %v9705_v12  ;;  %v2908_v36 = vpop.f32.mrb[63].mxu1  ;;  %v3593_v39 = vmax.f32 %v2903_v7, 0.0 }
 0x2ba   : > { %v2909_v32 = vadd.f32 %v2908_v36, %v9705_v12 }
 0x2bc   : > { %4148 = vmatpush1.bf16.msra.mxu0 %v3751_v18  ;;  %v3609_v18 = vmax.f32 %v2907_v15, 0.0  ;;  %v3610_v54 = vmax.f32 %v2909_v32, 0.0 }
 0x2bd   : > { %4053 = vmatmul.mubr.bf16.vlgmr.msra.gmra.mrb[128].mxu1 %v9887_v1 }
 0x2be   : > { %4247 = vmatpush1.bf16.msra.mxu1 %v9820_v40  ;;  %4062 = vmatprep.mubr.bf16.mxu1 %v11052_v60  ;;  %v3594_v40 = vmax.f32 %v2905_v48, 0.0  ;;  %v3753_v24 = vpack.c.bf16 %v3609_v18, %v3593_v39 }
 0x2bf   : > { %4248 = vmatprep.subr.bf16.mxu1 %v9853_v9  ;;  %3980 = vmatmul.mubr.bf16.gmra.mrb[144].mxu0 %v9985_v22  ;;  %v10002_v9 = vld [vmem:[%s10973_s4 + $0x28] sm:$0xff]  }
 0x2c0   : > { %3989 = vmatprep.mubr.bf16.mxu0 %v11052_v60  ;;  %v3754_v50 = vpack.c.bf16 %v3610_v54, %v3594_v40 }
 0x2c2   : > { %4249 = vmatpush1.bf16.msra.mxu1 %v9851_v25 }
 0x2c3   : > { %4250 = vmatprep.subr.bf16.mxu1 %v9889_v46 }
 0x2c5   : > { %4063 = vmatmul.mubr.bf16.gmra.mrb[132].mxu1 %v9915_v56  ;;  %v2945_v25 = vpop.f32.mrb[64].mxu0 }
 0x2c6   : > { %4072 = vmatprep.mubr.bf16.mxu1 %v11052_v60  ;;  %4251 = vmatpush1.bf16.msra.mxu1 %v9882_v29  ;;  %v2946_v46 = vadd.f32 %v2945_v25, %v9314_v28  ;;  %v2947_v2 = vpop.f32.mrb[65].mxu0  ;;  %v10017_v29 = vld [vmem:[%s10973_s4 + $0x30] sm:$0xff]  }
 0x2c7   : > { %4252 = vmatprep.subr.bf16.mxu1 %v9917_v42  ;;  %3990 = vmatmul.mubr.bf16.gmra.mrb[148].mxu0 %v10002_v9  ;;  %v2948_v38 = vadd.f32 %v2947_v2, %v9314_v28  ;;  %v2949_v6 = vpop.f32.mrb[66].mxu0 }
 0x2c8   : > { %3999 = vmatprep.mubr.bf16.mxu0 %v11052_v60  ;;  %v2950_v42 = vadd.f32 %v2949_v6, %v9352_v44  ;;  %v2951_v47 = vpop.f32.mrb[67].mxu0 }
 0x2c9   : > { %v3372_v14 = vmax.f32 %v2948_v38, 0.0 }
 0x2ca   : > { %4253 = vmatpush1.bf16.msra.mxu1 %v9910_v21  ;;  %v2952_v21 = vadd.f32 %v2951_v47, %v9352_v44  ;;  %v3387_v11 = vmax.f32 %v2950_v42, 0.0 }
 0x2cb   : > { %4254 = vmatprep.subr.bf16.mxu1 %v9945_v31  ;;  %v3371_v31 = vmax.f32 %v2946_v46, 0.0 }
 0x2cc   : > { %v3388_v52 = vmax.f32 %v2952_v21, 0.0 }
 0x2cd   : > { %4073 = vmatmul.mubr.bf16.gmra.mrb[136].mxu1 %v9943_v62  ;;  %v3643_v5 = vpack.c.bf16 %v3387_v11, %v3371_v31  ;;  %v2955_v58 = vpop.f32.mrb[68].mxu0 }
 0x2ce   : > { %4082 = vmatprep.mubr.bf16.mxu1 %v11052_v60  ;;  %4255 = vmatpush1.bf16.msra.mxu1 %v9938_v16  ;;  %v3644_v57 = vpack.c.bf16 %v3388_v52, %v3372_v14  ;;  %v2956_v10 = vadd.f32 %v2955_v58, %v9470_v63  ;;  %v2957_v34 = vpop.f32.mrb[69].mxu0 }
 0x2cf   : > { %4256 = vmatprep.subr.bf16.mxu1 %v9967_v23  ;;  %4000 = vmatmul.mubr.bf16.gmra.mrb[152].mxu0 %v10017_v29  ;;  %v2958_v16 = vadd.f32 %v2957_v34, %v9470_v63  ;;  %v2959_v33 = vpop.f32.mrb[70].mxu0  ;;  %v10033_v23 = vld [vmem:[%s10973_s4 + $0x38] sm:$0xff]  }
 0x2d0   : > { %4009 = vmatprep.mubr.bf16.mxu0 %v11052_v60  ;;  %4359 = vmatprep.subr.bf16.mxu0 %v3644_v57  ;;  %v2960_v53 = vadd.f32 %v2959_v33, %v9505_v27  ;;  %v2961_v17 = vpop.f32.mrb[71].mxu0  ;;  %v3403_v59 = vmax.f32 %v2956_v10, 0.0 }
 0x2d2   : > { %4257 = vmatpush1.bf16.msra.mxu1 %v9960_v8  ;;  %v2962_v8 = vadd.f32 %v2961_v17, %v9505_v27  ;;  %v3419_v55 = vmax.f32 %v2960_v53, 0.0 }
 0x2d3   : > { %4258 = vmatprep.subr.bf16.mxu1 %v3738_v51  ;;  %v3404_v51 = vmax.f32 %v2958_v16, 0.0 }
 0x2d4   : > { %v3420_v7 = vmax.f32 %v2962_v8, 0.0  ;;  %v3659_v4 = vpack.c.bf16 %v3419_v55, %v3403_v59 }
 0x2d5   : > { %4083 = vmatmul.mubr.bf16.gmra.mrb[140].mxu1 %v9965_v0  ;;  %v2965_v48 = vpop.f32.mrb[72].mxu0 }
 0x2d6   : > { %4092 = vmatprep.mubr.bf16.mxu1 %v11052_v60  ;;  %4259 = vmatpush1.bf16.msra.mxu1 %v9980_v3  ;;  %v3660_v30 = vpack.c.bf16 %v3420_v7, %v3404_v51  ;;  %v2966_v15 = vadd.f32 %v2965_v48, %v9503_v13  ;;  %v2967_v36 = vpop.f32.mrb[73].mxu0 }
 0x2d7   : > { %4260 = vmatprep.subr.bf16.mxu1 %v3754_v50  ;;  %4010 = vmatmul.mubr.bf16.gmra.mrb[156].mxu0 %v10033_v23  ;;  %v2968_v32 = vadd.f32 %v2967_v36, %v9503_v13  ;;  %v2969_v39 = vpop.f32.mrb[74].mxu0 }
 0x2d8   : > { %4165 = vmatprep.mubr.bf16.mxu0 %v11052_v60  ;;  %v2970_v3 = vadd.f32 %v2969_v39, %v9545_v49  ;;  %v2971_v18 = vpop.f32.mrb[75].mxu0  ;;  %v3435_v54 = vmax.f32 %v2966_v15, 0.0 }
 0x2d9   : > { %v2972_v40 = vadd.f32 %v2971_v18, %v9545_v49  ;;  %v3436_v25 = vmax.f32 %v2968_v32, 0.0 }
 0x2da   : > { %4261 = vmatpush1.bf16.msra.mxu1 %v3753_v24  ;;  %v3451_v50 = vmax.f32 %v2970_v3, 0.0 }
 0x2db   : > { %v3452_v46 = vmax.f32 %v2972_v40, 0.0 }
 0x2dc   : > { %v3675_v2 = vpack.c.bf16 %v3451_v50, %v3435_v54 }
 0x2dd   : > { %4093 = vmatmul.mubr.bf16.gmra.mrb[144].mxu1 %v9985_v22  ;;  %v3058_v24 = vpop.f32.mrb[64].mxu1  ;;  %v2975_v42 = vpop.f32.mrb[76].mxu0  ;;  %v3676_v47 = vpack.c.bf16 %v3452_v46, %v3436_v25 }
 0x2de   : > { %4102 = vmatprep.mubr.bf16.mxu1 %v11052_v60  ;;  %v3059_v38 = vadd.f32 %v3058_v24, %v9314_v28  ;;  %v3060_v6 = vpop.f32.mrb[65].mxu1  ;;  %v2976_v11 = vadd.f32 %v2975_v42, %v11053_v26  ;;  %v2977_v14 = vpop.f32.mrb[77].mxu0 }
 0x2df   : > { %4166 = vmatmul.mubr.bf16.vlgmr.msra.gmra.mrb[160].mxu0 %v9887_v1  ;;  %v3061_v21 = vadd.f32 %v3060_v6, %v9314_v28  ;;  %v3062_v31 = vpop.f32.mrb[66].mxu1  ;;  %v2978_v57 = vadd.f32 %v2977_v14, %v11053_v26  ;;  %v2979_v10 = vpop.f32.mrb[78].mxu0 }
 0x2e0   : > { %4360 = vmatpush1.bf16.msra.mxu0 %v3643_v5  ;;  %4175 = vmatprep.mubr.bf16.mxu0 %v11052_v60  ;;  %v3063_v52 = vadd.f32 %v3062_v31, %v9352_v44  ;;  %v3064_v58 = vpop.f32.mrb[67].mxu1  ;;  %v2980_v5 = vadd.f32 %v2979_v10, %v11054_v41  ;;  %v2981_v16 = vpop.f32.mrb[79].mxu0  ;;  %v3373_v33 = vmax.f32 %v3059_v38, 0.0  ;;  %v3467_v55 = vmax.f32 %v2976_v11, 0.0 }
 0x2e1   : > { %4361 = vmatprep.subr.bf16.mxu0 %v3660_v30  ;;  %v3065_v34 = vadd.f32 %v3064_v58, %v9352_v44  ;;  %v2982_v17 = vadd.f32 %v2981_v16, %v11054_v41  ;;  %v3374_v8 = vmax.f32 %v3061_v21, 0.0  ;;  %v3468_v48 = vmax.f32 %v2978_v57, 0.0 }
 0x2e2   : > { %v3389_v53 = vmax.f32 %v3063_v52, 0.0  ;;  %v3483_v51 = vmax.f32 %v2980_v5, 0.0 }
 0x2e3   : > { %v3390_v59 = vmax.f32 %v3065_v34, 0.0  ;;  %v3484_v30 = vmax.f32 %v2982_v17, 0.0 }
 0x2e4   : > { %4362 = vmatpush1.bf16.msra.mxu0 %v3659_v4  ;;  %v10060_v7 = vpack.c.bf16 %v3389_v53, %v3373_v33  ;;  %v3691_v32 = vpack.c.bf16 %v3483_v51, %v3467_v55 }
 0x2e5   : > { %4103 = vmatmul.mubr.bf16.gmra.mrb[148].mxu1 %v10002_v9  ;;  %4363 = vmatprep.subr.bf16.mxu0 %v3676_v47  ;;  %v3068_v15 = vpop.f32.mrb[68].mxu1  ;;  %v3646_v36 = vpack.c.bf16 %v3390_v59, %v3374_v8  ;;  %v2985_v3 = vpop.f32.mrb[80].mxu0  ;;  %v3692_v18 = vpack.c.bf16 %v3484_v30, %v3468_v48 }
 0x2e6   : > { %4112 = vmatprep.mubr.bf16.mxu1 %v11052_v60  ;;  %v3069_v4 = vadd.f32 %v3068_v15, %v9470_v63  ;;  %v3070_v39 = vpop.f32.mrb[69].mxu1  ;;  %v2986_v50 = vadd.f32 %v2985_v3, %v11056_v45  ;;  %v2987_v25 = vpop.f32.mrb[81].mxu0 }
 0x2e7   : > { %4176 = vmatmul.mubr.bf16.gmra.mrb[164].mxu0 %v9915_v56  ;;  %v3071_v40 = vadd.f32 %v3070_v39, %v9470_v63  ;;  %v3072_v54 = vpop.f32.mrb[70].mxu1  ;;  %4472 = vmatprep.subr.bf16.mxu1 %v3646_v36  ;;  %v2988_v38 = vadd.f32 %v2987_v25, %v11056_v45  ;;  %v2989_v6 = vpop.f32.mrb[82].mxu0 }
 0x2e8   : > { %4185 = vmatprep.mubr.bf16.mxu0 %v11052_v60  ;;  %4364 = vmatpush1.bf16.msra.mxu0 %v3675_v2  ;;  %v3073_v46 = vadd.f32 %v3072_v54, %v9505_v27  ;;  %v3074_v24 = vpop.f32.mrb[71].mxu1  ;;  %v2990_v2 = vadd.f32 %v2989_v6, %v9624_v20  ;;  %v2991_v47 = vpop.f32.mrb[83].mxu0  ;;  %v3405_v21 = vmax.f32 %v3069_v4, 0.0  ;;  %v3499_v58 = vmax.f32 %v2986_v50, 0.0 }
 0x2e9   : > { %4365 = vmatprep.subr.bf16.mxu0 %v3692_v18  ;;  %v3075_v42 = vadd.f32 %v3074_v24, %v9505_v27  ;;  %v2992_v11 = vadd.f32 %v2991_v47, %v9624_v20  ;;  %v3406_v14 = vmax.f32 %v3071_v40, 0.0  ;;  %v3500_v34 = vmax.f32 %v2988_v38, 0.0 }
 0x2ea   : > { %v3421_v31 = vmax.f32 %v3073_v46, 0.0  ;;  %v3515_v57 = vmax.f32 %v2990_v2, 0.0 }
 0x2eb   : > { %v3422_v52 = vmax.f32 %v3075_v42, 0.0  ;;  %v3516_v5 = vmax.f32 %v2992_v11, 0.0 }
 0x2ec   : > { %4366 = vmatpush1.bf16.msra.mxu0 %v3691_v32  ;;  %v10074_v10 = vpack.c.bf16 %v3421_v31, %v3405_v21  ;;  %v3707_v53 = vpack.c.bf16 %v3515_v57, %v3499_v58 }
 0x2ed   : > { %4113 = vmatmul.mubr.bf16.gmra.mrb[152].mxu1 %v10017_v29  ;;  %v3078_v16 = vpop.f32.mrb[72].mxu1  ;;  %v10076_v33 = vpack.c.bf16 %v3422_v52, %v3406_v14  ;;  %v3708_v59 = vpack.c.bf16 %v3516_v5, %v3500_v34  ;;  %v2995_v55 = vpop.f32.mrb[84].mxu0 }
 0x2ee   : > { %4122 = vmatprep.mubr.bf16.mxu1 %v11052_v60  ;;  %v3079_v17 = vadd.f32 %v3078_v16, %v9503_v13  ;;  %v3080_v8 = vpop.f32.mrb[73].mxu1  ;;  %v2996_v30 = vadd.f32 %v2995_v55, %v9619_v43  ;;  %v2997_v15 = vpop.f32.mrb[85].mxu0 }
 0x2ef   : > { %4186 = vmatmul.mubr.bf16.gmra.mrb[168].mxu0 %v9943_v62  ;;  %v3081_v51 = vadd.f32 %v3080_v8, %v9503_v13  ;;  %v3082_v48 = vpop.f32.mrb[74].mxu1  ;;  %v2998_v4 = vadd.f32 %v2997_v15, %v9619_v43  ;;  %v2999_v39 = vpop.f32.mrb[86].mxu0  ;;  %4367 = vmatprep.subr.bf16.mxu0 %v3708_v59 }
 0x2f0   : > { %4195 = vmatprep.mubr.bf16.mxu0 %v11052_v60  ;;  %v3083_v36 = vadd.f32 %v3082_v48, %v9545_v49  ;;  %v3084_v32 = vpop.f32.mrb[75].mxu1  ;;  %v3000_v18 = vadd.f32 %v2999_v39, %v9647_v37  ;;  %v3001_v40 = vpop.f32.mrb[87].mxu0  ;;  %4368 = vmatpush1.bf16.msra.mxu0 %v3707_v53  ;;  %v3437_v54 = vmax.f32 %v3079_v17, 0.0  ;;  %v3531_v38 = vmax.f32 %v2996_v30, 0.0 }
 0x2f1   : > { %v3085_v3 = vadd.f32 %v3084_v32, %v9545_v49  ;;  %v3002_v25 = vadd.f32 %v3001_v40, %v9647_v37  ;;  %v3438_v46 = vmax.f32 %v3081_v51, 0.0  ;;  %v3532_v2 = vmax.f32 %v2998_v4, 0.0 }
 0x2f2   : > { %v3453_v50 = vmax.f32 %v3083_v36, 0.0  ;;  %v3547_v6 = vmax.f32 %v3000_v18, 0.0 }
 0x2f3   : > { %v3454_v24 = vmax.f32 %v3085_v3, 0.0  ;;  %v3548_v47 = vmax.f32 %v3002_v25, 0.0 }
 0x2f4   : > { %v10090_v42 = vpack.c.bf16 %v3453_v50, %v3437_v54  ;;  %v3723_v11 = vpack.c.bf16 %v3547_v6, %v3531_v38 }
 0x2f5   : > { %4123 = vmatmul.mubr.bf16.gmra.mrb[156].mxu1 %v10033_v23  ;;  %v3088_v21 = vpop.f32.mrb[76].mxu1  ;;  %v3678_v31 = vpack.c.bf16 %v3454_v24, %v3438_v46  ;;  %v3724_v58 = vpack.c.bf16 %v3548_v47, %v3532_v2  ;;  %v3005_v57 = vpop.f32.mrb[88].mxu0 }
 0x2f6   : > { %4278 = vmatprep.mubr.bf16.mxu1 %v11052_v60  ;;  %v3089_v14 = vadd.f32 %v3088_v21, %v11053_v26  ;;  %v3090_v52 = vpop.f32.mrb[77].mxu1  ;;  %v3006_v16 = vadd.f32 %v3005_v57, %v9641_v35  ;;  %v3007_v53 = vpop.f32.mrb[89].mxu0 }
 0x2f7   : > { %4196 = vmatmul.mubr.bf16.gmra.mrb[172].mxu0 %v9965_v0  ;;  %v3091_v34 = vadd.f32 %v3090_v52, %v11053_v26  ;;  %v3092_v5 = vpop.f32.mrb[78].mxu1  ;;  %v3008_v59 = vadd.f32 %v3007_v53, %v9641_v35  ;;  %v3009_v55 = vpop.f32.mrb[90].mxu0  ;;  %4369 = vmatprep.subr.bf16.mxu0 %v3724_v58 }
 0x2f8   : > { %4205 = vmatprep.mubr.bf16.mxu0 %v11052_v60  ;;  %v3093_v17 = vadd.f32 %v3092_v5, %v11054_v41  ;;  %v3094_v8 = vpop.f32.mrb[79].mxu1  ;;  %v3010_v48 = vadd.f32 %v3009_v55, %v9674_v19  ;;  %v3011_v30 = vpop.f32.mrb[91].mxu0  ;;  %4370 = vmatpush1.bf16.msra.mxu0 %v3723_v11  ;;  %v3469_v15 = vmax.f32 %v3089_v14, 0.0  ;;  %v3563_v3 = vmax.f32 %v3006_v16, 0.0 }
 0x2f9   : > { %v3095_v51 = vadd.f32 %v3094_v8, %v11054_v41  ;;  %v3012_v32 = vadd.f32 %v3011_v30, %v9674_v19  ;;  %v3470_v4 = vmax.f32 %v3091_v34, 0.0  ;;  %v3564_v54 = vmax.f32 %v3008_v59, 0.0 }
 0x2fa   : > { %v3485_v36 = vmax.f32 %v3093_v17, 0.0  ;;  %v3579_v18 = vmax.f32 %v3010_v48, 0.0 }
 0x2fb   : > { %v3486_v39 = vmax.f32 %v3095_v51, 0.0  ;;  %v3580_v50 = vmax.f32 %v3012_v32, 0.0 }
 0x2fc   : > { %v3693_v40 = vpack.c.bf16 %v3485_v36, %v3469_v15  ;;  %v3739_v24 = vpack.c.bf16 %v3579_v18, %v3563_v3 }
 0x2fd   : > { %4279 = vmatmul.mubr.bf16.vlgmr.msra.gmra.mrb[160].mxu1 %v9887_v1  ;;  %v3098_v25 = vpop.f32.mrb[80].mxu1  ;;  %v3694_v46 = vpack.c.bf16 %v3486_v39, %v3470_v4 }
 0x2fe   : > { %4473 = vmatpush1.bf16.msra.mxu1 %v10060_v7  ;;  %4288 = vmatprep.mubr.bf16.mxu1 %v11052_v60  ;;  %v3099_v38 = vadd.f32 %v3098_v25, %v11056_v45  ;;  %v3100_v6 = vpop.f32.mrb[81].mxu1  ;;  %v3740_v7 = vpack.c.bf16 %v3580_v50, %v3564_v54 }
 0x2ff   : > { %4474 = vmatprep.subr.bf16.mxu1 %v10076_v33  ;;  %4206 = vmatmul.mubr.bf16.gmra.mrb[176].mxu0 %v9985_v22  ;;  %v3101_v2 = vadd.f32 %v3100_v6, %v11056_v45  ;;  %v3102_v47 = vpop.f32.mrb[82].mxu1  ;;  %v3015_v33 = vpop.f32.mrb[92].mxu0 }
 0x300   : > { %4215 = vmatprep.mubr.bf16.mxu0 %v11052_v60  ;;  %v3103_v21 = vadd.f32 %v3102_v47, %v9624_v20  ;;  %v3104_v11 = vpop.f32.mrb[83].mxu1  ;;  %v3016_v14 = vadd.f32 %v3015_v33, %v9682_v61  ;;  %v3017_v52 = vpop.f32.mrb[93].mxu0  ;;  %4371 = vmatprep.subr.bf16.mxu0 %v3740_v7 }
 0x301   : > { %v3105_v58 = vadd.f32 %v3104_v11, %v9624_v20  ;;  %v3018_v57 = vadd.f32 %v3017_v52, %v9682_v61  ;;  %v3019_v34 = vpop.f32.mrb[94].mxu0  ;;  %4372 = vmatpush1.bf16.msra.mxu0 %v3739_v24  ;;  %v3502_v53 = vmax.f32 %v3101_v2, 0.0 }
 0x302   : > { %4475 = vmatpush1.bf16.msra.mxu1 %v10074_v10  ;;  %v3501_v10 = vmax.f32 %v3099_v38, 0.0  ;;  %v3517_v5 = vmax.f32 %v3103_v21, 0.0  ;;  %v3020_v16 = vadd.f32 %v3019_v34, %v9705_v12  ;;  %v3595_v55 = vmax.f32 %v3016_v14, 0.0 }
 0x303   : > { %4476 = vmatprep.subr.bf16.mxu1 %v3678_v31  ;;  %v3021_v31 = vpop.f32.mrb[95].mxu0  ;;  %v3518_v17 = vmax.f32 %v3105_v58, 0.0  ;;  %v3596_v15 = vmax.f32 %v3018_v57, 0.0 }
 0x304   : > { %v3022_v8 = vadd.f32 %v3021_v31, %v9705_v12  ;;  %v3709_v59 = vpack.c.bf16 %v3517_v5, %v3501_v10  ;;  %v3611_v51 = vmax.f32 %v3020_v16, 0.0 }
 0x305   : > { %4289 = vmatmul.mubr.bf16.gmra.mrb[164].mxu1 %v9915_v56  ;;  %v3710_v48 = vpack.c.bf16 %v3518_v17, %v3502_v53  ;;  %v3108_v30 = vpop.f32.mrb[84].mxu1 }
 0x306   : > { %4298 = vmatprep.mubr.bf16.mxu1 %v11052_v60  ;;  %4477 = vmatpush1.bf16.msra.mxu1 %v10090_v42  ;;  %v3612_v36 = vmax.f32 %v3022_v8, 0.0  ;;  %v3109_v32 = vadd.f32 %v3108_v30, %v9619_v43  ;;  %v3110_v4 = vpop.f32.mrb[85].mxu1  ;;  %v3755_v42 = vpack.c.bf16 %v3611_v51, %v3595_v55 }
 0x307   : > { %4478 = vmatprep.subr.bf16.mxu1 %v3694_v46  ;;  %4216 = vmatmul.mubr.bf16.gmra.mrb[180].mxu0 %v10002_v9  ;;  %v3111_v39 = vadd.f32 %v3110_v4, %v9619_v43  ;;  %v3112_v3 = vpop.f32.mrb[86].mxu1 }
 0x308   : > { %4225 = vmatprep.mubr.bf16.mxu0 %v11052_v60  ;;  %v3756_v18 = vpack.c.bf16 %v3612_v36, %v3596_v15  ;;  %v3113_v54 = vadd.f32 %v3112_v3, %v9647_v37  ;;  %v3114_v50 = vpop.f32.mrb[87].mxu1  ;;  %v3533_v46 = vmax.f32 %v3109_v32, 0.0 }
 0x309   : > { %v3115_v25 = vadd.f32 %v3114_v50, %v9647_v37  ;;  %v3534_v38 = vmax.f32 %v3111_v39, 0.0 }
 0x30a   : > { %4479 = vmatpush1.bf16.msra.mxu1 %v3693_v40  ;;  %4373 = vmatprep.subr.bf16.mxu0 %v3756_v18  ;;  %v3549_v24 = vmax.f32 %v3113_v54, 0.0 }
 0x30b   : > { %4480 = vmatprep.subr.bf16.mxu1 %v3710_v48  ;;  %4374 = vmatpush1.bf16.msra.mxu0 %v3755_v42  ;;  %v3550_v40 = vmax.f32 %v3115_v25, 0.0 }
 0x30c   : > { %v3725_v6 = vpack.c.bf16 %v3549_v24, %v3533_v46 }
 0x30d   : > { %4299 = vmatmul.mubr.bf16.gmra.mrb[168].mxu1 %v9943_v62  ;;  %v3726_v7 = vpack.c.bf16 %v3550_v40, %v3534_v38  ;;  %v3118_v2 = vpop.f32.mrb[88].mxu1 }
 0x30e   : > { %4308 = vmatprep.mubr.bf16.mxu1 %v11052_v60  ;;  %4481 = vmatpush1.bf16.msra.mxu1 %v3709_v59  ;;  %v3119_v47 = vadd.f32 %v3118_v2, %v9641_v35  ;;  %v3120_v33 = vpop.f32.mrb[89].mxu1 }
 0x30f   : > { %4226 = vmatmul.mubr.bf16.gmra.mrb[184].mxu0 %v10017_v29  ;;  %v3121_v21 = vadd.f32 %v3120_v33, %v9641_v35  ;;  %v3122_v11 = vpop.f32.mrb[90].mxu1  ;;  %4482 = vmatprep.subr.bf16.mxu1 %v3726_v7 }
 0x310   : > { %4235 = vmatprep.mubr.bf16.mxu0 %v11052_v60  ;;  %v3123_v14 = vadd.f32 %v3122_v11, %v9674_v19  ;;  %v3124_v52 = vpop.f32.mrb[91].mxu1  ;;  %v3565_v57 = vmax.f32 %v3119_v47, 0.0 }
 0x311   : > { %v3125_v58 = vadd.f32 %v3124_v52, %v9674_v19  ;;  %v3566_v10 = vmax.f32 %v3121_v21, 0.0 }
 0x312   : > { %4483 = vmatpush1.bf16.msra.mxu1 %v3725_v6  ;;  %v3581_v34 = vmax.f32 %v3123_v14, 0.0 }
 0x313   : > { %v3582_v5 = vmax.f32 %v3125_v58, 0.0 }
 0x314   : > { %v3741_v16 = vpack.c.bf16 %v3581_v34, %v3565_v57 }
 0x315   : > { %4309 = vmatmul.mubr.bf16.gmra.mrb[172].mxu1 %v9965_v0  ;;  %v3742_v31 = vpack.c.bf16 %v3582_v5, %v3566_v10  ;;  %v3128_v53 = vpop.f32.mrb[92].mxu1 }
 0x316   : > { %4318 = vmatprep.mubr.bf16.mxu1 %v11052_v60  ;;  %v3129_v17 = vadd.f32 %v3128_v53, %v9682_v61  ;;  %v3130_v8 = vpop.f32.mrb[93].mxu1 }
 0x317   : > { %4236 = vmatmul.mubr.bf16.gmra.mrb[188].mxu0 %v10033_v23  ;;  %v3131_v59 = vadd.f32 %v3130_v8, %v9682_v61  ;;  %v3132_v55 = vpop.f32.mrb[94].mxu1  ;;  %4484 = vmatprep.subr.bf16.mxu1 %v3742_v31 }
 0x318   : > { %4391 = vmatprep.mubr.bf16.mxu0 %v11052_v60  ;;  %v3133_v51 = vadd.f32 %v3132_v55, %v9705_v12  ;;  %v3134_v48 = vpop.f32.mrb[95].mxu1  ;;  %4485 = vmatpush1.bf16.msra.mxu1 %v3741_v16  ;;  %v3597_v15 = vmax.f32 %v3129_v17, 0.0 }
 0x319   : > { %v3135_v30 = vadd.f32 %v3134_v48, %v9705_v12  ;;  %v3598_v32 = vmax.f32 %v3131_v59, 0.0 }
 0x31a   : > { %v3613_v36 = vmax.f32 %v3133_v51, 0.0 }
 0x31b   : > { %v3614_v4 = vmax.f32 %v3135_v30, 0.0 }
 0x31c   : > { %v3757_v42 = vpack.c.bf16 %v3613_v36, %v3597_v15 }
 0x31d   : > { %4319 = vmatmul.mubr.bf16.gmra.mrb[176].mxu1 %v9985_v22  ;;  %v3758_v39 = vpack.c.bf16 %v3614_v4, %v3598_v32 }
 0x31e   : > { %4328 = vmatprep.mubr.bf16.mxu1 %v11052_v60 }
 0x31f   : > { %4392 = vmatmul.mubr.bf16.vlgmr.msra.gmra.mrb[192].mxu0 %v9887_v1  ;;  %4486 = vmatprep.subr.bf16.mxu1 %v3758_v39 }
 0x320   : > { %4401 = vmatprep.mubr.bf16.mxu0 %v11052_v60  ;;  %4487 = vmatpush1.bf16.msra.mxu1 %v3757_v42 }
 0x325   : > { %4329 = vmatmul.mubr.bf16.gmra.mrb[180].mxu1 %v10002_v9 }
 0x326   : > { %4338 = vmatprep.mubr.bf16.mxu1 %v11052_v60 }
 0x327   : > { %4402 = vmatmul.mubr.bf16.gmra.mrb[196].mxu0 %v9915_v56 }
 0x328   : > { %4411 = vmatprep.mubr.bf16.mxu0 %v11052_v60 }
 0x32d   : > { %4339 = vmatmul.mubr.bf16.gmra.mrb[184].mxu1 %v10017_v29 }
 0x32e   : > { %4348 = vmatprep.mubr.bf16.mxu1 %v11052_v60 }
 0x32f   : > { %4412 = vmatmul.mubr.bf16.gmra.mrb[200].mxu0 %v9943_v62 }
 0x330   : > { %4421 = vmatprep.mubr.bf16.mxu0 %v11052_v60 }
 0x332   : > { %v3171_v3 = vpop.f32.mrb[96].mxu0 }
 0x333   : > { %v3172_v18 = vadd.f32 %v3171_v3, %v9314_v28  ;;  %v3173_v54 = vpop.f32.mrb[97].mxu0 }
 0x334   : > { %v3174_v50 = vadd.f32 %v3173_v54, %v9314_v28  ;;  %v3175_v25 = vpop.f32.mrb[98].mxu0 }
 0x335   : > { %4349 = vmatmul.mubr.bf16.gmra.mrb[188].mxu1 %v10033_v23  ;;  %v3176_v46 = vadd.f32 %v3175_v25, %v9352_v44  ;;  %v3177_v24 = vpop.f32.mrb[99].mxu0  ;;  %v3375_v40 = vmax.f32 %v3172_v18, 0.0 }
 0x336   : > { %4504 = vmatprep.mubr.bf16.mxu1 %v11052_v60  ;;  %v3178_v38 = vadd.f32 %v3177_v24, %v9352_v44  ;;  %v3376_v7 = vmax.f32 %v3174_v50, 0.0 }
 0x337   : > { %v3391_v6 = vmax.f32 %v3176_v46, 0.0  ;;  %4422 = vmatmul.mubr.bf16.gmra.mrb[204].mxu0 %v9965_v0 }
 0x338   : > { %v3392_v2 = vmax.f32 %v3178_v38, 0.0  ;;  %4431 = vmatprep.mubr.bf16.mxu0 %v11052_v60 }
 0x339   : > { %v3647_v47 = vpack.c.bf16 %v3391_v6, %v3375_v40 }
 0x33a   : > { %v3648_v33 = vpack.c.bf16 %v3392_v2, %v3376_v7  ;;  %v3181_v21 = vpop.f32.mrb[100].mxu0 }
 0x33b   : > { %v3182_v11 = vadd.f32 %v3181_v21, %v9470_v63  ;;  %v3183_v14 = vpop.f32.mrb[101].mxu0 }
 0x33c   : > { %v3184_v52 = vadd.f32 %v3183_v14, %v9470_v63  ;;  %v3185_v58 = vpop.f32.mrb[102].mxu0  ;;  %4585 = vmatprep.subr.bf16.mxu0 %v3648_v33 }
 0x33d   : > { %4505 = vmatmul.mubr.bf16.vlgmr.msra.gmra.mrb[192].mxu1 %v9887_v1  ;;  %v3186_v57 = vadd.f32 %v3185_v58, %v9505_v27  ;;  %v3187_v34 = vpop.f32.mrb[103].mxu0  ;;  %4586 = vmatpush1.bf16.msra.mxu0 %v3647_v47  ;;  %v3407_v5 = vmax.f32 %v3182_v11, 0.0 }
 0x33e   : > { %4514 = vmatprep.mubr.bf16.mxu1 %v11052_v60  ;;  %v3188_v10 = vadd.f32 %v3187_v34, %v9505_v27  ;;  %v3408_v31 = vmax.f32 %v3184_v52, 0.0 }
 0x33f   : > { %v3423_v16 = vmax.f32 %v3186_v57, 0.0  ;;  %4432 = vmatmul.mubr.bf16.gmra.mrb[208].mxu0 %v9985_v22 }
 0x340   : > { %v3424_v53 = vmax.f32 %v3188_v10, 0.0  ;;  %4441 = vmatprep.mubr.bf16.mxu0 %v11052_v60 }
 0x341   : > { %v3663_v1 = vpack.c.bf16 %v3423_v16, %v3407_v5 }
 0x342   : > { %v3664_v17 = vpack.c.bf16 %v3424_v53, %v3408_v31  ;;  %v3191_v8 = vpop.f32.mrb[104].mxu0 }
 0x343   : > { %v3192_v59 = vadd.f32 %v3191_v8, %v9503_v13  ;;  %v3193_v55 = vpop.f32.mrb[105].mxu0 }
 0x344   : > { %v3194_v51 = vadd.f32 %v3193_v55, %v9503_v13  ;;  %v3195_v48 = vpop.f32.mrb[106].mxu0  ;;  %4587 = vmatprep.subr.bf16.mxu0 %v3664_v17 }
 0x345   : > { %4515 = vmatmul.mubr.bf16.gmra.mrb[196].mxu1 %v9915_v56  ;;  %v3196_v30 = vadd.f32 %v3195_v48, %v9545_v49  ;;  %v3197_v15 = vpop.f32.mrb[107].mxu0  ;;  %4588 = vmatpush1.bf16.msra.mxu0 %v3663_v1  ;;  %v3439_v32 = vmax.f32 %v3192_v59, 0.0 }
 0x346   : > { %4524 = vmatprep.mubr.bf16.mxu1 %v11052_v60  ;;  %v3198_v36 = vadd.f32 %v3197_v15, %v9545_v49  ;;  %v3440_v42 = vmax.f32 %v3194_v51, 0.0 }
 0x347   : > { %v3455_v4 = vmax.f32 %v3196_v30, 0.0  ;;  %4442 = vmatmul.mubr.bf16.gmra.mrb[212].mxu0 %v10002_v9 }
 0x348   : > { %v3456_v39 = vmax.f32 %v3198_v36, 0.0  ;;  %4451 = vmatprep.mubr.bf16.mxu0 %v11052_v60 }
 0x349   : > { %v3679_v56 = vpack.c.bf16 %v3455_v4, %v3439_v32 }
 0x34a   : > { %v3680_v3 = vpack.c.bf16 %v3456_v39, %v3440_v42  ;;  %v3201_v18 = vpop.f32.mrb[108].mxu0 }
 0x34b   : > { %v3202_v54 = vadd.f32 %v3201_v18, %v11053_v26  ;;  %v3203_v50 = vpop.f32.mrb[109].mxu0 }
 0x34c   : > { %v3204_v25 = vadd.f32 %v3203_v50, %v11053_v26  ;;  %v3205_v46 = vpop.f32.mrb[110].mxu0  ;;  %4589 = vmatprep.subr.bf16.mxu0 %v3680_v3 }
 0x34d   : > { %4525 = vmatmul.mubr.bf16.gmra.mrb[200].mxu1 %v9943_v62  ;;  %v3206_v24 = vadd.f32 %v3205_v46, %v11054_v41  ;;  %v3207_v38 = vpop.f32.mrb[111].mxu0  ;;  %4590 = vmatpush1.bf16.msra.mxu0 %v3679_v56  ;;  %v3471_v7 = vmax.f32 %v3202_v54, 0.0 }
 0x34e   : > { %4534 = vmatprep.mubr.bf16.mxu1 %v11052_v60  ;;  %v3208_v40 = vadd.f32 %v3207_v38, %v11054_v41  ;;  %v3472_v33 = vmax.f32 %v3204_v25, 0.0 }
 0x34f   : > { %v3487_v2 = vmax.f32 %v3206_v24, 0.0  ;;  %4452 = vmatmul.mubr.bf16.gmra.mrb[216].mxu0 %v10017_v29 }
 0x350   : > { %v3284_v6 = vpop.f32.mrb[96].mxu1  ;;  %v3488_v21 = vmax.f32 %v3208_v40, 0.0  ;;  %4461 = vmatprep.mubr.bf16.mxu0 %v11052_v60 }
 0x351   : > { %v3285_v47 = vadd.f32 %v3284_v6, %v9314_v28  ;;  %v3286_v62 = vpop.f32.mrb[97].mxu1  ;;  %v3695_v52 = vpack.c.bf16 %v3487_v2, %v3471_v7 }
 0x352   : > { %v3287_v11 = vadd.f32 %v3286_v62, %v9314_v28  ;;  %v3288_v14 = vpop.f32.mrb[98].mxu1  ;;  %v3696_v34 = vpack.c.bf16 %v3488_v21, %v3472_v33  ;;  %v3211_v10 = vpop.f32.mrb[112].mxu0 }
 0x353   : > { %v3289_v58 = vadd.f32 %v3288_v14, %v9352_v44  ;;  %v3290_v57 = vpop.f32.mrb[99].mxu1  ;;  %v3212_v16 = vadd.f32 %v3211_v10, %v11056_v45  ;;  %v3213_v31 = vpop.f32.mrb[113].mxu0  ;;  %v3377_v53 = vmax.f32 %v3285_v47, 0.0 }
 0x354   : > { %v3291_v5 = vadd.f32 %v3290_v57, %v9352_v44  ;;  %v3214_v17 = vadd.f32 %v3213_v31, %v11056_v45  ;;  %v3215_v8 = vpop.f32.mrb[114].mxu0  ;;  %4591 = vmatprep.subr.bf16.mxu0 %v3696_v34  ;;  %v3378_v28 = vmax.f32 %v3287_v11, 0.0 }
 0x355   : > { %v3393_v1 = vmax.f32 %v3289_v58, 0.0  ;;  %4535 = vmatmul.mubr.bf16.gmra.mrb[204].mxu1 %v9965_v0  ;;  %v3216_v55 = vadd.f32 %v3215_v8, %v9624_v20  ;;  %v3217_v51 = vpop.f32.mrb[115].mxu0  ;;  %4592 = vmatpush1.bf16.msra.mxu0 %v3695_v52  ;;  %v3503_v36 = vmax.f32 %v3212_v16, 0.0 }
 0x356   : > { %v3394_v59 = vmax.f32 %v3291_v5, 0.0  ;;  %4544 = vmatprep.mubr.bf16.mxu1 %v11052_v60  ;;  %v3218_v48 = vadd.f32 %v3217_v51, %v9624_v20  ;;  %v3504_v42 = vmax.f32 %v3214_v17, 0.0 }
 0x357   : > { %v3649_v44 = vpack.c.bf16 %v3393_v1, %v3377_v53  ;;  %v3519_v32 = vmax.f32 %v3216_v55, 0.0  ;;  %4462 = vmatmul.mubr.bf16.gmra.mrb[220].mxu0 %v10033_v23 }
 0x358   : > { %v3650_v30 = vpack.c.bf16 %v3394_v59, %v3378_v28  ;;  %v3294_v15 = vpop.f32.mrb[100].mxu1  ;;  %v3520_v39 = vmax.f32 %v3218_v48, 0.0  ;;  %4617 = vmatprep.mubr.bf16.mxu0 %v11052_v60 }
 0x359   : > { %v3295_v0 = vadd.f32 %v3294_v15, %v9470_v63  ;;  %v3296_v4 = vpop.f32.mrb[101].mxu1  ;;  %v3711_v18 = vpack.c.bf16 %v3519_v32, %v3503_v36 }
 0x35a   : > { %v3297_v56 = vadd.f32 %v3296_v4, %v9470_v63  ;;  %v3298_v3 = vpop.f32.mrb[102].mxu1  ;;  %4698 = vmatprep.subr.bf16.mxu1 %v3650_v30  ;;  %v3712_v25 = vpack.c.bf16 %v3520_v39, %v3504_v42  ;;  %v3221_v46 = vpop.f32.mrb[116].mxu0 }
 0x35b   : > { %v3299_v54 = vadd.f32 %v3298_v3, %v9505_v27  ;;  %v3300_v50 = vpop.f32.mrb[103].mxu1  ;;  %4699 = vmatpush1.bf16.msra.mxu1 %v3649_v44  ;;  %v3222_v24 = vadd.f32 %v3221_v46, %v9619_v43  ;;  %v3223_v38 = vpop.f32.mrb[117].mxu0  ;;  %v3409_v40 = vmax.f32 %v3295_v0, 0.0 }
 0x35c   : > { %v3301_v23 = vadd.f32 %v3300_v50, %v9505_v27  ;;  %v3224_v63 = vadd.f32 %v3223_v38, %v9619_v43  ;;  %v3225_v7 = vpop.f32.mrb[118].mxu0  ;;  %4593 = vmatprep.subr.bf16.mxu0 %v3712_v25  ;;  %v3410_v2 = vmax.f32 %v3297_v56, 0.0 }
 0x35d   : > { %v3425_v6 = vmax.f32 %v3299_v54, 0.0  ;;  %4545 = vmatmul.mubr.bf16.gmra.mrb[208].mxu1 %v9985_v22  ;;  %v3226_v62 = vadd.f32 %v3225_v7, %v9647_v37  ;;  %v3227_v33 = vpop.f32.mrb[119].mxu0  ;;  %4594 = vmatpush1.bf16.msra.mxu0 %v3711_v18  ;;  %v3535_v52 = vmax.f32 %v3222_v24, 0.0 }
 0x35e   : > { %v3426_v47 = vmax.f32 %v3301_v23, 0.0  ;;  %4554 = vmatprep.mubr.bf16.mxu1 %v11052_v60  ;;  %v3228_v21 = vadd.f32 %v3227_v33, %v9647_v37  ;;  %v3536_v34 = vmax.f32 %v3224_v63, 0.0 }
 0x35f   : > { %v3665_v27 = vpack.c.bf16 %v3425_v6, %v3409_v40  ;;  %v3551_v58 = vmax.f32 %v3226_v62, 0.0 }
 0x360   : > { %v3666_v11 = vpack.c.bf16 %v3426_v47, %v3410_v2  ;;  %v3304_v14 = vpop.f32.mrb[104].mxu1  ;;  %v3552_v10 = vmax.f32 %v3228_v21, 0.0 }
 0x361   : > { %v3305_v22 = vadd.f32 %v3304_v14, %v9503_v13  ;;  %v3306_v57 = vpop.f32.mrb[105].mxu1  ;;  %v3727_v31 = vpack.c.bf16 %v3551_v58, %v3535_v52 }
 0x362   : > { %v3307_v5 = vadd.f32 %v3306_v57, %v9503_v13  ;;  %v3308_v16 = vpop.f32.mrb[106].mxu1  ;;  %4700 = vmatprep.subr.bf16.mxu1 %v3666_v11  ;;  %v3728_v17 = vpack.c.bf16 %v3552_v10, %v3536_v34  ;;  %v3231_v8 = vpop.f32.mrb[120].mxu0 }
 0x363   : > { %v3309_v53 = vadd.f32 %v3308_v16, %v9545_v49  ;;  %v3310_v1 = vpop.f32.mrb[107].mxu1  ;;  %4701 = vmatpush1.bf16.msra.mxu1 %v3665_v27  ;;  %v3232_v59 = vadd.f32 %v3231_v8, %v9641_v35  ;;  %v3233_v55 = vpop.f32.mrb[121].mxu0  ;;  %v3441_v51 = vmax.f32 %v3305_v22, 0.0 }
 0x364   : > { %v3311_v28 = vadd.f32 %v3310_v1, %v9545_v49  ;;  %v3234_v13 = vadd.f32 %v3233_v55, %v9641_v35  ;;  %v3235_v48 = vpop.f32.mrb[122].mxu0  ;;  %4595 = vmatprep.subr.bf16.mxu0 %v3728_v17  ;;  %v3442_v30 = vmax.f32 %v3307_v5, 0.0  ;;  %v10229_v16 = vpop.permute.xlu0 %3781 }
 0x365   : > { %v3457_v44 = vmax.f32 %v3309_v53, 0.0  ;;  %4555 = vmatmul.mubr.bf16.gmra.mrb[212].mxu1 %v10002_v9  ;;  %v3236_v36 = vadd.f32 %v3235_v48, %v9674_v19  ;;  %v3237_v32 = vpop.f32.mrb[123].mxu0  ;;  %4596 = vmatpush1.bf16.msra.mxu0 %v3727_v31  ;;  %v3567_v39 = vmax.f32 %v3232_v59, 0.0 }
 0x366   : > { %v3458_v15 = vmax.f32 %v3311_v28, 0.0  ;;  %4564 = vmatprep.mubr.bf16.mxu1 %v11052_v60  ;;  %v3238_v0 = vadd.f32 %v3237_v32, %v9674_v19  ;;  %v3568_v18 = vmax.f32 %v3234_v13, 0.0  ;;  %v10235_v13 = vpop.permute.xlu1 %3786 }
 0x367   : > { %v3681_v49 = vpack.c.bf16 %v3457_v44, %v3441_v51  ;;  %v3583_v56 = vmax.f32 %v3236_v36, 0.0 }
 0x368   : > { %v3682_v4 = vpack.c.bf16 %v3458_v15, %v3442_v30  ;;  %v3314_v42 = vpop.f32.mrb[108].mxu1  ;;  %v3584_v54 = vmax.f32 %v3238_v0, 0.0 }
 0x369   : > { %v3315_v9 = vadd.f32 %v3314_v42, %v11053_v26  ;;  %v3316_v3 = vpop.f32.mrb[109].mxu1  ;;  %v3743_v46 = vpack.c.bf16 %v3583_v56, %v3567_v39 }
 0x36a   : > { %v3317_v50 = vadd.f32 %v3316_v3, %v11053_v26  ;;  %v3318_v25 = vpop.f32.mrb[110].mxu1  ;;  %4702 = vmatprep.subr.bf16.mxu1 %v3682_v4  ;;  %v3744_v38 = vpack.c.bf16 %v3584_v54, %v3568_v18  ;;  %v3241_v40 = vpop.f32.mrb[124].mxu0 }
 0x36b   : > { %v3319_v23 = vadd.f32 %v3318_v25, %v11054_v41  ;;  %v3320_v24 = vpop.f32.mrb[111].mxu1  ;;  %4703 = vmatpush1.bf16.msra.mxu1 %v3681_v49  ;;  %v3242_v63 = vadd.f32 %v3241_v40, %v9682_v61  ;;  %v3243_v7 = vpop.f32.mrb[125].mxu0  ;;  %v3473_v2 = vmax.f32 %v3315_v9, 0.0 }
 0x36c   : > { %v3321_v6 = vadd.f32 %v3320_v24, %v11054_v41  ;;  %v3244_v26 = vadd.f32 %v3243_v7, %v9682_v61  ;;  %v3245_v62 = vpop.f32.mrb[126].mxu0  ;;  %4597 = vmatprep.subr.bf16.mxu0 %v3744_v38  ;;  %v3474_v33 = vmax.f32 %v3317_v50, 0.0  ;;  %v10251_v50 = vld [vmem:[%s10973_s4] sm:$0xff]  }
 0x36d   : > { %v3489_v47 = vmax.f32 %v3319_v23, 0.0  ;;  %4565 = vmatmul.mubr.bf16.gmra.mrb[216].mxu1 %v10017_v29  ;;  %v3246_v21 = vadd.f32 %v3245_v62, %v9705_v12  ;;  %v3247_v11 = vpop.f32.mrb[127].mxu0  ;;  %4598 = vmatpush1.bf16.msra.mxu0 %v3743_v46  ;;  %v3599_v22 = vmax.f32 %v3242_v63, 0.0  ;;  %v10254_v23 = vpop.permute.xlu0 %3791 }
 0x36e   : > { %v3490_v27 = vmax.f32 %v3321_v6, 0.0  ;;  %4574 = vmatprep.mubr.bf16.mxu1 %v11052_v60  ;;  %v3248_v14 = vadd.f32 %v3247_v11, %v9705_v12  ;;  %v3600_v10 = vmax.f32 %v3244_v26, 0.0 }
 0x36f   : > { %v3697_v41 = vpack.c.bf16 %v3489_v47, %v3473_v2  ;;  %v3615_v57 = vmax.f32 %v3246_v21, 0.0 }
 0x370   : > { %v3698_v52 = vpack.c.bf16 %v3490_v27, %v3474_v33  ;;  %v3324_v58 = vpop.f32.mrb[112].mxu1  ;;  %v3616_v5 = vmax.f32 %v3248_v14, 0.0  ;;  %v10261_v33 = vpop.permute.xlu1 %3796 }
 0x371   : > { %v3325_v29 = vadd.f32 %v3324_v58, %v11056_v45  ;;  %v3326_v34 = vpop.f32.mrb[113].mxu1  ;;  %v3759_v1 = vpack.c.bf16 %v3615_v57, %v3599_v22 }
 0x372   : > { %v3327_v31 = vadd.f32 %v3326_v34, %v11056_v45  ;;  %v3328_v53 = vpop.f32.mrb[114].mxu1  ;;  %4704 = vmatprep.subr.bf16.mxu1 %v3698_v52  ;;  %v3760_v28 = vpack.c.bf16 %v3616_v5, %v3600_v10  ;;  %v3941_v59 = vpop.f32.mrb[128].mxu0  ;;  %v10240_v45 = vld [vmem:[%s10973_s4 + $0x38] sm:$0xff]  }
 0x373   : > { %v3329_v17 = vadd.f32 %v3328_v53, %v9624_v20  ;;  %v3330_v8 = vpop.f32.mrb[115].mxu1  ;;  %4705 = vmatpush1.bf16.msra.mxu1 %v3697_v41  ;;  %v3942_v51 = vadd.f32 %v3941_v59, %v10229_v16  ;;  %v3943_v44 = vpop.f32.mrb[129].mxu0  ;;  %v3505_v48 = vmax.f32 %v3325_v29, 0.0  ;;  %v10270_v53 = vld [vmem:[%s10973_s4 + $0x8] sm:$0xff]  }
 0x374   : > { %v3331_v55 = vadd.f32 %v3330_v8, %v9624_v20  ;;  %4599 = vmatprep.subr.bf16.mxu0 %v3760_v28  ;;  %v3944_v15 = vadd.f32 %v3943_v44, %v10229_v16  ;;  %v3945_v36 = vpop.f32.mrb[130].mxu0  ;;  %v3506_v32 = vmax.f32 %v3327_v31, 0.0  ;;  %v10273_v8 = vpop.permute.xlu0 %3801 }
 0x375   : > { %v3521_v30 = vmax.f32 %v3329_v17, 0.0  ;;  %4575 = vmatmul.mubr.bf16.gmra.mrb[220].mxu1 %v10240_v45  ;;  %4600 = vmatpush1.bf16.msra.mxu0 %v3759_v1  ;;  %v3946_v49 = vadd.f32 %v3945_v36, %v10235_v13  ;;  %v3947_v0 = vpop.f32.mrb[131].mxu0  ;;  %v4811_v9 = vmax.f32 %v3942_v51, 0.0 }
 0x376   : > { %v3522_v20 = vmax.f32 %v3331_v55, 0.0  ;;  %4730 = vmatprep.mubr.bf16.mxu1 %v11052_v60  ;;  %v3948_v42 = vadd.f32 %v3947_v0, %v10235_v13  ;;  %v4812_v25 = vmax.f32 %v3944_v15, 0.0 }
 0x377   : > { %v3713_v4 = vpack.c.bf16 %v3521_v30, %v3505_v48  ;;  %v4827_v3 = vmax.f32 %v3946_v49, 0.0 }
 0x378   : > { %v3714_v39 = vpack.c.bf16 %v3522_v20, %v3506_v32  ;;  %v3334_v56 = vpop.f32.mrb[116].mxu1  ;;  %4618 = vmatmul.mubr.bf16.vlgmr.msra.gmra.mrb[224].mxu0 %v10251_v50  ;;  %v4828_v46 = vmax.f32 %v3948_v42, 0.0  ;;  %v10280_v20 = vpop.permute.xlu1 %3806 }
 0x379   : > { %v3335_v18 = vadd.f32 %v3334_v56, %v9619_v43  ;;  %v3336_v54 = vpop.f32.mrb[117].mxu1  ;;  %4627 = vmatprep.mubr.bf16.mxu0 %v11052_v60  ;;  %v5075_v40 = vpack.c.bf16 %v4827_v3, %v4811_v9 }
 0x37a   : > { %v3337_v24 = vadd.f32 %v3336_v54, %v9619_v43  ;;  %v3338_v38 = vpop.f32.mrb[118].mxu1  ;;  %4706 = vmatprep.subr.bf16.mxu1 %v3714_v39  ;;  %v5076_v7 = vpack.c.bf16 %v4828_v46, %v4812_v25  ;;  %v3951_v2 = vpop.f32.mrb[132].mxu0 }
 0x37b   : > { %v3339_v6 = vadd.f32 %v3338_v38, %v9647_v37  ;;  %v3340_v63 = vpop.f32.mrb[119].mxu1  ;;  %4707 = vmatpush1.bf16.msra.mxu1 %v3713_v4  ;;  %v3952_v26 = vadd.f32 %v3951_v2, %v10254_v23  ;;  %v3953_v62 = vpop.f32.mrb[133].mxu0  ;;  %v3537_v27 = vmax.f32 %v3335_v18, 0.0 }
 0x37c   : > { %v3341_v47 = vadd.f32 %v3340_v63, %v9647_v37  ;;  %v3954_v21 = vadd.f32 %v3953_v62, %v10254_v23  ;;  %v3955_v11 = vpop.f32.mrb[134].mxu0  ;;  %5275 = vmatprep.subr.bf16.mxu0 %v5076_v7  ;;  %v3538_v41 = vmax.f32 %v3337_v24, 0.0  ;;  %v10292_v7 = vpop.permute.xlu0 %3811 }
 0x37d   : > { %v3553_v43 = vmax.f32 %v3339_v6, 0.0  ;;  %v3956_v52 = vadd.f32 %v3955_v11, %v10261_v33  ;;  %v3957_v58 = vpop.f32.mrb[135].mxu0  ;;  %5276 = vmatpush1.bf16.msra.mxu0 %v5075_v40  ;;  %v4843_v34 = vmax.f32 %v3952_v26, 0.0  ;;  %v10289_v40 = vld [vmem:[%s10973_s4 + $0x10] sm:$0xff]  }
 0x37e   : > { %v3554_v14 = vmax.f32 %v3341_v47, 0.0  ;;  %v3958_v37 = vadd.f32 %v3957_v58, %v10261_v33  ;;  %v4844_v1 = vmax.f32 %v3954_v21, 0.0 }
 0x37f   : > { %v3729_v22 = vpack.c.bf16 %v3553_v43, %v3537_v27  ;;  %v4859_v10 = vmax.f32 %v3956_v52, 0.0  ;;  %v10299_v52 = vpop.permute.xlu1 %3816 }
 0x380   : > { %v3730_v57 = vpack.c.bf16 %v3554_v14, %v3538_v41  ;;  %v3344_v29 = vpop.f32.mrb[120].mxu1  ;;  %4628 = vmatmul.mubr.bf16.gmra.mrb[228].mxu0 %v10270_v53  ;;  %v4860_v17 = vmax.f32 %v3958_v37, 0.0 }
 0x381   : > { %v3345_v5 = vadd.f32 %v3344_v29, %v9641_v35  ;;  %v3346_v31 = vpop.f32.mrb[121].mxu1  ;;  %4637 = vmatprep.mubr.bf16.mxu0 %v11052_v60  ;;  %v5091_v55 = vpack.c.bf16 %v4859_v10, %v4843_v34 }
 0x382   : > { %v3347_v28 = vadd.f32 %v3346_v31, %v9641_v35  ;;  %v3348_v59 = vpop.f32.mrb[122].mxu1  ;;  %4708 = vmatprep.subr.bf16.mxu1 %v3730_v57  ;;  %v5092_v48 = vpack.c.bf16 %v4860_v17, %v4844_v1  ;;  %v3961_v30 = vpop.f32.mrb[136].mxu0 }
 0x383   : > { %v3349_v51 = vadd.f32 %v3348_v59, %v9674_v19  ;;  %v3350_v44 = vpop.f32.mrb[123].mxu1  ;;  %4709 = vmatpush1.bf16.msra.mxu1 %v3729_v22  ;;  %v3962_v36 = vadd.f32 %v3961_v30, %v10273_v8  ;;  %v3963_v32 = vpop.f32.mrb[137].mxu0  ;;  %v3569_v49 = vmax.f32 %v3345_v5, 0.0 }
 0x384   : > { %v3351_v15 = vadd.f32 %v3350_v44, %v9674_v19  ;;  %v3964_v0 = vadd.f32 %v3963_v32, %v10273_v8  ;;  %v3965_v4 = vpop.f32.mrb[138].mxu0  ;;  %5277 = vmatprep.subr.bf16.mxu0 %v5092_v48  ;;  %v3570_v42 = vmax.f32 %v3347_v28, 0.0  ;;  %v10311_v30 = vpop.permute.xlu0 %3821 }
 0x385   : > { %v3585_v35 = vmax.f32 %v3349_v51, 0.0  ;;  %v3966_v56 = vadd.f32 %v3965_v4, %v10280_v20  ;;  %v3967_v9 = vpop.f32.mrb[139].mxu0  ;;  %5278 = vmatpush1.bf16.msra.mxu0 %v5091_v55  ;;  %v4875_v25 = vmax.f32 %v3962_v36, 0.0  ;;  %v10308_v51 = vld [vmem:[%s10973_s4 + $0x18] sm:$0xff]  }
 0x386   : > { %v3586_v39 = vmax.f32 %v3351_v15, 0.0  ;;  %v3968_v19 = vadd.f32 %v3967_v9, %v10280_v20  ;;  %v4876_v6 = vmax.f32 %v3964_v0, 0.0  ;;  %v10318_v9 = vpop.permute.xlu1 %3826 }
 0x387   : > { %v3745_v3 = vpack.c.bf16 %v3585_v35, %v3569_v49  ;;  %v4891_v46 = vmax.f32 %v3966_v56, 0.0 }
 0x388   : > { %v3746_v18 = vpack.c.bf16 %v3586_v39, %v3570_v42  ;;  %v3354_v54 = vpop.f32.mrb[124].mxu1  ;;  %4638 = vmatmul.mubr.bf16.gmra.mrb[232].mxu0 %v10289_v40  ;;  %v4892_v63 = vmax.f32 %v3968_v19, 0.0 }
 0x389   : > { %v3355_v24 = vadd.f32 %v3354_v54, %v9682_v61  ;;  %v3356_v38 = vpop.f32.mrb[125].mxu1  ;;  %4647 = vmatprep.mubr.bf16.mxu0 %v11052_v60  ;;  %v5107_v26 = vpack.c.bf16 %v4891_v46, %v4875_v25 }
 0x38a   : > { %v3357_v2 = vadd.f32 %v3356_v38, %v9682_v61  ;;  %v3358_v47 = vpop.f32.mrb[126].mxu1  ;;  %4710 = vmatprep.subr.bf16.mxu1 %v3746_v18  ;;  %v5108_v43 = vpack.c.bf16 %v4892_v63, %v4876_v6  ;;  %v3971_v21 = vpop.f32.mrb[140].mxu0 }
 0x38b   : > { %v3359_v62 = vadd.f32 %v3358_v47, %v9705_v12  ;;  %v3360_v27 = vpop.f32.mrb[127].mxu1  ;;  %4711 = vmatpush1.bf16.msra.mxu1 %v3745_v3  ;;  %v3972_v41 = vadd.f32 %v3971_v21, %v10292_v7  ;;  %v3973_v14 = vpop.f32.mrb[141].mxu0  ;;  %v3601_v58 = vmax.f32 %v3355_v24, 0.0 }
 0x38c   : > { %v3361_v11 = vadd.f32 %v3360_v27, %v9705_v12  ;;  %v3974_v22 = vadd.f32 %v3973_v14, %v10292_v7  ;;  %v3975_v37 = vpop.f32.mrb[142].mxu0  ;;  %5279 = vmatprep.subr.bf16.mxu0 %v5108_v43  ;;  %v3602_v57 = vmax.f32 %v3357_v2, 0.0 }
 0x38d   : > { %v3617_v61 = vmax.f32 %v3359_v62, 0.0  ;;  %v3976_v34 = vadd.f32 %v3975_v37, %v10299_v52  ;;  %v3977_v10 = vpop.f32.mrb[143].mxu0  ;;  %5280 = vmatpush1.bf16.msra.mxu0 %v5107_v26  ;;  %v4907_v17 = vmax.f32 %v3972_v41, 0.0  ;;  %v10332_v41 = vpop.permute.xlu0 %3831 }
 0x38e   : > { %v3618_v29 = vmax.f32 %v3361_v11, 0.0  ;;  %v3978_v12 = vadd.f32 %v3977_v10, %v10299_v52  ;;  %v4908_v44 = vmax.f32 %v3974_v22, 0.0 }
 0x38f   : > { %v3761_v5 = vpack.c.bf16 %v3617_v61, %v3601_v58  ;;  %v4923_v28 = vmax.f32 %v3976_v34, 0.0 }
 0x390   : > { %v3762_v31 = vpack.c.bf16 %v3618_v29, %v3602_v57  ;;  %v4054_v1 = vpop.f32.mrb[128].mxu1  ;;  %4648 = vmatmul.mubr.bf16.gmra.mrb[236].mxu0 %v10308_v51  ;;  %v4924_v48 = vmax.f32 %v3978_v12, 0.0  ;;  %v10339_v12 = vpop.permute.xlu1 %3836 }
 0x391   : > { %v4055_v59 = vadd.f32 %v4054_v1, %v10229_v16  ;;  %v4056_v55 = vpop.f32.mrb[129].mxu1  ;;  %4657 = vmatprep.mubr.bf16.mxu0 %v11052_v60  ;;  %v5123_v32 = vpack.c.bf16 %v4923_v28, %v4907_v17 }
 0x392   : > { %4712 = vmatprep.subr.bf16.mxu1 %v3762_v31  ;;  %v4057_v15 = vadd.f32 %v4056_v55, %v10229_v16  ;;  %v4058_v36 = vpop.f32.mrb[130].mxu1  ;;  %v5124_v0 = vpack.c.bf16 %v4924_v48, %v4908_v44  ;;  %v3981_v4 = vpop.f32.mrb[144].mxu0 }
 0x393   : > { %4713 = vmatpush1.bf16.msra.mxu1 %v3761_v5  ;;  %v4059_v49 = vadd.f32 %v4058_v36, %v10235_v13  ;;  %v4060_v35 = vpop.f32.mrb[131].mxu1  ;;  %v3982_v39 = vadd.f32 %v3981_v4, %v10311_v30  ;;  %v3983_v56 = vpop.f32.mrb[145].mxu0  ;;  %v4813_v3 = vmax.f32 %v4055_v59, 0.0 }
 0x394   : > { %v4061_v42 = vadd.f32 %v4060_v35, %v10235_v13  ;;  %v3984_v18 = vadd.f32 %v3983_v56, %v10311_v30  ;;  %v3985_v54 = vpop.f32.mrb[146].mxu0  ;;  %5281 = vmatprep.subr.bf16.mxu0 %v5124_v0  ;;  %v4814_v25 = vmax.f32 %v4057_v15, 0.0 }
 0x395   : > { %v4829_v19 = vmax.f32 %v4059_v49, 0.0  ;;  %v3986_v24 = vadd.f32 %v3985_v54, %v10318_v9  ;;  %v3987_v38 = vpop.f32.mrb[147].mxu0  ;;  %5282 = vmatpush1.bf16.msra.mxu0 %v5123_v32  ;;  %v4939_v26 = vmax.f32 %v3982_v39, 0.0 }
 0x396   : > { %4731 = vmatmul.mubr.bf16.vlgmr.msra.gmra.mrb[224].mxu1 %v10251_v50  ;;  %v4830_v46 = vmax.f32 %v4061_v42, 0.0  ;;  %v3988_v63 = vadd.f32 %v3987_v38, %v10318_v9  ;;  %v10329_v50 = vld [vmem:[%s10973_s4 + $0x20] sm:$0xff]   ;;  %v4940_v21 = vmax.f32 %v3984_v18, 0.0 }
 0x397   : > { %4740 = vmatprep.mubr.bf16.mxu1 %v11052_v60  ;;  %v5077_v6 = vpack.c.bf16 %v4829_v19, %v4813_v3  ;;  %v4955_v62 = vmax.f32 %v3986_v24, 0.0  ;;  %v10353_v3 = vpop.permute.xlu0 %3841 }
 0x398   : > { %v5078_v2 = vpack.c.bf16 %v4830_v46, %v4814_v25  ;;  %v4064_v47 = vpop.f32.mrb[132].mxu1  ;;  %4658 = vmatmul.mubr.bf16.gmra.mrb[240].mxu0 %v10329_v50  ;;  %v4956_v11 = vmax.f32 %v3988_v63, 0.0 }
 0x399   : > { %v4065_v27 = vadd.f32 %v4064_v47, %v10254_v23  ;;  %v4066_v43 = vpop.f32.mrb[133].mxu1  ;;  %4667 = vmatprep.mubr.bf16.mxu0 %v11052_v60  ;;  %v5139_v61 = vpack.c.bf16 %v4955_v62, %v4939_v26  ;;  %v10360_v47 = vpop.permute.xlu1 %3846 }
 0x39a   : > { %v4067_v14 = vadd.f32 %v4066_v43, %v10254_v23  ;;  %v4068_v58 = vpop.f32.mrb[134].mxu1  ;;  %5348 = vmatprep.subr.bf16.mxu1 %v5078_v2  ;;  %v5140_v57 = vpack.c.bf16 %v4956_v11, %v4940_v21  ;;  %v3991_v29 = vpop.f32.mrb[148].mxu0 }
 0x39b   : > { %v4069_v22 = vadd.f32 %v4068_v58, %v10261_v33  ;;  %v4070_v37 = vpop.f32.mrb[135].mxu1  ;;  %5349 = vmatpush1.bf16.msra.mxu1 %v5077_v6  ;;  %v3992_v10 = vadd.f32 %v3991_v29, %v10332_v41  ;;  %v3993_v5 = vpop.f32.mrb[149].mxu0  ;;  %v4845_v31 = vmax.f32 %v4065_v27, 0.0 }
 0x39c   : > { %v4071_v34 = vadd.f32 %v4070_v37, %v10261_v33  ;;  %v3994_v17 = vadd.f32 %v3993_v5, %v10332_v41  ;;  %v3995_v28 = vpop.f32.mrb[150].mxu0  ;;  %5283 = vmatprep.subr.bf16.mxu0 %v5140_v57  ;;  %v4846_v59 = vmax.f32 %v4067_v14, 0.0 }
 0x39d   : > { %v4861_v1 = vmax.f32 %v4069_v22, 0.0  ;;  %v3996_v44 = vadd.f32 %v3995_v28, %v10339_v12  ;;  %v3997_v48 = vpop.f32.mrb[151].mxu0  ;;  %5284 = vmatpush1.bf16.msra.mxu0 %v5139_v61  ;;  %v4971_v35 = vmax.f32 %v3992_v10, 0.0 }
 0x39e   : > { %4741 = vmatmul.mubr.bf16.gmra.mrb[228].mxu1 %v10270_v53  ;;  %v4862_v55 = vmax.f32 %v4071_v34, 0.0  ;;  %v3998_v36 = vadd.f32 %v3997_v48, %v10339_v12  ;;  %v10350_v53 = vld [vmem:[%s10973_s4 + $0x28] sm:$0xff]   ;;  %v4972_v39 = vmax.f32 %v3994_v17, 0.0  ;;  %v10374_v17 = vpop.permute.xlu0 %3851 }
 0x39f   : > { %4750 = vmatprep.mubr.bf16.mxu1 %v11052_v60  ;;  %v5093_v15 = vpack.c.bf16 %v4861_v1, %v4845_v31  ;;  %v4987_v0 = vmax.f32 %v3996_v44, 0.0 }
 0x3a0   : > { %v5094_v32 = vpack.c.bf16 %v4862_v55, %v4846_v59  ;;  %v4074_v49 = vpop.f32.mrb[136].mxu1  ;;  %4668 = vmatmul.mubr.bf16.gmra.mrb[244].mxu0 %v10350_v53  ;;  %v4988_v56 = vmax.f32 %v3998_v36, 0.0 }
 0x3a1   : > { %v4075_v4 = vadd.f32 %v4074_v49, %v10273_v8  ;;  %v4076_v42 = vpop.f32.mrb[137].mxu1  ;;  %4677 = vmatprep.mubr.bf16.mxu0 %v11052_v60  ;;  %v5155_v54 = vpack.c.bf16 %v4987_v0, %v4971_v35  ;;  %v10381_v0 = vpop.permute.xlu1 %3856 }
 0x3a2   : > { %v4077_v19 = vadd.f32 %v4076_v42, %v10273_v8  ;;  %v4078_v18 = vpop.f32.mrb[138].mxu1  ;;  %5350 = vmatprep.subr.bf16.mxu1 %v5094_v32  ;;  %v5156_v24 = vpack.c.bf16 %v4988_v56, %v4972_v39  ;;  %v4001_v38 = vpop.f32.mrb[152].mxu0 }
 0x3a3   : > { %v4079_v25 = vadd.f32 %v4078_v18, %v10280_v20  ;;  %v4080_v46 = vpop.f32.mrb[139].mxu1  ;;  %5351 = vmatpush1.bf16.msra.mxu1 %v5093_v15  ;;  %v4002_v63 = vadd.f32 %v4001_v38, %v10353_v3  ;;  %v4003_v2 = vpop.f32.mrb[153].mxu0  ;;  %v4877_v26 = vmax.f32 %v4075_v4, 0.0 }
 0x3a4   : > { %v4081_v6 = vadd.f32 %v4080_v46, %v10280_v20  ;;  %v4004_v27 = vadd.f32 %v4003_v2, %v10353_v3  ;;  %v4005_v43 = vpop.f32.mrb[154].mxu0  ;;  %5285 = vmatprep.subr.bf16.mxu0 %v5156_v24  ;;  %v4878_v21 = vmax.f32 %v4077_v19, 0.0 }
 0x3a5   : > { %v4893_v62 = vmax.f32 %v4079_v25, 0.0  ;;  %v4006_v14 = vadd.f32 %v4005_v43, %v10360_v47  ;;  %v4007_v58 = vpop.f32.mrb[155].mxu0  ;;  %5286 = vmatpush1.bf16.msra.mxu0 %v5155_v54  ;;  %v5003_v29 = vmax.f32 %v4002_v63, 0.0 }
 0x3a6   : > { %4751 = vmatmul.mubr.bf16.gmra.mrb[232].mxu1 %v10289_v40  ;;  %v4894_v11 = vmax.f32 %v4081_v6, 0.0  ;;  %v4008_v22 = vadd.f32 %v4007_v58, %v10360_v47  ;;  %v10371_v40 = vld [vmem:[%s10973_s4 + $0x30] sm:$0xff]   ;;  %v5004_v31 = vmax.f32 %v4004_v27, 0.0 }
 0x3a7   : > { %4760 = vmatprep.mubr.bf16.mxu1 %v11052_v60  ;;  %v5109_v61 = vpack.c.bf16 %v4893_v62, %v4877_v26  ;;  %v5019_v34 = vmax.f32 %v4006_v14, 0.0 }
 0x3a8   : > { %v5110_v37 = vpack.c.bf16 %v4894_v11, %v4878_v21  ;;  %v4084_v57 = vpop.f32.mrb[140].mxu1  ;;  %4678 = vmatmul.mubr.bf16.gmra.mrb[248].mxu0 %v10371_v40  ;;  %v5020_v1 = vmax.f32 %v4008_v22, 0.0 }
 0x3a9   : > { %v4085_v10 = vadd.f32 %v4084_v57, %v10292_v7  ;;  %v4086_v5 = vpop.f32.mrb[141].mxu1  ;;  %4687 = vmatprep.mubr.bf16.mxu0 %v11052_v60  ;;  %v5171_v55 = vpack.c.bf16 %v5019_v34, %v5003_v29 }
 0x3aa   : > { %v4087_v28 = vadd.f32 %v4086_v5, %v10292_v7  ;;  %v4088_v59 = vpop.f32.mrb[142].mxu1  ;;  %5352 = vmatprep.subr.bf16.mxu1 %v5110_v37  ;;  %v5172_v15 = vpack.c.bf16 %v5020_v1, %v5004_v31  ;;  %v4011_v36 = vpop.f32.mrb[156].mxu0  ;;  %v10399_v1 = vld [vmem:[%s10975_s6] sm:$0xff]  }
 0x3ab   : > { %v4089_v44 = vadd.f32 %v4088_v59, %v10299_v52  ;;  %v4090_v48 = vpop.f32.mrb[143].mxu1  ;;  %5353 = vmatpush1.bf16.msra.mxu1 %v5109_v61  ;;  %v4012_v49 = vadd.f32 %v4011_v36, %v10374_v17  ;;  %v4013_v35 = vpop.f32.mrb[157].mxu0  ;;  %v4909_v4 = vmax.f32 %v4085_v10, 0.0 }
 0x3ac   : > { %v4091_v32 = vadd.f32 %v4090_v48, %v10299_v52  ;;  %v4014_v39 = vadd.f32 %v4013_v35, %v10374_v17  ;;  %v4015_v56 = vpop.f32.mrb[158].mxu0  ;;  %5287 = vmatprep.subr.bf16.mxu0 %v5172_v15  ;;  %v4910_v19 = vmax.f32 %v4087_v28, 0.0 }
 0x3ad   : > { %v4925_v42 = vmax.f32 %v4089_v44, 0.0  ;;  %v4016_v54 = vadd.f32 %v4015_v56, %v10381_v0  ;;  %v4017_v25 = vpop.f32.mrb[159].mxu0  ;;  %5288 = vmatpush1.bf16.msra.mxu0 %v5171_v55  ;;  %v5035_v63 = vmax.f32 %v4012_v49, 0.0 }
 0x3ae   : > { %4761 = vmatmul.mubr.bf16.gmra.mrb[236].mxu1 %v10308_v51  ;;  %v4926_v18 = vmax.f32 %v4091_v32, 0.0  ;;  %v4018_v24 = vadd.f32 %v4017_v25, %v10381_v0  ;;  %v5036_v51 = vmax.f32 %v4014_v39, 0.0 }
 0x3af   : > { %4770 = vmatprep.mubr.bf16.mxu1 %v11052_v60  ;;  %v5125_v46 = vpack.c.bf16 %v4925_v42, %v4909_v4  ;;  %v5051_v2 = vmax.f32 %v4016_v54, 0.0 }
 0x3b0   : > { %v5126_v38 = vpack.c.bf16 %v4926_v18, %v4910_v19  ;;  %v4094_v6 = vpop.f32.mrb[144].mxu1  ;;  %4688 = vmatmul.mubr.bf16.gmra.mrb[252].mxu0 %v10240_v45  ;;  %v5052_v27 = vmax.f32 %v4018_v24, 0.0 }
 0x3b1   : > { %v4095_v26 = vadd.f32 %v4094_v6, %v10311_v30  ;;  %v4096_v62 = vpop.f32.mrb[145].mxu1  ;;  %v5187_v11 = vpack.c.bf16 %v5051_v2, %v5035_v63  ;;  %5307 = vmatprep.mubr.bf16.mxu0 %v11052_v60 }
 0x3b2   : > { %v4097_v43 = vadd.f32 %v4096_v62, %v10311_v30  ;;  %v4098_v21 = vpop.f32.mrb[146].mxu1  ;;  %5354 = vmatprep.subr.bf16.mxu1 %v5126_v38  ;;  %v5188_v61 = vpack.c.bf16 %v5052_v27, %v5036_v51  ;;  %v4167_v22 = vpop.f32.mrb[160].mxu0  ;;  %v10416_v27 = vld [vmem:[%s10975_s6 + $0x8] sm:$0xff]  }
 0x3b3   : > { %v4099_v14 = vadd.f32 %v4098_v21, %v10318_v9  ;;  %v4100_v58 = vpop.f32.mrb[147].mxu1  ;;  %5355 = vmatpush1.bf16.msra.mxu1 %v5125_v46  ;;  %v4168_v57 = vadd.f32 %v4167_v22, %v10229_v16  ;;  %v4169_v29 = vpop.f32.mrb[161].mxu0  ;;  %v4941_v34 = vmax.f32 %v4095_v26, 0.0 }
 0x3b4   : > { %v4101_v37 = vadd.f32 %v4100_v58, %v10318_v9  ;;  %v4170_v5 = vadd.f32 %v4169_v29, %v10229_v16  ;;  %v4171_v31 = vpop.f32.mrb[162].mxu0  ;;  %5289 = vmatprep.subr.bf16.mxu0 %v5188_v61  ;;  %v4942_v28 = vmax.f32 %v4097_v43, 0.0 }
 0x3b5   : > { %v4957_v10 = vmax.f32 %v4099_v14, 0.0  ;;  %v4172_v55 = vadd.f32 %v4171_v31, %v10235_v13  ;;  %v4173_v44 = vpop.f32.mrb[163].mxu0  ;;  %5290 = vmatpush1.bf16.msra.mxu0 %v5187_v11  ;;  %v4815_v49 = vmax.f32 %v4168_v57, 0.0 }
 0x3b6   : > { %4771 = vmatmul.mubr.bf16.gmra.mrb[240].mxu1 %v10329_v50  ;;  %v4958_v59 = vmax.f32 %v4101_v37, 0.0  ;;  %v4174_v15 = vadd.f32 %v4173_v44, %v10235_v13  ;;  %v4816_v39 = vmax.f32 %v4170_v5, 0.0 }
 0x3b7   : > { %4780 = vmatprep.mubr.bf16.mxu1 %v11052_v60  ;;  %v5141_v48 = vpack.c.bf16 %v4957_v10, %v4941_v34  ;;  %v4831_v35 = vmax.f32 %v4172_v55, 0.0 }
 0x3b8   : > { %v5142_v36 = vpack.c.bf16 %v4958_v59, %v4942_v28  ;;  %v4104_v32 = vpop.f32.mrb[148].mxu1  ;;  %v4832_v50 = vmax.f32 %v4174_v15, 0.0  ;;  %5308 = vmatmul.mubr.bf16.vlgmr.msra.gmra.mrb[0].mxu0 %v10399_v1 }
 0x3b9   : > { %v4105_v4 = vadd.f32 %v4104_v32, %v10332_v41  ;;  %v4106_v42 = vpop.f32.mrb[149].mxu1  ;;  %v5079_v18 = vpack.c.bf16 %v4831_v35, %v4815_v49  ;;  %5317 = vmatprep.mubr.bf16.mxu0 %v11052_v60 }
 0x3ba   : > { %v4107_v56 = vadd.f32 %v4106_v42, %v10332_v41  ;;  %v4108_v19 = vpop.f32.mrb[150].mxu1  ;;  %5356 = vmatprep.subr.bf16.mxu1 %v5142_v36  ;;  %v5080_v46 = vpack.c.bf16 %v4832_v50, %v4816_v39  ;;  %v4177_v24 = vpop.f32.mrb[164].mxu0  ;;  %v10433_v50 = vld [vmem:[%s10975_s6 + $0x10] sm:$0xff]  }
 0x3bb   : > { %v4109_v54 = vadd.f32 %v4108_v19, %v10339_v12  ;;  %v4110_v25 = vpop.f32.mrb[151].mxu1  ;;  %5357 = vmatpush1.bf16.msra.mxu1 %v5141_v48  ;;  %v4178_v6 = vadd.f32 %v4177_v24, %v10254_v23  ;;  %v4179_v63 = vpop.f32.mrb[165].mxu0  ;;  %v4973_v2 = vmax.f32 %v4105_v4, 0.0 }
 0x3bc   : > { %v4111_v38 = vadd.f32 %v4110_v25, %v10339_v12  ;;  %v4180_v62 = vadd.f32 %v4179_v63, %v10254_v23  ;;  %v4181_v51 = vpop.f32.mrb[166].mxu0  ;;  %5421 = vmatprep.subr.bf16.mxu0 %v5080_v46  ;;  %v4974_v43 = vmax.f32 %v4107_v56, 0.0 }
 0x3bd   : > { %v4989_v26 = vmax.f32 %v4109_v54, 0.0  ;;  %v4182_v11 = vadd.f32 %v4181_v51, %v10261_v33  ;;  %v4183_v14 = vpop.f32.mrb[167].mxu0  ;;  %5422 = vmatpush1.bf16.msra.mxu0 %v5079_v18  ;;  %v4847_v57 = vmax.f32 %v4178_v6, 0.0 }
 0x3be   : > { %4781 = vmatmul.mubr.bf16.gmra.mrb[244].mxu1 %v10350_v53  ;;  %v4990_v21 = vmax.f32 %v4111_v38, 0.0  ;;  %v4184_v61 = vadd.f32 %v4183_v14, %v10261_v33  ;;  %v4848_v5 = vmax.f32 %v4180_v62, 0.0 }
 0x3bf   : > { %4790 = vmatprep.mubr.bf16.mxu1 %v11052_v60  ;;  %v5157_v58 = vpack.c.bf16 %v4989_v26, %v4973_v2  ;;  %v4863_v29 = vmax.f32 %v4182_v11, 0.0 }
 0x3c0   : > { %v5158_v22 = vpack.c.bf16 %v4990_v21, %v4974_v43  ;;  %v4114_v37 = vpop.f32.mrb[152].mxu1  ;;  %v4864_v53 = vmax.f32 %v4184_v61, 0.0  ;;  %5318 = vmatmul.mubr.bf16.gmra.mrb[4].mxu0 %v10416_v27 }
 0x3c1   : > { %v4115_v34 = vadd.f32 %v4114_v37, %v10353_v3  ;;  %v4116_v10 = vpop.f32.mrb[153].mxu1  ;;  %v5095_v59 = vpack.c.bf16 %v4863_v29, %v4847_v57  ;;  %5327 = vmatprep.mubr.bf16.mxu0 %v11052_v60 }
 0x3c2   : > { %v4117_v31 = vadd.f32 %v4116_v10, %v10353_v3  ;;  %v4118_v28 = vpop.f32.mrb[154].mxu1  ;;  %5358 = vmatprep.subr.bf16.mxu1 %v5158_v22  ;;  %v5096_v48 = vpack.c.bf16 %v4864_v53, %v4848_v5  ;;  %v4187_v15 = vpop.f32.mrb[168].mxu0  ;;  %v10450_v53 = vld [vmem:[%s10975_s6 + $0x18] sm:$0xff]  }
 0x3c3   : > { %v4119_v55 = vadd.f32 %v4118_v28, %v10360_v47  ;;  %v4120_v44 = vpop.f32.mrb[155].mxu1  ;;  %5359 = vmatpush1.bf16.msra.mxu1 %v5157_v58  ;;  %v4188_v32 = vadd.f32 %v4187_v15, %v10273_v8  ;;  %v4189_v49 = vpop.f32.mrb[169].mxu0  ;;  %v5005_v35 = vmax.f32 %v4115_v34, 0.0 }
 0x3c4   : > { %v4121_v36 = vadd.f32 %v4120_v44, %v10360_v47  ;;  %v4190_v42 = vadd.f32 %v4189_v49, %v10273_v8  ;;  %v4191_v39 = vpop.f32.mrb[170].mxu0  ;;  %5423 = vmatprep.subr.bf16.mxu0 %v5096_v48  ;;  %v5006_v56 = vmax.f32 %v4117_v31, 0.0 }
 0x3c5   : > { %v5021_v4 = vmax.f32 %v4119_v55, 0.0  ;;  %v4192_v18 = vadd.f32 %v4191_v39, %v10280_v20  ;;  %v4193_v54 = vpop.f32.mrb[171].mxu0  ;;  %5424 = vmatpush1.bf16.msra.mxu0 %v5095_v59  ;;  %v4879_v6 = vmax.f32 %v4188_v32, 0.0 }
 0x3c6   : > { %4791 = vmatmul.mubr.bf16.gmra.mrb[248].mxu1 %v10371_v40  ;;  %v5022_v19 = vmax.f32 %v4121_v36, 0.0  ;;  %v4194_v46 = vadd.f32 %v4193_v54, %v10280_v20  ;;  %v4880_v62 = vmax.f32 %v4190_v42, 0.0 }
 0x3c7   : > { %4800 = vmatprep.mubr.bf16.mxu1 %v11052_v60  ;;  %v5173_v25 = vpack.c.bf16 %v5021_v4, %v5005_v35  ;;  %v4895_v63 = vmax.f32 %v4192_v18, 0.0 }
 0x3c8   : > { %v5174_v24 = vpack.c.bf16 %v5022_v19, %v5006_v56  ;;  %v4124_v38 = vpop.f32.mrb[156].mxu1  ;;  %v4896_v40 = vmax.f32 %v4194_v46, 0.0  ;;  %5328 = vmatmul.mubr.bf16.gmra.mrb[8].mxu0 %v10433_v50 }
 0x3c9   : > { %v4125_v2 = vadd.f32 %v4124_v38, %v10374_v17  ;;  %v4126_v26 = vpop.f32.mrb[157].mxu1  ;;  %v5111_v21 = vpack.c.bf16 %v4895_v63, %v4879_v6  ;;  %5337 = vmatprep.mubr.bf16.mxu0 %v11052_v60 }
 0x3ca   : > { %v4127_v51 = vadd.f32 %v4126_v26, %v10374_v17  ;;  %v4128_v43 = vpop.f32.mrb[158].mxu1  ;;  %5360 = vmatprep.subr.bf16.mxu1 %v5174_v24  ;;  %v5112_v58 = vpack.c.bf16 %v4896_v40, %v4880_v62  ;;  %v4197_v61 = vpop.f32.mrb[172].mxu0 }
 0x3cb   : > { %v4129_v11 = vadd.f32 %v4128_v43, %v10381_v0  ;;  %v4130_v14 = vpop.f32.mrb[159].mxu1  ;;  %5361 = vmatpush1.bf16.msra.mxu1 %v5173_v25  ;;  %v4198_v37 = vadd.f32 %v4197_v61, %v10292_v7  ;;  %v4199_v57 = vpop.f32.mrb[173].mxu0  ;;  %v5037_v29 = vmax.f32 %v4125_v2, 0.0 }
 0x3cc   : > { %v4131_v22 = vadd.f32 %v4130_v14, %v10381_v0  ;;  %v4200_v10 = vadd.f32 %v4199_v57, %v10292_v7  ;;  %v4201_v5 = vpop.f32.mrb[174].mxu0  ;;  %5425 = vmatprep.subr.bf16.mxu0 %v5112_v58  ;;  %v5038_v31 = vmax.f32 %v4127_v51, 0.0 }
 0x3cd   : > { %v5053_v34 = vmax.f32 %v4129_v11, 0.0  ;;  %v4202_v59 = vadd.f32 %v4201_v5, %v10299_v52  ;;  %v4203_v55 = vpop.f32.mrb[175].mxu0  ;;  %5426 = vmatpush1.bf16.msra.mxu0 %v5111_v21  ;;  %v4911_v32 = vmax.f32 %v4198_v37, 0.0 }
 0x3ce   : > { %4801 = vmatmul.mubr.bf16.gmra.mrb[252].mxu1 %v10240_v45  ;;  %v5054_v28 = vmax.f32 %v4131_v22, 0.0  ;;  %v4204_v48 = vadd.f32 %v4203_v55, %v10299_v52  ;;  %v4912_v42 = vmax.f32 %v4200_v10, 0.0 }
 0x3cf   : > { %v5189_v44 = vpack.c.bf16 %v5053_v34, %v5037_v29  ;;  %5380 = vmatprep.mubr.bf16.mxu1 %v11052_v60  ;;  %v4927_v49 = vmax.f32 %v4202_v59, 0.0 }
 0x3d0   : > { %v5190_v15 = vpack.c.bf16 %v5054_v28, %v5038_v31  ;;  %v4280_v36 = vpop.f32.mrb[160].mxu1  ;;  %v4928_v45 = vmax.f32 %v4204_v48, 0.0  ;;  %5338 = vmatmul.mubr.bf16.gmra.mrb[12].mxu0 %v10450_v53 }
 0x3d1   : > { %v4281_v35 = vadd.f32 %v4280_v36, %v10229_v16  ;;  %v4282_v4 = vpop.f32.mrb[161].mxu1  ;;  %v5127_v19 = vpack.c.bf16 %v4927_v49, %v4911_v32  ;;  %5453 = vmatprep.mubr.bf16.mxu0 %v11052_v60 }
 0x3d2   : > { %v4283_v39 = vadd.f32 %v4282_v4, %v10229_v16  ;;  %v4284_v56 = vpop.f32.mrb[162].mxu1  ;;  %5362 = vmatprep.subr.bf16.mxu1 %v5190_v15  ;;  %v5128_v25 = vpack.c.bf16 %v4928_v45, %v4912_v42  ;;  %v4207_v46 = vpop.f32.mrb[176].mxu0 }
 0x3d3   : > { %v4285_v18 = vadd.f32 %v4284_v56, %v10235_v13  ;;  %v4286_v54 = vpop.f32.mrb[163].mxu1  ;;  %5363 = vmatpush1.bf16.msra.mxu1 %v5189_v44  ;;  %v4208_v38 = vadd.f32 %v4207_v46, %v10311_v30  ;;  %v4209_v6 = vpop.f32.mrb[177].mxu0  ;;  %v4817_v63 = vmax.f32 %v4281_v35, 0.0 }
 0x3d4   : > { %v4287_v24 = vadd.f32 %v4286_v54, %v10235_v13  ;;  %v4210_v26 = vadd.f32 %v4209_v6, %v10311_v30  ;;  %v4211_v62 = vpop.f32.mrb[178].mxu0  ;;  %5427 = vmatprep.subr.bf16.mxu0 %v5128_v25  ;;  %v4818_v40 = vmax.f32 %v4283_v39, 0.0 }
 0x3d5   : > { %v4833_v2 = vmax.f32 %v4285_v18, 0.0  ;;  %v4212_v43 = vadd.f32 %v4211_v62, %v10318_v9  ;;  %v4213_v21 = vpop.f32.mrb[179].mxu0  ;;  %5428 = vmatpush1.bf16.msra.mxu0 %v5127_v19  ;;  %v4943_v22 = vmax.f32 %v4208_v38, 0.0 }
 0x3d6   : > { %v4834_v51 = vmax.f32 %v4287_v24, 0.0  ;;  %5381 = vmatmul.mubr.bf16.vlgmr.msra.gmra.mrb[0].mxu1 %v10399_v1  ;;  %v4214_v14 = vadd.f32 %v4213_v21, %v10318_v9  ;;  %v4944_v34 = vmax.f32 %v4210_v26, 0.0 }
 0x3d7   : > { %v5081_v11 = vpack.c.bf16 %v4833_v2, %v4817_v63  ;;  %5390 = vmatprep.mubr.bf16.mxu1 %v11052_v60  ;;  %v4959_v37 = vmax.f32 %v4212_v43, 0.0 }
 0x3d8   : > { %v5082_v58 = vpack.c.bf16 %v4834_v51, %v4818_v40  ;;  %v4290_v61 = vpop.f32.mrb[164].mxu1  ;;  %v4960_v10 = vmax.f32 %v4214_v14, 0.0 }
 0x3d9   : > { %v4291_v57 = vadd.f32 %v4290_v61, %v10254_v23  ;;  %v4292_v29 = vpop.f32.mrb[165].mxu1  ;;  %v5143_v28 = vpack.c.bf16 %v4959_v37, %v4943_v22 }
 0x3da   : > { %v4293_v5 = vadd.f32 %v4292_v29, %v10254_v23  ;;  %v4294_v31 = vpop.f32.mrb[166].mxu1  ;;  %5494 = vmatprep.subr.bf16.mxu1 %v5082_v58  ;;  %v5144_v44 = vpack.c.bf16 %v4960_v10, %v4944_v34  ;;  %v4217_v48 = vpop.f32.mrb[180].mxu0 }
 0x3db   : > { %v4295_v59 = vadd.f32 %v4294_v31, %v10261_v33  ;;  %v4296_v55 = vpop.f32.mrb[167].mxu1  ;;  %5495 = vmatpush1.bf16.msra.mxu1 %v5081_v11  ;;  %v4218_v36 = vadd.f32 %v4217_v48, %v10332_v41  ;;  %v4219_v32 = vpop.f32.mrb[181].mxu0  ;;  %v4849_v49 = vmax.f32 %v4291_v57, 0.0 }
 0x3dc   : > { %v4297_v15 = vadd.f32 %v4296_v55, %v10261_v33  ;;  %v4220_v4 = vadd.f32 %v4219_v32, %v10332_v41  ;;  %v4221_v42 = vpop.f32.mrb[182].mxu0  ;;  %5429 = vmatprep.subr.bf16.mxu0 %v5144_v44  ;;  %v4850_v45 = vmax.f32 %v4293_v5, 0.0 }
 0x3dd   : > { %v4865_v35 = vmax.f32 %v4295_v59, 0.0  ;;  %v4222_v56 = vadd.f32 %v4221_v42, %v10339_v12  ;;  %v4223_v19 = vpop.f32.mrb[183].mxu0  ;;  %5430 = vmatpush1.bf16.msra.mxu0 %v5143_v28  ;;  %v4975_v24 = vmax.f32 %v4218_v36, 0.0 }
 0x3de   : > { %v4866_v39 = vmax.f32 %v4297_v15, 0.0  ;;  %5391 = vmatmul.mubr.bf16.gmra.mrb[4].mxu1 %v10416_v27  ;;  %v4224_v54 = vadd.f32 %v4223_v19, %v10339_v12  ;;  %v4976_v2 = vmax.f32 %v4220_v4, 0.0 }
 0x3df   : > { %v5097_v18 = vpack.c.bf16 %v4865_v35, %v4849_v49  ;;  %5400 = vmatprep.mubr.bf16.mxu1 %v11052_v60  ;;  %v4991_v38 = vmax.f32 %v4222_v56, 0.0 }
 0x3e0   : > { %v5098_v25 = vpack.c.bf16 %v4866_v39, %v4850_v45  ;;  %v4300_v46 = vpop.f32.mrb[168].mxu1  ;;  %v4992_v26 = vmax.f32 %v4224_v54, 0.0 }
 0x3e1   : > { %v4301_v6 = vadd.f32 %v4300_v46, %v10273_v8  ;;  %v4302_v63 = vpop.f32.mrb[169].mxu1  ;;  %v5159_v51 = vpack.c.bf16 %v4991_v38, %v4975_v24 }
 0x3e2   : > { %v4303_v62 = vadd.f32 %v4302_v63, %v10273_v8  ;;  %v4304_v40 = vpop.f32.mrb[170].mxu1  ;;  %5496 = vmatprep.subr.bf16.mxu1 %v5098_v25  ;;  %v5160_v11 = vpack.c.bf16 %v4992_v26, %v4976_v2  ;;  %v4227_v14 = vpop.f32.mrb[184].mxu0 }
 0x3e3   : > { %v4305_v43 = vadd.f32 %v4304_v40, %v10280_v20  ;;  %v4306_v21 = vpop.f32.mrb[171].mxu1  ;;  %5497 = vmatpush1.bf16.msra.mxu1 %v5097_v18  ;;  %v4228_v61 = vadd.f32 %v4227_v14, %v10353_v3  ;;  %v4229_v22 = vpop.f32.mrb[185].mxu0  ;;  %v4881_v37 = vmax.f32 %v4301_v6, 0.0 }
 0x3e4   : > { %v4307_v58 = vadd.f32 %v4306_v21, %v10280_v20  ;;  %v4230_v29 = vadd.f32 %v4229_v22, %v10353_v3  ;;  %v4231_v34 = vpop.f32.mrb[186].mxu0  ;;  %5431 = vmatprep.subr.bf16.mxu0 %v5160_v11  ;;  %v4882_v10 = vmax.f32 %v4303_v62, 0.0 }
 0x3e5   : > { %v4897_v57 = vmax.f32 %v4305_v43, 0.0  ;;  %v4232_v31 = vadd.f32 %v4231_v34, %v10360_v47  ;;  %v4233_v28 = vpop.f32.mrb[187].mxu0  ;;  %5432 = vmatpush1.bf16.msra.mxu0 %v5159_v51  ;;  %v5007_v15 = vmax.f32 %v4228_v61, 0.0 }
 0x3e6   : > { %v4898_v5 = vmax.f32 %v4307_v58, 0.0  ;;  %5401 = vmatmul.mubr.bf16.gmra.mrb[8].mxu1 %v10433_v50  ;;  %v4234_v55 = vadd.f32 %v4233_v28, %v10360_v47  ;;  %v5008_v35 = vmax.f32 %v4230_v29, 0.0 }
 0x3e7   : > { %v5113_v59 = vpack.c.bf16 %v4897_v57, %v4881_v37  ;;  %5410 = vmatprep.mubr.bf16.mxu1 %v11052_v60  ;;  %v5023_v36 = vmax.f32 %v4232_v31, 0.0 }
 0x3e8   : > { %v5114_v44 = vpack.c.bf16 %v4898_v5, %v4882_v10  ;;  %v4310_v48 = vpop.f32.mrb[172].mxu1  ;;  %v5024_v4 = vmax.f32 %v4234_v55, 0.0 }
 0x3e9   : > { %v4311_v32 = vadd.f32 %v4310_v48, %v10292_v7  ;;  %v4312_v49 = vpop.f32.mrb[173].mxu1  ;;  %v5175_v39 = vpack.c.bf16 %v5023_v36, %v5007_v15 }
 0x3ea   : > { %v4313_v42 = vadd.f32 %v4312_v49, %v10292_v7  ;;  %v4314_v45 = vpop.f32.mrb[174].mxu1  ;;  %5498 = vmatprep.subr.bf16.mxu1 %v5114_v44  ;;  %v5176_v18 = vpack.c.bf16 %v5024_v4, %v5008_v35  ;;  %v4237_v54 = vpop.f32.mrb[188].mxu0 }
 0x3eb   : > { %v4315_v56 = vadd.f32 %v4314_v45, %v10299_v52  ;;  %v4316_v19 = vpop.f32.mrb[175].mxu1  ;;  %5499 = vmatpush1.bf16.msra.mxu1 %v5113_v59  ;;  %v4238_v46 = vadd.f32 %v4237_v54, %v10374_v17  ;;  %v4239_v24 = vpop.f32.mrb[189].mxu0  ;;  %v4913_v38 = vmax.f32 %v4311_v32, 0.0 }
 0x3ec   : > { %v4317_v25 = vadd.f32 %v4316_v19, %v10299_v52  ;;  %v4240_v63 = vadd.f32 %v4239_v24, %v10374_v17  ;;  %v4241_v2 = vpop.f32.mrb[190].mxu0  ;;  %5433 = vmatprep.subr.bf16.mxu0 %v5176_v18  ;;  %v4914_v26 = vmax.f32 %v4313_v42, 0.0 }
 0x3ed   : > { %v4929_v6 = vmax.f32 %v4315_v56, 0.0  ;;  %v4242_v40 = vadd.f32 %v4241_v2, %v10381_v0  ;;  %v4243_v51 = vpop.f32.mrb[191].mxu0  ;;  %5434 = vmatpush1.bf16.msra.mxu0 %v5175_v39  ;;  %v5039_v58 = vmax.f32 %v4238_v46, 0.0 }
 0x3ee   : > { %v4930_v62 = vmax.f32 %v4317_v25, 0.0  ;;  %5411 = vmatmul.mubr.bf16.gmra.mrb[12].mxu1 %v10450_v53  ;;  %v4244_v21 = vadd.f32 %v4243_v51, %v10381_v0  ;;  %v5040_v57 = vmax.f32 %v4240_v63, 0.0 }
 0x3ef   : > { %v5129_v43 = vpack.c.bf16 %v4929_v6, %v4913_v38  ;;  %5526 = vmatprep.mubr.bf16.mxu1 %v11052_v60  ;;  %v5055_v61 = vmax.f32 %v4242_v40, 0.0 }
 0x3f0   : > { %v5130_v11 = vpack.c.bf16 %v4930_v62, %v4914_v26  ;;  %v4320_v14 = vpop.f32.mrb[176].mxu1  ;;  %v5056_v29 = vmax.f32 %v4244_v21, 0.0 }
 0x3f1   : > { %v4321_v22 = vadd.f32 %v4320_v14, %v10311_v30  ;;  %v4322_v37 = vpop.f32.mrb[177].mxu1  ;;  %v5191_v5 = vpack.c.bf16 %v5055_v61, %v5039_v58 }
 0x3f2   : > { %v4323_v34 = vadd.f32 %v4322_v37, %v10311_v30  ;;  %v4324_v10 = vpop.f32.mrb[178].mxu1  ;;  %5500 = vmatprep.subr.bf16.mxu1 %v5130_v11  ;;  %v5192_v59 = vpack.c.bf16 %v5056_v29, %v5040_v57  ;;  %v4393_v55 = vpop.f32.mrb[192].mxu0 }
 0x3f3   : > { %v4325_v31 = vadd.f32 %v4324_v10, %v10318_v9  ;;  %v4326_v28 = vpop.f32.mrb[179].mxu1  ;;  %5501 = vmatpush1.bf16.msra.mxu1 %v5129_v43  ;;  %v4394_v48 = vadd.f32 %v4393_v55, %v10229_v16  ;;  %v4395_v15 = vpop.f32.mrb[193].mxu0  ;;  %v4945_v36 = vmax.f32 %v4321_v22, 0.0 }
 0x3f4   : > { %v4327_v44 = vadd.f32 %v4326_v28, %v10318_v9  ;;  %v4396_v49 = vadd.f32 %v4395_v15, %v10229_v16  ;;  %v4397_v35 = vpop.f32.mrb[194].mxu0  ;;  %5435 = vmatprep.subr.bf16.mxu0 %v5192_v59  ;;  %v4946_v4 = vmax.f32 %v4323_v34, 0.0 }
 0x3f5   : > { %v4961_v32 = vmax.f32 %v4325_v31, 0.0  ;;  %v4398_v45 = vadd.f32 %v4397_v35, %v10235_v13  ;;  %v4399_v39 = vpop.f32.mrb[195].mxu0  ;;  %5436 = vmatpush1.bf16.msra.mxu0 %v5191_v5  ;;  %v4819_v25 = vmax.f32 %v4394_v48, 0.0 }
 0x3f6   : > { %v4962_v42 = vmax.f32 %v4327_v44, 0.0  ;;  %v4400_v19 = vadd.f32 %v4399_v39, %v10235_v13  ;;  %v4820_v6 = vmax.f32 %v4396_v49, 0.0 }
 0x3f7   : > { %v5145_v56 = vpack.c.bf16 %v4961_v32, %v4945_v36  ;;  %v4835_v46 = vmax.f32 %v4398_v45, 0.0 }
 0x3f8   : > { %v5146_v18 = vpack.c.bf16 %v4962_v42, %v4946_v4  ;;  %v4330_v54 = vpop.f32.mrb[180].mxu1  ;;  %v4836_v63 = vmax.f32 %v4400_v19, 0.0  ;;  %5454 = vmatmul.mubr.bf16.vlgmr.msra.gmra.mrb[16].mxu0 %v10399_v1 }
 0x3f9   : > { %v4331_v24 = vadd.f32 %v4330_v54, %v10332_v41  ;;  %v4332_v38 = vpop.f32.mrb[181].mxu1  ;;  %v5083_v62 = vpack.c.bf16 %v4835_v46, %v4819_v25  ;;  %5463 = vmatprep.mubr.bf16.mxu0 %v11052_v60 }
 0x3fa   : > { %v4333_v2 = vadd.f32 %v4332_v38, %v10332_v41  ;;  %v4334_v26 = vpop.f32.mrb[182].mxu1  ;;  %5502 = vmatprep.subr.bf16.mxu1 %v5146_v18  ;;  %v5084_v43 = vpack.c.bf16 %v4836_v63, %v4820_v6  ;;  %v4403_v21 = vpop.f32.mrb[196].mxu0 }
 0x3fb   : > { %v4335_v40 = vadd.f32 %v4334_v26, %v10339_v12  ;;  %v4336_v51 = vpop.f32.mrb[183].mxu1  ;;  %5503 = vmatpush1.bf16.msra.mxu1 %v5145_v56  ;;  %v4404_v14 = vadd.f32 %v4403_v21, %v10254_v23  ;;  %v4405_v58 = vpop.f32.mrb[197].mxu0  ;;  %v4977_v61 = vmax.f32 %v4331_v24, 0.0 }
 0x3fc   : > { %v4337_v11 = vadd.f32 %v4336_v51, %v10339_v12  ;;  %v4406_v37 = vadd.f32 %v4405_v58, %v10254_v23  ;;  %v4407_v57 = vpop.f32.mrb[198].mxu0  ;;  %5567 = vmatprep.subr.bf16.mxu0 %v5084_v43  ;;  %v4978_v29 = vmax.f32 %v4333_v2, 0.0 }
 0x3fd   : > { %v4993_v22 = vmax.f32 %v4335_v40, 0.0  ;;  %v4408_v10 = vadd.f32 %v4407_v57, %v10261_v33  ;;  %v4409_v5 = vpop.f32.mrb[199].mxu0  ;;  %5568 = vmatpush1.bf16.msra.mxu0 %v5083_v62  ;;  %v4851_v44 = vmax.f32 %v4404_v14, 0.0 }
 0x3fe   : > { %v4994_v34 = vmax.f32 %v4337_v11, 0.0  ;;  %v4410_v28 = vadd.f32 %v4409_v5, %v10261_v33  ;;  %v4852_v32 = vmax.f32 %v4406_v37, 0.0 }
 0x3ff   : > { %v5161_v31 = vpack.c.bf16 %v4993_v22, %v4977_v61  ;;  %v4867_v48 = vmax.f32 %v4408_v10, 0.0 }
 0x400   : > { %v5162_v59 = vpack.c.bf16 %v4994_v34, %v4978_v29  ;;  %v4340_v55 = vpop.f32.mrb[184].mxu1  ;;  %v4868_v49 = vmax.f32 %v4410_v28, 0.0  ;;  %5464 = vmatmul.mubr.bf16.gmra.mrb[20].mxu0 %v10416_v27 }
 0x401   : > { %v4341_v15 = vadd.f32 %v4340_v55, %v10353_v3  ;;  %v4342_v36 = vpop.f32.mrb[185].mxu1  ;;  %v5099_v42 = vpack.c.bf16 %v4867_v48, %v4851_v44  ;;  %5473 = vmatprep.mubr.bf16.mxu0 %v11052_v60 }
 0x402   : > { %v4343_v35 = vadd.f32 %v4342_v36, %v10353_v3  ;;  %v4344_v4 = vpop.f32.mrb[186].mxu1  ;;  %5504 = vmatprep.subr.bf16.mxu1 %v5162_v59  ;;  %v5100_v56 = vpack.c.bf16 %v4868_v49, %v4852_v32  ;;  %v4413_v19 = vpop.f32.mrb[200].mxu0 }
 0x403   : > { %v4345_v45 = vadd.f32 %v4344_v4, %v10360_v47  ;;  %v4346_v39 = vpop.f32.mrb[187].mxu1  ;;  %5505 = vmatpush1.bf16.msra.mxu1 %v5161_v31  ;;  %v4414_v54 = vadd.f32 %v4413_v19, %v10273_v8  ;;  %v4415_v25 = vpop.f32.mrb[201].mxu0  ;;  %v5009_v46 = vmax.f32 %v4341_v15, 0.0 }
 0x404   : > { %v4347_v18 = vadd.f32 %v4346_v39, %v10360_v47  ;;  %v4416_v38 = vadd.f32 %v4415_v25, %v10273_v8  ;;  %v4417_v6 = vpop.f32.mrb[202].mxu0  ;;  %5569 = vmatprep.subr.bf16.mxu0 %v5100_v56  ;;  %v5010_v63 = vmax.f32 %v4343_v35, 0.0 }
 0x405   : > { %v5025_v24 = vmax.f32 %v4345_v45, 0.0  ;;  %v4418_v26 = vadd.f32 %v4417_v6, %v10280_v20  ;;  %v4419_v62 = vpop.f32.mrb[203].mxu0  ;;  %5570 = vmatpush1.bf16.msra.mxu0 %v5099_v42  ;;  %v4883_v11 = vmax.f32 %v4414_v54, 0.0 }
 0x406   : > { %v5026_v2 = vmax.f32 %v4347_v18, 0.0  ;;  %v4420_v51 = vadd.f32 %v4419_v62, %v10280_v20  ;;  %v4884_v22 = vmax.f32 %v4416_v38, 0.0 }
 0x407   : > { %v5177_v40 = vpack.c.bf16 %v5025_v24, %v5009_v46  ;;  %v4899_v14 = vmax.f32 %v4418_v26, 0.0 }
 0x408   : > { %v5178_v43 = vpack.c.bf16 %v5026_v2, %v5010_v63  ;;  %v4350_v21 = vpop.f32.mrb[188].mxu1  ;;  %v4900_v37 = vmax.f32 %v4420_v51, 0.0  ;;  %5474 = vmatmul.mubr.bf16.gmra.mrb[24].mxu0 %v10433_v50 }
 0x409   : > { %v4351_v58 = vadd.f32 %v4350_v21, %v10374_v17  ;;  %v4352_v61 = vpop.f32.mrb[189].mxu1  ;;  %v5115_v34 = vpack.c.bf16 %v4899_v14, %v4883_v11  ;;  %5483 = vmatprep.mubr.bf16.mxu0 %v11052_v60 }
 0x40a   : > { %v4353_v57 = vadd.f32 %v4352_v61, %v10374_v17  ;;  %v4354_v29 = vpop.f32.mrb[190].mxu1  ;;  %5506 = vmatprep.subr.bf16.mxu1 %v5178_v43  ;;  %v5116_v31 = vpack.c.bf16 %v4900_v37, %v4884_v22  ;;  %v4423_v28 = vpop.f32.mrb[204].mxu0 }
 0x40b   : > { %v4355_v10 = vadd.f32 %v4354_v29, %v10381_v0  ;;  %v4356_v5 = vpop.f32.mrb[191].mxu1  ;;  %5507 = vmatpush1.bf16.msra.mxu1 %v5177_v40  ;;  %v4424_v55 = vadd.f32 %v4423_v28, %v10292_v7  ;;  %v4425_v44 = vpop.f32.mrb[205].mxu0  ;;  %v5041_v48 = vmax.f32 %v4351_v58, 0.0 }
 0x40c   : > { %v4357_v59 = vadd.f32 %v4356_v5, %v10381_v0  ;;  %v4426_v36 = vadd.f32 %v4425_v44, %v10292_v7  ;;  %v4427_v32 = vpop.f32.mrb[206].mxu0  ;;  %5571 = vmatprep.subr.bf16.mxu0 %v5116_v31  ;;  %v5042_v49 = vmax.f32 %v4353_v57, 0.0 }
 0x40d   : > { %v5057_v15 = vmax.f32 %v4355_v10, 0.0  ;;  %v4428_v4 = vadd.f32 %v4427_v32, %v10299_v52  ;;  %v4429_v42 = vpop.f32.mrb[207].mxu0  ;;  %5572 = vmatpush1.bf16.msra.mxu0 %v5115_v34  ;;  %v4915_v18 = vmax.f32 %v4424_v55, 0.0 }
 0x40e   : > { %v5058_v35 = vmax.f32 %v4357_v59, 0.0  ;;  %v4430_v39 = vadd.f32 %v4429_v42, %v10299_v52  ;;  %v4916_v24 = vmax.f32 %v4426_v36, 0.0 }
 0x40f   : > { %v5193_v45 = vpack.c.bf16 %v5057_v15, %v5041_v48  ;;  %v4931_v54 = vmax.f32 %v4428_v4, 0.0 }
 0x410   : > { %v5194_v56 = vpack.c.bf16 %v5058_v35, %v5042_v49  ;;  %v4506_v19 = vpop.f32.mrb[192].mxu1  ;;  %v4932_v38 = vmax.f32 %v4430_v39, 0.0  ;;  %5484 = vmatmul.mubr.bf16.gmra.mrb[28].mxu0 %v10450_v53 }
 0x411   : > { %v4507_v25 = vadd.f32 %v4506_v19, %v10229_v16  ;;  %v4508_v46 = vpop.f32.mrb[193].mxu1  ;;  %v5131_v2 = vpack.c.bf16 %v4931_v54, %v4915_v18  ;;  %5599 = vmatprep.mubr.bf16.mxu0 %v11052_v60 }
 0x412   : > { %v4509_v6 = vadd.f32 %v4508_v46, %v10229_v16  ;;  %v4510_v63 = vpop.f32.mrb[194].mxu1  ;;  %5508 = vmatprep.subr.bf16.mxu1 %v5194_v56  ;;  %v5132_v40 = vpack.c.bf16 %v4932_v38, %v4916_v24  ;;  %v4433_v51 = vpop.f32.mrb[208].mxu0 }
 0x413   : > { %v4511_v26 = vadd.f32 %v4510_v63, %v10235_v13  ;;  %v4512_v62 = vpop.f32.mrb[195].mxu1  ;;  %5509 = vmatpush1.bf16.msra.mxu1 %v5193_v45  ;;  %v4434_v21 = vadd.f32 %v4433_v51, %v10311_v30  ;;  %v4435_v11 = vpop.f32.mrb[209].mxu0  ;;  %v4821_v14 = vmax.f32 %v4507_v25, 0.0 }
 0x414   : > { %v4513_v43 = vadd.f32 %v4512_v62, %v10235_v13  ;;  %v4436_v61 = vadd.f32 %v4435_v11, %v10311_v30  ;;  %v4437_v22 = vpop.f32.mrb[210].mxu0  ;;  %5573 = vmatprep.subr.bf16.mxu0 %v5132_v40  ;;  %v4822_v37 = vmax.f32 %v4509_v6, 0.0 }
 0x415   : > { %v4837_v58 = vmax.f32 %v4511_v26, 0.0  ;;  %v4438_v29 = vadd.f32 %v4437_v22, %v10318_v9  ;;  %v4439_v34 = vpop.f32.mrb[211].mxu0  ;;  %5574 = vmatpush1.bf16.msra.mxu0 %v5131_v2  ;;  %v4947_v59 = vmax.f32 %v4434_v21, 0.0 }
 0x416   : > { %v4838_v57 = vmax.f32 %v4513_v43, 0.0  ;;  %5527 = vmatmul.mubr.bf16.vlgmr.msra.gmra.mrb[16].mxu1 %v10399_v1  ;;  %v4440_v5 = vadd.f32 %v4439_v34, %v10318_v9  ;;  %v4948_v15 = vmax.f32 %v4436_v61, 0.0 }
 0x417   : > { %v5085_v10 = vpack.c.bf16 %v4837_v58, %v4821_v14  ;;  %5536 = vmatprep.mubr.bf16.mxu1 %v11052_v60  ;;  %v4963_v55 = vmax.f32 %v4438_v29, 0.0 }
 0x418   : > { %v5086_v31 = vpack.c.bf16 %v4838_v57, %v4822_v37  ;;  %v4516_v28 = vpop.f32.mrb[196].mxu1  ;;  %v4964_v36 = vmax.f32 %v4440_v5, 0.0 }
 0x419   : > { %v4517_v44 = vadd.f32 %v4516_v28, %v10254_v23  ;;  %v4518_v48 = vpop.f32.mrb[197].mxu1  ;;  %v5147_v49 = vpack.c.bf16 %v4963_v55, %v4947_v59 }
 0x41a   : > { %v4519_v1 = vadd.f32 %v4518_v48, %v10254_v23  ;;  %v4520_v32 = vpop.f32.mrb[198].mxu1  ;;  %5640 = vmatprep.subr.bf16.mxu1 %v5086_v31  ;;  %v5148_v42 = vpack.c.bf16 %v4964_v36, %v4948_v15  ;;  %v4443_v45 = vpop.f32.mrb[212].mxu0 }
 0x41b   : > { %v4521_v35 = vadd.f32 %v4520_v32, %v10261_v33  ;;  %v4522_v4 = vpop.f32.mrb[199].mxu1  ;;  %5641 = vmatpush1.bf16.msra.mxu1 %v5085_v10  ;;  %v4444_v56 = vadd.f32 %v4443_v45, %v10332_v41  ;;  %v4445_v19 = vpop.f32.mrb[213].mxu0  ;;  %v4853_v18 = vmax.f32 %v4517_v44, 0.0 }
 0x41c   : > { %v4523_v39 = vadd.f32 %v4522_v4, %v10261_v33  ;;  %v4446_v25 = vadd.f32 %v4445_v19, %v10332_v41  ;;  %v4447_v46 = vpop.f32.mrb[214].mxu0  ;;  %5575 = vmatprep.subr.bf16.mxu0 %v5148_v42  ;;  %v4854_v24 = vmax.f32 %v4519_v1, 0.0 }
 0x41d   : > { %v4869_v54 = vmax.f32 %v4521_v35, 0.0  ;;  %v4448_v6 = vadd.f32 %v4447_v46, %v10339_v12  ;;  %v4449_v63 = vpop.f32.mrb[215].mxu0  ;;  %5576 = vmatpush1.bf16.msra.mxu0 %v5147_v49  ;;  %v4979_v51 = vmax.f32 %v4444_v56, 0.0 }
 0x41e   : > { %v4870_v38 = vmax.f32 %v4523_v39, 0.0  ;;  %5537 = vmatmul.mubr.bf16.gmra.mrb[20].mxu1 %v10416_v27  ;;  %v4450_v26 = vadd.f32 %v4449_v63, %v10339_v12  ;;  %v4980_v14 = vmax.f32 %v4446_v25, 0.0 }
 0x41f   : > { %v5101_v2 = vpack.c.bf16 %v4869_v54, %v4853_v18  ;;  %5546 = vmatprep.mubr.bf16.mxu1 %v11052_v60  ;;  %v4995_v43 = vmax.f32 %v4448_v6, 0.0 }
 0x420   : > { %v5102_v62 = vpack.c.bf16 %v4870_v38, %v4854_v24  ;;  %v4526_v40 = vpop.f32.mrb[200].mxu1  ;;  %v4996_v58 = vmax.f32 %v4450_v26, 0.0 }
 0x421   : > { %v4527_v21 = vadd.f32 %v4526_v40, %v10273_v8  ;;  %v4528_v11 = vpop.f32.mrb[201].mxu1  ;;  %v5163_v22 = vpack.c.bf16 %v4995_v43, %v4979_v51 }
 0x422   : > { %v4529_v27 = vadd.f32 %v4528_v11, %v10273_v8  ;;  %v4530_v61 = vpop.f32.mrb[202].mxu1  ;;  %5642 = vmatprep.subr.bf16.mxu1 %v5102_v62  ;;  %v5164_v29 = vpack.c.bf16 %v4996_v58, %v4980_v14  ;;  %v4453_v34 = vpop.f32.mrb[216].mxu0 }
 0x423   : > { %v4531_v37 = vadd.f32 %v4530_v61, %v10280_v20  ;;  %v4532_v57 = vpop.f32.mrb[203].mxu1  ;;  %5643 = vmatpush1.bf16.msra.mxu1 %v5101_v2  ;;  %v4454_v5 = vadd.f32 %v4453_v34, %v10353_v3  ;;  %v4455_v31 = vpop.f32.mrb[217].mxu0  ;;  %v4885_v28 = vmax.f32 %v4527_v21, 0.0 }
 0x424   : > { %v4533_v10 = vadd.f32 %v4532_v57, %v10280_v20  ;;  %v4456_v55 = vadd.f32 %v4455_v31, %v10353_v3  ;;  %v4457_v44 = vpop.f32.mrb[218].mxu0  ;;  %5577 = vmatprep.subr.bf16.mxu0 %v5164_v29  ;;  %v4886_v48 = vmax.f32 %v4529_v27, 0.0 }
 0x425   : > { %v4901_v59 = vmax.f32 %v4531_v37, 0.0  ;;  %v4458_v36 = vadd.f32 %v4457_v44, %v10360_v47  ;;  %v4459_v1 = vpop.f32.mrb[219].mxu0  ;;  %5578 = vmatpush1.bf16.msra.mxu0 %v5163_v22  ;;  %v5011_v42 = vmax.f32 %v4454_v5, 0.0 }
 0x426   : > { %v4902_v15 = vmax.f32 %v4533_v10, 0.0  ;;  %5547 = vmatmul.mubr.bf16.gmra.mrb[24].mxu1 %v10433_v50  ;;  %v4460_v49 = vadd.f32 %v4459_v1, %v10360_v47  ;;  %v5012_v19 = vmax.f32 %v4456_v55, 0.0 }
 0x427   : > { %v5117_v32 = vpack.c.bf16 %v4901_v59, %v4885_v28  ;;  %5556 = vmatprep.mubr.bf16.mxu1 %v11052_v60  ;;  %v5027_v45 = vmax.f32 %v4458_v36, 0.0 }
 0x428   : > { %v5118_v35 = vpack.c.bf16 %v4902_v15, %v4886_v48  ;;  %v4536_v4 = vpop.f32.mrb[204].mxu1  ;;  %v5028_v18 = vmax.f32 %v4460_v49, 0.0 }
 0x429   : > { %v4537_v39 = vadd.f32 %v4536_v4, %v10292_v7  ;;  %v4538_v56 = vpop.f32.mrb[205].mxu1  ;;  %v5179_v25 = vpack.c.bf16 %v5027_v45, %v5011_v42 }
 0x42a   : > { %v4539_v50 = vadd.f32 %v4538_v56, %v10292_v7  ;;  %v4540_v54 = vpop.f32.mrb[206].mxu1  ;;  %5644 = vmatprep.subr.bf16.mxu1 %v5118_v35  ;;  %v5180_v38 = vpack.c.bf16 %v5028_v18, %v5012_v19  ;;  %v4463_v6 = vpop.f32.mrb[220].mxu0  ;;  %v10586_v19 = vld [vmem:[%s10975_s6] sm:$0xff]  }
 0x42b   : > { %v4541_v46 = vadd.f32 %v4540_v54, %v10299_v52  ;;  %v4542_v24 = vpop.f32.mrb[207].mxu1  ;;  %5645 = vmatpush1.bf16.msra.mxu1 %v5117_v32  ;;  %v4464_v2 = vadd.f32 %v4463_v6, %v10374_v17  ;;  %v4465_v26 = vpop.f32.mrb[221].mxu0  ;;  %v4917_v62 = vmax.f32 %v4537_v39, 0.0 }
 0x42c   : > { %v4543_v63 = vadd.f32 %v4542_v24, %v10299_v52  ;;  %v4466_v51 = vadd.f32 %v4465_v26, %v10374_v17  ;;  %v4467_v43 = vpop.f32.mrb[222].mxu0  ;;  %5579 = vmatprep.subr.bf16.mxu0 %v5180_v38  ;;  %v4918_v21 = vmax.f32 %v4539_v50, 0.0 }
 0x42d   : > { %v4933_v40 = vmax.f32 %v4541_v46, 0.0  ;;  %v4468_v14 = vadd.f32 %v4467_v43, %v10381_v0  ;;  %v4469_v58 = vpop.f32.mrb[223].mxu0  ;;  %5580 = vmatpush1.bf16.msra.mxu0 %v5179_v25  ;;  %v5043_v57 = vmax.f32 %v4464_v2, 0.0  ;;  %v10597_v43 = vld [vmem:[%s10975_s6 + $0x8] sm:$0xff]  }
 0x42e   : > { %v4934_v11 = vmax.f32 %v4543_v63, 0.0  ;;  %5557 = vmatmul.mubr.bf16.gmra.mrb[28].mxu1 %v10450_v53  ;;  %v4470_v61 = vadd.f32 %v4469_v58, %v10381_v0  ;;  %v5044_v5 = vmax.f32 %v4466_v51, 0.0 }
 0x42f   : > { %v5133_v27 = vpack.c.bf16 %v4933_v40, %v4917_v62  ;;  %5672 = vmatprep.mubr.bf16.mxu1 %v11052_v60  ;;  %v5059_v29 = vmax.f32 %v4468_v14, 0.0 }
 0x430   : > { %v5134_v22 = vpack.c.bf16 %v4934_v11, %v4918_v21  ;;  %v4546_v37 = vpop.f32.mrb[208].mxu1  ;;  %v5060_v31 = vmax.f32 %v4470_v61, 0.0 }
 0x431   : > { %v4547_v34 = vadd.f32 %v4546_v37, %v10311_v30  ;;  %v4548_v10 = vpop.f32.mrb[209].mxu1  ;;  %v5195_v55 = vpack.c.bf16 %v5059_v29, %v5043_v57 }
 0x432   : > { %v4549_v28 = vadd.f32 %v4548_v10, %v10311_v30  ;;  %v4550_v59 = vpop.f32.mrb[210].mxu1  ;;  %5646 = vmatprep.subr.bf16.mxu1 %v5134_v22  ;;  %v5196_v15 = vpack.c.bf16 %v5060_v31, %v5044_v5 }
 0x433   : > { %v4551_v44 = vadd.f32 %v4550_v59, %v10318_v9  ;;  %v4552_v48 = vpop.f32.mrb[211].mxu1  ;;  %5647 = vmatpush1.bf16.msra.mxu1 %v5133_v27  ;;  %v4949_v1 = vmax.f32 %v4547_v34, 0.0 }
 0x434   : > { %v4553_v36 = vadd.f32 %v4552_v48, %v10318_v9  ;;  %5581 = vmatprep.subr.bf16.mxu0 %v5196_v15  ;;  %v4950_v49 = vmax.f32 %v4549_v28, 0.0  ;;  %v10608_v28 = vld [vmem:[%s10975_s6 + $0x10] sm:$0xff]  }
 0x435   : > { %v4965_v32 = vmax.f32 %v4551_v44, 0.0  ;;  %5582 = vmatpush1.bf16.msra.mxu0 %v5195_v55 }
 0x436   : > { %v4966_v35 = vmax.f32 %v4553_v36, 0.0 }
 0x437   : > { %v5149_v4 = vpack.c.bf16 %v4965_v32, %v4949_v1 }
 0x438   : > { %v5150_v42 = vpack.c.bf16 %v4966_v35, %v4950_v49  ;;  %v4556_v45 = vpop.f32.mrb[212].mxu1  ;;  %5600 = vmatmul.mubr.bf16.vlgmr.msra.gmra.mrb[32].mxu0 %v10586_v19 }
 0x439   : > { %v4557_v39 = vadd.f32 %v4556_v45, %v10332_v41  ;;  %v4558_v56 = vpop.f32.mrb[213].mxu1  ;;  %5609 = vmatprep.mubr.bf16.mxu0 %v11052_v60 }
 0x43a   : > { %v4559_v18 = vadd.f32 %v4558_v56, %v10332_v41  ;;  %v4560_v50 = vpop.f32.mrb[214].mxu1  ;;  %5648 = vmatprep.subr.bf16.mxu1 %v5150_v42 }
 0x43b   : > { %v4561_v54 = vadd.f32 %v4560_v50, %v10339_v12  ;;  %v4562_v25 = vpop.f32.mrb[215].mxu1  ;;  %5649 = vmatpush1.bf16.msra.mxu1 %v5149_v4  ;;  %v4981_v24 = vmax.f32 %v4557_v39, 0.0 }
 0x43c   : > { %v4563_v46 = vadd.f32 %v4562_v25, %v10339_v12  ;;  %v4982_v6 = vmax.f32 %v4559_v18, 0.0 }
 0x43d   : > { %v4997_v38 = vmax.f32 %v4561_v54, 0.0 }
 0x43e   : > { %v4998_v63 = vmax.f32 %v4563_v46, 0.0 }
 0x43f   : > { %v5165_v2 = vpack.c.bf16 %v4997_v38, %v4981_v24 }
 0x440   : > { %v5166_v26 = vpack.c.bf16 %v4998_v63, %v4982_v6  ;;  %v4566_v62 = vpop.f32.mrb[216].mxu1  ;;  %5610 = vmatmul.mubr.bf16.gmra.mrb[36].mxu0 %v10597_v43 }
 0x441   : > { %v4567_v40 = vadd.f32 %v4566_v62, %v10353_v3  ;;  %v4568_v51 = vpop.f32.mrb[217].mxu1  ;;  %5619 = vmatprep.mubr.bf16.mxu0 %v11052_v60 }
 0x442   : > { %v4569_v21 = vadd.f32 %v4568_v51, %v10353_v3  ;;  %v4570_v11 = vpop.f32.mrb[218].mxu1  ;;  %5650 = vmatprep.subr.bf16.mxu1 %v5166_v26 }
 0x443   : > { %v4571_v14 = vadd.f32 %v4570_v11, %v10360_v47  ;;  %v4572_v58 = vpop.f32.mrb[219].mxu1  ;;  %5651 = vmatpush1.bf16.msra.mxu1 %v5165_v2  ;;  %v5013_v61 = vmax.f32 %v4567_v40, 0.0 }
 0x444   : > { %v4573_v27 = vadd.f32 %v4572_v58, %v10360_v47  ;;  %v5014_v37 = vmax.f32 %v4569_v21, 0.0 }
 0x445   : > { %v5029_v22 = vmax.f32 %v4571_v14, 0.0 }
 0x446   : > { %v5030_v57 = vmax.f32 %v4573_v27, 0.0 }
 0x447   : > { %v5181_v29 = vpack.c.bf16 %v5029_v22, %v5013_v61 }
 0x448   : > { %v5182_v34 = vpack.c.bf16 %v5030_v57, %v5014_v37  ;;  %v4576_v10 = vpop.f32.mrb[220].mxu1  ;;  %5620 = vmatmul.mubr.bf16.gmra.mrb[40].mxu0 %v10608_v28 }
 0x449   : > { %v4577_v5 = vadd.f32 %v4576_v10, %v10374_v17  ;;  %v4578_v31 = vpop.f32.mrb[221].mxu1  ;;  %5629 = vmatprep.mubr.bf16.mxu0 %v11052_v60 }
 0x44a   : > { %v4579_v59 = vadd.f32 %v4578_v31, %v10374_v17  ;;  %v4580_v55 = vpop.f32.mrb[222].mxu1  ;;  %5652 = vmatprep.subr.bf16.mxu1 %v5182_v34 }
 0x44b   : > { %v4581_v44 = vadd.f32 %v4580_v55, %v10381_v0  ;;  %v4582_v48 = vpop.f32.mrb[223].mxu1  ;;  %5653 = vmatpush1.bf16.msra.mxu1 %v5181_v29  ;;  %v4619_v36 = vpop.f32.mrb[224].mxu0  ;;  %v5045_v1 = vmax.f32 %v4577_v5, 0.0 }
 0x44c   : > { %v4583_v15 = vadd.f32 %v4582_v48, %v10381_v0  ;;  %v4620_v49 = vadd.f32 %v4619_v36, %v10229_v16  ;;  %v4621_v35 = vpop.f32.mrb[225].mxu0  ;;  %v5046_v4 = vmax.f32 %v4579_v59, 0.0 }
 0x44d   : > { %v5061_v32 = vmax.f32 %v4581_v44, 0.0  ;;  %v4622_v45 = vadd.f32 %v4621_v35, %v10229_v16  ;;  %v4623_v39 = vpop.f32.mrb[226].mxu0 }
 0x44e   : > { %v5062_v42 = vmax.f32 %v4583_v15, 0.0  ;;  %v4624_v18 = vadd.f32 %v4623_v39, %v10235_v13  ;;  %v4625_v50 = vpop.f32.mrb[227].mxu0  ;;  %v4823_v46 = vmax.f32 %v4620_v49, 0.0 }
 0x44f   : > { %v5197_v56 = vpack.c.bf16 %v5061_v32, %v5045_v1  ;;  %v4626_v25 = vadd.f32 %v4625_v50, %v10235_v13  ;;  %v4824_v38 = vmax.f32 %v4622_v45, 0.0 }
 0x450   : > { %v5198_v54 = vpack.c.bf16 %v5062_v42, %v5046_v4  ;;  %v4839_v24 = vmax.f32 %v4624_v18, 0.0  ;;  %5630 = vmatmul.mubr.bf16.gmra.mrb[44].mxu0 %v10450_v53 }
 0x451   : > { %v4840_v6 = vmax.f32 %v4626_v25, 0.0  ;;  %5745 = vmatprep.mubr.bf16.mxu0 %v11052_v60 }
 0x452   : > { %5654 = vmatprep.subr.bf16.mxu1 %v5198_v54  ;;  %v5087_v63 = vpack.c.bf16 %v4839_v24, %v4823_v46 }
 0x453   : > { %5655 = vmatpush1.bf16.msra.mxu1 %v5197_v56  ;;  %v5088_v2 = vpack.c.bf16 %v4840_v6, %v4824_v38  ;;  %v4629_v26 = vpop.f32.mrb[228].mxu0 }
 0x454   : > { %v4630_v62 = vadd.f32 %v4629_v26, %v10254_v23  ;;  %v4631_v40 = vpop.f32.mrb[229].mxu0 }
 0x455   : > { %v4632_v51 = vadd.f32 %v4631_v40, %v10254_v23  ;;  %v4633_v21 = vpop.f32.mrb[230].mxu0  ;;  %5713 = vmatprep.subr.bf16.mxu0 %v5088_v2 }
 0x456   : > { %5673 = vmatmul.mubr.bf16.vlgmr.msra.gmra.mrb[32].mxu1 %v10586_v19  ;;  %v4634_v53 = vadd.f32 %v4633_v21, %v10261_v33  ;;  %v4635_v11 = vpop.f32.mrb[231].mxu0  ;;  %5714 = vmatpush1.bf16.msra.mxu0 %v5087_v63  ;;  %v4855_v58 = vmax.f32 %v4630_v62, 0.0 }
 0x457   : > { %5682 = vmatprep.mubr.bf16.mxu1 %v11052_v60  ;;  %v4636_v14 = vadd.f32 %v4635_v11, %v10261_v33  ;;  %v4856_v61 = vmax.f32 %v4632_v51, 0.0 }
 0x458   : > { %v4871_v27 = vmax.f32 %v4634_v53, 0.0 }
 0x459   : > { %v4872_v22 = vmax.f32 %v4636_v14, 0.0 }
 0x45a   : > { %v5103_v37 = vpack.c.bf16 %v4871_v27, %v4855_v58 }
 0x45b   : > { %v5104_v57 = vpack.c.bf16 %v4872_v22, %v4856_v61  ;;  %v4639_v29 = vpop.f32.mrb[232].mxu0  ;;  %v10647_v22 = vld [vmem:[%s10975_s6 + $0x18] sm:$0xff]  }
 0x45c   : > { %v4640_v34 = vadd.f32 %v4639_v29, %v10273_v8  ;;  %v4641_v10 = vpop.f32.mrb[233].mxu0 }
 0x45d   : > { %v4642_v5 = vadd.f32 %v4641_v10, %v10273_v8  ;;  %v4643_v31 = vpop.f32.mrb[234].mxu0  ;;  %5715 = vmatprep.subr.bf16.mxu0 %v5104_v57 }
 0x45e   : > { %5683 = vmatmul.mubr.bf16.gmra.mrb[36].mxu1 %v10597_v43  ;;  %v4644_v59 = vadd.f32 %v4643_v31, %v10280_v20  ;;  %v4645_v55 = vpop.f32.mrb[235].mxu0  ;;  %5716 = vmatpush1.bf16.msra.mxu0 %v5103_v37  ;;  %v4887_v48 = vmax.f32 %v4640_v34, 0.0 }
 0x45f   : > { %5692 = vmatprep.mubr.bf16.mxu1 %v11052_v60  ;;  %v4646_v44 = vadd.f32 %v4645_v55, %v10280_v20  ;;  %v4888_v36 = vmax.f32 %v4642_v5, 0.0 }
 0x460   : > { %v4903_v15 = vmax.f32 %v4644_v59, 0.0 }
 0x461   : > { %v4904_v1 = vmax.f32 %v4646_v44, 0.0 }
 0x462   : > { %v5119_v32 = vpack.c.bf16 %v4903_v15, %v4887_v48 }
 0x463   : > { %v5120_v49 = vpack.c.bf16 %v4904_v1, %v4888_v36  ;;  %v4649_v35 = vpop.f32.mrb[236].mxu0 }
 0x464   : > { %v4650_v4 = vadd.f32 %v4649_v35, %v10292_v7  ;;  %v4651_v42 = vpop.f32.mrb[237].mxu0 }
 0x465   : > { %v4652_v45 = vadd.f32 %v4651_v42, %v10292_v7  ;;  %v4653_v39 = vpop.f32.mrb[238].mxu0  ;;  %5717 = vmatprep.subr.bf16.mxu0 %v5120_v49 }
 0x466   : > { %5693 = vmatmul.mubr.bf16.gmra.mrb[40].mxu1 %v10608_v28  ;;  %v4654_v56 = vadd.f32 %v4653_v39, %v10299_v52  ;;  %v4655_v18 = vpop.f32.mrb[239].mxu0  ;;  %5718 = vmatpush1.bf16.msra.mxu0 %v5119_v32  ;;  %v4919_v25 = vmax.f32 %v4650_v4, 0.0 }
 0x467   : > { %5702 = vmatprep.mubr.bf16.mxu1 %v11052_v60  ;;  %v4656_v50 = vadd.f32 %v4655_v18, %v10299_v52  ;;  %v4920_v6 = vmax.f32 %v4652_v45, 0.0 }
 0x468   : > { %v4935_v46 = vmax.f32 %v4654_v56, 0.0 }
 0x469   : > { %v4732_v54 = vpop.f32.mrb[224].mxu1  ;;  %v4936_v63 = vmax.f32 %v4656_v50, 0.0 }
 0x46a   : > { %v4733_v24 = vadd.f32 %v4732_v54, %v10229_v16  ;;  %v4734_v38 = vpop.f32.mrb[225].mxu1  ;;  %v5135_v62 = vpack.c.bf16 %v4935_v46, %v4919_v25 }
 0x46b   : > { %v4735_v2 = vadd.f32 %v4734_v38, %v10229_v16  ;;  %v4736_v26 = vpop.f32.mrb[226].mxu1  ;;  %v5136_v21 = vpack.c.bf16 %v4936_v63, %v4920_v6  ;;  %v4659_v53 = vpop.f32.mrb[240].mxu0 }
 0x46c   : > { %v4737_v40 = vadd.f32 %v4736_v26, %v10235_v13  ;;  %v4738_v51 = vpop.f32.mrb[227].mxu1  ;;  %v4660_v14 = vadd.f32 %v4659_v53, %v10311_v30  ;;  %v4661_v58 = vpop.f32.mrb[241].mxu0  ;;  %v4825_v27 = vmax.f32 %v4733_v24, 0.0 }
 0x46d   : > { %v4739_v11 = vadd.f32 %v4738_v51, %v10235_v13  ;;  %v4662_v16 = vadd.f32 %v4661_v58, %v10311_v30  ;;  %v4663_v37 = vpop.f32.mrb[242].mxu0  ;;  %5719 = vmatprep.subr.bf16.mxu0 %v5136_v21  ;;  %v4826_v57 = vmax.f32 %v4735_v2, 0.0 }
 0x46e   : > { %v4841_v61 = vmax.f32 %v4737_v40, 0.0  ;;  %5703 = vmatmul.mubr.bf16.gmra.mrb[44].mxu1 %v10647_v22  ;;  %v4664_v13 = vadd.f32 %v4663_v37, %v10318_v9  ;;  %v4665_v34 = vpop.f32.mrb[243].mxu0  ;;  %5720 = vmatpush1.bf16.msra.mxu0 %v5135_v62  ;;  %v4951_v55 = vmax.f32 %v4660_v14, 0.0 }
 0x46f   : > { %v4842_v29 = vmax.f32 %v4739_v11, 0.0  ;;  %5818 = vmatprep.mubr.bf16.mxu1 %v11052_v60  ;;  %v4666_v5 = vadd.f32 %v4665_v34, %v10318_v9  ;;  %v4952_v36 = vmax.f32 %v4662_v16, 0.0 }
 0x470   : > { %v5089_v10 = vpack.c.bf16 %v4841_v61, %v4825_v27  ;;  %v4967_v44 = vmax.f32 %v4664_v13, 0.0 }
 0x471   : > { %v5090_v31 = vpack.c.bf16 %v4842_v29, %v4826_v57  ;;  %v4742_v59 = vpop.f32.mrb[228].mxu1  ;;  %v4968_v1 = vmax.f32 %v4666_v5, 0.0 }
 0x472   : > { %v4743_v48 = vadd.f32 %v4742_v59, %v10254_v23  ;;  %v4744_v15 = vpop.f32.mrb[229].mxu1  ;;  %v5151_v35 = vpack.c.bf16 %v4967_v44, %v4951_v55 }
 0x473   : > { %v4745_v32 = vadd.f32 %v4744_v15, %v10254_v23  ;;  %v4746_v49 = vpop.f32.mrb[230].mxu1  ;;  %5786 = vmatprep.subr.bf16.mxu1 %v5090_v31  ;;  %v5152_v45 = vpack.c.bf16 %v4968_v1, %v4952_v36  ;;  %v4669_v39 = vpop.f32.mrb[244].mxu0 }
 0x474   : > { %v4747_v4 = vadd.f32 %v4746_v49, %v10261_v33  ;;  %v4748_v42 = vpop.f32.mrb[231].mxu1  ;;  %5787 = vmatpush1.bf16.msra.mxu1 %v5089_v10  ;;  %v4670_v18 = vadd.f32 %v4669_v39, %v10332_v41  ;;  %v4671_v50 = vpop.f32.mrb[245].mxu0  ;;  %v4857_v54 = vmax.f32 %v4743_v48, 0.0 }
 0x475   : > { %v4749_v56 = vadd.f32 %v4748_v42, %v10261_v33  ;;  %v4672_v46 = vadd.f32 %v4671_v50, %v10332_v41  ;;  %v4673_v24 = vpop.f32.mrb[246].mxu0  ;;  %5721 = vmatprep.subr.bf16.mxu0 %v5152_v45  ;;  %v4858_v23 = vmax.f32 %v4745_v32, 0.0 }
 0x476   : > { %v4873_v25 = vmax.f32 %v4747_v4, 0.0  ;;  %v4674_v6 = vadd.f32 %v4673_v24, %v10339_v12  ;;  %v4675_v63 = vpop.f32.mrb[247].mxu0  ;;  %5722 = vmatpush1.bf16.msra.mxu0 %v5151_v35  ;;  %v4983_v40 = vmax.f32 %v4670_v18, 0.0 }
 0x477   : > { %v4874_v38 = vmax.f32 %v4749_v56, 0.0  ;;  %v4676_v26 = vadd.f32 %v4675_v63, %v10339_v12  ;;  %v4984_v11 = vmax.f32 %v4672_v46, 0.0 }
 0x478   : > { %v5105_v2 = vpack.c.bf16 %v4873_v25, %v4857_v54  ;;  %v4999_v51 = vmax.f32 %v4674_v6, 0.0 }
 0x479   : > { %v5106_v62 = vpack.c.bf16 %v4874_v38, %v4858_v23  ;;  %v4752_v33 = vpop.f32.mrb[232].mxu1  ;;  %v5000_v14 = vmax.f32 %v4676_v26, 0.0 }
 0x47a   : > { %v4753_v21 = vadd.f32 %v4752_v33, %v10273_v8  ;;  %v4754_v53 = vpop.f32.mrb[233].mxu1  ;;  %v5167_v61 = vpack.c.bf16 %v4999_v51, %v4983_v40 }
 0x47b   : > { %v4755_v58 = vadd.f32 %v4754_v53, %v10273_v8  ;;  %v4756_v27 = vpop.f32.mrb[234].mxu1  ;;  %5788 = vmatprep.subr.bf16.mxu1 %v5106_v62  ;;  %v5168_v57 = vpack.c.bf16 %v5000_v14, %v4984_v11  ;;  %v4679_v29 = vpop.f32.mrb[248].mxu0 }
 0x47c   : > { %v4757_v16 = vadd.f32 %v4756_v27, %v10280_v20  ;;  %v4758_v37 = vpop.f32.mrb[235].mxu1  ;;  %5789 = vmatpush1.bf16.msra.mxu1 %v5105_v2  ;;  %v4680_v34 = vadd.f32 %v4679_v29, %v10353_v3  ;;  %v4681_v10 = vpop.f32.mrb[249].mxu0  ;;  %v4889_v5 = vmax.f32 %v4753_v21, 0.0 }
 0x47d   : > { %v4759_v13 = vadd.f32 %v4758_v37, %v10280_v20  ;;  %v4682_v59 = vadd.f32 %v4681_v10, %v10353_v3  ;;  %v4683_v55 = vpop.f32.mrb[250].mxu0  ;;  %5723 = vmatprep.subr.bf16.mxu0 %v5168_v57  ;;  %v4890_v8 = vmax.f32 %v4755_v58, 0.0  ;;  %v10679_v57 = vpop.permute.xlu0 %5213 }
 0x47e   : > { %v4905_v31 = vmax.f32 %v4757_v16, 0.0  ;;  %v4684_v48 = vadd.f32 %v4683_v55, %v10360_v47  ;;  %v4685_v15 = vpop.f32.mrb[251].mxu0  ;;  %5724 = vmatpush1.bf16.msra.mxu0 %v5167_v61  ;;  %v5015_v49 = vmax.f32 %v4680_v34, 0.0 }
 0x47f   : > { %v4906_v44 = vmax.f32 %v4759_v13, 0.0  ;;  %v4686_v1 = vadd.f32 %v4685_v15, %v10360_v47  ;;  %v5016_v45 = vmax.f32 %v4682_v59, 0.0 }
 0x480   : > { %v5121_v36 = vpack.c.bf16 %v4905_v31, %v4889_v5  ;;  %v5031_v35 = vmax.f32 %v4684_v48, 0.0  ;;  %v10685_v48 = vpop.permute.xlu1 %5218 }
 0x481   : > { %v5122_v32 = vpack.c.bf16 %v4906_v44, %v4890_v8  ;;  %v4762_v20 = vpop.f32.mrb[236].mxu1  ;;  %v5032_v39 = vmax.f32 %v4686_v1, 0.0 }
 0x482   : > { %v4763_v4 = vadd.f32 %v4762_v20, %v10292_v7  ;;  %v4764_v42 = vpop.f32.mrb[237].mxu1  ;;  %v5183_v50 = vpack.c.bf16 %v5031_v35, %v5015_v49 }
 0x483   : > { %v4765_v56 = vadd.f32 %v4764_v42, %v10292_v7  ;;  %v4766_v18 = vpop.f32.mrb[238].mxu1  ;;  %5790 = vmatprep.subr.bf16.mxu1 %v5122_v32  ;;  %v5184_v46 = vpack.c.bf16 %v5032_v39, %v5016_v45  ;;  %v4689_v24 = vpop.f32.mrb[252].mxu0 }
 0x484   : > { %v4767_v54 = vadd.f32 %v4766_v18, %v10299_v52  ;;  %v4768_v25 = vpop.f32.mrb[239].mxu1  ;;  %5791 = vmatpush1.bf16.msra.mxu1 %v5121_v36  ;;  %v4690_v38 = vadd.f32 %v4689_v24, %v10374_v17  ;;  %v4691_v6 = vpop.f32.mrb[253].mxu0  ;;  %v4921_v63 = vmax.f32 %v4763_v4, 0.0 }
 0x485   : > { %v4769_v23 = vadd.f32 %v4768_v25, %v10299_v52  ;;  %v4692_v26 = vadd.f32 %v4691_v6, %v10374_v17  ;;  %v4693_v62 = vpop.f32.mrb[254].mxu0  ;;  %5725 = vmatprep.subr.bf16.mxu0 %v5184_v46  ;;  %v4922_v7 = vmax.f32 %v4765_v56, 0.0  ;;  %v10692_v46 = vpop.permute.xlu0 %5223 }
 0x486   : > { %v4937_v2 = vmax.f32 %v4767_v54, 0.0  ;;  %v4694_v40 = vadd.f32 %v4693_v62, %v10381_v0  ;;  %v4695_v51 = vpop.f32.mrb[255].mxu0  ;;  %5726 = vmatpush1.bf16.msra.mxu0 %v5183_v50  ;;  %v5047_v14 = vmax.f32 %v4690_v38, 0.0 }
 0x487   : > { %v4938_v33 = vmax.f32 %v4769_v23, 0.0  ;;  %v4696_v53 = vadd.f32 %v4695_v51, %v10381_v0  ;;  %v5048_v16 = vmax.f32 %v4692_v26, 0.0 }
 0x488   : > { %v5137_v21 = vpack.c.bf16 %v4937_v2, %v4921_v63  ;;  %v5063_v58 = vmax.f32 %v4694_v40, 0.0  ;;  %v10699_v40 = vpop.permute.xlu1 %5228 }
 0x489   : > { %v5138_v11 = vpack.c.bf16 %v4938_v33, %v4922_v7  ;;  %v4772_v52 = vpop.f32.mrb[240].mxu1  ;;  %v5064_v37 = vmax.f32 %v4696_v53, 0.0 }
 0x48a   : > { %v4773_v27 = vadd.f32 %v4772_v52, %v10311_v30  ;;  %v4774_v61 = vpop.f32.mrb[241].mxu1  ;;  %v5199_v34 = vpack.c.bf16 %v5063_v58, %v5047_v14 }
 0x48b   : > { %v4775_v29 = vadd.f32 %v4774_v61, %v10311_v30  ;;  %v4776_v13 = vpop.f32.mrb[242].mxu1  ;;  %5792 = vmatprep.subr.bf16.mxu1 %v5138_v11  ;;  %v5200_v31 = vpack.c.bf16 %v5064_v37, %v5048_v16  ;;  %v5309_v59 = vpop.f32.mrb[0].mxu0 }
 0x48c   : > { %v4777_v10 = vadd.f32 %v4776_v13, %v10318_v9  ;;  %v4778_v5 = vpop.f32.mrb[243].mxu1  ;;  %5793 = vmatpush1.bf16.msra.mxu1 %v5137_v21  ;;  %v5310_v8 = vadd.f32 %v5309_v59, %v10679_v57  ;;  %v5311_v44 = vpop.f32.mrb[1].mxu0  ;;  %v4953_v15 = vmax.f32 %v4773_v27, 0.0 }
 0x48d   : > { %v4779_v55 = vadd.f32 %v4778_v5, %v10318_v9  ;;  %5727 = vmatprep.subr.bf16.mxu0 %v5200_v31  ;;  %v5312_v30 = vadd.f32 %v5311_v44, %v10679_v57  ;;  %v5313_v1 = vpop.f32.mrb[2].mxu0  ;;  %v4954_v32 = vmax.f32 %v4775_v29, 0.0  ;;  %v10706_v31 = vpop.permute.xlu0 %5233 }
 0x48e   : > { %v4969_v36 = vmax.f32 %v4777_v10, 0.0  ;;  %5728 = vmatpush1.bf16.msra.mxu0 %v5199_v34  ;;  %v5314_v49 = vadd.f32 %v5313_v1, %v10685_v48  ;;  %v5315_v35 = vpop.f32.mrb[3].mxu0  ;;  %v5859_v39 = vmax.f32 %v5310_v8, 0.0 }
 0x48f   : > { %v4970_v20 = vmax.f32 %v4779_v55, 0.0  ;;  %v5316_v9 = vadd.f32 %v5315_v35, %v10685_v48  ;;  %v5860_v54 = vmax.f32 %v5312_v30, 0.0 }
 0x490   : > { %v5153_v4 = vpack.c.bf16 %v4969_v36, %v4953_v15  ;;  %v5875_v56 = vmax.f32 %v5314_v49, 0.0  ;;  %v10713_v49 = vpop.permute.xlu1 %5238 }
 0x491   : > { %v5154_v42 = vpack.c.bf16 %v4970_v20, %v4954_v32  ;;  %v4782_v45 = vpop.f32.mrb[244].mxu1  ;;  %5746 = vmatmul.mubr.bf16.vlgmr.msra.gmra.mrb[48].mxu0 %v10586_v19  ;;  %v5876_v25 = vmax.f32 %v5316_v9, 0.0 }
 0x492   : > { %v4783_v18 = vadd.f32 %v4782_v45, %v10332_v41  ;;  %v4784_v50 = vpop.f32.mrb[245].mxu1  ;;  %5755 = vmatprep.mubr.bf16.mxu0 %v11052_v60  ;;  %v5988_v38 = vpack.c.bf16 %v5875_v56, %v5859_v39 }
 0x493   : > { %v4785_v24 = vadd.f32 %v4784_v50, %v10332_v41  ;;  %v4786_v23 = vpop.f32.mrb[246].mxu1  ;;  %5794 = vmatprep.subr.bf16.mxu1 %v5154_v42  ;;  %v5989_v2 = vpack.c.bf16 %v5876_v25, %v5860_v54  ;;  %v5319_v26 = vpop.f32.mrb[4].mxu0 }
 0x494   : > { %v4787_v6 = vadd.f32 %v4786_v23, %v10339_v12  ;;  %v4788_v63 = vpop.f32.mrb[247].mxu1  ;;  %5795 = vmatpush1.bf16.msra.mxu1 %v5153_v4  ;;  %v5320_v7 = vadd.f32 %v5319_v26, %v10692_v46  ;;  %v5321_v33 = vpop.f32.mrb[5].mxu0  ;;  %v4985_v51 = vmax.f32 %v4783_v18, 0.0 }
 0x495   : > { %v4789_v62 = vadd.f32 %v4788_v63, %v10339_v12  ;;  %v5322_v21 = vadd.f32 %v5321_v33, %v10692_v46  ;;  %v5323_v53 = vpop.f32.mrb[6].mxu0  ;;  %6062 = vmatprep.subr.bf16.mxu0 %v5989_v2  ;;  %v4986_v11 = vmax.f32 %v4785_v24, 0.0  ;;  %v10720_v2 = vpop.permute.xlu0 %5243 }
 0x496   : > { %v5001_v41 = vmax.f32 %v4787_v6, 0.0  ;;  %v5324_v14 = vadd.f32 %v5323_v53, %v10699_v40  ;;  %v5325_v58 = vpop.f32.mrb[7].mxu0  ;;  %6063 = vmatpush1.bf16.msra.mxu0 %v5988_v38  ;;  %v5891_v37 = vmax.f32 %v5320_v7, 0.0 }
 0x497   : > { %v5002_v52 = vmax.f32 %v4789_v62, 0.0  ;;  %v5326_v12 = vadd.f32 %v5325_v58, %v10699_v40  ;;  %v5892_v10 = vmax.f32 %v5322_v21, 0.0 }
 0x498   : > { %v5169_v27 = vpack.c.bf16 %v5001_v41, %v4985_v51  ;;  %v5907_v29 = vmax.f32 %v5324_v14, 0.0  ;;  %v10727_v14 = vpop.permute.xlu1 %5248 }
 0x499   : > { %v5170_v61 = vpack.c.bf16 %v5002_v52, %v4986_v11  ;;  %v4792_v16 = vpop.f32.mrb[248].mxu1  ;;  %5756 = vmatmul.mubr.bf16.gmra.mrb[52].mxu0 %v10597_v43  ;;  %v5908_v5 = vmax.f32 %v5326_v12, 0.0 }
 0x49a   : > { %v4793_v13 = vadd.f32 %v4792_v16, %v10353_v3  ;;  %v4794_v34 = vpop.f32.mrb[249].mxu1  ;;  %5765 = vmatprep.mubr.bf16.mxu0 %v11052_v60  ;;  %v6004_v8 = vpack.c.bf16 %v5907_v29, %v5891_v37 }
 0x49b   : > { %v4795_v59 = vadd.f32 %v4794_v34, %v10353_v3  ;;  %v4796_v55 = vpop.f32.mrb[250].mxu1  ;;  %5796 = vmatprep.subr.bf16.mxu1 %v5170_v61  ;;  %v6005_v36 = vpack.c.bf16 %v5908_v5, %v5892_v10  ;;  %v5329_v30 = vpop.f32.mrb[8].mxu0 }
 0x49c   : > { %v4797_v44 = vadd.f32 %v4796_v55, %v10360_v47  ;;  %v4798_v15 = vpop.f32.mrb[251].mxu1  ;;  %5797 = vmatpush1.bf16.msra.mxu1 %v5169_v27  ;;  %v5330_v32 = vadd.f32 %v5329_v30, %v10706_v31  ;;  %v5331_v20 = vpop.f32.mrb[9].mxu0  ;;  %v5017_v35 = vmax.f32 %v4793_v13, 0.0 }
 0x49d   : > { %v4799_v1 = vadd.f32 %v4798_v15, %v10360_v47  ;;  %v5332_v4 = vadd.f32 %v5331_v20, %v10706_v31  ;;  %v5333_v9 = vpop.f32.mrb[10].mxu0  ;;  %6064 = vmatprep.subr.bf16.mxu0 %v6005_v36  ;;  %v5018_v42 = vmax.f32 %v4795_v59, 0.0 }
 0x49e   : > { %v5033_v3 = vmax.f32 %v4797_v44, 0.0  ;;  %v5334_v39 = vadd.f32 %v5333_v9, %v10713_v49  ;;  %v5335_v56 = vpop.f32.mrb[11].mxu0  ;;  %6065 = vmatpush1.bf16.msra.mxu0 %v6004_v8  ;;  %v5923_v25 = vmax.f32 %v5330_v32, 0.0 }
 0x49f   : > { %v5034_v45 = vmax.f32 %v4799_v1, 0.0  ;;  %v5336_v47 = vadd.f32 %v5335_v56, %v10713_v49  ;;  %v5924_v6 = vmax.f32 %v5332_v4, 0.0 }
 0x4a0   : > { %v5185_v18 = vpack.c.bf16 %v5033_v3, %v5017_v35  ;;  %v5939_v24 = vmax.f32 %v5334_v39, 0.0  ;;  %v10742_v39 = vld [vmem:[%s10977_s8] sm:$0x3] }
 0x4a1   : > { %v5186_v50 = vpack.c.bf16 %v5034_v45, %v5018_v42  ;;  %v4802_v54 = vpop.f32.mrb[252].mxu1  ;;  %5766 = vmatmul.mubr.bf16.gmra.mrb[56].mxu0 %v10608_v28  ;;  %v5940_v63 = vmax.f32 %v5336_v47, 0.0 }
 0x4a2   : > { %v4803_v23 = vadd.f32 %v4802_v54, %v10374_v17  ;;  %v4804_v38 = vpop.f32.mrb[253].mxu1  ;;  %5775 = vmatprep.mubr.bf16.mxu0 %v11052_v60  ;;  %v6020_v7 = vpack.c.bf16 %v5939_v24, %v5923_v25 }
 0x4a3   : > { %v4805_v26 = vadd.f32 %v4804_v38, %v10374_v17  ;;  %v4806_v62 = vpop.f32.mrb[254].mxu1  ;;  %5798 = vmatprep.subr.bf16.mxu1 %v5186_v50  ;;  %v6021_v41 = vpack.c.bf16 %v5940_v63, %v5924_v6  ;;  %v5339_v21 = vpop.f32.mrb[12].mxu0 }
 0x4a4   : > { %v4807_v33 = vadd.f32 %v4806_v62, %v10381_v0  ;;  %v4808_v51 = vpop.f32.mrb[255].mxu1  ;;  %5799 = vmatpush1.bf16.msra.mxu1 %v5185_v18  ;;  %v5340_v11 = vadd.f32 %v5339_v21, %v10720_v2  ;;  %v5341_v52 = vpop.f32.mrb[13].mxu0  ;;  %v5049_v58 = vmax.f32 %v4803_v23, 0.0 }
 0x4a5   : > { %v4809_v53 = vadd.f32 %v4808_v51, %v10381_v0  ;;  %v5342_v27 = vadd.f32 %v5341_v52, %v10720_v2  ;;  %v5343_v12 = vpop.f32.mrb[14].mxu0  ;;  %6066 = vmatprep.subr.bf16.mxu0 %v6021_v41  ;;  %v5050_v61 = vmax.f32 %v4805_v26, 0.0 }
 0x4a6   : > { %v5065_v17 = vmax.f32 %v4807_v33, 0.0  ;;  %v5344_v37 = vadd.f32 %v5343_v12, %v10727_v14  ;;  %v5345_v29 = vpop.f32.mrb[15].mxu0  ;;  %6067 = vmatpush1.bf16.msra.mxu0 %v6020_v7  ;;  %v5955_v5 = vmax.f32 %v5340_v11, 0.0 }
 0x4a7   : > { %v5066_v16 = vmax.f32 %v4809_v53, 0.0  ;;  %v5346_v0 = vadd.f32 %v5345_v29, %v10727_v14  ;;  %v5956_v44 = vmax.f32 %v5342_v27, 0.0 }
 0x4a8   : > { %v5201_v13 = vpack.c.bf16 %v5065_v17, %v5049_v58  ;;  %v5971_v59 = vmax.f32 %v5344_v37, 0.0 }
 0x4a9   : > { %v5202_v34 = vpack.c.bf16 %v5066_v16, %v5050_v61  ;;  %v5382_v10 = vpop.f32.mrb[0].mxu1  ;;  %5776 = vmatmul.mubr.bf16.gmra.mrb[60].mxu0 %v10647_v22  ;;  %v5972_v15 = vmax.f32 %v5346_v0, 0.0 }
 0x4aa   : > { %v5383_v55 = vadd.f32 %v5382_v10, %v10679_v57  ;;  %v5384_v8 = vpop.f32.mrb[1].mxu1  ;;  %v6036_v1 = vpack.c.bf16 %v5971_v59, %v5955_v5  ;;  %6094 = vmatprep.mubr.bf16.mxu0 %v11052_v60 }
 0x4ab   : > { %5800 = vmatprep.subr.bf16.mxu1 %v5202_v34  ;;  %v5385_v36 = vadd.f32 %v5384_v8, %v10679_v57  ;;  %v5386_v30 = vpop.f32.mrb[2].mxu1  ;;  %v6037_v35 = vpack.c.bf16 %v5972_v15, %v5956_v44 }
 0x4ac   : > { %5801 = vmatpush1.bf16.msra.mxu1 %v5201_v13  ;;  %v5387_v32 = vadd.f32 %v5386_v30, %v10685_v48  ;;  %v5388_v20 = vpop.f32.mrb[3].mxu1  ;;  %v5861_v4 = vmax.f32 %v5383_v55, 0.0 }
 0x4ad   : > { %v5389_v3 = vadd.f32 %v5388_v20, %v10685_v48  ;;  %6068 = vmatprep.subr.bf16.mxu0 %v6037_v35  ;;  %v5862_v42 = vmax.f32 %v5385_v36, 0.0 }
 0x4ae   : > { %v5877_v9 = vmax.f32 %v5387_v32, 0.0  ;;  %6069 = vmatpush1.bf16.msra.mxu0 %v6036_v1 }
 0x4af   : > { %5819 = vmatmul.mubr.bf16.vlgmr.msra.gmra.mrb[48].mxu1 %v10586_v19  ;;  %v5878_v45 = vmax.f32 %v5389_v3, 0.0 }
 0x4b0   : > { %5828 = vmatprep.mubr.bf16.mxu1 %v11052_v60  ;;  %v5990_v56 = vpack.c.bf16 %v5877_v9, %v5861_v4 }
 0x4b1   : > { %v5991_v18 = vpack.c.bf16 %v5878_v45, %v5862_v42  ;;  %v5392_v47 = vpop.f32.mrb[4].mxu1  ;;  %6895 = vmatmul.mubr.msk.bf16.vlgmr.msra.gmra.mrb[64].mxu0 %vm6058_vm0, %v10742_v39 }
 0x4b2   : > { %v5393_v50 = vadd.f32 %v5392_v47, %v10692_v46  ;;  %v5394_v54 = vpop.f32.mrb[5].mxu1  ;;  %6176 = vmatprep.mubr.bf16.mxu0 %v11052_v60 }
 0x4b3   : > { %v5395_v19 = vadd.f32 %v5394_v54, %v10692_v46  ;;  %v5396_v25 = vpop.f32.mrb[6].mxu1  ;;  %6103 = vmatprep.subr.bf16.mxu1 %v5991_v18 }
 0x4b4   : > { %v5397_v24 = vadd.f32 %v5396_v25, %v10699_v40  ;;  %v5398_v23 = vpop.f32.mrb[7].mxu1  ;;  %6104 = vmatpush1.bf16.msra.mxu1 %v5990_v56  ;;  %v5893_v6 = vmax.f32 %v5393_v50, 0.0 }
 0x4b5   : > { %v5399_v38 = vadd.f32 %v5398_v23, %v10699_v40  ;;  %v5894_v26 = vmax.f32 %v5395_v19, 0.0 }
 0x4b6   : > { %v5909_v63 = vmax.f32 %v5397_v24, 0.0 }
 0x4b7   : > { %5829 = vmatmul.mubr.bf16.gmra.mrb[52].mxu1 %v10597_v43  ;;  %v5910_v62 = vmax.f32 %v5399_v38, 0.0 }
 0x4b8   : > { %5838 = vmatprep.mubr.bf16.mxu1 %v11052_v60  ;;  %v6006_v7 = vpack.c.bf16 %v5909_v63, %v5893_v6 }
 0x4b9   : > { %v6007_v33 = vpack.c.bf16 %v5910_v62, %v5894_v26  ;;  %v5402_v51 = vpop.f32.mrb[8].mxu1 }
 0x4ba   : > { %v5403_v41 = vadd.f32 %v5402_v51, %v10706_v31  ;;  %v5404_v21 = vpop.f32.mrb[9].mxu1 }
 0x4bb   : > { %v5405_v53 = vadd.f32 %v5404_v21, %v10706_v31  ;;  %v5406_v11 = vpop.f32.mrb[10].mxu1  ;;  %6105 = vmatprep.subr.bf16.mxu1 %v6007_v33 }
 0x4bc   : > { %v5407_v52 = vadd.f32 %v5406_v11, %v10713_v49  ;;  %v5408_v58 = vpop.f32.mrb[11].mxu1  ;;  %6106 = vmatpush1.bf16.msra.mxu1 %v6006_v7  ;;  %v5925_v17 = vmax.f32 %v5403_v41, 0.0 }
 0x4bd   : > { %v5409_v43 = vadd.f32 %v5408_v58, %v10713_v49  ;;  %v5926_v12 = vmax.f32 %v5405_v53, 0.0 }
 0x4be   : > { %v5941_v27 = vmax.f32 %v5407_v52, 0.0 }
 0x4bf   : > { %5839 = vmatmul.mubr.bf16.gmra.mrb[56].mxu1 %v10608_v28  ;;  %v5942_v61 = vmax.f32 %v5409_v43, 0.0 }
 0x4c0   : > { %5848 = vmatprep.mubr.bf16.mxu1 %v11052_v60  ;;  %v6022_v16 = vpack.c.bf16 %v5941_v27, %v5925_v17 }
 0x4c1   : > { %v6023_v37 = vpack.c.bf16 %v5942_v61, %v5926_v12  ;;  %v5412_v29 = vpop.f32.mrb[12].mxu1 }
 0x4c2   : > { %v5413_v13 = vadd.f32 %v5412_v29, %v10720_v2  ;;  %v5414_v0 = vpop.f32.mrb[13].mxu1 }
 0x4c3   : > { %v5415_v34 = vadd.f32 %v5414_v0, %v10720_v2  ;;  %v5416_v10 = vpop.f32.mrb[14].mxu1  ;;  %6107 = vmatprep.subr.bf16.mxu1 %v6023_v37 }
 0x4c4   : > { %v5417_v5 = vadd.f32 %v5416_v10, %v10727_v14  ;;  %v5418_v59 = vpop.f32.mrb[15].mxu1  ;;  %6108 = vmatpush1.bf16.msra.mxu1 %v6022_v16  ;;  %v5957_v55 = vmax.f32 %v5413_v13, 0.0 }
 0x4c5   : > { %v5419_v28 = vadd.f32 %v5418_v59, %v10727_v14  ;;  %v5958_v44 = vmax.f32 %v5415_v34, 0.0 }
 0x4c6   : > { %v5973_v8 = vmax.f32 %v5417_v5, 0.0 }
 0x4c7   : > { %5849 = vmatmul.mubr.bf16.gmra.mrb[60].mxu1 %v10647_v22  ;;  %v5974_v15 = vmax.f32 %v5419_v28, 0.0 }
 0x4c8   : > { %v6038_v36 = vpack.c.bf16 %v5973_v8, %v5957_v55  ;;  %6135 = vmatprep.mubr.bf16.mxu1 %v11052_v60 }
 0x4c9   : > { %v6039_v30 = vpack.c.bf16 %v5974_v15, %v5958_v44 }
 0x4cb   : > { %6109 = vmatprep.subr.bf16.mxu1 %v6039_v30  ;;  %v5455_v1 = vpop.f32.mrb[16].mxu0 }
 0x4cc   : > { %6110 = vmatpush1.bf16.msra.mxu1 %v6038_v36  ;;  %v5456_v32 = vadd.f32 %v5455_v1, %v10679_v57  ;;  %v5457_v20 = vpop.f32.mrb[17].mxu0 }
 0x4cd   : > { %v5458_v35 = vadd.f32 %v5457_v20, %v10679_v57  ;;  %v5459_v3 = vpop.f32.mrb[18].mxu0 }
 0x4ce   : > { %v5460_v22 = vadd.f32 %v5459_v3, %v10685_v48  ;;  %v5461_v4 = vpop.f32.mrb[19].mxu0  ;;  %v5863_v42 = vmax.f32 %v5456_v32, 0.0 }
 0x4cf   : > { %6896 = vmatmul.mubr.msk.bf16.vlgmr.msra.gmra.mrb[64].mxu1 %vm6058_vm0, %v10742_v39  ;;  %v5462_v9 = vadd.f32 %v5461_v4, %v10685_v48  ;;  %v5864_v56 = vmax.f32 %v5458_v35, 0.0 }
 0x4d0   : > { %6217 = vmatprep.mubr.bf16.mxu1 %v11052_v60  ;;  %v5879_v45 = vmax.f32 %v5460_v22, 0.0 }
 0x4d1   : > { %v5880_v18 = vmax.f32 %v5462_v9, 0.0 }
 0x4d2   : > { %v5992_v47 = vpack.c.bf16 %v5879_v45, %v5863_v42 }
 0x4d3   : > { %v5993_v50 = vpack.c.bf16 %v5880_v18, %v5864_v56  ;;  %v5465_v54 = vpop.f32.mrb[20].mxu0 }
 0x4d4   : > { %v5466_v19 = vadd.f32 %v5465_v54, %v10692_v46  ;;  %v5467_v25 = vpop.f32.mrb[21].mxu0 }
 0x4d5   : > { %v5468_v24 = vadd.f32 %v5467_v25, %v10692_v46  ;;  %v5469_v23 = vpop.f32.mrb[22].mxu0  ;;  %6144 = vmatprep.subr.bf16.mxu0 %v5993_v50 }
 0x4d6   : > { %v5470_v38 = vadd.f32 %v5469_v23, %v10699_v40  ;;  %v5471_v6 = vpop.f32.mrb[23].mxu0  ;;  %6145 = vmatpush1.bf16.msra.mxu0 %v5992_v47  ;;  %v5895_v26 = vmax.f32 %v5466_v19, 0.0 }
 0x4d7   : > { %v5472_v63 = vadd.f32 %v5471_v6, %v10699_v40  ;;  %v5896_v7 = vmax.f32 %v5468_v24, 0.0 }
 0x4d8   : > { %v5911_v62 = vmax.f32 %v5470_v38, 0.0 }
 0x4d9   : > { %v5912_v33 = vmax.f32 %v5472_v63, 0.0 }
 0x4da   : > { %v6008_v51 = vpack.c.bf16 %v5911_v62, %v5895_v26 }
 0x4db   : > { %v6009_v41 = vpack.c.bf16 %v5912_v33, %v5896_v7  ;;  %v5475_v21 = vpop.f32.mrb[24].mxu0 }
 0x4dc   : > { %v5476_v53 = vadd.f32 %v5475_v21, %v10706_v31  ;;  %v5477_v11 = vpop.f32.mrb[25].mxu0 }
 0x4dd   : > { %v5478_v52 = vadd.f32 %v5477_v11, %v10706_v31  ;;  %v5479_v58 = vpop.f32.mrb[26].mxu0  ;;  %6146 = vmatprep.subr.bf16.mxu0 %v6009_v41 }
 0x4de   : > { %v5480_v43 = vadd.f32 %v5479_v58, %v10713_v49  ;;  %v5481_v17 = vpop.f32.mrb[27].mxu0  ;;  %6147 = vmatpush1.bf16.msra.mxu0 %v6008_v51  ;;  %v5927_v12 = vmax.f32 %v5476_v53, 0.0 }
 0x4df   : > { %v5482_v27 = vadd.f32 %v5481_v17, %v10713_v49  ;;  %v5928_v16 = vmax.f32 %v5478_v52, 0.0 }
 0x4e0   : > { %v5943_v61 = vmax.f32 %v5480_v43, 0.0 }
 0x4e1   : > { %v5944_v37 = vmax.f32 %v5482_v27, 0.0 }
 0x4e2   : > { %v6024_v29 = vpack.c.bf16 %v5943_v61, %v5927_v12 }
 0x4e3   : > { %v6025_v13 = vpack.c.bf16 %v5944_v37, %v5928_v16  ;;  %v5485_v0 = vpop.f32.mrb[28].mxu0 }
 0x4e4   : > { %v5486_v34 = vadd.f32 %v5485_v0, %v10720_v2  ;;  %v5487_v10 = vpop.f32.mrb[29].mxu0 }
 0x4e5   : > { %v5488_v5 = vadd.f32 %v5487_v10, %v10720_v2  ;;  %v5489_v59 = vpop.f32.mrb[30].mxu0  ;;  %6148 = vmatprep.subr.bf16.mxu0 %v6025_v13 }
 0x4e6   : > { %v5490_v28 = vadd.f32 %v5489_v59, %v10727_v14  ;;  %v5491_v55 = vpop.f32.mrb[31].mxu0  ;;  %6149 = vmatpush1.bf16.msra.mxu0 %v6024_v29  ;;  %v5959_v15 = vmax.f32 %v5486_v34, 0.0 }
 0x4e7   : > { %v5492_v8 = vadd.f32 %v5491_v55, %v10727_v14  ;;  %v5960_v32 = vmax.f32 %v5488_v5, 0.0 }
 0x4e8   : > { %v5975_v36 = vmax.f32 %v5490_v28, 0.0 }
 0x4e9   : > { %v5528_v44 = vpop.f32.mrb[16].mxu1  ;;  %v5976_v20 = vmax.f32 %v5492_v8, 0.0 }
 0x4ea   : > { %v5529_v30 = vadd.f32 %v5528_v44, %v10679_v57  ;;  %v5530_v1 = vpop.f32.mrb[17].mxu1  ;;  %v6040_v22 = vpack.c.bf16 %v5975_v36, %v5959_v15 }
 0x4eb   : > { %v5531_v35 = vadd.f32 %v5530_v1, %v10679_v57  ;;  %v5532_v3 = vpop.f32.mrb[18].mxu1  ;;  %v6041_v42 = vpack.c.bf16 %v5976_v20, %v5960_v32 }
 0x4ec   : > { %v5533_v4 = vadd.f32 %v5532_v3, %v10685_v48  ;;  %v5534_v9 = vpop.f32.mrb[19].mxu1  ;;  %v5865_v56 = vmax.f32 %v5529_v30, 0.0 }
 0x4ed   : > { %v5535_v45 = vadd.f32 %v5534_v9, %v10685_v48  ;;  %6150 = vmatprep.subr.bf16.mxu0 %v6041_v42  ;;  %v5866_v47 = vmax.f32 %v5531_v35, 0.0 }
 0x4ee   : > { %v5881_v18 = vmax.f32 %v5533_v4, 0.0  ;;  %6151 = vmatpush1.bf16.msra.mxu0 %v6040_v22 }
 0x4ef   : > { %v5882_v50 = vmax.f32 %v5535_v45, 0.0 }
 0x4f0   : > { %v5994_v54 = vpack.c.bf16 %v5881_v18, %v5865_v56 }
 0x4f1   : > { %v5995_v19 = vpack.c.bf16 %v5882_v50, %v5866_v47  ;;  %v5538_v25 = vpop.f32.mrb[20].mxu1  ;;  %6897 = vmatmul.mubr.msk.bf16.vlgmr.msra.gmra.mrb[68].mxu0 %vm6058_vm0, %v10742_v39 }
 0x4f2   : > { %v5539_v24 = vadd.f32 %v5538_v25, %v10692_v46  ;;  %v5540_v23 = vpop.f32.mrb[21].mxu1  ;;  %6258 = vmatprep.mubr.bf16.mxu0 %v11052_v60 }
 0x4f3   : > { %v5541_v38 = vadd.f32 %v5540_v23, %v10692_v46  ;;  %v5542_v6 = vpop.f32.mrb[22].mxu1  ;;  %6185 = vmatprep.subr.bf16.mxu1 %v5995_v19 }
 0x4f4   : > { %v5543_v63 = vadd.f32 %v5542_v6, %v10699_v40  ;;  %v5544_v26 = vpop.f32.mrb[23].mxu1  ;;  %6186 = vmatpush1.bf16.msra.mxu1 %v5994_v54  ;;  %v5897_v7 = vmax.f32 %v5539_v24, 0.0 }
 0x4f5   : > { %v5545_v62 = vadd.f32 %v5544_v26, %v10699_v40  ;;  %v5898_v51 = vmax.f32 %v5541_v38, 0.0 }
 0x4f6   : > { %v5913_v33 = vmax.f32 %v5543_v63, 0.0 }
 0x4f7   : > { %v5914_v41 = vmax.f32 %v5545_v62, 0.0 }
 0x4f8   : > { %v6010_v21 = vpack.c.bf16 %v5913_v33, %v5897_v7 }
 0x4f9   : > { %v6011_v53 = vpack.c.bf16 %v5914_v41, %v5898_v51  ;;  %v5548_v11 = vpop.f32.mrb[24].mxu1 }
 0x4fa   : > { %v5549_v52 = vadd.f32 %v5548_v11, %v10706_v31  ;;  %v5550_v58 = vpop.f32.mrb[25].mxu1 }
 0x4fb   : > { %v5551_v43 = vadd.f32 %v5550_v58, %v10706_v31  ;;  %v5552_v17 = vpop.f32.mrb[26].mxu1  ;;  %6187 = vmatprep.subr.bf16.mxu1 %v6011_v53 }
 0x4fc   : > { %v5553_v27 = vadd.f32 %v5552_v17, %v10713_v49  ;;  %v5554_v12 = vpop.f32.mrb[27].mxu1  ;;  %6188 = vmatpush1.bf16.msra.mxu1 %v6010_v21  ;;  %v5929_v16 = vmax.f32 %v5549_v52, 0.0 }
 0x4fd   : > { %v5555_v61 = vadd.f32 %v5554_v12, %v10713_v49  ;;  %v5930_v29 = vmax.f32 %v5551_v43, 0.0 }
 0x4fe   : > { %v5945_v37 = vmax.f32 %v5553_v27, 0.0 }
 0x4ff   : > { %v5946_v13 = vmax.f32 %v5555_v61, 0.0 }
 0x500   : > { %v6026_v0 = vpack.c.bf16 %v5945_v37, %v5929_v16 }
 0x501   : > { %v6027_v34 = vpack.c.bf16 %v5946_v13, %v5930_v29  ;;  %v5558_v10 = vpop.f32.mrb[28].mxu1 }
 0x502   : > { %v5559_v5 = vadd.f32 %v5558_v10, %v10720_v2  ;;  %v5560_v59 = vpop.f32.mrb[29].mxu1 }
 0x503   : > { %v5561_v28 = vadd.f32 %v5560_v59, %v10720_v2  ;;  %v5562_v55 = vpop.f32.mrb[30].mxu1  ;;  %6189 = vmatprep.subr.bf16.mxu1 %v6027_v34 }
 0x504   : > { %v5563_v8 = vadd.f32 %v5562_v55, %v10727_v14  ;;  %v5564_v44 = vpop.f32.mrb[31].mxu1  ;;  %6190 = vmatpush1.bf16.msra.mxu1 %v6026_v0  ;;  %v5961_v36 = vmax.f32 %v5559_v5, 0.0 }
 0x505   : > { %v5565_v15 = vadd.f32 %v5564_v44, %v10727_v14  ;;  %v5962_v1 = vmax.f32 %v5561_v28, 0.0 }
 0x506   : > { %v5977_v30 = vmax.f32 %v5563_v8, 0.0 }
 0x507   : > { %v5978_v32 = vmax.f32 %v5565_v15, 0.0 }
 0x508   : > { %v6042_v20 = vpack.c.bf16 %v5977_v30, %v5961_v36 }
 0x509   : > { %v6043_v35 = vpack.c.bf16 %v5978_v32, %v5962_v1 }
 0x50b   : > { %6191 = vmatprep.subr.bf16.mxu1 %v6043_v35  ;;  %v5601_v3 = vpop.f32.mrb[32].mxu0 }
 0x50c   : > { %6192 = vmatpush1.bf16.msra.mxu1 %v6042_v20  ;;  %v5602_v22 = vadd.f32 %v5601_v3, %v10679_v57  ;;  %v5603_v4 = vpop.f32.mrb[33].mxu0 }
 0x50d   : > { %v5604_v9 = vadd.f32 %v5603_v4, %v10679_v57  ;;  %v5605_v42 = vpop.f32.mrb[34].mxu0 }
 0x50e   : > { %v5606_v45 = vadd.f32 %v5605_v42, %v10685_v48  ;;  %v5607_v56 = vpop.f32.mrb[35].mxu0  ;;  %v5867_v47 = vmax.f32 %v5602_v22, 0.0 }
 0x50f   : > { %6898 = vmatmul.mubr.msk.bf16.vlgmr.msra.gmra.mrb[68].mxu1 %vm6058_vm0, %v10742_v39  ;;  %v5608_v18 = vadd.f32 %v5607_v56, %v10685_v48  ;;  %v5868_v54 = vmax.f32 %v5604_v9, 0.0 }
 0x510   : > { %6299 = vmatprep.mubr.bf16.mxu1 %v11052_v60  ;;  %v5883_v50 = vmax.f32 %v5606_v45, 0.0 }
 0x511   : > { %v5884_v19 = vmax.f32 %v5608_v18, 0.0 }
 0x512   : > { %v5996_v25 = vpack.c.bf16 %v5883_v50, %v5867_v47 }
 0x513   : > { %v5997_v24 = vpack.c.bf16 %v5884_v19, %v5868_v54  ;;  %v5611_v23 = vpop.f32.mrb[36].mxu0 }
 0x514   : > { %v5612_v38 = vadd.f32 %v5611_v23, %v10692_v46  ;;  %v5613_v6 = vpop.f32.mrb[37].mxu0 }
 0x515   : > { %v5614_v63 = vadd.f32 %v5613_v6, %v10692_v46  ;;  %v5615_v26 = vpop.f32.mrb[38].mxu0  ;;  %6226 = vmatprep.subr.bf16.mxu0 %v5997_v24 }
 0x516   : > { %v5616_v62 = vadd.f32 %v5615_v26, %v10699_v40  ;;  %v5617_v7 = vpop.f32.mrb[39].mxu0  ;;  %6227 = vmatpush1.bf16.msra.mxu0 %v5996_v25  ;;  %v5899_v51 = vmax.f32 %v5612_v38, 0.0 }
 0x517   : > { %v5618_v33 = vadd.f32 %v5617_v7, %v10699_v40  ;;  %v5900_v21 = vmax.f32 %v5614_v63, 0.0 }
 0x518   : > { %v5915_v41 = vmax.f32 %v5616_v62, 0.0 }
 0x519   : > { %v5916_v53 = vmax.f32 %v5618_v33, 0.0 }
 0x51a   : > { %v6012_v11 = vpack.c.bf16 %v5915_v41, %v5899_v51 }
 0x51b   : > { %v6013_v52 = vpack.c.bf16 %v5916_v53, %v5900_v21  ;;  %v5621_v58 = vpop.f32.mrb[40].mxu0 }
 0x51c   : > { %v5622_v43 = vadd.f32 %v5621_v58, %v10706_v31  ;;  %v5623_v17 = vpop.f32.mrb[41].mxu0 }
 0x51d   : > { %v5624_v27 = vadd.f32 %v5623_v17, %v10706_v31  ;;  %v5625_v12 = vpop.f32.mrb[42].mxu0  ;;  %6228 = vmatprep.subr.bf16.mxu0 %v6013_v52 }
 0x51e   : > { %v5626_v61 = vadd.f32 %v5625_v12, %v10713_v49  ;;  %v5627_v16 = vpop.f32.mrb[43].mxu0  ;;  %6229 = vmatpush1.bf16.msra.mxu0 %v6012_v11  ;;  %v5931_v29 = vmax.f32 %v5622_v43, 0.0 }
 0x51f   : > { %v5628_v37 = vadd.f32 %v5627_v16, %v10713_v49  ;;  %v5932_v0 = vmax.f32 %v5624_v27, 0.0 }
 0x520   : > { %v5947_v13 = vmax.f32 %v5626_v61, 0.0 }
 0x521   : > { %v5948_v34 = vmax.f32 %v5628_v37, 0.0 }
 0x522   : > { %v6028_v10 = vpack.c.bf16 %v5947_v13, %v5931_v29 }
 0x523   : > { %v6029_v5 = vpack.c.bf16 %v5948_v34, %v5932_v0  ;;  %v5631_v59 = vpop.f32.mrb[44].mxu0 }
 0x524   : > { %v5632_v28 = vadd.f32 %v5631_v59, %v10720_v2  ;;  %v5633_v55 = vpop.f32.mrb[45].mxu0 }
 0x525   : > { %v5634_v8 = vadd.f32 %v5633_v55, %v10720_v2  ;;  %v5635_v44 = vpop.f32.mrb[46].mxu0  ;;  %6230 = vmatprep.subr.bf16.mxu0 %v6029_v5 }
 0x526   : > { %v5636_v15 = vadd.f32 %v5635_v44, %v10727_v14  ;;  %v5637_v36 = vpop.f32.mrb[47].mxu0  ;;  %6231 = vmatpush1.bf16.msra.mxu0 %v6028_v10  ;;  %v5963_v32 = vmax.f32 %v5632_v28, 0.0 }
 0x527   : > { %v5638_v30 = vadd.f32 %v5637_v36, %v10727_v14  ;;  %v5964_v22 = vmax.f32 %v5634_v8, 0.0 }
 0x528   : > { %v5979_v20 = vmax.f32 %v5636_v15, 0.0 }
 0x529   : > { %v5674_v1 = vpop.f32.mrb[32].mxu1  ;;  %v5980_v4 = vmax.f32 %v5638_v30, 0.0 }
 0x52a   : > { %v5675_v35 = vadd.f32 %v5674_v1, %v10679_v57  ;;  %v5676_v3 = vpop.f32.mrb[33].mxu1  ;;  %v6044_v45 = vpack.c.bf16 %v5979_v20, %v5963_v32 }
 0x52b   : > { %v5677_v9 = vadd.f32 %v5676_v3, %v10679_v57  ;;  %v5678_v42 = vpop.f32.mrb[34].mxu1  ;;  %v6045_v47 = vpack.c.bf16 %v5980_v4, %v5964_v22 }
 0x52c   : > { %v5679_v56 = vadd.f32 %v5678_v42, %v10685_v48  ;;  %v5680_v18 = vpop.f32.mrb[35].mxu1  ;;  %v5869_v54 = vmax.f32 %v5675_v35, 0.0 }
 0x52d   : > { %v5681_v50 = vadd.f32 %v5680_v18, %v10685_v48  ;;  %6232 = vmatprep.subr.bf16.mxu0 %v6045_v47  ;;  %v5870_v25 = vmax.f32 %v5677_v9, 0.0 }
 0x52e   : > { %v5885_v19 = vmax.f32 %v5679_v56, 0.0  ;;  %6233 = vmatpush1.bf16.msra.mxu0 %v6044_v45 }
 0x52f   : > { %v5886_v24 = vmax.f32 %v5681_v50, 0.0 }
 0x530   : > { %v5998_v23 = vpack.c.bf16 %v5885_v19, %v5869_v54 }
 0x531   : > { %v5999_v38 = vpack.c.bf16 %v5886_v24, %v5870_v25  ;;  %v5684_v6 = vpop.f32.mrb[36].mxu1  ;;  %6899 = vmatmul.mubr.msk.bf16.vlgmr.msra.gmra.mrb[72].mxu0 %vm6058_vm0, %v10742_v39 }
 0x532   : > { %v5685_v63 = vadd.f32 %v5684_v6, %v10692_v46  ;;  %v5686_v26 = vpop.f32.mrb[37].mxu1  ;;  %6340 = vmatprep.mubr.bf16.mxu0 %v11052_v60 }
 0x533   : > { %v5687_v62 = vadd.f32 %v5686_v26, %v10692_v46  ;;  %v5688_v7 = vpop.f32.mrb[38].mxu1  ;;  %6267 = vmatprep.subr.bf16.mxu1 %v5999_v38 }
 0x534   : > { %v5689_v33 = vadd.f32 %v5688_v7, %v10699_v40  ;;  %v5690_v51 = vpop.f32.mrb[39].mxu1  ;;  %6268 = vmatpush1.bf16.msra.mxu1 %v5998_v23  ;;  %v5901_v21 = vmax.f32 %v5685_v63, 0.0 }
 0x535   : > { %v5691_v41 = vadd.f32 %v5690_v51, %v10699_v40  ;;  %v5902_v11 = vmax.f32 %v5687_v62, 0.0 }
 0x536   : > { %v5917_v53 = vmax.f32 %v5689_v33, 0.0 }
 0x537   : > { %v5918_v52 = vmax.f32 %v5691_v41, 0.0 }
 0x538   : > { %v6014_v58 = vpack.c.bf16 %v5917_v53, %v5901_v21 }
 0x539   : > { %v6015_v43 = vpack.c.bf16 %v5918_v52, %v5902_v11  ;;  %v5694_v17 = vpop.f32.mrb[40].mxu1 }
 0x53a   : > { %v5695_v27 = vadd.f32 %v5694_v17, %v10706_v31  ;;  %v5696_v12 = vpop.f32.mrb[41].mxu1 }
 0x53b   : > { %v5697_v61 = vadd.f32 %v5696_v12, %v10706_v31  ;;  %v5698_v16 = vpop.f32.mrb[42].mxu1  ;;  %6269 = vmatprep.subr.bf16.mxu1 %v6015_v43 }
 0x53c   : > { %v5699_v37 = vadd.f32 %v5698_v16, %v10713_v49  ;;  %v5700_v29 = vpop.f32.mrb[43].mxu1  ;;  %6270 = vmatpush1.bf16.msra.mxu1 %v6014_v58  ;;  %v5933_v0 = vmax.f32 %v5695_v27, 0.0 }
 0x53d   : > { %v5701_v13 = vadd.f32 %v5700_v29, %v10713_v49  ;;  %v5934_v10 = vmax.f32 %v5697_v61, 0.0 }
 0x53e   : > { %v5949_v34 = vmax.f32 %v5699_v37, 0.0 }
 0x53f   : > { %v5950_v5 = vmax.f32 %v5701_v13, 0.0 }
 0x540   : > { %v6030_v59 = vpack.c.bf16 %v5949_v34, %v5933_v0 }
 0x541   : > { %v6031_v28 = vpack.c.bf16 %v5950_v5, %v5934_v10  ;;  %v5704_v55 = vpop.f32.mrb[44].mxu1 }
 0x542   : > { %v5705_v8 = vadd.f32 %v5704_v55, %v10720_v2  ;;  %v5706_v44 = vpop.f32.mrb[45].mxu1 }
 0x543   : > { %v5707_v15 = vadd.f32 %v5706_v44, %v10720_v2  ;;  %v5708_v36 = vpop.f32.mrb[46].mxu1  ;;  %6271 = vmatprep.subr.bf16.mxu1 %v6031_v28 }
 0x544   : > { %v5709_v30 = vadd.f32 %v5708_v36, %v10727_v14  ;;  %v5710_v1 = vpop.f32.mrb[47].mxu1  ;;  %6272 = vmatpush1.bf16.msra.mxu1 %v6030_v59  ;;  %v5965_v20 = vmax.f32 %v5705_v8, 0.0 }
 0x545   : > { %v5711_v32 = vadd.f32 %v5710_v1, %v10727_v14  ;;  %v5966_v3 = vmax.f32 %v5707_v15, 0.0 }
 0x546   : > { %v5981_v35 = vmax.f32 %v5709_v30, 0.0 }
 0x547   : > { %v5982_v22 = vmax.f32 %v5711_v32, 0.0 }
 0x548   : > { %v6046_v4 = vpack.c.bf16 %v5981_v35, %v5965_v20 }
 0x549   : > { %v6047_v9 = vpack.c.bf16 %v5982_v22, %v5966_v3 }
 0x54b   : > { %6273 = vmatprep.subr.bf16.mxu1 %v6047_v9 }
 0x54c   : > { %6274 = vmatpush1.bf16.msra.mxu1 %v6046_v4 }
 0x54f   : > { %6900 = vmatmul.mubr.msk.bf16.vlgmr.msra.gmra.mrb[72].mxu1 %vm6058_vm0, %v10742_v39 }
 0x550   : > { %6381 = vmatprep.mubr.bf16.mxu1 %v11052_v60 }
 0x564   : > { %v5747_v42 = vpop.f32.mrb[48].mxu0 }
 0x565   : > { %v5748_v45 = vadd.f32 %v5747_v42, %v10679_v57  ;;  %v5749_v56 = vpop.f32.mrb[49].mxu0 }
 0x566   : > { %v5750_v18 = vadd.f32 %v5749_v56, %v10679_v57  ;;  %v5751_v47 = vpop.f32.mrb[50].mxu0  ;;  %v10862_v56 = vpop.permute.xlu0 %6055 }
 0x567   : > { %v5752_v50 = vadd.f32 %v5751_v47, %v10685_v48  ;;  %v5753_v54 = vpop.f32.mrb[51].mxu0  ;;  %v5871_v25 = vmax.f32 %v5748_v45, 0.0 }
 0x568   : > { %v5754_v19 = vadd.f32 %v5753_v54, %v10685_v48  ;;  %v5872_v23 = vmax.f32 %v5750_v18, 0.0 }
 0x569   : > { %v5887_v24 = vmax.f32 %v5752_v50, 0.0 }
 0x56a   : > { %v5888_v38 = vmax.f32 %v5754_v19, 0.0 }
 0x56b   : > { %v6000_v6 = vpack.c.bf16 %v5887_v24, %v5871_v25 }
 0x56c   : > { %v6001_v63 = vpack.c.bf16 %v5888_v38, %v5872_v23  ;;  %v5757_v26 = vpop.f32.mrb[52].mxu0 }
 0x56d   : > { %v5758_v60 = vadd.f32 %v5757_v26, %v10692_v46  ;;  %v5759_v62 = vpop.f32.mrb[53].mxu0 }
 0x56e   : > { %v5760_v7 = vadd.f32 %v5759_v62, %v10692_v46  ;;  %v5761_v33 = vpop.f32.mrb[54].mxu0  ;;  %6308 = vmatprep.subr.bf16.mxu0 %v6001_v63 }
 0x56f   : > { %v5762_v51 = vadd.f32 %v5761_v33, %v10699_v40  ;;  %v5763_v41 = vpop.f32.mrb[55].mxu0  ;;  %6309 = vmatpush1.bf16.msra.mxu0 %v6000_v6  ;;  %v5903_v53 = vmax.f32 %v5758_v60, 0.0 }
 0x570   : > { %v5764_v21 = vadd.f32 %v5763_v41, %v10699_v40  ;;  %v5904_v52 = vmax.f32 %v5760_v7, 0.0 }
 0x571   : > { %v5919_v11 = vmax.f32 %v5762_v51, 0.0 }
 0x572   : > { %v5920_v58 = vmax.f32 %v5764_v21, 0.0 }
 0x573   : > { %v6016_v43 = vpack.c.bf16 %v5919_v11, %v5903_v53 }
 0x574   : > { %v6017_v17 = vpack.c.bf16 %v5920_v58, %v5904_v52  ;;  %v5767_v27 = vpop.f32.mrb[56].mxu0 }
 0x575   : > { %v5768_v12 = vadd.f32 %v5767_v27, %v10706_v31  ;;  %v5769_v61 = vpop.f32.mrb[57].mxu0 }
 0x576   : > { %v5770_v16 = vadd.f32 %v5769_v61, %v10706_v31  ;;  %v5771_v37 = vpop.f32.mrb[58].mxu0  ;;  %6310 = vmatprep.subr.bf16.mxu0 %v6017_v17 }
 0x577   : > { %v5772_v29 = vadd.f32 %v5771_v37, %v10713_v49  ;;  %v5773_v13 = vpop.f32.mrb[59].mxu0  ;;  %6311 = vmatpush1.bf16.msra.mxu0 %v6016_v43  ;;  %v5935_v34 = vmax.f32 %v5768_v12, 0.0 }
 0x578   : > { %v5774_v0 = vadd.f32 %v5773_v13, %v10713_v49  ;;  %v5936_v5 = vmax.f32 %v5770_v16, 0.0 }
 0x579   : > { %v5951_v10 = vmax.f32 %v5772_v29, 0.0 }
 0x57a   : > { %v5952_v59 = vmax.f32 %v5774_v0, 0.0 }
 0x57b   : > { %v6032_v28 = vpack.c.bf16 %v5951_v10, %v5935_v34 }
 0x57c   : > { %v6033_v55 = vpack.c.bf16 %v5952_v59, %v5936_v5  ;;  %v5777_v8 = vpop.f32.mrb[60].mxu0 }
 0x57d   : > { %v5778_v44 = vadd.f32 %v5777_v8, %v10720_v2  ;;  %v5779_v15 = vpop.f32.mrb[61].mxu0 }
 0x57e   : > { %v5780_v36 = vadd.f32 %v5779_v15, %v10720_v2  ;;  %v5781_v30 = vpop.f32.mrb[62].mxu0  ;;  %6312 = vmatprep.subr.bf16.mxu0 %v6033_v55 }
 0x57f   : > { %v5782_v1 = vadd.f32 %v5781_v30, %v10727_v14  ;;  %v5783_v32 = vpop.f32.mrb[63].mxu0  ;;  %6313 = vmatpush1.bf16.msra.mxu0 %v6032_v28  ;;  %v5967_v3 = vmax.f32 %v5778_v44, 0.0 }
 0x580   : > { %v5784_v20 = vadd.f32 %v5783_v32, %v10727_v14  ;;  %v5968_v42 = vmax.f32 %v5780_v36, 0.0 }
 0x581   : > { %v5983_v22 = vmax.f32 %v5782_v1, 0.0 }
 0x582   : > { %v5820_v35 = vpop.f32.mrb[48].mxu1  ;;  %v5984_v45 = vmax.f32 %v5784_v20, 0.0 }
 0x583   : > { %v5821_v4 = vadd.f32 %v5820_v35, %v10679_v57  ;;  %v5822_v9 = vpop.f32.mrb[49].mxu1  ;;  %v6048_v50 = vpack.c.bf16 %v5983_v22, %v5967_v3 }
 0x584   : > { %v5823_v18 = vadd.f32 %v5822_v9, %v10679_v57  ;;  %v5824_v47 = vpop.f32.mrb[50].mxu1  ;;  %v6049_v25 = vpack.c.bf16 %v5984_v45, %v5968_v42  ;;  %v6096_v24 = vpop.f32.mrb[64].mxu0 }
 0x585   : > { %v5825_v54 = vadd.f32 %v5824_v47, %v10685_v48  ;;  %v5826_v19 = vpop.f32.mrb[51].mxu1  ;;  %v10868_v38 = vadd.f32 %v6096_v24, %v10862_v56  ;;  %v6098_v6 = vpop.f32.mrb[65].mxu0  ;;  %v5873_v63 = vmax.f32 %v5821_v4, 0.0 }
 0x586   : > { %v5827_v23 = vadd.f32 %v5826_v19, %v10685_v48  ;;  %6314 = vmatprep.subr.bf16.mxu0 %v6049_v25  ;;  %v10871_v60 = vadd.f32 %v6098_v6, %v10862_v56  ;;  %v6100_v57 = vpop.f32.mrb[66].mxu0  ;;  %v5874_v62 = vmax.f32 %v5823_v18, 0.0 }
 0x587   : > { %v5889_v26 = vmax.f32 %v5825_v54, 0.0  ;;  %6315 = vmatpush1.bf16.msra.mxu0 %v6048_v50  ;;  %v6406_v33 = vand.u32 2147483647, %v10868_v38  ;;  %v6101_v51 = vpop.f32.mrb[67].mxu0 }
 0x588   : > { %v5890_v7 = vmax.f32 %v5827_v23, 0.0  ;;  %v6407_v48 = vand.u32 2147483647, %v10871_v60 }
 0x589   : > { %v6002_v41 = vpack.c.bf16 %v5889_v26, %v5873_v63  ;;  %v6422_v11 = vsub.f32 0.0, %v6406_v33 }
 0x58a   : > { %v6003_v21 = vpack.c.bf16 %v5890_v7, %v5874_v62  ;;  %v5830_v53 = vpop.f32.mrb[52].mxu1  ;;  %6901 = vmatmul.mubr.msk.bf16.vlgmr.msra.gmra.mrb[76].mxu0 %vm6058_vm0, %v10742_v39  ;;  %v6423_v43 = vsub.f32 0.0, %v6407_v48 }
 0x58b   : > { %v5831_v52 = vadd.f32 %v5830_v53, %v10692_v46  ;;  %v5832_v58 = vpop.f32.mrb[53].mxu1  ;;  %v6438_v12 = vmul.f32 1.442695, %v6422_v11 }
 0x58c   : > { %v5833_v17 = vadd.f32 %v5832_v58, %v10692_v46  ;;  %v5834_v27 = vpop.f32.mrb[54].mxu1  ;;  %6349 = vmatprep.subr.bf16.mxu1 %v6003_v21  ;;  %v6440_v37 = vmul.f32 1.442695, %v6423_v43 }
 0x58d   : > { %v5835_v61 = vadd.f32 %v5834_v27, %v10699_v40  ;;  %v5836_v16 = vpop.f32.mrb[55].mxu1  ;;  %6350 = vmatpush1.bf16.msra.mxu1 %v6002_v41  ;;  %7109 = vpow2.f32 %v6438_v12  ;;  %v5905_v13 = vmax.f32 %v5831_v52, 0.0 }
 0x58e   : > { %v5837_v29 = vadd.f32 %v5836_v16, %v10699_v40  ;;  %7111 = vpow2.f32 %v6440_v37  ;;  %v5906_v34 = vmax.f32 %v5833_v17, 0.0  ;;  %v6390_v17 = vmax.f32 %v10868_v38, 0.0 }
 0x58f   : > { %v5921_v0 = vmax.f32 %v5835_v61, 0.0 }
 0x590   : > { %v5922_v10 = vmax.f32 %v5837_v29, 0.0 }
 0x591   : > { %v6018_v5 = vpack.c.bf16 %v5921_v0, %v5905_v13  ;;  %v6391_v0 = vmax.f32 %v10871_v60, 0.0 }
 0x592   : > { %v6019_v59 = vpack.c.bf16 %v5922_v10, %v5906_v34  ;;  %v5840_v28 = vpop.f32.mrb[56].mxu1 }
 0x593   : > { %v5841_v46 = vadd.f32 %v5840_v28, %v10706_v31  ;;  %v5842_v55 = vpop.f32.mrb[57].mxu1 }
 0x594   : > { %v5843_v8 = vadd.f32 %v5842_v55, %v10706_v31  ;;  %v5844_v44 = vpop.f32.mrb[58].mxu1  ;;  %6351 = vmatprep.subr.bf16.mxu1 %v6019_v59 }
 0x595   : > { %v5845_v15 = vadd.f32 %v5844_v44, %v10713_v49  ;;  %v5846_v36 = vpop.f32.mrb[59].mxu1  ;;  %6352 = vmatpush1.bf16.msra.mxu1 %v6018_v5  ;;  %v5937_v30 = vmax.f32 %v5841_v46, 0.0 }
 0x596   : > { %v5847_v40 = vadd.f32 %v5846_v36, %v10713_v49  ;;  %v5938_v20 = vmax.f32 %v5843_v8, 0.0 }
 0x597   : > { %v5953_v1 = vmax.f32 %v5845_v15, 0.0  ;;  %v7110_v32 = vpop.eup %7109 }
 0x598   : > { %v5954_v35 = vmax.f32 %v5847_v40, 0.0  ;;  %v7112_v3 = vpop.eup %7111  ;;  %v6470_v4 = vadd.f32 1.0, %v7110_v32  ;;  %v6473_v25 = vmul.f32 -0.5, %v7110_v32  ;;  %v6476_v33 = vand.u32 2147483647, %v7110_v32 }
 0x599   : > { %v6034_v22 = vpack.c.bf16 %v5953_v1, %v5937_v30  ;;  %v6479_v45 = vadd.f32 1.0, %v7112_v3  ;;  %v6482_v6 = vmul.f32 -0.5, %v7112_v3  ;;  %v6485_v21 = vand.u32 2147483647, %v7112_v3 }
 0x59a   : > { %v6035_v9 = vpack.c.bf16 %v5954_v35, %v5938_v20  ;;  %v5850_v42 = vpop.f32.mrb[60].mxu1  ;;  %7113 = vlog2.f32 %v6470_v4  ;;  %v6474_v7 = vadd.f32 1.0, %v6473_v25  ;;  %vm6477_vm10 = vcmp.lt.f32.partialorder %v6476_v33, 0.0004427343 }
 0x59b   : > { %v5851_v31 = vadd.f32 %v5850_v42, %v10720_v2  ;;  %v5852_v18 = vpop.f32.mrb[61].mxu1  ;;  %7115 = vlog2.f32 %v6479_v45  ;;  %v6483_v41 = vadd.f32 1.0, %v6482_v6  ;;  %vm6486_vm13 = vcmp.lt.f32.partialorder %v6485_v21, 0.0004427343 }
 0x59c   : > { %v5853_v47 = vadd.f32 %v5852_v18, %v10720_v2  ;;  %v5854_v50 = vpop.f32.mrb[62].mxu1  ;;  %6353 = vmatprep.subr.bf16.mxu1 %v6035_v9  ;;  %v6475_v12 = vmul.f32 %v7110_v32, %v6474_v7 }
 0x59d   : > { %v5855_v49 = vadd.f32 %v5854_v50, %v10727_v14  ;;  %v5856_v54 = vpop.f32.mrb[63].mxu1  ;;  %6354 = vmatpush1.bf16.msra.mxu1 %v6034_v22  ;;  %v5969_v24 = vmax.f32 %v5851_v31, 0.0  ;;  %v6484_v29 = vmul.f32 %v7112_v3, %v6483_v41 }
 0x59e   : > { %v5857_v19 = vadd.f32 %v5856_v54, %v10727_v14  ;;  %v5970_v63 = vmax.f32 %v5853_v47, 0.0 }
 0x59f   : > { %v5985_v23 = vmax.f32 %v5855_v49, 0.0 }
 0x5a0   : > { %v5986_v26 = vmax.f32 %v5857_v19, 0.0 }
 0x5a1   : > { %v6050_v57 = vpack.c.bf16 %v5985_v23, %v5969_v24 }
 0x5a2   : > { %v6051_v62 = vpack.c.bf16 %v5986_v26, %v5970_v63  ;;  %v6137_v2 = vpop.f32.mrb[64].mxu1 }
 0x5a3   : > { %v6138_v51 = vadd.f32 %v6137_v2, %v10862_v56  ;;  %v6139_v48 = vpop.f32.mrb[65].mxu1 }
 0x5a4   : > { %6355 = vmatprep.subr.bf16.mxu1 %v6051_v62  ;;  %v6140_v14 = vadd.f32 %v6139_v48, %v10862_v56  ;;  %v6141_v53 = vpop.f32.mrb[66].mxu1  ;;  %v7114_v11 = vpop.eup %7113 }
 0x5a5   : > { %6356 = vmatpush1.bf16.msra.mxu1 %v6050_v57  ;;  %v6408_v52 = vand.u32 2147483647, %v6138_v51  ;;  %v6142_v58 = vpop.f32.mrb[67].mxu1  ;;  %v7116_v43 = vpop.eup %7115  ;;  %v6472_v27 = vmul.f32 0.6931472, %v7114_v11  ;;  %v6392_v22 = vmax.f32 %v6138_v51, 0.0 }
 0x5a6   : > { %v6409_v61 = vand.u32 2147483647, %v6140_v14  ;;  %v6481_v37 = vmul.f32 0.6931472, %v7116_v43  ;;  %v6393_v45 = vmax.f32 %v6140_v14, 0.0 }
 0x5a7   : > { %v6424_v16 = vsub.f32 0.0, %v6408_v52  ;;  %v6478_v13 = vsel %vm6477_vm10, %v6475_v12, %v6472_v27 }
 0x5a8   : > { %6902 = vmatmul.mubr.msk.bf16.vlgmr.msra.gmra.mrb[76].mxu1 %vm6058_vm0, %v10742_v39  ;;  %v6425_v34 = vsub.f32 0.0, %v6409_v61  ;;  %v6614_v10 = vadd.f32 %v6478_v13, %v6390_v17  ;;  %v6487_v38 = vsel %vm6486_vm13, %v6484_v29, %v6481_v37 }
 0x5a9   : > { %v6442_v5 = vmul.f32 1.442695, %v6424_v16  ;;  %v6615_v59 = vadd.f32 %v6487_v38, %v6391_v0 }
 0x5aa   : > { %v6444_v28 = vmul.f32 1.442695, %v6425_v34 }
 0x5ab   : > { %7117 = vpow2.f32 %v6442_v5  ;;  %v6646_v46 = vcombine.low %v6614_v10, %v6615_v59 }
 0x5ac   : > { %7119 = vpow2.f32 %v6444_v28 }
 0x5ad   : > { %6662 = vst [vmem:[%s10898_s26] sm:$0x77] %v6646_v46 }
 0x5b5   : > { %v7118_v39 = vpop.eup %7117 }
 0x5b6   : > { %v7120_v55 = vpop.eup %7119  ;;  %v6488_v8 = vadd.f32 1.0, %v7118_v39  ;;  %v6491_v60 = vmul.f32 -0.5, %v7118_v39  ;;  %v6494_v40 = vand.u32 2147483647, %v7118_v39 }
 0x5b7   : > { %v6497_v44 = vadd.f32 1.0, %v7120_v55  ;;  %v6500_v15 = vmul.f32 -0.5, %v7120_v55  ;;  %v6503_v1 = vand.u32 2147483647, %v7120_v55 }
 0x5b8   : > { %7121 = vlog2.f32 %v6488_v8  ;;  %v6492_v36 = vadd.f32 1.0, %v6491_v60  ;;  %vm6495_vm12 = vcmp.lt.f32.partialorder %v6494_v40, 0.0004427343 }
 0x5b9   : > { %7123 = vlog2.f32 %v6497_v44  ;;  %v6501_v30 = vadd.f32 1.0, %v6500_v15  ;;  %vm6504_vm14 = vcmp.lt.f32.partialorder %v6503_v1, 0.0004427343 }
 0x5ba   : > { %v6493_v3 = vmul.f32 %v7118_v39, %v6492_v36 }
 0x5bb   : > { %v6502_v9 = vmul.f32 %v7120_v55, %v6501_v30 }
 0x5c2   : > { %v7122_v32 = vpop.eup %7121 }
 0x5c3   : > { %v7124_v20 = vpop.eup %7123  ;;  %v6490_v35 = vmul.f32 0.6931472, %v7122_v32 }
 0x5c4   : > { %v6499_v4 = vmul.f32 0.6931472, %v7124_v20  ;;  %v6178_v31 = vpop.f32.mrb[68].mxu0 }
 0x5c5   : > { %v6496_v42 = vsel %vm6495_vm12, %v6493_v3, %v6490_v35  ;;  %v6179_v50 = vadd.f32 %v6178_v31, %v10862_v56  ;;  %v6180_v49 = vpop.f32.mrb[69].mxu0 }
 0x5c6   : > { %v6616_v18 = vadd.f32 %v6496_v42, %v6392_v22  ;;  %v6505_v47 = vsel %vm6504_vm14, %v6502_v9, %v6499_v4  ;;  %v6181_v19 = vadd.f32 %v6180_v49, %v10862_v56  ;;  %v6182_v25 = vpop.f32.mrb[70].mxu0 }
 0x5c7   : > { %v6617_v54 = vadd.f32 %v6505_v47, %v6393_v45  ;;  %v6410_v24 = vand.u32 2147483647, %v6179_v50  ;;  %v6183_v23 = vpop.f32.mrb[71].mxu0  ;;  %v6394_v13 = vmax.f32 %v6179_v50, 0.0 }
 0x5c8   : > { %v6411_v63 = vand.u32 2147483647, %v6181_v19  ;;  %v6395_v46 = vmax.f32 %v6181_v19, 0.0 }
 0x5c9   : > { %v6647_v6 = vcombine.low %v6616_v18, %v6617_v54  ;;  %v6426_v26 = vsub.f32 0.0, %v6410_v24 }
 0x5ca   : > { %v6427_v57 = vsub.f32 0.0, %v6411_v63 }
 0x5cb   : > { %6663 = vst [vmem:[%s10898_s26 + $0x8] sm:$0x77] %v6647_v6  ;;  %v6446_v62 = vmul.f32 1.442695, %v6426_v26 }
 0x5cc   : > { %v6448_v7 = vmul.f32 1.442695, %v6427_v57 }
 0x5cd   : > { %7125 = vpow2.f32 %v6446_v62 }
 0x5ce   : > { %7127 = vpow2.f32 %v6448_v7 }
 0x5d7   : > { %v7126_v2 = vpop.eup %7125 }
 0x5d8   : > { %v7128_v33 = vpop.eup %7127  ;;  %v6506_v51 = vadd.f32 1.0, %v7126_v2  ;;  %v6509_v48 = vmul.f32 -0.5, %v7126_v2  ;;  %v6512_v11 = vand.u32 2147483647, %v7126_v2 }
 0x5d9   : > { %v6515_v41 = vadd.f32 1.0, %v7128_v33  ;;  %v6518_v21 = vmul.f32 -0.5, %v7128_v33  ;;  %v6521_v17 = vand.u32 2147483647, %v7128_v33 }
 0x5da   : > { %7129 = vlog2.f32 %v6506_v51  ;;  %v6510_v14 = vadd.f32 1.0, %v6509_v48  ;;  %vm6513_vm15 = vcmp.lt.f32.partialorder %v6512_v11, 0.0004427343 }
 0x5db   : > { %7131 = vlog2.f32 %v6515_v41  ;;  %v6519_v58 = vadd.f32 1.0, %v6518_v21  ;;  %vm6522_vm5 = vcmp.lt.f32.partialorder %v6521_v17, 0.0004427343 }
 0x5dc   : > { %v6511_v34 = vmul.f32 %v7126_v2, %v6510_v14 }
 0x5dd   : > { %v6520_v59 = vmul.f32 %v7128_v33, %v6519_v58 }
 0x5e2   : > { %v6219_v53 = vpop.f32.mrb[68].mxu1 }
 0x5e3   : > { %v6220_v52 = vadd.f32 %v6219_v53, %v10862_v56  ;;  %v6221_v43 = vpop.f32.mrb[69].mxu1 }
 0x5e4   : > { %v6222_v27 = vadd.f32 %v6221_v43, %v10862_v56  ;;  %v6223_v12 = vpop.f32.mrb[70].mxu1  ;;  %v7130_v61 = vpop.eup %7129 }
 0x5e5   : > { %v6412_v16 = vand.u32 2147483647, %v6220_v52  ;;  %v6224_v37 = vpop.f32.mrb[71].mxu1  ;;  %v7132_v29 = vpop.eup %7131  ;;  %v6508_v0 = vmul.f32 0.6931472, %v7130_v61  ;;  %v6396_v47 = vmax.f32 %v6220_v52, 0.0 }
 0x5e6   : > { %v6413_v10 = vand.u32 2147483647, %v6222_v27  ;;  %v6517_v38 = vmul.f32 0.6931472, %v7132_v29  ;;  %v6397_v19 = vmax.f32 %v6222_v27, 0.0 }
 0x5e7   : > { %v6428_v5 = vsub.f32 0.0, %v6412_v16  ;;  %v6514_v28 = vsel %vm6513_vm15, %v6511_v34, %v6508_v0 }
 0x5e8   : > { %v6429_v39 = vsub.f32 0.0, %v6413_v10  ;;  %v6618_v55 = vadd.f32 %v6514_v28, %v6394_v13  ;;  %v6523_v44 = vsel %vm6522_vm5, %v6520_v59, %v6517_v38 }
 0x5e9   : > { %v6450_v8 = vmul.f32 1.442695, %v6428_v5  ;;  %v6619_v60 = vadd.f32 %v6523_v44, %v6395_v46 }
 0x5ea   : > { %v6452_v15 = vmul.f32 1.442695, %v6429_v39 }
 0x5eb   : > { %7133 = vpow2.f32 %v6450_v8  ;;  %v6648_v36 = vcombine.low %v6618_v55, %v6619_v60 }
 0x5ec   : > { %7135 = vpow2.f32 %v6452_v15 }
 0x5ed   : > { %6664 = vst [vmem:[%s10898_s26 + $0x10] sm:$0x77] %v6648_v36 }
 0x5f5   : > { %v7134_v40 = vpop.eup %7133 }
 0x5f6   : > { %v7136_v30 = vpop.eup %7135  ;;  %v6524_v1 = vadd.f32 1.0, %v7134_v40  ;;  %v6527_v20 = vmul.f32 -0.5, %v7134_v40  ;;  %v6530_v22 = vand.u32 2147483647, %v7134_v40 }
 0x5f7   : > { %v6533_v32 = vadd.f32 1.0, %v7136_v30  ;;  %v6536_v35 = vmul.f32 -0.5, %v7136_v30  ;;  %v6539_v9 = vand.u32 2147483647, %v7136_v30 }
 0x5f8   : > { %7137 = vlog2.f32 %v6524_v1  ;;  %v6528_v3 = vadd.f32 1.0, %v6527_v20  ;;  %vm6531_vm1 = vcmp.lt.f32.partialorder %v6530_v22, 0.0004427343 }
 0x5f9   : > { %7139 = vlog2.f32 %v6533_v32  ;;  %v6537_v4 = vadd.f32 1.0, %v6536_v35  ;;  %vm6540_vm2 = vcmp.lt.f32.partialorder %v6539_v9, 0.0004427343 }
 0x5fa   : > { %v6529_v18 = vmul.f32 %v7134_v40, %v6528_v3 }
 0x5fb   : > { %v6538_v49 = vmul.f32 %v7136_v30, %v6537_v4 }
 0x602   : > { %v7138_v42 = vpop.eup %7137 }
 0x603   : > { %v7140_v45 = vpop.eup %7139  ;;  %v6526_v31 = vmul.f32 0.6931472, %v7138_v42 }
 0x604   : > { %v6535_v50 = vmul.f32 0.6931472, %v7140_v45  ;;  %v6260_v25 = vpop.f32.mrb[72].mxu0 }
 0x605   : > { %v6532_v54 = vsel %vm6531_vm1, %v6529_v18, %v6526_v31  ;;  %v6261_v6 = vadd.f32 %v6260_v25, %v10862_v56  ;;  %v6262_v63 = vpop.f32.mrb[73].mxu0 }
 0x606   : > { %v6620_v24 = vadd.f32 %v6532_v54, %v6396_v47  ;;  %v6541_v23 = vsel %vm6540_vm2, %v6538_v49, %v6535_v50  ;;  %v6263_v57 = vadd.f32 %v6262_v63, %v10862_v56  ;;  %v6264_v62 = vpop.f32.mrb[74].mxu0 }
 0x607   : > { %v6621_v26 = vadd.f32 %v6541_v23, %v6397_v19  ;;  %v6414_v7 = vand.u32 2147483647, %v6261_v6  ;;  %v6265_v2 = vpop.f32.mrb[75].mxu0  ;;  %v6398_v28 = vmax.f32 %v6261_v6, 0.0 }
 0x608   : > { %v6415_v51 = vand.u32 2147483647, %v6263_v57  ;;  %v6399_v36 = vmax.f32 %v6263_v57, 0.0 }
 0x609   : > { %v6649_v33 = vcombine.low %v6620_v24, %v6621_v26  ;;  %v6430_v41 = vsub.f32 0.0, %v6414_v7 }
 0x60a   : > { %v6431_v48 = vsub.f32 0.0, %v6415_v51 }
 0x60b   : > { %6665 = vst [vmem:[%s10898_s26 + $0x18] sm:$0x77] %v6649_v33  ;;  %v6454_v21 = vmul.f32 1.442695, %v6430_v41 }
 0x60c   : > { %v6456_v14 = vmul.f32 1.442695, %v6431_v48 }
 0x60d   : > { %7141 = vpow2.f32 %v6454_v21 }
 0x60e   : > { %7143 = vpow2.f32 %v6456_v14 }
 0x617   : > { %v7142_v53 = vpop.eup %7141 }
 0x618   : > { %v7144_v11 = vpop.eup %7143  ;;  %v6542_v52 = vadd.f32 1.0, %v7142_v53  ;;  %v6545_v43 = vmul.f32 -0.5, %v7142_v53  ;;  %v6548_v61 = vand.u32 2147483647, %v7142_v53 }
 0x619   : > { %v6551_v58 = vadd.f32 1.0, %v7144_v11  ;;  %v6554_v17 = vmul.f32 -0.5, %v7144_v11  ;;  %v6557_v13 = vand.u32 2147483647, %v7144_v11 }
 0x61a   : > { %7145 = vlog2.f32 %v6542_v52  ;;  %v6546_v27 = vadd.f32 1.0, %v6545_v43  ;;  %vm6549_vm3 = vcmp.lt.f32.partialorder %v6548_v61, 0.0004427343 }
 0x61b   : > { %7147 = vlog2.f32 %v6551_v58  ;;  %v6555_v37 = vadd.f32 1.0, %v6554_v17  ;;  %vm6558_vm4 = vcmp.lt.f32.partialorder %v6557_v13, 0.0004427343 }
 0x61c   : > { %v6547_v39 = vmul.f32 %v7142_v53, %v6546_v27 }
 0x61d   : > { %v6556_v60 = vmul.f32 %v7144_v11, %v6555_v37 }
 0x622   : > { %v6301_v12 = vpop.f32.mrb[72].mxu1 }
 0x623   : > { %v6302_v16 = vadd.f32 %v6301_v12, %v10862_v56  ;;  %v6303_v29 = vpop.f32.mrb[73].mxu1 }
 0x624   : > { %v6304_v0 = vadd.f32 %v6303_v29, %v10862_v56  ;;  %v6305_v34 = vpop.f32.mrb[74].mxu1  ;;  %v7146_v10 = vpop.eup %7145 }
 0x625   : > { %v6416_v5 = vand.u32 2147483647, %v6302_v16  ;;  %v6306_v38 = vpop.f32.mrb[75].mxu1  ;;  %v7148_v59 = vpop.eup %7147  ;;  %v6544_v46 = vmul.f32 0.6931472, %v7146_v10  ;;  %v6400_v23 = vmax.f32 %v6302_v16, 0.0 }
 0x626   : > { %v6417_v55 = vand.u32 2147483647, %v6304_v0  ;;  %v6553_v44 = vmul.f32 0.6931472, %v7148_v59  ;;  %v6401_v57 = vmax.f32 %v6304_v0, 0.0 }
 0x627   : > { %v6432_v8 = vsub.f32 0.0, %v6416_v5  ;;  %v6550_v15 = vsel %vm6549_vm3, %v6547_v39, %v6544_v46 }
 0x628   : > { %v6433_v40 = vsub.f32 0.0, %v6417_v55  ;;  %v6622_v30 = vadd.f32 %v6550_v15, %v6398_v28  ;;  %v6559_v32 = vsel %vm6558_vm4, %v6556_v60, %v6553_v44 }
 0x629   : > { %v6458_v1 = vmul.f32 1.442695, %v6432_v8  ;;  %v6623_v20 = vadd.f32 %v6559_v32, %v6399_v36 }
 0x62a   : > { %v6460_v35 = vmul.f32 1.442695, %v6433_v40 }
 0x62b   : > { %7149 = vpow2.f32 %v6458_v1  ;;  %v6650_v3 = vcombine.low %v6622_v30, %v6623_v20 }
 0x62c   : > { %7151 = vpow2.f32 %v6460_v35 }
 0x62d   : > { %6666 = vst [vmem:[%s10898_s26 + $0x20] sm:$0x77] %v6650_v3 }
 0x635   : > { %v7150_v22 = vpop.eup %7149 }
 0x636   : > { %v7152_v4 = vpop.eup %7151  ;;  %v6560_v9 = vadd.f32 1.0, %v7150_v22  ;;  %v6563_v45 = vmul.f32 -0.5, %v7150_v22  ;;  %v6566_v47 = vand.u32 2147483647, %v7150_v22 }
 0x637   : > { %v6569_v42 = vadd.f32 1.0, %v7152_v4  ;;  %v6572_v31 = vmul.f32 -0.5, %v7152_v4  ;;  %v6575_v49 = vand.u32 2147483647, %v7152_v4 }
 0x638   : > { %7153 = vlog2.f32 %v6560_v9  ;;  %v6564_v18 = vadd.f32 1.0, %v6563_v45  ;;  %vm6567_vm6 = vcmp.lt.f32.partialorder %v6566_v47, 0.0004427343 }
 0x639   : > { %7155 = vlog2.f32 %v6569_v42  ;;  %v6573_v50 = vadd.f32 1.0, %v6572_v31  ;;  %vm6576_vm7 = vcmp.lt.f32.partialorder %v6575_v49, 0.0004427343 }
 0x63a   : > { %v6565_v24 = vmul.f32 %v7150_v22, %v6564_v18 }
 0x63b   : > { %v6574_v63 = vmul.f32 %v7152_v4, %v6573_v50 }
 0x642   : > { %v7154_v54 = vpop.eup %7153 }
 0x643   : > { %v7156_v19 = vpop.eup %7155  ;;  %v6562_v25 = vmul.f32 0.6931472, %v7154_v54 }
 0x644   : > { %v6571_v6 = vmul.f32 0.6931472, %v7156_v19 }
 0x645   : > { %v6568_v26 = vsel %vm6567_vm6, %v6565_v24, %v6562_v25 }
 0x646   : > { %v6624_v62 = vadd.f32 %v6568_v26, %v6400_v23  ;;  %v6577_v7 = vsel %vm6576_vm7, %v6574_v63, %v6571_v6 }
 0x647   : > { %v6625_v2 = vadd.f32 %v6577_v7, %v6401_v57 }
 0x649   : > { %v6651_v33 = vcombine.low %v6624_v62, %v6625_v2 }
 0x64b   : > { %6667 = vst [vmem:[%s10898_s26 + $0x28] sm:$0x77] %v6651_v33 }
 0x65d   : > { %v6342_v51 = vpop.f32.mrb[76].mxu0 }
 0x65e   : > { %v6343_v41 = vadd.f32 %v6342_v51, %v10862_v56  ;;  %v6344_v48 = vpop.f32.mrb[77].mxu0 }
 0x65f   : > { %v6345_v21 = vadd.f32 %v6344_v48, %v10862_v56  ;;  %v6346_v14 = vpop.f32.mrb[78].mxu0 }
 0x660   : > { %v6418_v53 = vand.u32 2147483647, %v6343_v41  ;;  %v6347_v11 = vpop.f32.mrb[79].mxu0  ;;  %v6402_v15 = vmax.f32 %v6343_v41, 0.0 }
 0x661   : > { %v6419_v52 = vand.u32 2147483647, %v6345_v21  ;;  %v6403_v3 = vmax.f32 %v6345_v21, 0.0 }
 0x662   : > { %v6434_v58 = vsub.f32 0.0, %v6418_v53 }
 0x663   : > { %v6435_v43 = vsub.f32 0.0, %v6419_v52 }
 0x664   : > { %v6462_v17 = vmul.f32 1.442695, %v6434_v58 }
 0x665   : > { %v6464_v27 = vmul.f32 1.442695, %v6435_v43 }
 0x666   : > { %7157 = vpow2.f32 %v6462_v17 }
 0x667   : > { %7159 = vpow2.f32 %v6464_v27 }
 0x670   : > { %v7158_v12 = vpop.eup %7157 }
 0x671   : > { %v7160_v61 = vpop.eup %7159  ;;  %v6578_v16 = vadd.f32 1.0, %v7158_v12  ;;  %v6581_v29 = vmul.f32 -0.5, %v7158_v12  ;;  %v6584_v10 = vand.u32 2147483647, %v7158_v12 }
 0x672   : > { %v6587_v37 = vadd.f32 1.0, %v7160_v61  ;;  %v6590_v13 = vmul.f32 -0.5, %v7160_v61  ;;  %v6593_v28 = vand.u32 2147483647, %v7160_v61 }
 0x673   : > { %7161 = vlog2.f32 %v6578_v16  ;;  %v6582_v0 = vadd.f32 1.0, %v6581_v29  ;;  %vm6585_vm9 = vcmp.lt.f32.partialorder %v6584_v10, 0.0004427343 }
 0x674   : > { %7163 = vlog2.f32 %v6587_v37  ;;  %v6591_v38 = vadd.f32 1.0, %v6590_v13  ;;  %vm6594_vm11 = vcmp.lt.f32.partialorder %v6593_v28, 0.0004427343 }
 0x675   : > { %v6583_v40 = vmul.f32 %v7158_v12, %v6582_v0 }
 0x676   : > { %v6592_v20 = vmul.f32 %v7160_v61, %v6591_v38 }
 0x67b   : > { %v6383_v34 = vpop.f32.mrb[76].mxu1 }
 0x67c   : > { %v6384_v5 = vadd.f32 %v6383_v34, %v10862_v56  ;;  %v6385_v59 = vpop.f32.mrb[77].mxu1 }
 0x67d   : > { %v6386_v46 = vadd.f32 %v6385_v59, %v10862_v56  ;;  %v6387_v39 = vpop.f32.mrb[78].mxu1  ;;  %v7162_v55 = vpop.eup %7161 }
 0x67e   : > { %v6420_v8 = vand.u32 2147483647, %v6384_v5  ;;  %v6388_v44 = vpop.f32.mrb[79].mxu1  ;;  %v7164_v60 = vpop.eup %7163  ;;  %v6580_v36 = vmul.f32 0.6931472, %v7162_v55  ;;  %v6404_v7 = vmax.f32 %v6384_v5, 0.0 }
 0x67f   : > { %v6421_v30 = vand.u32 2147483647, %v6386_v46  ;;  %v6589_v32 = vmul.f32 0.6931472, %v7164_v60  ;;  %v6405_v41 = vmax.f32 %v6386_v46, 0.0 }
 0x680   : > { %v6436_v1 = vsub.f32 0.0, %v6420_v8  ;;  %v6586_v35 = vsel %vm6585_vm9, %v6583_v40, %v6580_v36 }
 0x681   : > { %v6437_v22 = vsub.f32 0.0, %v6421_v30  ;;  %v6626_v4 = vadd.f32 %v6586_v35, %v6402_v15  ;;  %v6595_v9 = vsel %vm6594_vm11, %v6592_v20, %v6589_v32 }
 0x682   : > { %v6466_v56 = vmul.f32 1.442695, %v6436_v1  ;;  %v6627_v42 = vadd.f32 %v6595_v9, %v6403_v3 }
 0x683   : > { %v6468_v45 = vmul.f32 1.442695, %v6437_v22 }
 0x684   : > { %7165 = vpow2.f32 %v6466_v56  ;;  %v6652_v31 = vcombine.low %v6626_v4, %v6627_v42 }
 0x685   : > { %7167 = vpow2.f32 %v6468_v45 }
 0x686   : > { %6668 = vst [vmem:[%s10898_s26 + $0x30] sm:$0x77] %v6652_v31 }
 0x68e   : > { %v7166_v18 = vpop.eup %7165 }
 0x68f   : > { %v7168_v47 = vpop.eup %7167  ;;  %v6596_v50 = vadd.f32 1.0, %v7166_v18  ;;  %v6599_v54 = vmul.f32 -0.5, %v7166_v18  ;;  %v6602_v24 = vand.u32 2147483647, %v7166_v18 }
 0x690   : > { %v6605_v49 = vadd.f32 1.0, %v7168_v47  ;;  %v6608_v19 = vmul.f32 -0.5, %v7168_v47  ;;  %v6611_v6 = vand.u32 2147483647, %v7168_v47 }
 0x691   : > { %7169 = vlog2.f32 %v6596_v50  ;;  %v6600_v25 = vadd.f32 1.0, %v6599_v54  ;;  %vm6603_vm8 = vcmp.lt.f32.partialorder %v6602_v24, 0.0004427343 }
 0x692   : > { %7171 = vlog2.f32 %v6605_v49  ;;  %v6609_v23 = vadd.f32 1.0, %v6608_v19  ;;  %vm6612_vm0 = vcmp.lt.f32.partialorder %v6611_v6, 0.0004427343 }
 0x693   : > { %v6601_v62 = vmul.f32 %v7166_v18, %v6600_v25 }
 0x694   : > { %v6610_v33 = vmul.f32 %v7168_v47, %v6609_v23 }
 0x69b   : > { %v7170_v63 = vpop.eup %7169 }
 0x69c   : > { %v7172_v26 = vpop.eup %7171  ;;  %v6598_v57 = vmul.f32 0.6931472, %v7170_v63 }
 0x69d   : > { %v6607_v2 = vmul.f32 0.6931472, %v7172_v26 }
 0x69e   : > { %v6604_v51 = vsel %vm6603_vm8, %v6601_v62, %v6598_v57 }
 0x69f   : > { %v6628_v48 = vadd.f32 %v6604_v51, %v6404_v7  ;;  %v6613_v21 = vsel %vm6612_vm0, %v6610_v33, %v6607_v2 }
 0x6a0   : > { %v6629_v14 = vadd.f32 %v6613_v21, %v6405_v41 }
 0x6a2   : > { %v6653_v53 = vcombine.low %v6628_v48, %v6629_v14 }
 0x6a4   : > { %6669 = vst [vmem:[%s10898_s26 + $0x38] sm:$0x77] %v6653_v53 }
 0x6a5   : > { %7218 = shalt.err (!%p7215_p3)
}
 0x6a6   : > { %s7219_s21 = scalar_lea.hbm %s10924_s11, 1024  ;;  %s7223_s28 = scalar_lea.hbm %s10979_s10, 3072 }
 0x6a7   : > { %p7220_p4 = scmp.ne.s32.totalorder %s10924_s11, %s7219_s21  ;;  %p7224_p9 = scmp.lt.u32.totalorder %s10924_s11, %s10979_s10 }
 0x6a8   : > { %p7225_p10 = scmp.lt.u32.totalorder %s7223_s28, %s7219_s21  ;;  %p7227_p12 = scmp.lt.u32.totalorder %s7219_s21, %s10924_s11 }
 0x6a9   : > { %p7221_p7 = pnand %p7220_p4, %p7372_p5 }
 0x6aa   : > { %p7226_p11 = por %p7225_p10, %p7224_p9 }
 0x6ab   : > { %p7222_p8 = pneg %p7221_p7 }
 0x6ac   : > { %p7228_p13 = por %p7227_p12, %p7226_p11 }
 0x6ae   : > { %p7229_p0 = pnand %p7228_p13, %p7222_p8 }
 0x6b0   : > { %7232 = shalt.err (!%p7229_p0)
}
 0x6b1   : > { %6973 = dma.vmem_to_hbm [thread:$0]  (%p7372_p5), %s10926_s30, 1024, %s10924_s11, %s6671_s12  }
 0x6b2 PF: > { %p6979_p1 = scmp.ge.s32.totalorder %s7267_s16, 2  ;;  %s6697_s18 = sand.u32 1, %s7255_s13  }
 0x6b3   : > { %s6698_s20 = scalar_lea.sflag [#allocation3], %s6697_s18 }
 0x6b4   : > { %p6976_p2 = pnand %p6979_p1, %p7376_p6 }
 0x6b6   : > { %7250 = dma.done.wait (!%p6976_p2), %s6698_s20, 1024  }
 0x6b7   : > { %7252 = vsyncadd (!%p6976_p2), %s6698_s20, 4294966272  ;;  %p20_p3 = scmp.ge.s32.totalorder %s7359_s19, 5   ;;  %s11057_s13 = smov %s7259_s14 }
 0x6b8   : > { %s11058_s14 = smov %s7263_s15  ;;  %s11059_s15 = smov %s7370_s22 }
 0x6b9   : > { %s11060_s16 = smov %s7359_s19  ;;  %22 = sbr.rel (!%p20_p3) target bundleno = 3 (0x3), region = 95 }
 0x6c0   :  { %6703 = vsyncpa [#allocation3], 1 }
 0x6c1   :  { %6705 = vsyncpa [#allocation3 + $0x1], 1 }

</bundles_post_ra>
